<compile_context>
chip_gen: v5e
topology: v5e:2x2
jax: 0.10.0
libtpu: 0.0.40
codegen_flags: <defaults>
</compile_context>

<pallas_src>
import numpy as np

import jax
import jax.numpy as jnp
from jax.experimental import pallas as pl
from jax.experimental.pallas import tpu as pltpu


# ------------------------- aux 0/1 gather matrices ---------------------------
# Built once with numpy in prepare_params(); passed to the kernel and kept
# VMEM-resident.  All "layout" work (zero padding, maxpool site selection,
# transposed-conv pixel shuffle) becomes exact 0/1 matmuls on the MXU.


def _emb_matrix(h, w):
    # (rows_pad, h*w): scatters the flat image into the flat zero-padded image
    # laid out row-major over (h+2, w+2), plus 2 slack rows so every 3x3 tap
    # slice of length h*(w+2) stays in bounds.
    rows = (h + 2) * (w + 2) + 2
    m = np.zeros((rows, h * w), np.float32)
    for i in range(h):
        for j in range(w):
            m[(i + 1) * (w + 2) + (j + 1), i * w + j] = 1.0
    return m


def _pool_sel_matrix(h, w, pad_out):
    # 4 stacked selection matrices (one per 2x2 phase).  Input rows are the
    # conv's "extended" output, row-major over (h, w+2) (the two rightmost
    # columns are junk and never selected).  If pad_out, the output rows are
    # already the next conv's zero-padded flat layout (padding rows stay 0).
    ho, wo = h // 2, w // 2
    in_rows = h * (w + 2)
    if pad_out:
        out_rows = (ho + 2) * (wo + 2) + 2
        dst = lambda i, j: (i + 1) * (wo + 2) + (j + 1)
    else:
        out_rows = ho * wo
        dst = lambda i, j: i * wo + j
    m = np.zeros((4, out_rows, in_rows), np.float32)
    for a in range(2):
        for b in range(2):
            t = 2 * a + b
            for i in range(ho):
                for j in range(wo):
                    m[t, dst(i, j), (2 * i + a) * (w + 2) + (2 * j + b)] = 1.0
    return m.reshape(4 * out_rows, in_rows)


def _shuffle_matrix(h, w):
    # 4 stacked scatter matrices for the ConvTranspose2d(k=2, s=2) pixel
    # shuffle: per tap (kh, kw), input pixel (i, j) lands at output row
    # (2i+kh)*(2w) + (2j+kw) of the (2h, 2w) row-major output.
    out_rows = 4 * h * w
    m = np.zeros((4, out_rows, h * w), np.float32)
    for kh in range(2):
        for kw in range(2):
            t = 2 * kh + kw
            for i in range(h):
                for j in range(w):
                    m[t, (2 * i + kh) * (2 * w) + (2 * j + kw), i * w + j] = 1.0
    return m.reshape(4 * out_rows, h * w)


# ------------------------------- fused kernel --------------------------------


def _fused_kernel(x_ref, emb1_ref, w1_ref, b1_ref, sel1_ref, w2_ref, b2_ref,
                  sel2_ref, w3_ref, b3_ref, sel3_ref, wd1_ref, bd1_ref,
                  pd1_ref, wd2_ref, bd2_ref, pd2_ref, wd3_ref, bd3_ref,
                  pd3_ref, o_ref):
    f32 = jnp.float32

    def conv3x3_relu(p, w, b, h, wdt):
        # p: ((h+2)*(wdt+2)+2, Cin) flat zero-padded image (row-major (h+2, wdt+2)).
        # w: (9*Cin, Cout), tap blocks ordered t = 3*kh + kw.
        # Returns relu(conv + b) over the extended (h, wdt+2) domain; the two
        # rightmost columns per row are junk and are dropped by the pool select.
        wp = wdt + 2
        rows = h * wp
        cin = p.shape[1]
        acc = None
        for kh in range(3):
            for kw in range(3):
                t = 3 * kh + kw
                off = kh * wp + kw
                tap = p[off:off + rows, :]
                contrib = jnp.dot(tap, w[t * cin:(t + 1) * cin, :],
                                  preferred_element_type=f32)
                acc = contrib if acc is None else acc + contrib
        return jnp.maximum(acc + b, 0.0)

    def maxpool2x2(sel, y, out_rows):
        # Max of four 0/1 row-selection matmuls; output is already laid out as
        # the next stage's (zero-padded) input.
        r = None
        for t in range(4):
            m = jnp.dot(sel[t * out_rows:(t + 1) * out_rows, :], y,
                        preferred_element_type=f32)
            r = m if r is None else jnp.maximum(r, m)
        return r

    def conv_t2x2(x, w, b, pd, act):
        # x: (HW, Cin); w: (4*Cin, Cout) tap blocks t = 2*kh + kw;
        # pd: (4*4HW, HW) stacked 0/1 scatter matrices (fused pixel shuffle).
        hw, cin = x.shape
        out_rows = 4 * hw
        s = None
        for t in range(4):
            yt = jnp.dot(x, w[t * cin:(t + 1) * cin, :],
                         preferred_element_type=f32)
            st = jnp.dot(pd[t * out_rows:(t + 1) * out_rows, :], yt,
                         preferred_element_type=f32)
            s = st if s is None else s + st
        s = s + b
        if act == "relu":
            return jnp.maximum(s, 0.0)
        return 1.0 / (1.0 + jnp.exp(-s))        # sigmoid

    x = x_ref[...]                                                  # (256, 3)
    # encoder
    p1 = jnp.dot(emb1_ref[...], x, preferred_element_type=f32)      # (326, 3)
    y1 = conv3x3_relu(p1, w1_ref[...], b1_ref[...], 16, 16)         # (288, 32)
    p2 = maxpool2x2(sel1_ref[...], y1, 102)                         # (102, 32)
    y2 = conv3x3_relu(p2, w2_ref[...], b2_ref[...], 8, 8)           # (80, 64)
    p3 = maxpool2x2(sel2_ref[...], y2, 38)                          # (38, 64)
    y3 = conv3x3_relu(p3, w3_ref[...], b3_ref[...], 4, 4)           # (24, 128)
    z = maxpool2x2(sel3_ref[...], y3, 4)                            # (4, 128)
    # decoder
    d = conv_t2x2(z, wd1_ref[...], bd1_ref[...], pd1_ref[...], "relu")     # (16, 64)
    d = conv_t2x2(d, wd2_ref[...], bd2_ref[...], pd2_ref[...], "relu")     # (64, 32)
    d = conv_t2x2(d, wd3_ref[...], bd3_ref[...], pd3_ref[...], "sigmoid")  # (256, 3)
    o_ref[...] = d.astype(o_ref.dtype)


# ------------------------------ param preparation ----------------------------


def prepare_params(p):
    """One-time (outside jit) weight re-layout + gather-matrix construction."""

    def conv_w(w):      # (Cout, Cin, 3, 3) -> (9*Cin, Cout), taps t = 3*kh+kw
        cout, cin = w.shape[0], w.shape[1]
        return jnp.transpose(w, (2, 3, 1, 0)).reshape(9 * cin, cout)

    def convt_w(w):     # (Cin, Cout, 2, 2) -> (4*Cin, Cout), taps t = 2*kh+kw
        cin, cout = w.shape[0], w.shape[1]
        return jnp.transpose(w, (2, 3, 0, 1)).reshape(4 * cin, cout)

    return {
        "w1": conv_w(p["enc1_w"]), "b1": p["enc1_b"].reshape(1, -1),
        "w2": conv_w(p["enc2_w"]), "b2": p["enc2_b"].reshape(1, -1),
        "w3": conv_w(p["enc3_w"]), "b3": p["enc3_b"].reshape(1, -1),
        "wd1": convt_w(p["dec1_w"]), "bd1": p["dec1_b"].reshape(1, -1),
        "wd2": convt_w(p["dec2_w"]), "bd2": p["dec2_b"].reshape(1, -1),
        "wd3": convt_w(p["dec3_w"]), "bd3": p["dec3_b"].reshape(1, -1),
        "emb1": jnp.asarray(_emb_matrix(16, 16)),
        "sel1": jnp.asarray(_pool_sel_matrix(16, 16, True)),
        "sel2": jnp.asarray(_pool_sel_matrix(8, 8, True)),
        "sel3": jnp.asarray(_pool_sel_matrix(4, 4, False)),
        "pd1": jnp.asarray(_shuffle_matrix(2, 2)),
        "pd2": jnp.asarray(_shuffle_matrix(4, 4)),
        "pd3": jnp.asarray(_shuffle_matrix(8, 8)),
    }


_RESIDENT_ORDER = ("emb1", "w1", "b1", "sel1", "w2", "b2", "sel2",
                   "w3", "b3", "sel3", "wd1", "bd1", "pd1",
                   "wd2", "bd2", "pd2", "wd3", "bd3", "pd3")


# --------------------------------- forward -----------------------------------


def conv_autoencoder(x_nchw, prep):
    N, C, H, W = x_nchw.shape
    assert (C, H, W) == (3, 16, 16), (C, H, W)
    rows = H * W
    x2d = jnp.transpose(x_nchw, (0, 2, 3, 1)).reshape(N * rows, C)

    resident = [prep[k] for k in _RESIDENT_ORDER]
    in_specs = [pl.BlockSpec((rows, C), lambda n: (n, 0))]
    in_specs += [pl.BlockSpec(a.shape, lambda n: (0, 0)) for a in resident]

    out2d = pl.pallas_call(
        _fused_kernel,
        out_shape=jax.ShapeDtypeStruct((N * rows, C), jnp.float32),
        grid_spec=pltpu.PrefetchScalarGridSpec(
            num_scalar_prefetch=0,
            grid=(N,),
            in_specs=in_specs,
            out_specs=pl.BlockSpec((rows, C), lambda n: (n, 0)),
        ),
        compiler_params=pltpu.CompilerParams(
            dimension_semantics=("parallel",)),
    )(x2d, *resident)

    return jnp.transpose(out2d.reshape(N, H, W, C), (0, 3, 1, 2))


# ------------------------------ pure-JAX reference ---------------------------


def _reference(x, p):
    hp = jax.lax.Precision.HIGHEST

    def conv(x, w, b):
        y = jax.lax.conv_general_dilated(
            x, w, (1, 1), [(1, 1), (1, 1)],
            dimension_numbers=("NCHW", "OIHW", "NCHW"), precision=hp)
        return y + b.reshape(1, -1, 1, 1)

    def convT(x, w, b):
        k = w.shape[2]
        w_eq = jnp.transpose(jnp.flip(w, (2, 3)), (1, 0, 2, 3))   # -> OIHW
        y = jax.lax.conv_general_dilated(
            x, w_eq, (1, 1), [(k - 1, k - 1), (k - 1, k - 1)],
            lhs_dilation=(2, 2),
            dimension_numbers=("NCHW", "OIHW", "NCHW"), precision=hp)
        return y + b.reshape(1, -1, 1, 1)

    def pool(x):
        N, C, H, W = x.shape
        return x.reshape(N, C, H // 2, 2, W // 2, 2).max(axis=(3, 5))

    relu = lambda v: jnp.maximum(v, 0.0)
    x = pool(relu(conv(x, p["enc1_w"], p["enc1_b"])))
    x = pool(relu(conv(x, p["enc2_w"], p["enc2_b"])))
    x = pool(relu(conv(x, p["enc3_w"], p["enc3_b"])))
    x = relu(convT(x, p["dec1_w"], p["dec1_b"]))
    x = relu(convT(x, p["dec2_w"], p["dec2_b"]))
    return jax.nn.sigmoid(convT(x, p["dec3_w"], p["dec3_b"]))


# ----------------------------------- main -------------------------------------


def _init_params(key):
    ks = jax.random.split(key, 12)
    f32 = jnp.float32

    def w(k, shape):
        return (0.05 * jax.random.normal(k, shape)).astype(f32)

    def b(k, n):
        return (0.01 * jax.random.normal(k, (n,))).astype(f32)

    return {
        "enc1_w": w(ks[0], (32, 3, 3, 3)),    "enc1_b": b(ks[1], 32),
        "enc2_w": w(ks[2], (64, 32, 3, 3)),   "enc2_b": b(ks[3], 64),
        "enc3_w": w(ks[4], (128, 64, 3, 3)),  "enc3_b": b(ks[5], 128),
        "dec1_w": w(ks[6], (128, 64, 2, 2)),  "dec1_b": b(ks[7], 64),
        "dec2_w": w(ks[8], (64, 32, 2, 2)),   "dec2_b": b(ks[9], 32),
        "dec3_w": w(ks[10], (32, 3, 2, 2)),   "dec3_b": b(ks[11], 3),
    }


if __name__ == "__main__":
    key = jax.random.PRNGKey(0)
    kx, kp = jax.random.split(key)
    x = jax.random.normal(kx, (2, 3, 16, 16), dtype=jnp.float32)   # NCHW
    params = _init_params(kp)
    prep = prepare_params(params)          # one-time layout prep, outside jit

    fwd = jax.jit(conv_autoencoder)
    out = jax.block_until_ready(fwd(x, prep))
    assert out.shape == (2, 3, 16, 16), out.shape

    ref = jax.block_until_ready(jax.jit(_reference)(x, params))
    max_err = float(jnp.max(jnp.abs(out - ref)))
    assert jnp.allclose(out, ref, atol=1e-3, rtol=1e-3), max_err

    print("KERNEL_OK")
</pallas_src>

<mosaic_0001>
module attributes {stable_mosaic.version = 11 : i64} {
  func.func @_fused_kernel(%arg0: i32, %arg1: memref<256x3xf32, #tpu.memory_space<vmem>>, %arg2: memref<326x256xf32, #tpu.memory_space<vmem>>, %arg3: memref<27x32xf32, #tpu.memory_space<vmem>>, %arg4: memref<1x32xf32, #tpu.memory_space<vmem>>, %arg5: memref<408x288xf32, #tpu.memory_space<vmem>>, %arg6: memref<288x64xf32, #tpu.memory_space<vmem>>, %arg7: memref<1x64xf32, #tpu.memory_space<vmem>>, %arg8: memref<152x80xf32, #tpu.memory_space<vmem>>, %arg9: memref<576x128xf32, #tpu.memory_space<vmem>>, %arg10: memref<1x128xf32, #tpu.memory_space<vmem>>, %arg11: memref<16x24xf32, #tpu.memory_space<vmem>>, %arg12: memref<512x64xf32, #tpu.memory_space<vmem>>, %arg13: memref<1x64xf32, #tpu.memory_space<vmem>>, %arg14: memref<64x4xf32, #tpu.memory_space<vmem>>, %arg15: memref<256x32xf32, #tpu.memory_space<vmem>>, %arg16: memref<1x32xf32, #tpu.memory_space<vmem>>, %arg17: memref<256x16xf32, #tpu.memory_space<vmem>>, %arg18: memref<128x3xf32, #tpu.memory_space<vmem>>, %arg19: memref<1x3xf32, #tpu.memory_space<vmem>>, %arg20: memref<1024x64xf32, #tpu.memory_space<vmem>>, %arg21: memref<256x3xf32, #tpu.memory_space<vmem>>) attributes {dimension_semantics = [#tpu.dimension_semantics<parallel>], iteration_bounds = array<i64: 2>, scalar_prefetch = 0 : i64, scratch_operands = 0 : i64, tpu.core_type = #tpu.core_type<tc>, window_params = [{transform_indices = @transform_0, window_bounds = array<i64: 256, 3>}, {pipeline_mode = #tpu.pipeline_mode<synchronous>, transform_indices = @transform_1, window_bounds = array<i64: 326, 256>}, {pipeline_mode = #tpu.pipeline_mode<synchronous>, transform_indices = @transform_2, window_bounds = array<i64: 27, 32>}, {pipeline_mode = #tpu.pipeline_mode<synchronous>, transform_indices = @transform_3, window_bounds = array<i64: 1, 32>}, {pipeline_mode = #tpu.pipeline_mode<synchronous>, transform_indices = @transform_4, window_bounds = array<i64: 408, 288>}, {pipeline_mode = #tpu.pipeline_mode<synchronous>, transform_indices = @transform_5, window_bounds = array<i64: 288, 64>}, {pipeline_mode = #tpu.pipeline_mode<synchronous>, transform_indices = @transform_6, window_bounds = array<i64: 1, 64>}, {pipeline_mode = #tpu.pipeline_mode<synchronous>, transform_indices = @transform_7, window_bounds = array<i64: 152, 80>}, {pipeline_mode = #tpu.pipeline_mode<synchronous>, transform_indices = @transform_8, window_bounds = array<i64: 576, 128>}, {pipeline_mode = #tpu.pipeline_mode<synchronous>, transform_indices = @transform_9, window_bounds = array<i64: 1, 128>}, {pipeline_mode = #tpu.pipeline_mode<synchronous>, transform_indices = @transform_10, window_bounds = array<i64: 16, 24>}, {pipeline_mode = #tpu.pipeline_mode<synchronous>, transform_indices = @transform_11, window_bounds = array<i64: 512, 64>}, {pipeline_mode = #tpu.pipeline_mode<synchronous>, transform_indices = @transform_12, window_bounds = array<i64: 1, 64>}, {pipeline_mode = #tpu.pipeline_mode<synchronous>, transform_indices = @transform_13, window_bounds = array<i64: 64, 4>}, {pipeline_mode = #tpu.pipeline_mode<synchronous>, transform_indices = @transform_14, window_bounds = array<i64: 256, 32>}, {pipeline_mode = #tpu.pipeline_mode<synchronous>, transform_indices = @transform_15, window_bounds = array<i64: 1, 32>}, {pipeline_mode = #tpu.pipeline_mode<synchronous>, transform_indices = @transform_16, window_bounds = array<i64: 256, 16>}, {pipeline_mode = #tpu.pipeline_mode<synchronous>, transform_indices = @transform_17, window_bounds = array<i64: 128, 3>}, {pipeline_mode = #tpu.pipeline_mode<synchronous>, transform_indices = @transform_18, window_bounds = array<i64: 1, 3>}, {pipeline_mode = #tpu.pipeline_mode<synchronous>, transform_indices = @transform_19, window_bounds = array<i64: 1024, 64>}, {transform_indices = @transform_20, window_bounds = array<i64: 256, 3>}]} {
    %c0 = arith.constant 0 : index
    %c0_0 = arith.constant 0 : index
    %0 = vector.load %arg1[%c0, %c0_0] : memref<256x3xf32, #tpu.memory_space<vmem>>, vector<256x3xf32>
    %c0_1 = arith.constant 0 : index
    %c0_2 = arith.constant 0 : index
    %1 = vector.load %arg2[%c0_1, %c0_2] : memref<326x256xf32, #tpu.memory_space<vmem>>, vector<326x256xf32>
    %cst = arith.constant dense<0.000000e+00> : vector<326x3xf32>
    %2 = tpu.matmul %1, %0, %cst {dimension_numbers = #tpu.dot_dimension_numbers<[1], [0], [0], [1], [0, 0, 1, 1], [], []>} : vector<326x256xf32>, vector<256x3xf32>, vector<326x3xf32> -> vector<326x3xf32>
    %c0_3 = arith.constant 0 : index
    %c0_4 = arith.constant 0 : index
    %3 = vector.load %arg3[%c0_3, %c0_4] : memref<27x32xf32, #tpu.memory_space<vmem>>, vector<27x32xf32>
    %c0_5 = arith.constant 0 : index
    %c0_6 = arith.constant 0 : index
    %4 = vector.load %arg4[%c0_5, %c0_6] : memref<1x32xf32, #tpu.memory_space<vmem>>, vector<1x32xf32>
    %5 = vector.extract_strided_slice %2 {offsets = [0, 0], sizes = [288, 3], strides = [1, 1]} : vector<326x3xf32> to vector<288x3xf32>
    %6 = vector.extract_strided_slice %3 {offsets = [0, 0], sizes = [3, 32], strides = [1, 1]} : vector<27x32xf32> to vector<3x32xf32>
    %cst_7 = arith.constant dense<0.000000e+00> : vector<288x32xf32>
    %7 = tpu.matmul %5, %6, %cst_7 {dimension_numbers = #tpu.dot_dimension_numbers<[1], [0], [0], [1], [0, 0, 1, 1], [], []>} : vector<288x3xf32>, vector<3x32xf32>, vector<288x32xf32> -> vector<288x32xf32>
    %8 = vector.extract_strided_slice %2 {offsets = [1, 0], sizes = [288, 3], strides = [1, 1]} : vector<326x3xf32> to vector<288x3xf32>
    %9 = vector.extract_strided_slice %3 {offsets = [3, 0], sizes = [3, 32], strides = [1, 1]} : vector<27x32xf32> to vector<3x32xf32>
    %cst_8 = arith.constant dense<0.000000e+00> : vector<288x32xf32>
    %10 = tpu.matmul %8, %9, %cst_8 {dimension_numbers = #tpu.dot_dimension_numbers<[1], [0], [0], [1], [0, 0, 1, 1], [], []>} : vector<288x3xf32>, vector<3x32xf32>, vector<288x32xf32> -> vector<288x32xf32>
    %11 = arith.addf %7, %10 : vector<288x32xf32>
    %12 = vector.extract_strided_slice %2 {offsets = [2, 0], sizes = [288, 3], strides = [1, 1]} : vector<326x3xf32> to vector<288x3xf32>
    %13 = vector.extract_strided_slice %3 {offsets = [6, 0], sizes = [3, 32], strides = [1, 1]} : vector<27x32xf32> to vector<3x32xf32>
    %cst_9 = arith.constant dense<0.000000e+00> : vector<288x32xf32>
    %14 = tpu.matmul %12, %13, %cst_9 {dimension_numbers = #tpu.dot_dimension_numbers<[1], [0], [0], [1], [0, 0, 1, 1], [], []>} : vector<288x3xf32>, vector<3x32xf32>, vector<288x32xf32> -> vector<288x32xf32>
    %15 = arith.addf %11, %14 : vector<288x32xf32>
    %16 = vector.extract_strided_slice %2 {offsets = [18, 0], sizes = [288, 3], strides = [1, 1]} : vector<326x3xf32> to vector<288x3xf32>
    %17 = vector.extract_strided_slice %3 {offsets = [9, 0], sizes = [3, 32], strides = [1, 1]} : vector<27x32xf32> to vector<3x32xf32>
    %cst_10 = arith.constant dense<0.000000e+00> : vector<288x32xf32>
    %18 = tpu.matmul %16, %17, %cst_10 {dimension_numbers = #tpu.dot_dimension_numbers<[1], [0], [0], [1], [0, 0, 1, 1], [], []>} : vector<288x3xf32>, vector<3x32xf32>, vector<288x32xf32> -> vector<288x32xf32>
    %19 = arith.addf %15, %18 : vector<288x32xf32>
    %20 = vector.extract_strided_slice %2 {offsets = [19, 0], sizes = [288, 3], strides = [1, 1]} : vector<326x3xf32> to vector<288x3xf32>
    %21 = vector.extract_strided_slice %3 {offsets = [12, 0], sizes = [3, 32], strides = [1, 1]} : vector<27x32xf32> to vector<3x32xf32>
    %cst_11 = arith.constant dense<0.000000e+00> : vector<288x32xf32>
    %22 = tpu.matmul %20, %21, %cst_11 {dimension_numbers = #tpu.dot_dimension_numbers<[1], [0], [0], [1], [0, 0, 1, 1], [], []>} : vector<288x3xf32>, vector<3x32xf32>, vector<288x32xf32> -> vector<288x32xf32>
    %23 = arith.addf %19, %22 : vector<288x32xf32>
    %24 = vector.extract_strided_slice %2 {offsets = [20, 0], sizes = [288, 3], strides = [1, 1]} : vector<326x3xf32> to vector<288x3xf32>
    %25 = vector.extract_strided_slice %3 {offsets = [15, 0], sizes = [3, 32], strides = [1, 1]} : vector<27x32xf32> to vector<3x32xf32>
    %cst_12 = arith.constant dense<0.000000e+00> : vector<288x32xf32>
    %26 = tpu.matmul %24, %25, %cst_12 {dimension_numbers = #tpu.dot_dimension_numbers<[1], [0], [0], [1], [0, 0, 1, 1], [], []>} : vector<288x3xf32>, vector<3x32xf32>, vector<288x32xf32> -> vector<288x32xf32>
    %27 = arith.addf %23, %26 : vector<288x32xf32>
    %28 = vector.extract_strided_slice %2 {offsets = [36, 0], sizes = [288, 3], strides = [1, 1]} : vector<326x3xf32> to vector<288x3xf32>
    %29 = vector.extract_strided_slice %3 {offsets = [18, 0], sizes = [3, 32], strides = [1, 1]} : vector<27x32xf32> to vector<3x32xf32>
    %cst_13 = arith.constant dense<0.000000e+00> : vector<288x32xf32>
    %30 = tpu.matmul %28, %29, %cst_13 {dimension_numbers = #tpu.dot_dimension_numbers<[1], [0], [0], [1], [0, 0, 1, 1], [], []>} : vector<288x3xf32>, vector<3x32xf32>, vector<288x32xf32> -> vector<288x32xf32>
    %31 = arith.addf %27, %30 : vector<288x32xf32>
    %32 = vector.extract_strided_slice %2 {offsets = [37, 0], sizes = [288, 3], strides = [1, 1]} : vector<326x3xf32> to vector<288x3xf32>
    %33 = vector.extract_strided_slice %3 {offsets = [21, 0], sizes = [3, 32], strides = [1, 1]} : vector<27x32xf32> to vector<3x32xf32>
    %cst_14 = arith.constant dense<0.000000e+00> : vector<288x32xf32>
    %34 = tpu.matmul %32, %33, %cst_14 {dimension_numbers = #tpu.dot_dimension_numbers<[1], [0], [0], [1], [0, 0, 1, 1], [], []>} : vector<288x3xf32>, vector<3x32xf32>, vector<288x32xf32> -> vector<288x32xf32>
    %35 = arith.addf %31, %34 : vector<288x32xf32>
    %36 = vector.extract_strided_slice %2 {offsets = [38, 0], sizes = [288, 3], strides = [1, 1]} : vector<326x3xf32> to vector<288x3xf32>
    %37 = vector.extract_strided_slice %3 {offsets = [24, 0], sizes = [3, 32], strides = [1, 1]} : vector<27x32xf32> to vector<3x32xf32>
    %cst_15 = arith.constant dense<0.000000e+00> : vector<288x32xf32>
    %38 = tpu.matmul %36, %37, %cst_15 {dimension_numbers = #tpu.dot_dimension_numbers<[1], [0], [0], [1], [0, 0, 1, 1], [], []>} : vector<288x3xf32>, vector<3x32xf32>, vector<288x32xf32> -> vector<288x32xf32>
    %39 = arith.addf %35, %38 : vector<288x32xf32>
    %40 = vector.broadcast %4 : vector<1x32xf32> to vector<288x32xf32>
    %41 = arith.addf %39, %40 : vector<288x32xf32>
    %cst_16 = arith.constant 0.000000e+00 : f32
    %42 = vector.broadcast %cst_16 : f32 to vector<288x32xf32>
    %43 = arith.maximumf %41, %42 : vector<288x32xf32>
    %c0_17 = arith.constant 0 : index
    %c0_18 = arith.constant 0 : index
    %44 = vector.load %arg5[%c0_17, %c0_18] : memref<408x288xf32, #tpu.memory_space<vmem>>, vector<408x288xf32>
    %45 = vector.extract_strided_slice %44 {offsets = [0, 0], sizes = [102, 288], strides = [1, 1]} : vector<408x288xf32> to vector<102x288xf32>
    %cst_19 = arith.constant dense<0.000000e+00> : vector<102x32xf32>
    %46 = tpu.matmul %45, %43, %cst_19 {dimension_numbers = #tpu.dot_dimension_numbers<[1], [0], [0], [1], [0, 0, 1, 1], [], []>} : vector<102x288xf32>, vector<288x32xf32>, vector<102x32xf32> -> vector<102x32xf32>
    %47 = vector.extract_strided_slice %44 {offsets = [102, 0], sizes = [102, 288], strides = [1, 1]} : vector<408x288xf32> to vector<102x288xf32>
    %cst_20 = arith.constant dense<0.000000e+00> : vector<102x32xf32>
    %48 = tpu.matmul %47, %43, %cst_20 {dimension_numbers = #tpu.dot_dimension_numbers<[1], [0], [0], [1], [0, 0, 1, 1], [], []>} : vector<102x288xf32>, vector<288x32xf32>, vector<102x32xf32> -> vector<102x32xf32>
    %49 = arith.maximumf %46, %48 : vector<102x32xf32>
    %50 = vector.extract_strided_slice %44 {offsets = [204, 0], sizes = [102, 288], strides = [1, 1]} : vector<408x288xf32> to vector<102x288xf32>
    %cst_21 = arith.constant dense<0.000000e+00> : vector<102x32xf32>
    %51 = tpu.matmul %50, %43, %cst_21 {dimension_numbers = #tpu.dot_dimension_numbers<[1], [0], [0], [1], [0, 0, 1, 1], [], []>} : vector<102x288xf32>, vector<288x32xf32>, vector<102x32xf32> -> vector<102x32xf32>
    %52 = arith.maximumf %49, %51 : vector<102x32xf32>
    %53 = vector.extract_strided_slice %44 {offsets = [306, 0], sizes = [102, 288], strides = [1, 1]} : vector<408x288xf32> to vector<102x288xf32>
    %cst_22 = arith.constant dense<0.000000e+00> : vector<102x32xf32>
    %54 = tpu.matmul %53, %43, %cst_22 {dimension_numbers = #tpu.dot_dimension_numbers<[1], [0], [0], [1], [0, 0, 1, 1], [], []>} : vector<102x288xf32>, vector<288x32xf32>, vector<102x32xf32> -> vector<102x32xf32>
    %55 = arith.maximumf %52, %54 : vector<102x32xf32>
    %c0_23 = arith.constant 0 : index
    %c0_24 = arith.constant 0 : index
    %56 = vector.load %arg6[%c0_23, %c0_24] : memref<288x64xf32, #tpu.memory_space<vmem>>, vector<288x64xf32>
    %c0_25 = arith.constant 0 : index
    %c0_26 = arith.constant 0 : index
    %57 = vector.load %arg7[%c0_25, %c0_26] : memref<1x64xf32, #tpu.memory_space<vmem>>, vector<1x64xf32>
    %58 = vector.extract_strided_slice %55 {offsets = [0, 0], sizes = [80, 32], strides = [1, 1]} : vector<102x32xf32> to vector<80x32xf32>
    %59 = vector.extract_strided_slice %56 {offsets = [0, 0], sizes = [32, 64], strides = [1, 1]} : vector<288x64xf32> to vector<32x64xf32>
    %cst_27 = arith.constant dense<0.000000e+00> : vector<80x64xf32>
    %60 = tpu.matmul %58, %59, %cst_27 {dimension_numbers = #tpu.dot_dimension_numbers<[1], [0], [0], [1], [0, 0, 1, 1], [], []>} : vector<80x32xf32>, vector<32x64xf32>, vector<80x64xf32> -> vector<80x64xf32>
    %61 = vector.extract_strided_slice %55 {offsets = [1, 0], sizes = [80, 32], strides = [1, 1]} : vector<102x32xf32> to vector<80x32xf32>
    %62 = vector.extract_strided_slice %56 {offsets = [32, 0], sizes = [32, 64], strides = [1, 1]} : vector<288x64xf32> to vector<32x64xf32>
    %cst_28 = arith.constant dense<0.000000e+00> : vector<80x64xf32>
    %63 = tpu.matmul %61, %62, %cst_28 {dimension_numbers = #tpu.dot_dimension_numbers<[1], [0], [0], [1], [0, 0, 1, 1], [], []>} : vector<80x32xf32>, vector<32x64xf32>, vector<80x64xf32> -> vector<80x64xf32>
    %64 = arith.addf %60, %63 : vector<80x64xf32>
    %65 = vector.extract_strided_slice %55 {offsets = [2, 0], sizes = [80, 32], strides = [1, 1]} : vector<102x32xf32> to vector<80x32xf32>
    %66 = vector.extract_strided_slice %56 {offsets = [64, 0], sizes = [32, 64], strides = [1, 1]} : vector<288x64xf32> to vector<32x64xf32>
    %cst_29 = arith.constant dense<0.000000e+00> : vector<80x64xf32>
    %67 = tpu.matmul %65, %66, %cst_29 {dimension_numbers = #tpu.dot_dimension_numbers<[1], [0], [0], [1], [0, 0, 1, 1], [], []>} : vector<80x32xf32>, vector<32x64xf32>, vector<80x64xf32> -> vector<80x64xf32>
    %68 = arith.addf %64, %67 : vector<80x64xf32>
    %69 = vector.extract_strided_slice %55 {offsets = [10, 0], sizes = [80, 32], strides = [1, 1]} : vector<102x32xf32> to vector<80x32xf32>
    %70 = vector.extract_strided_slice %56 {offsets = [96, 0], sizes = [32, 64], strides = [1, 1]} : vector<288x64xf32> to vector<32x64xf32>
    %cst_30 = arith.constant dense<0.000000e+00> : vector<80x64xf32>
    %71 = tpu.matmul %69, %70, %cst_30 {dimension_numbers = #tpu.dot_dimension_numbers<[1], [0], [0], [1], [0, 0, 1, 1], [], []>} : vector<80x32xf32>, vector<32x64xf32>, vector<80x64xf32> -> vector<80x64xf32>
    %72 = arith.addf %68, %71 : vector<80x64xf32>
    %73 = vector.extract_strided_slice %55 {offsets = [11, 0], sizes = [80, 32], strides = [1, 1]} : vector<102x32xf32> to vector<80x32xf32>
    %74 = vector.extract_strided_slice %56 {offsets = [128, 0], sizes = [32, 64], strides = [1, 1]} : vector<288x64xf32> to vector<32x64xf32>
    %cst_31 = arith.constant dense<0.000000e+00> : vector<80x64xf32>
    %75 = tpu.matmul %73, %74, %cst_31 {dimension_numbers = #tpu.dot_dimension_numbers<[1], [0], [0], [1], [0, 0, 1, 1], [], []>} : vector<80x32xf32>, vector<32x64xf32>, vector<80x64xf32> -> vector<80x64xf32>
    %76 = arith.addf %72, %75 : vector<80x64xf32>
    %77 = vector.extract_strided_slice %55 {offsets = [12, 0], sizes = [80, 32], strides = [1, 1]} : vector<102x32xf32> to vector<80x32xf32>
    %78 = vector.extract_strided_slice %56 {offsets = [160, 0], sizes = [32, 64], strides = [1, 1]} : vector<288x64xf32> to vector<32x64xf32>
    %cst_32 = arith.constant dense<0.000000e+00> : vector<80x64xf32>
    %79 = tpu.matmul %77, %78, %cst_32 {dimension_numbers = #tpu.dot_dimension_numbers<[1], [0], [0], [1], [0, 0, 1, 1], [], []>} : vector<80x32xf32>, vector<32x64xf32>, vector<80x64xf32> -> vector<80x64xf32>
    %80 = arith.addf %76, %79 : vector<80x64xf32>
    %81 = vector.extract_strided_slice %55 {offsets = [20, 0], sizes = [80, 32], strides = [1, 1]} : vector<102x32xf32> to vector<80x32xf32>
    %82 = vector.extract_strided_slice %56 {offsets = [192, 0], sizes = [32, 64], strides = [1, 1]} : vector<288x64xf32> to vector<32x64xf32>
    %cst_33 = arith.constant dense<0.000000e+00> : vector<80x64xf32>
    %83 = tpu.matmul %81, %82, %cst_33 {dimension_numbers = #tpu.dot_dimension_numbers<[1], [0], [0], [1], [0, 0, 1, 1], [], []>} : vector<80x32xf32>, vector<32x64xf32>, vector<80x64xf32> -> vector<80x64xf32>
    %84 = arith.addf %80, %83 : vector<80x64xf32>
    %85 = vector.extract_strided_slice %55 {offsets = [21, 0], sizes = [80, 32], strides = [1, 1]} : vector<102x32xf32> to vector<80x32xf32>
    %86 = vector.extract_strided_slice %56 {offsets = [224, 0], sizes = [32, 64], strides = [1, 1]} : vector<288x64xf32> to vector<32x64xf32>
    %cst_34 = arith.constant dense<0.000000e+00> : vector<80x64xf32>
    %87 = tpu.matmul %85, %86, %cst_34 {dimension_numbers = #tpu.dot_dimension_numbers<[1], [0], [0], [1], [0, 0, 1, 1], [], []>} : vector<80x32xf32>, vector<32x64xf32>, vector<80x64xf32> -> vector<80x64xf32>
    %88 = arith.addf %84, %87 : vector<80x64xf32>
    %89 = vector.extract_strided_slice %55 {offsets = [22, 0], sizes = [80, 32], strides = [1, 1]} : vector<102x32xf32> to vector<80x32xf32>
    %90 = vector.extract_strided_slice %56 {offsets = [256, 0], sizes = [32, 64], strides = [1, 1]} : vector<288x64xf32> to vector<32x64xf32>
    %cst_35 = arith.constant dense<0.000000e+00> : vector<80x64xf32>
    %91 = tpu.matmul %89, %90, %cst_35 {dimension_numbers = #tpu.dot_dimension_numbers<[1], [0], [0], [1], [0, 0, 1, 1], [], []>} : vector<80x32xf32>, vector<32x64xf32>, vector<80x64xf32> -> vector<80x64xf32>
    %92 = arith.addf %88, %91 : vector<80x64xf32>
    %93 = vector.broadcast %57 : vector<1x64xf32> to vector<80x64xf32>
    %94 = arith.addf %92, %93 : vector<80x64xf32>
    %cst_36 = arith.constant 0.000000e+00 : f32
    %95 = vector.broadcast %cst_36 : f32 to vector<80x64xf32>
    %96 = arith.maximumf %94, %95 : vector<80x64xf32>
    %c0_37 = arith.constant 0 : index
    %c0_38 = arith.constant 0 : index
    %97 = vector.load %arg8[%c0_37, %c0_38] : memref<152x80xf32, #tpu.memory_space<vmem>>, vector<152x80xf32>
    %98 = vector.extract_strided_slice %97 {offsets = [0, 0], sizes = [38, 80], strides = [1, 1]} : vector<152x80xf32> to vector<38x80xf32>
    %cst_39 = arith.constant dense<0.000000e+00> : vector<38x64xf32>
    %99 = tpu.matmul %98, %96, %cst_39 {dimension_numbers = #tpu.dot_dimension_numbers<[1], [0], [0], [1], [0, 0, 1, 1], [], []>} : vector<38x80xf32>, vector<80x64xf32>, vector<38x64xf32> -> vector<38x64xf32>
    %100 = vector.extract_strided_slice %97 {offsets = [38, 0], sizes = [38, 80], strides = [1, 1]} : vector<152x80xf32> to vector<38x80xf32>
    %cst_40 = arith.constant dense<0.000000e+00> : vector<38x64xf32>
    %101 = tpu.matmul %100, %96, %cst_40 {dimension_numbers = #tpu.dot_dimension_numbers<[1], [0], [0], [1], [0, 0, 1, 1], [], []>} : vector<38x80xf32>, vector<80x64xf32>, vector<38x64xf32> -> vector<38x64xf32>
    %102 = arith.maximumf %99, %101 : vector<38x64xf32>
    %103 = vector.extract_strided_slice %97 {offsets = [76, 0], sizes = [38, 80], strides = [1, 1]} : vector<152x80xf32> to vector<38x80xf32>
    %cst_41 = arith.constant dense<0.000000e+00> : vector<38x64xf32>
    %104 = tpu.matmul %103, %96, %cst_41 {dimension_numbers = #tpu.dot_dimension_numbers<[1], [0], [0], [1], [0, 0, 1, 1], [], []>} : vector<38x80xf32>, vector<80x64xf32>, vector<38x64xf32> -> vector<38x64xf32>
    %105 = arith.maximumf %102, %104 : vector<38x64xf32>
    %106 = vector.extract_strided_slice %97 {offsets = [114, 0], sizes = [38, 80], strides = [1, 1]} : vector<152x80xf32> to vector<38x80xf32>
    %cst_42 = arith.constant dense<0.000000e+00> : vector<38x64xf32>
    %107 = tpu.matmul %106, %96, %cst_42 {dimension_numbers = #tpu.dot_dimension_numbers<[1], [0], [0], [1], [0, 0, 1, 1], [], []>} : vector<38x80xf32>, vector<80x64xf32>, vector<38x64xf32> -> vector<38x64xf32>
    %108 = arith.maximumf %105, %107 : vector<38x64xf32>
    %c0_43 = arith.constant 0 : index
    %c0_44 = arith.constant 0 : index
    %109 = vector.load %arg9[%c0_43, %c0_44] : memref<576x128xf32, #tpu.memory_space<vmem>>, vector<576x128xf32>
    %c0_45 = arith.constant 0 : index
    %c0_46 = arith.constant 0 : index
    %110 = vector.load %arg10[%c0_45, %c0_46] : memref<1x128xf32, #tpu.memory_space<vmem>>, vector<1x128xf32>
    %111 = vector.extract_strided_slice %108 {offsets = [0, 0], sizes = [24, 64], strides = [1, 1]} : vector<38x64xf32> to vector<24x64xf32>
    %112 = vector.extract_strided_slice %109 {offsets = [0, 0], sizes = [64, 128], strides = [1, 1]} : vector<576x128xf32> to vector<64x128xf32>
    %cst_47 = arith.constant dense<0.000000e+00> : vector<24x128xf32>
    %113 = tpu.matmul %111, %112, %cst_47 {dimension_numbers = #tpu.dot_dimension_numbers<[1], [0], [0], [1], [0, 0, 1, 1], [], []>} : vector<24x64xf32>, vector<64x128xf32>, vector<24x128xf32> -> vector<24x128xf32>
    %114 = vector.extract_strided_slice %108 {offsets = [1, 0], sizes = [24, 64], strides = [1, 1]} : vector<38x64xf32> to vector<24x64xf32>
    %115 = vector.extract_strided_slice %109 {offsets = [64, 0], sizes = [64, 128], strides = [1, 1]} : vector<576x128xf32> to vector<64x128xf32>
    %cst_48 = arith.constant dense<0.000000e+00> : vector<24x128xf32>
    %116 = tpu.matmul %114, %115, %cst_48 {dimension_numbers = #tpu.dot_dimension_numbers<[1], [0], [0], [1], [0, 0, 1, 1], [], []>} : vector<24x64xf32>, vector<64x128xf32>, vector<24x128xf32> -> vector<24x128xf32>
    %117 = arith.addf %113, %116 : vector<24x128xf32>
    %118 = vector.extract_strided_slice %108 {offsets = [2, 0], sizes = [24, 64], strides = [1, 1]} : vector<38x64xf32> to vector<24x64xf32>
    %119 = vector.extract_strided_slice %109 {offsets = [128, 0], sizes = [64, 128], strides = [1, 1]} : vector<576x128xf32> to vector<64x128xf32>
    %cst_49 = arith.constant dense<0.000000e+00> : vector<24x128xf32>
    %120 = tpu.matmul %118, %119, %cst_49 {dimension_numbers = #tpu.dot_dimension_numbers<[1], [0], [0], [1], [0, 0, 1, 1], [], []>} : vector<24x64xf32>, vector<64x128xf32>, vector<24x128xf32> -> vector<24x128xf32>
    %121 = arith.addf %117, %120 : vector<24x128xf32>
    %122 = vector.extract_strided_slice %108 {offsets = [6, 0], sizes = [24, 64], strides = [1, 1]} : vector<38x64xf32> to vector<24x64xf32>
    %123 = vector.extract_strided_slice %109 {offsets = [192, 0], sizes = [64, 128], strides = [1, 1]} : vector<576x128xf32> to vector<64x128xf32>
    %cst_50 = arith.constant dense<0.000000e+00> : vector<24x128xf32>
    %124 = tpu.matmul %122, %123, %cst_50 {dimension_numbers = #tpu.dot_dimension_numbers<[1], [0], [0], [1], [0, 0, 1, 1], [], []>} : vector<24x64xf32>, vector<64x128xf32>, vector<24x128xf32> -> vector<24x128xf32>
    %125 = arith.addf %121, %124 : vector<24x128xf32>
    %126 = vector.extract_strided_slice %108 {offsets = [7, 0], sizes = [24, 64], strides = [1, 1]} : vector<38x64xf32> to vector<24x64xf32>
    %127 = vector.extract_strided_slice %109 {offsets = [256, 0], sizes = [64, 128], strides = [1, 1]} : vector<576x128xf32> to vector<64x128xf32>
    %cst_51 = arith.constant dense<0.000000e+00> : vector<24x128xf32>
    %128 = tpu.matmul %126, %127, %cst_51 {dimension_numbers = #tpu.dot_dimension_numbers<[1], [0], [0], [1], [0, 0, 1, 1], [], []>} : vector<24x64xf32>, vector<64x128xf32>, vector<24x128xf32> -> vector<24x128xf32>
    %129 = arith.addf %125, %128 : vector<24x128xf32>
    %130 = vector.extract_strided_slice %108 {offsets = [8, 0], sizes = [24, 64], strides = [1, 1]} : vector<38x64xf32> to vector<24x64xf32>
    %131 = vector.extract_strided_slice %109 {offsets = [320, 0], sizes = [64, 128], strides = [1, 1]} : vector<576x128xf32> to vector<64x128xf32>
    %cst_52 = arith.constant dense<0.000000e+00> : vector<24x128xf32>
    %132 = tpu.matmul %130, %131, %cst_52 {dimension_numbers = #tpu.dot_dimension_numbers<[1], [0], [0], [1], [0, 0, 1, 1], [], []>} : vector<24x64xf32>, vector<64x128xf32>, vector<24x128xf32> -> vector<24x128xf32>
    %133 = arith.addf %129, %132 : vector<24x128xf32>
    %134 = vector.extract_strided_slice %108 {offsets = [12, 0], sizes = [24, 64], strides = [1, 1]} : vector<38x64xf32> to vector<24x64xf32>
    %135 = vector.extract_strided_slice %109 {offsets = [384, 0], sizes = [64, 128], strides = [1, 1]} : vector<576x128xf32> to vector<64x128xf32>
    %cst_53 = arith.constant dense<0.000000e+00> : vector<24x128xf32>
    %136 = tpu.matmul %134, %135, %cst_53 {dimension_numbers = #tpu.dot_dimension_numbers<[1], [0], [0], [1], [0, 0, 1, 1], [], []>} : vector<24x64xf32>, vector<64x128xf32>, vector<24x128xf32> -> vector<24x128xf32>
    %137 = arith.addf %133, %136 : vector<24x128xf32>
    %138 = vector.extract_strided_slice %108 {offsets = [13, 0], sizes = [24, 64], strides = [1, 1]} : vector<38x64xf32> to vector<24x64xf32>
    %139 = vector.extract_strided_slice %109 {offsets = [448, 0], sizes = [64, 128], strides = [1, 1]} : vector<576x128xf32> to vector<64x128xf32>
    %cst_54 = arith.constant dense<0.000000e+00> : vector<24x128xf32>
    %140 = tpu.matmul %138, %139, %cst_54 {dimension_numbers = #tpu.dot_dimension_numbers<[1], [0], [0], [1], [0, 0, 1, 1], [], []>} : vector<24x64xf32>, vector<64x128xf32>, vector<24x128xf32> -> vector<24x128xf32>
    %141 = arith.addf %137, %140 : vector<24x128xf32>
    %142 = vector.extract_strided_slice %108 {offsets = [14, 0], sizes = [24, 64], strides = [1, 1]} : vector<38x64xf32> to vector<24x64xf32>
    %143 = vector.extract_strided_slice %109 {offsets = [512, 0], sizes = [64, 128], strides = [1, 1]} : vector<576x128xf32> to vector<64x128xf32>
    %cst_55 = arith.constant dense<0.000000e+00> : vector<24x128xf32>
    %144 = tpu.matmul %142, %143, %cst_55 {dimension_numbers = #tpu.dot_dimension_numbers<[1], [0], [0], [1], [0, 0, 1, 1], [], []>} : vector<24x64xf32>, vector<64x128xf32>, vector<24x128xf32> -> vector<24x128xf32>
    %145 = arith.addf %141, %144 : vector<24x128xf32>
    %146 = vector.broadcast %110 : vector<1x128xf32> to vector<24x128xf32>
    %147 = arith.addf %145, %146 : vector<24x128xf32>
    %cst_56 = arith.constant 0.000000e+00 : f32
    %148 = vector.broadcast %cst_56 : f32 to vector<24x128xf32>
    %149 = arith.maximumf %147, %148 : vector<24x128xf32>
    %c0_57 = arith.constant 0 : index
    %c0_58 = arith.constant 0 : index
    %150 = vector.load %arg11[%c0_57, %c0_58] : memref<16x24xf32, #tpu.memory_space<vmem>>, vector<16x24xf32>
    %151 = vector.extract_strided_slice %150 {offsets = [0, 0], sizes = [4, 24], strides = [1, 1]} : vector<16x24xf32> to vector<4x24xf32>
    %cst_59 = arith.constant dense<0.000000e+00> : vector<4x128xf32>
    %152 = tpu.matmul %151, %149, %cst_59 {dimension_numbers = #tpu.dot_dimension_numbers<[1], [0], [0], [1], [0, 0, 1, 1], [], []>} : vector<4x24xf32>, vector<24x128xf32>, vector<4x128xf32> -> vector<4x128xf32>
    %153 = vector.extract_strided_slice %150 {offsets = [4, 0], sizes = [4, 24], strides = [1, 1]} : vector<16x24xf32> to vector<4x24xf32>
    %cst_60 = arith.constant dense<0.000000e+00> : vector<4x128xf32>
    %154 = tpu.matmul %153, %149, %cst_60 {dimension_numbers = #tpu.dot_dimension_numbers<[1], [0], [0], [1], [0, 0, 1, 1], [], []>} : vector<4x24xf32>, vector<24x128xf32>, vector<4x128xf32> -> vector<4x128xf32>
    %155 = arith.maximumf %152, %154 : vector<4x128xf32>
    %156 = vector.extract_strided_slice %150 {offsets = [8, 0], sizes = [4, 24], strides = [1, 1]} : vector<16x24xf32> to vector<4x24xf32>
    %cst_61 = arith.constant dense<0.000000e+00> : vector<4x128xf32>
    %157 = tpu.matmul %156, %149, %cst_61 {dimension_numbers = #tpu.dot_dimension_numbers<[1], [0], [0], [1], [0, 0, 1, 1], [], []>} : vector<4x24xf32>, vector<24x128xf32>, vector<4x128xf32> -> vector<4x128xf32>
    %158 = arith.maximumf %155, %157 : vector<4x128xf32>
    %159 = vector.extract_strided_slice %150 {offsets = [12, 0], sizes = [4, 24], strides = [1, 1]} : vector<16x24xf32> to vector<4x24xf32>
    %cst_62 = arith.constant dense<0.000000e+00> : vector<4x128xf32>
    %160 = tpu.matmul %159, %149, %cst_62 {dimension_numbers = #tpu.dot_dimension_numbers<[1], [0], [0], [1], [0, 0, 1, 1], [], []>} : vector<4x24xf32>, vector<24x128xf32>, vector<4x128xf32> -> vector<4x128xf32>
    %161 = arith.maximumf %158, %160 : vector<4x128xf32>
    %c0_63 = arith.constant 0 : index
    %c0_64 = arith.constant 0 : index
    %162 = vector.load %arg12[%c0_63, %c0_64] : memref<512x64xf32, #tpu.memory_space<vmem>>, vector<512x64xf32>
    %c0_65 = arith.constant 0 : index
    %c0_66 = arith.constant 0 : index
    %163 = vector.load %arg13[%c0_65, %c0_66] : memref<1x64xf32, #tpu.memory_space<vmem>>, vector<1x64xf32>
    %c0_67 = arith.constant 0 : index
    %c0_68 = arith.constant 0 : index
    %164 = vector.load %arg14[%c0_67, %c0_68] : memref<64x4xf32, #tpu.memory_space<vmem>>, vector<64x4xf32>
    %165 = vector.extract_strided_slice %162 {offsets = [0, 0], sizes = [128, 64], strides = [1, 1]} : vector<512x64xf32> to vector<128x64xf32>
    %cst_69 = arith.constant dense<0.000000e+00> : vector<4x64xf32>
    %166 = tpu.matmul %161, %165, %cst_69 {dimension_numbers = #tpu.dot_dimension_numbers<[1], [0], [0], [1], [0, 0, 1, 1], [], []>} : vector<4x128xf32>, vector<128x64xf32>, vector<4x64xf32> -> vector<4x64xf32>
    %167 = vector.extract_strided_slice %164 {offsets = [0, 0], sizes = [16, 4], strides = [1, 1]} : vector<64x4xf32> to vector<16x4xf32>
    %cst_70 = arith.constant dense<0.000000e+00> : vector<16x64xf32>
    %168 = tpu.matmul %167, %166, %cst_70 {dimension_numbers = #tpu.dot_dimension_numbers<[1], [0], [0], [1], [0, 0, 1, 1], [], []>} : vector<16x4xf32>, vector<4x64xf32>, vector<16x64xf32> -> vector<16x64xf32>
    %169 = vector.extract_strided_slice %162 {offsets = [128, 0], sizes = [128, 64], strides = [1, 1]} : vector<512x64xf32> to vector<128x64xf32>
    %cst_71 = arith.constant dense<0.000000e+00> : vector<4x64xf32>
    %170 = tpu.matmul %161, %169, %cst_71 {dimension_numbers = #tpu.dot_dimension_numbers<[1], [0], [0], [1], [0, 0, 1, 1], [], []>} : vector<4x128xf32>, vector<128x64xf32>, vector<4x64xf32> -> vector<4x64xf32>
    %171 = vector.extract_strided_slice %164 {offsets = [16, 0], sizes = [16, 4], strides = [1, 1]} : vector<64x4xf32> to vector<16x4xf32>
    %cst_72 = arith.constant dense<0.000000e+00> : vector<16x64xf32>
    %172 = tpu.matmul %171, %170, %cst_72 {dimension_numbers = #tpu.dot_dimension_numbers<[1], [0], [0], [1], [0, 0, 1, 1], [], []>} : vector<16x4xf32>, vector<4x64xf32>, vector<16x64xf32> -> vector<16x64xf32>
    %173 = arith.addf %168, %172 : vector<16x64xf32>
    %174 = vector.extract_strided_slice %162 {offsets = [256, 0], sizes = [128, 64], strides = [1, 1]} : vector<512x64xf32> to vector<128x64xf32>
    %cst_73 = arith.constant dense<0.000000e+00> : vector<4x64xf32>
    %175 = tpu.matmul %161, %174, %cst_73 {dimension_numbers = #tpu.dot_dimension_numbers<[1], [0], [0], [1], [0, 0, 1, 1], [], []>} : vector<4x128xf32>, vector<128x64xf32>, vector<4x64xf32> -> vector<4x64xf32>
    %176 = vector.extract_strided_slice %164 {offsets = [32, 0], sizes = [16, 4], strides = [1, 1]} : vector<64x4xf32> to vector<16x4xf32>
    %cst_74 = arith.constant dense<0.000000e+00> : vector<16x64xf32>
    %177 = tpu.matmul %176, %175, %cst_74 {dimension_numbers = #tpu.dot_dimension_numbers<[1], [0], [0], [1], [0, 0, 1, 1], [], []>} : vector<16x4xf32>, vector<4x64xf32>, vector<16x64xf32> -> vector<16x64xf32>
    %178 = arith.addf %173, %177 : vector<16x64xf32>
    %179 = vector.extract_strided_slice %162 {offsets = [384, 0], sizes = [128, 64], strides = [1, 1]} : vector<512x64xf32> to vector<128x64xf32>
    %cst_75 = arith.constant dense<0.000000e+00> : vector<4x64xf32>
    %180 = tpu.matmul %161, %179, %cst_75 {dimension_numbers = #tpu.dot_dimension_numbers<[1], [0], [0], [1], [0, 0, 1, 1], [], []>} : vector<4x128xf32>, vector<128x64xf32>, vector<4x64xf32> -> vector<4x64xf32>
    %181 = vector.extract_strided_slice %164 {offsets = [48, 0], sizes = [16, 4], strides = [1, 1]} : vector<64x4xf32> to vector<16x4xf32>
    %cst_76 = arith.constant dense<0.000000e+00> : vector<16x64xf32>
    %182 = tpu.matmul %181, %180, %cst_76 {dimension_numbers = #tpu.dot_dimension_numbers<[1], [0], [0], [1], [0, 0, 1, 1], [], []>} : vector<16x4xf32>, vector<4x64xf32>, vector<16x64xf32> -> vector<16x64xf32>
    %183 = arith.addf %178, %182 : vector<16x64xf32>
    %184 = vector.broadcast %163 : vector<1x64xf32> to vector<16x64xf32>
    %185 = arith.addf %183, %184 : vector<16x64xf32>
    %cst_77 = arith.constant 0.000000e+00 : f32
    %186 = vector.broadcast %cst_77 : f32 to vector<16x64xf32>
    %187 = arith.maximumf %185, %186 : vector<16x64xf32>
    %c0_78 = arith.constant 0 : index
    %c0_79 = arith.constant 0 : index
    %188 = vector.load %arg15[%c0_78, %c0_79] : memref<256x32xf32, #tpu.memory_space<vmem>>, vector<256x32xf32>
    %c0_80 = arith.constant 0 : index
    %c0_81 = arith.constant 0 : index
    %189 = vector.load %arg16[%c0_80, %c0_81] : memref<1x32xf32, #tpu.memory_space<vmem>>, vector<1x32xf32>
    %c0_82 = arith.constant 0 : index
    %c0_83 = arith.constant 0 : index
    %190 = vector.load %arg17[%c0_82, %c0_83] : memref<256x16xf32, #tpu.memory_space<vmem>>, vector<256x16xf32>
    %191 = vector.extract_strided_slice %188 {offsets = [0, 0], sizes = [64, 32], strides = [1, 1]} : vector<256x32xf32> to vector<64x32xf32>
    %cst_84 = arith.constant dense<0.000000e+00> : vector<16x32xf32>
    %192 = tpu.matmul %187, %191, %cst_84 {dimension_numbers = #tpu.dot_dimension_numbers<[1], [0], [0], [1], [0, 0, 1, 1], [], []>} : vector<16x64xf32>, vector<64x32xf32>, vector<16x32xf32> -> vector<16x32xf32>
    %193 = vector.extract_strided_slice %190 {offsets = [0, 0], sizes = [64, 16], strides = [1, 1]} : vector<256x16xf32> to vector<64x16xf32>
    %cst_85 = arith.constant dense<0.000000e+00> : vector<64x32xf32>
    %194 = tpu.matmul %193, %192, %cst_85 {dimension_numbers = #tpu.dot_dimension_numbers<[1], [0], [0], [1], [0, 0, 1, 1], [], []>} : vector<64x16xf32>, vector<16x32xf32>, vector<64x32xf32> -> vector<64x32xf32>
    %195 = vector.extract_strided_slice %188 {offsets = [64, 0], sizes = [64, 32], strides = [1, 1]} : vector<256x32xf32> to vector<64x32xf32>
    %cst_86 = arith.constant dense<0.000000e+00> : vector<16x32xf32>
    %196 = tpu.matmul %187, %195, %cst_86 {dimension_numbers = #tpu.dot_dimension_numbers<[1], [0], [0], [1], [0, 0, 1, 1], [], []>} : vector<16x64xf32>, vector<64x32xf32>, vector<16x32xf32> -> vector<16x32xf32>
    %197 = vector.extract_strided_slice %190 {offsets = [64, 0], sizes = [64, 16], strides = [1, 1]} : vector<256x16xf32> to vector<64x16xf32>
    %cst_87 = arith.constant dense<0.000000e+00> : vector<64x32xf32>
    %198 = tpu.matmul %197, %196, %cst_87 {dimension_numbers = #tpu.dot_dimension_numbers<[1], [0], [0], [1], [0, 0, 1, 1], [], []>} : vector<64x16xf32>, vector<16x32xf32>, vector<64x32xf32> -> vector<64x32xf32>
    %199 = arith.addf %194, %198 : vector<64x32xf32>
    %200 = vector.extract_strided_slice %188 {offsets = [128, 0], sizes = [64, 32], strides = [1, 1]} : vector<256x32xf32> to vector<64x32xf32>
    %cst_88 = arith.constant dense<0.000000e+00> : vector<16x32xf32>
    %201 = tpu.matmul %187, %200, %cst_88 {dimension_numbers = #tpu.dot_dimension_numbers<[1], [0], [0], [1], [0, 0, 1, 1], [], []>} : vector<16x64xf32>, vector<64x32xf32>, vector<16x32xf32> -> vector<16x32xf32>
    %202 = vector.extract_strided_slice %190 {offsets = [128, 0], sizes = [64, 16], strides = [1, 1]} : vector<256x16xf32> to vector<64x16xf32>
    %cst_89 = arith.constant dense<0.000000e+00> : vector<64x32xf32>
    %203 = tpu.matmul %202, %201, %cst_89 {dimension_numbers = #tpu.dot_dimension_numbers<[1], [0], [0], [1], [0, 0, 1, 1], [], []>} : vector<64x16xf32>, vector<16x32xf32>, vector<64x32xf32> -> vector<64x32xf32>
    %204 = arith.addf %199, %203 : vector<64x32xf32>
    %205 = vector.extract_strided_slice %188 {offsets = [192, 0], sizes = [64, 32], strides = [1, 1]} : vector<256x32xf32> to vector<64x32xf32>
    %cst_90 = arith.constant dense<0.000000e+00> : vector<16x32xf32>
    %206 = tpu.matmul %187, %205, %cst_90 {dimension_numbers = #tpu.dot_dimension_numbers<[1], [0], [0], [1], [0, 0, 1, 1], [], []>} : vector<16x64xf32>, vector<64x32xf32>, vector<16x32xf32> -> vector<16x32xf32>
    %207 = vector.extract_strided_slice %190 {offsets = [192, 0], sizes = [64, 16], strides = [1, 1]} : vector<256x16xf32> to vector<64x16xf32>
    %cst_91 = arith.constant dense<0.000000e+00> : vector<64x32xf32>
    %208 = tpu.matmul %207, %206, %cst_91 {dimension_numbers = #tpu.dot_dimension_numbers<[1], [0], [0], [1], [0, 0, 1, 1], [], []>} : vector<64x16xf32>, vector<16x32xf32>, vector<64x32xf32> -> vector<64x32xf32>
    %209 = arith.addf %204, %208 : vector<64x32xf32>
    %210 = vector.broadcast %189 : vector<1x32xf32> to vector<64x32xf32>
    %211 = arith.addf %209, %210 : vector<64x32xf32>
    %cst_92 = arith.constant 0.000000e+00 : f32
    %212 = vector.broadcast %cst_92 : f32 to vector<64x32xf32>
    %213 = arith.maximumf %211, %212 : vector<64x32xf32>
    %c0_93 = arith.constant 0 : index
    %c0_94 = arith.constant 0 : index
    %214 = vector.load %arg18[%c0_93, %c0_94] : memref<128x3xf32, #tpu.memory_space<vmem>>, vector<128x3xf32>
    %c0_95 = arith.constant 0 : index
    %c0_96 = arith.constant 0 : index
    %215 = vector.load %arg19[%c0_95, %c0_96] : memref<1x3xf32, #tpu.memory_space<vmem>>, vector<1x3xf32>
    %c0_97 = arith.constant 0 : index
    %c0_98 = arith.constant 0 : index
    %216 = vector.load %arg20[%c0_97, %c0_98] : memref<1024x64xf32, #tpu.memory_space<vmem>>, vector<1024x64xf32>
    %217 = vector.extract_strided_slice %214 {offsets = [0, 0], sizes = [32, 3], strides = [1, 1]} : vector<128x3xf32> to vector<32x3xf32>
    %cst_99 = arith.constant dense<0.000000e+00> : vector<64x3xf32>
    %218 = tpu.matmul %213, %217, %cst_99 {dimension_numbers = #tpu.dot_dimension_numbers<[1], [0], [0], [1], [0, 0, 1, 1], [], []>} : vector<64x32xf32>, vector<32x3xf32>, vector<64x3xf32> -> vector<64x3xf32>
    %219 = vector.extract_strided_slice %216 {offsets = [0, 0], sizes = [256, 64], strides = [1, 1]} : vector<1024x64xf32> to vector<256x64xf32>
    %cst_100 = arith.constant dense<0.000000e+00> : vector<256x3xf32>
    %220 = tpu.matmul %219, %218, %cst_100 {dimension_numbers = #tpu.dot_dimension_numbers<[1], [0], [0], [1], [0, 0, 1, 1], [], []>} : vector<256x64xf32>, vector<64x3xf32>, vector<256x3xf32> -> vector<256x3xf32>
    %221 = vector.extract_strided_slice %214 {offsets = [32, 0], sizes = [32, 3], strides = [1, 1]} : vector<128x3xf32> to vector<32x3xf32>
    %cst_101 = arith.constant dense<0.000000e+00> : vector<64x3xf32>
    %222 = tpu.matmul %213, %221, %cst_101 {dimension_numbers = #tpu.dot_dimension_numbers<[1], [0], [0], [1], [0, 0, 1, 1], [], []>} : vector<64x32xf32>, vector<32x3xf32>, vector<64x3xf32> -> vector<64x3xf32>
    %223 = vector.extract_strided_slice %216 {offsets = [256, 0], sizes = [256, 64], strides = [1, 1]} : vector<1024x64xf32> to vector<256x64xf32>
    %cst_102 = arith.constant dense<0.000000e+00> : vector<256x3xf32>
    %224 = tpu.matmul %223, %222, %cst_102 {dimension_numbers = #tpu.dot_dimension_numbers<[1], [0], [0], [1], [0, 0, 1, 1], [], []>} : vector<256x64xf32>, vector<64x3xf32>, vector<256x3xf32> -> vector<256x3xf32>
    %225 = arith.addf %220, %224 : vector<256x3xf32>
    %226 = vector.extract_strided_slice %214 {offsets = [64, 0], sizes = [32, 3], strides = [1, 1]} : vector<128x3xf32> to vector<32x3xf32>
    %cst_103 = arith.constant dense<0.000000e+00> : vector<64x3xf32>
    %227 = tpu.matmul %213, %226, %cst_103 {dimension_numbers = #tpu.dot_dimension_numbers<[1], [0], [0], [1], [0, 0, 1, 1], [], []>} : vector<64x32xf32>, vector<32x3xf32>, vector<64x3xf32> -> vector<64x3xf32>
    %228 = vector.extract_strided_slice %216 {offsets = [512, 0], sizes = [256, 64], strides = [1, 1]} : vector<1024x64xf32> to vector<256x64xf32>
    %cst_104 = arith.constant dense<0.000000e+00> : vector<256x3xf32>
    %229 = tpu.matmul %228, %227, %cst_104 {dimension_numbers = #tpu.dot_dimension_numbers<[1], [0], [0], [1], [0, 0, 1, 1], [], []>} : vector<256x64xf32>, vector<64x3xf32>, vector<256x3xf32> -> vector<256x3xf32>
    %230 = arith.addf %225, %229 : vector<256x3xf32>
    %231 = vector.extract_strided_slice %214 {offsets = [96, 0], sizes = [32, 3], strides = [1, 1]} : vector<128x3xf32> to vector<32x3xf32>
    %cst_105 = arith.constant dense<0.000000e+00> : vector<64x3xf32>
    %232 = tpu.matmul %213, %231, %cst_105 {dimension_numbers = #tpu.dot_dimension_numbers<[1], [0], [0], [1], [0, 0, 1, 1], [], []>} : vector<64x32xf32>, vector<32x3xf32>, vector<64x3xf32> -> vector<64x3xf32>
    %233 = vector.extract_strided_slice %216 {offsets = [768, 0], sizes = [256, 64], strides = [1, 1]} : vector<1024x64xf32> to vector<256x64xf32>
    %cst_106 = arith.constant dense<0.000000e+00> : vector<256x3xf32>
    %234 = tpu.matmul %233, %232, %cst_106 {dimension_numbers = #tpu.dot_dimension_numbers<[1], [0], [0], [1], [0, 0, 1, 1], [], []>} : vector<256x64xf32>, vector<64x3xf32>, vector<256x3xf32> -> vector<256x3xf32>
    %235 = arith.addf %230, %234 : vector<256x3xf32>
    %236 = vector.broadcast %215 : vector<1x3xf32> to vector<256x3xf32>
    %237 = arith.addf %235, %236 : vector<256x3xf32>
    %cst_107 = arith.constant 0.000000e+00 : f32
    %238 = vector.broadcast %cst_107 : f32 to vector<256x3xf32>
    %239 = arith.subf %238, %237 : vector<256x3xf32>
    %240 = math.exp %239 : vector<256x3xf32>
    %cst_108 = arith.constant 1.000000e+00 : f32
    %241 = vector.broadcast %cst_108 : f32 to vector<256x3xf32>
    %242 = arith.addf %241, %240 : vector<256x3xf32>
    %cst_109 = arith.constant 1.000000e+00 : f32
    %243 = vector.broadcast %cst_109 : f32 to vector<256x3xf32>
    %244 = arith.divf %243, %242 : vector<256x3xf32>
    %c0_110 = arith.constant 0 : index
    %c0_111 = arith.constant 0 : index
    %245 = vector.load %arg21[%c0_110, %c0_111] : memref<256x3xf32, #tpu.memory_space<vmem>>, vector<256x3xf32>
    tpu.vector_store %arg21[%c0_110, %c0_111], %244 {strides = array<i32>} : memref<256x3xf32, #tpu.memory_space<vmem>>, vector<256x3xf32>,
    return
  }
  func.func @transform_0(%arg0: i32) -> (i32, i32) {
    %c0_i32 = arith.constant 0 : i32
    %c0_i32_0 = arith.constant 0 : i32
    return %arg0, %c0_i32 : i32, i32
  }
  func.func @transform_1(%arg0: i32) -> (i32, i32) {
    %c0_i32 = arith.constant 0 : i32
    %c0_i32_0 = arith.constant 0 : i32
    %c0_i32_1 = arith.constant 0 : i32
    return %c0_i32, %c0_i32_0 : i32, i32
  }
  func.func @transform_2(%arg0: i32) -> (i32, i32) {
    %c0_i32 = arith.constant 0 : i32
    %c0_i32_0 = arith.constant 0 : i32
    %c0_i32_1 = arith.constant 0 : i32
    return %c0_i32, %c0_i32_0 : i32, i32
  }
  func.func @transform_3(%arg0: i32) -> (i32, i32) {
    %c0_i32 = arith.constant 0 : i32
    %c0_i32_0 = arith.constant 0 : i32
    %c0_i32_1 = arith.constant 0 : i32
    return %c0_i32, %c0_i32_0 : i32, i32
  }
  func.func @transform_4(%arg0: i32) -> (i32, i32) {
    %c0_i32 = arith.constant 0 : i32
    %c0_i32_0 = arith.constant 0 : i32
    %c0_i32_1 = arith.constant 0 : i32
    return %c0_i32, %c0_i32_0 : i32, i32
  }
  func.func @transform_5(%arg0: i32) -> (i32, i32) {
    %c0_i32 = arith.constant 0 : i32
    %c0_i32_0 = arith.constant 0 : i32
    %c0_i32_1 = arith.constant 0 : i32
    return %c0_i32, %c0_i32_0 : i32, i32
  }
  func.func @transform_6(%arg0: i32) -> (i32, i32) {
    %c0_i32 = arith.constant 0 : i32
    %c0_i32_0 = arith.constant 0 : i32
    %c0_i32_1 = arith.constant 0 : i32
    return %c0_i32, %c0_i32_0 : i32, i32
  }
  func.func @transform_7(%arg0: i32) -> (i32, i32) {
    %c0_i32 = arith.constant 0 : i32
    %c0_i32_0 = arith.constant 0 : i32
    %c0_i32_1 = arith.constant 0 : i32
    return %c0_i32, %c0_i32_0 : i32, i32
  }
  func.func @transform_8(%arg0: i32) -> (i32, i32) {
    %c0_i32 = arith.constant 0 : i32
    %c0_i32_0 = arith.constant 0 : i32
    %c0_i32_1 = arith.constant 0 : i32
    return %c0_i32, %c0_i32_0 : i32, i32
  }
  func.func @transform_9(%arg0: i32) -> (i32, i32) {
    %c0_i32 = arith.constant 0 : i32
    %c0_i32_0 = arith.constant 0 : i32
    %c0_i32_1 = arith.constant 0 : i32
    return %c0_i32, %c0_i32_0 : i32, i32
  }
  func.func @transform_10(%arg0: i32) -> (i32, i32) {
    %c0_i32 = arith.constant 0 : i32
    %c0_i32_0 = arith.constant 0 : i32
    %c0_i32_1 = arith.constant 0 : i32
    return %c0_i32, %c0_i32_0 : i32, i32
  }
  func.func @transform_11(%arg0: i32) -> (i32, i32) {
    %c0_i32 = arith.constant 0 : i32
    %c0_i32_0 = arith.constant 0 : i32
    %c0_i32_1 = arith.constant 0 : i32
    return %c0_i32, %c0_i32_0 : i32, i32
  }
  func.func @transform_12(%arg0: i32) -> (i32, i32) {
    %c0_i32 = arith.constant 0 : i32
    %c0_i32_0 = arith.constant 0 : i32
    %c0_i32_1 = arith.constant 0 : i32
    return %c0_i32, %c0_i32_0 : i32, i32
  }
  func.func @transform_13(%arg0: i32) -> (i32, i32) {
    %c0_i32 = arith.constant 0 : i32
    %c0_i32_0 = arith.constant 0 : i32
    %c0_i32_1 = arith.constant 0 : i32
    return %c0_i32, %c0_i32_0 : i32, i32
  }
  func.func @transform_14(%arg0: i32) -> (i32, i32) {
    %c0_i32 = arith.constant 0 : i32
    %c0_i32_0 = arith.constant 0 : i32
    %c0_i32_1 = arith.constant 0 : i32
    return %c0_i32, %c0_i32_0 : i32, i32
  }
  func.func @transform_15(%arg0: i32) -> (i32, i32) {
    %c0_i32 = arith.constant 0 : i32
    %c0_i32_0 = arith.constant 0 : i32
    %c0_i32_1 = arith.constant 0 : i32
    return %c0_i32, %c0_i32_0 : i32, i32
  }
  func.func @transform_16(%arg0: i32) -> (i32, i32) {
    %c0_i32 = arith.constant 0 : i32
    %c0_i32_0 = arith.constant 0 : i32
    %c0_i32_1 = arith.constant 0 : i32
    return %c0_i32, %c0_i32_0 : i32, i32
  }
  func.func @transform_17(%arg0: i32) -> (i32, i32) {
    %c0_i32 = arith.constant 0 : i32
    %c0_i32_0 = arith.constant 0 : i32
    %c0_i32_1 = arith.constant 0 : i32
    return %c0_i32, %c0_i32_0 : i32, i32
  }
  func.func @transform_18(%arg0: i32) -> (i32, i32) {
    %c0_i32 = arith.constant 0 : i32
    %c0_i32_0 = arith.constant 0 : i32
    %c0_i32_1 = arith.constant 0 : i32
    return %c0_i32, %c0_i32_0 : i32, i32
  }
  func.func @transform_19(%arg0: i32) -> (i32, i32) {
    %c0_i32 = arith.constant 0 : i32
    %c0_i32_0 = arith.constant 0 : i32
    %c0_i32_1 = arith.constant 0 : i32
    return %c0_i32, %c0_i32_0 : i32, i32
  }
  func.func @transform_20(%arg0: i32) -> (i32, i32) {
    %c0_i32 = arith.constant 0 : i32
    %c0_i32_0 = arith.constant 0 : i32
    return %arg0, %c0_i32 : i32, i32
  }
}

</mosaic_0001>

<bundles_post_ra>
// kernel: conv_autoencoder.1
= control target key start
LH: loop header
LB: loop body
LE: loop exit
PB: predicated region body
PF: predicated region fallthrough
CT: control target
= control target key end

     0   :  { %s16253_s0 = inlined_call_operand.vmem [shape: f32[512,3], index: 0, kind: input, shape index: {}]   ;;  %s16254_s1 = inlined_call_operand.vmem [shape: f32[326,256], index: 1, kind: input, shape index: {}]   ;;  %s16255_s2 = inlined_call_operand.vmem [shape: f32[27,32], index: 2, kind: input, shape index: {}]   ;;  %s16256_s3 = inlined_call_operand.vmem [shape: f32[1,32], index: 3, kind: input, shape index: {}]   ;;  %s16257_s4 = inlined_call_operand.vmem [shape: f32[408,288], index: 4, kind: input, shape index: {}]   ;;  %s16258_s5 = inlined_call_operand.vmem [shape: f32[288,64], index: 5, kind: input, shape index: {}]   ;;  %s16259_s6 = inlined_call_operand.vmem [shape: f32[1,64], index: 6, kind: input, shape index: {}]   ;;  %s16260_s7 = inlined_call_operand.vmem [shape: f32[152,80], index: 7, kind: input, shape index: {}]   ;;  %s16261_s8 = inlined_call_operand.vmem [shape: f32[576,128], index: 8, kind: input, shape index: {}]   ;;  %s16262_s9 = inlined_call_operand.vmem [shape: f32[1,128], index: 9, kind: input, shape index: {}]   ;;  %s16263_s10 = inlined_call_operand.vmem [shape: f32[16,24], index: 10, kind: input, shape index: {}]   ;;  %s16264_s11 = inlined_call_operand.vmem [shape: f32[512,64], index: 11, kind: input, shape index: {}]   ;;  %s16265_s12 = inlined_call_operand.vmem [shape: f32[1,64], index: 12, kind: input, shape index: {}]   ;;  %s16266_s13 = inlined_call_operand.vmem [shape: f32[64,4], index: 13, kind: input, shape index: {}]   ;;  %s16267_s14 = inlined_call_operand.vmem [shape: f32[256,32], index: 14, kind: input, shape index: {}]   ;;  %s16268_s15 = inlined_call_operand.vmem [shape: f32[1,32], index: 15, kind: input, shape index: {}]   ;;  %s16269_s16 = inlined_call_operand.vmem [shape: f32[256,16], index: 16, kind: input, shape index: {}]   ;;  %s16270_s17 = inlined_call_operand.vmem [shape: f32[128,3], index: 17, kind: input, shape index: {}]   ;;  %s16271_s18 = inlined_call_operand.vmem [shape: f32[1,3], index: 18, kind: input, shape index: {}]   ;;  %s16272_s19 = inlined_call_operand.vmem [shape: f32[1024,64], index: 19, kind: input, shape index: {}]   ;;  %s16273_s20 = inlined_call_operand.vmem [shape: f32[512,3], index: 20, kind: output, shape index: {}]  }
   0x1   :  { %16371 = sst [smem:[#allocation146_spill]] %s16253_s0 }
   0x2   :  { %16372 = sst [smem:[#allocation147_spill]] %s16254_s1  ;;  %s10292_s1 = smov 0  }
   0x3   :  { %16373 = sst [smem:[#allocation148_spill]] %s16255_s2 }
   0x4   :  { %16374 = sst [smem:[#allocation149_spill]] %s16256_s3 }
   0x5   :  { %16375 = sst [smem:[#allocation150_spill]] %s16257_s4 }
   0x6 LB: > { %s9277_s22 = sadd.s32 4294967295, %s10185_s1   ;;  %p9281_p0 = scmp.ge.s32.totalorder %s10185_s1, 1  ;;  %s10185_s1 = sphi %s10292_s1, %s30_s1  }
   0x7   : > { %p563_p1 = scmp.lt.s32.totalorder %s10185_s1, 3 }
   0x9   : > { %p564_p2 = pnand %p9281_p0, %p563_p1 }
   0xb   : > { %567 = sbr.rel (%p564_p2) target bundleno = 4114 (0x1012), region = 100 }
  0x10   : > { %s9282_s23 = sshll.u32 %s9277_s22, 5  ;;  %s16376_s3 = sld [smem:[#allocation146_spill]]  ;;  %vm1218_vm0 = vcmask 1042432   ;;  %vm1145_vm1 = vcmask 23552   ;;  %vm1069_vm2 = vcmask 1046528   ;;  %vm1545_vm3 = vcmask 1045504  }
  0x11   : > { %p622_p3 = scmp.lt.s32.totalorder %s9282_s23, 63  ;;  %s16377_s4 = sld [smem:[#allocation147_spill]]  ;;  %vm2033_vm4 = vcmask 1044480   ;;  %vm2343_vm5 = vcmask 1043456   ;;  %vm1620_vm6 = vcmask 1041408   ;;  %vm2418_vm7 = vcmask 1040384  }
  0x12   : > { %s16803_s29 = sld [smem:[#allocation149_spill]]  ;;  %vm3677_vm8 = vcmask 261120   ;;  %vm5796_vm9 = vcmask 654336   ;;  %vm6114_vm10 = vcmask 523264   ;;  %vm6465_vm11 = vcmask 195584  }
  0x13   : > { %s17050_s23 = smov (!%p622_p3, %s9282_s23), 63  ;;  %s16829_s21 = sld [smem:[#allocation150_spill]]  ;;  %vm6674_vm12 = vcmask 31744   ;;  %vm6971_vm13 = vcmask 130048  }
  0x14   : > { %s16370_s24 = sshll.u32 %s17050_s23, 3 }
  0x16   : > { %s10308_s26 = scalar_lea.vmem %s16376_s3, %s16370_s24  ;;  %s17048_s24 = sshll.u32 %s17050_s23, 3 }
  0x17   : > { %v648_v0 = vld [vmem:[%s10308_s26 + $0x78] sm:$0xff]  ;;  %v647_v2 = vld [vmem:[%s10308_s26 + $0x70] sm:$0xff]  ;;  %v646_v4 = vld [vmem:[%s10308_s26 + $0x68] sm:$0xff]  ;;  %s15732_s2 = scalar_lea.vmem %s16273_s20, %s17048_s24 }
  0x18   : > { %v664_v1 = vld [vmem:[%s10308_s26 + $0xf8] sm:$0xff]  ;;  %747 = vmatpush.msra.mxu0 %v648_v0  ;;  %v663_v3 = vld [vmem:[%s10308_s26 + $0xf0] sm:$0xff]  ;;  %v662_v5 = vld [vmem:[%s10308_s26 + $0xe8] sm:$0xff] }
  0x19   : > { %887 = vmatpush.msra.mxu1 %v664_v1  ;;  %v645_v6 = vld [vmem:[%s10308_s26 + $0x60] sm:$0xff]  ;;  %v644_v8 = vld [vmem:[%s10308_s26 + $0x58] sm:$0xff]  ;;  %v643_v10 = vld [vmem:[%s10308_s26 + $0x50] sm:$0xff] }
  0x1a   : > { %748 = vmatpush.msra.mxu0 %v647_v2  ;;  %v661_v7 = vld [vmem:[%s10308_s26 + $0xe0] sm:$0xff]  ;;  %v660_v9 = vld [vmem:[%s10308_s26 + $0xd8] sm:$0xff]  ;;  %v659_v11 = vld [vmem:[%s10308_s26 + $0xd0] sm:$0xff] }
  0x1b   : > { %888 = vmatpush.msra.mxu1 %v663_v3  ;;  %v642_v12 = vld [vmem:[%s10308_s26 + $0x48] sm:$0xff]  ;;  %v641_v14 = vld [vmem:[%s10308_s26 + $0x40] sm:$0xff]  ;;  %v640_v16 = vld [vmem:[%s10308_s26 + $0x38] sm:$0xff] }
  0x1c   : > { %749 = vmatpush.msra.mxu0 %v646_v4  ;;  %v658_v13 = vld [vmem:[%s10308_s26 + $0xc8] sm:$0xff]  ;;  %v657_v15 = vld [vmem:[%s10308_s26 + $0xc0] sm:$0xff]  ;;  %v656_v17 = vld [vmem:[%s10308_s26 + $0xb8] sm:$0xff] }
  0x1d   : > { %889 = vmatpush.msra.mxu1 %v662_v5  ;;  %v639_v18 = vld [vmem:[%s10308_s26 + $0x30] sm:$0xff]  ;;  %v638_v20 = vld [vmem:[%s10308_s26 + $0x28] sm:$0xff]  ;;  %v637_v22 = vld [vmem:[%s10308_s26 + $0x20] sm:$0xff] }
  0x1e   : > { %750 = vmatpush.msra.mxu0 %v645_v6  ;;  %v655_v19 = vld [vmem:[%s10308_s26 + $0xb0] sm:$0xff]  ;;  %v654_v21 = vld [vmem:[%s10308_s26 + $0xa8] sm:$0xff]  ;;  %v653_v23 = vld [vmem:[%s10308_s26 + $0xa0] sm:$0xff] }
  0x1f   : > { %890 = vmatpush.msra.mxu1 %v661_v7  ;;  %v636_v24 = vld [vmem:[%s10308_s26 + $0x18] sm:$0xff]  ;;  %v635_v26 = vld [vmem:[%s10308_s26 + $0x10] sm:$0xff]  ;;  %v634_v28 = vld [vmem:[%s10308_s26 + $0x8] sm:$0xff] }
  0x20   : > { %751 = vmatpush.msra.mxu0 %v644_v8  ;;  %v652_v25 = vld [vmem:[%s10308_s26 + $0x98] sm:$0xff]  ;;  %v651_v27 = vld [vmem:[%s10308_s26 + $0x90] sm:$0xff]  ;;  %v650_v29 = vld [vmem:[%s10308_s26 + $0x88] sm:$0xff] }
  0x21   : > { %891 = vmatpush.msra.mxu1 %v660_v9  ;;  %v633_v30 = vld [vmem:[%s10308_s26] sm:$0xff]  ;;  %v666_v33 = vld [vmem:[%s16377_s4 + $0x8] sm:$0xff]  ;;  %v667_v34 = vld [vmem:[%s16377_s4 + $0x10] sm:$0xff] }
  0x22   : > { %752 = vmatpush.msra.mxu0 %v643_v10  ;;  %v649_v31 = vld [vmem:[%s10308_s26 + $0x80] sm:$0xff]  ;;  %v668_v35 = vld [vmem:[%s16377_s4 + $0x18] sm:$0xff]  ;;  %v670_v37 = vld [vmem:[%s16377_s4 + $0x28] sm:$0xff]  ;;  %s16378_s26 = sld [smem:[#allocation148_spill]] }
  0x23   : > { %892 = vmatpush.msra.mxu1 %v659_v11  ;;  %v665_v32 = vld [vmem:[%s16377_s4] sm:$0xff]  ;;  %v671_v38 = vld [vmem:[%s16377_s4 + $0x30] sm:$0xff]  ;;  %v672_v39 = vld [vmem:[%s16377_s4 + $0x38] sm:$0xff] }
  0x24   : > { %753 = vmatpush.msra.mxu0 %v642_v12  ;;  %v669_v36 = vld [vmem:[%s16377_s4 + $0x20] sm:$0xff]  ;;  %v674_v41 = vld [vmem:[%s16377_s4 + $0x48] sm:$0xff]  ;;  %v675_v42 = vld [vmem:[%s16377_s4 + $0x50] sm:$0xff] }
  0x25   : > { %893 = vmatpush.msra.mxu1 %v658_v13  ;;  %v673_v40 = vld [vmem:[%s16377_s4 + $0x40] sm:$0xff]  ;;  %v676_v43 = vld [vmem:[%s16377_s4 + $0x58] sm:$0xff]  ;;  %v678_v45 = vld [vmem:[%s16377_s4 + $0x68] sm:$0xff] }
  0x26   : > { %754 = vmatpush.msra.mxu0 %v641_v14  ;;  %v677_v44 = vld [vmem:[%s16377_s4 + $0x60] sm:$0xff]  ;;  %v679_v46 = vld [vmem:[%s16377_s4 + $0x70] sm:$0xff]  ;;  %v680_v47 = vld [vmem:[%s16377_s4 + $0x78] sm:$0xff] }
  0x27   : > { %894 = vmatpush.msra.mxu1 %v657_v15  ;;  %v681_v48 = vld [vmem:[%s16377_s4 + $0x80] sm:$0xff]  ;;  %v682_v49 = vld [vmem:[%s16377_s4 + $0x88] sm:$0xff]  ;;  %v683_v50 = vld [vmem:[%s16377_s4 + $0x90] sm:$0xff] }
  0x28   : > { %755 = vmatpush.msra.mxu0 %v640_v16  ;;  %v684_v51 = vld [vmem:[%s16377_s4 + $0x98] sm:$0xff]  ;;  %v685_v52 = vld [vmem:[%s16377_s4 + $0xa0] sm:$0xff]  ;;  %v686_v53 = vld [vmem:[%s16377_s4 + $0xa8] sm:$0xff] }
  0x29   : > { %895 = vmatpush.msra.mxu1 %v656_v17  ;;  %v687_v54 = vld [vmem:[%s16377_s4 + $0xb0] sm:$0xff]  ;;  %v688_v55 = vld [vmem:[%s16377_s4 + $0xb8] sm:$0xff]  ;;  %v689_v56 = vld [vmem:[%s16377_s4 + $0xc0] sm:$0xff] }
  0x2a   : > { %756 = vmatpush.msra.mxu0 %v639_v18  ;;  %v690_v57 = vld [vmem:[%s16377_s4 + $0xc8] sm:$0xff]  ;;  %v1027_v58 = vld [vmem:[%s16378_s26] sm:$0xff]  ;;  %v691_v59 = vld [vmem:[%s16377_s4 + $0xd0] sm:$0xff] }
  0x2b   : > { %896 = vmatpush.msra.mxu1 %v655_v19  ;;  %9323 = vmatpush.msk.msra.mxu3 %vm1218_vm0, %v1027_v58  ;;  %v692_v60 = vld [vmem:[%s16377_s4 + $0xd8] sm:$0xff]  ;;  %v1144_v61 = vrot.slane %v1027_v58, 3  ;;  %v693_v62 = vld [vmem:[%s16377_s4 + $0xe0] sm:$0xff]  ;;  %v694_v63 = vld [vmem:[%s16377_s4 + $0xe8] sm:$0xff] }
  0x2c   : > { %757 = vmatpush.msra.mxu0 %v638_v20  ;;  %v695_v0 = vld [vmem:[%s16377_s4 + $0xf0] sm:$0xff]  ;;  %v696_v1 = vld [vmem:[%s16377_s4 + $0xf8] sm:$0xff]  ;;  %v697_v4 = vld [vmem:[%s16377_s4 + $0x100] sm:$0xff] }
  0x2d   : > { %897 = vmatpush.msra.mxu1 %v654_v21  ;;  %9286 = vmatpush.msk.msra.mxu2 %vm1218_vm0, %v1144_v61  ;;  %v698_v5 = vld [vmem:[%s16377_s4 + $0x108] sm:$0xff]  ;;  %v699_v9 = vld [vmem:[%s16377_s4 + $0x110] sm:$0xff]  ;;  %v700_v10 = vld [vmem:[%s16377_s4 + $0x118] sm:$0xff] }
  0x2e   : > { %758 = vmatpush.msra.mxu0 %v637_v22  ;;  %v701_v20 = vld [vmem:[%s16377_s4 + $0x120] sm:$0xff]  ;;  %v702_v21 = vld [vmem:[%s16377_s4 + $0x128] sm:$0xff]  ;;  %v708_v58 = vld [vmem:[%s16377_s4 + $0x158] sm:$0xff] }
  0x2f   : > { %898 = vmatpush.msra.mxu1 %v653_v23 }
  0x30   : > { %759 = vmatpush.msra.mxu0 %v636_v24 }
  0x31   : > { %899 = vmatpush.msra.mxu1 %v652_v25 }
  0x32   : > { %760 = vmatpush.msra.mxu0 %v635_v26 }
  0x33   : > { %900 = vmatpush.msra.mxu1 %v651_v27 }
  0x34   : > { %761 = vmatpush.msra.mxu0 %v634_v28 }
  0x35   : > { %901 = vmatpush.msra.mxu1 %v650_v29  ;;  %v703_v29 = vld [vmem:[%s16377_s4 + $0x130] sm:$0xff] }
  0x36   : > { %762 = vmatpush.msra.mxu0 %v633_v30  ;;  %v704_v30 = vld [vmem:[%s16377_s4 + $0x138] sm:$0xff] }
  0x37   : > { %902 = vmatpush.msra.mxu1 %v649_v31  ;;  %763 = vmatmul.f32.vlgmr.msra.gmra.mxu0 %v665_v32 }
  0x38   : > { %903 = vmatmul.f32.vlgmr.msra.gmra.mxu1 %v666_v33 }
  0x3f   : > { %766 = vmatmul.f32.gmra.mxu0 %v667_v34 }
  0x40   : > { %906 = vmatmul.f32.gmra.mxu1 %v668_v35 }
  0x47   : > { %769 = vmatmul.f32.gmra.mxu0 %v669_v36 }
  0x48   : > { %909 = vmatmul.f32.gmra.mxu1 %v670_v37 }
  0x4f   : > { %772 = vmatmul.f32.gmra.mxu0 %v671_v38 }
  0x50   : > { %912 = vmatmul.f32.gmra.mxu1 %v672_v39 }
  0x57   : > { %775 = vmatmul.f32.gmra.mxu0 %v673_v40 }
  0x58   : > { %915 = vmatmul.f32.gmra.mxu1 %v674_v41 }
  0x5f   : > { %778 = vmatmul.f32.gmra.mxu0 %v675_v42 }
  0x60   : > { %918 = vmatmul.f32.gmra.mxu1 %v676_v43 }
  0x67   : > { %781 = vmatmul.f32.gmra.mxu0 %v677_v44  ;;  %v705_v44 = vld [vmem:[%s16377_s4 + $0x140] sm:$0xff] }
  0x68   : > { %921 = vmatmul.f32.gmra.mxu1 %v678_v45  ;;  %v706_v45 = vld [vmem:[%s16377_s4 + $0x148] sm:$0xff] }
  0x6f   : > { %784 = vmatmul.f32.gmra.mxu0 %v679_v46 }
  0x70   : > { %924 = vmatmul.f32.gmra.mxu1 %v680_v47 }
  0x77   : > { %787 = vmatmul.f32.gmra.mxu0 %v681_v48 }
  0x78   : > { %927 = vmatmul.f32.gmra.mxu1 %v682_v49 }
  0x7f   : > { %790 = vmatmul.f32.gmra.mxu0 %v683_v50 }
  0x80   : > { %930 = vmatmul.f32.gmra.mxu1 %v684_v51 }
  0x87   : > { %793 = vmatmul.f32.gmra.mxu0 %v685_v52 }
  0x88   : > { %933 = vmatmul.f32.gmra.mxu1 %v686_v53 }
  0x8f   : > { %796 = vmatmul.f32.gmra.mxu0 %v687_v54 }
  0x90   : > { %936 = vmatmul.f32.gmra.mxu1 %v688_v55 }
  0x97   : > { %799 = vmatmul.f32.gmra.mxu0 %v689_v56 }
  0x98   : > { %939 = vmatmul.f32.gmra.mxu1 %v690_v57  ;;  %v707_v57 = vld [vmem:[%s16377_s4 + $0x150] sm:$0xff] }
  0x9f   : > { %802 = vmatmul.f32.gmra.mxu0 %v691_v59 }
  0xa0   : > { %942 = vmatmul.f32.gmra.mxu1 %v692_v60 }
  0xa7   : > { %805 = vmatmul.f32.gmra.mxu0 %v693_v62 }
  0xa8   : > { %945 = vmatmul.f32.gmra.mxu1 %v694_v63 }
  0xaf   : > { %808 = vmatmul.f32.gmra.mxu0 %v695_v0 }
  0xb0   : > { %948 = vmatmul.f32.gmra.mxu1 %v696_v1 }
  0xb4   : > { %v764_v2 = vpop.f32.mrf.mxu0 }
  0xb5   : > { %v904_v3 = vpop.f32.mrf.mxu1 }
  0xb6   : > { %v905_v6 = vadd.f32 %v904_v3, %v764_v2 }
  0xb7   : > { %811 = vmatmul.f32.gmra.mxu0 %v697_v4 }
  0xb8   : > { %951 = vmatmul.f32.gmra.mxu1 %v698_v5  ;;  %9324 = vmatmul.msk.f32.vlgmr.msra.gmra.mxu3 %vm1145_vm1, %v905_v6  ;;  %v1546_v12 = vrot.slane %v905_v6, 2  ;;  %v1070_v14 = vrot.slane %v905_v6, 1 }
  0xbc   : > { %v767_v7 = vpop.f32.mrf.mxu0 }
  0xbd   : > { %v907_v8 = vpop.f32.mrf.mxu1 }
  0xbe   : > { %v908_v11 = vadd.f32 %v907_v8, %v767_v7 }
  0xbf   : > { %814 = vmatmul.f32.gmra.mxu0 %v699_v9 }
  0xc0   : > { %v1547_v13 = vrot.slane %v908_v11, 2  ;;  %954 = vmatmul.f32.gmra.mxu1 %v700_v10  ;;  %v1071_v15 = vrot.slane %v908_v11, 1  ;;  %9325 = vmatmul.msk.f32.gmra.mxu3 %vm1145_vm1, %v908_v11 }
  0xc2   : > { %v1072_v16 = vsel %vm1069_vm2, %v1070_v14, %v1071_v15  ;;  %v10459_v17 = vsel %vm1545_vm3, %v1546_v12, %v1547_v13  ;;  %v709_v12 = vld [vmem:[%s16377_s4 + $0x160] sm:$0xff] }
  0xc3   : > { %9287 = vmatmul.msk.f32.vlgmr.msra.gmra.mxu2 %vm1145_vm1, %v1072_v16 }
  0xc4   : > { %v770_v18 = vpop.f32.mrf.mxu0 }
  0xc5   : > { %v910_v19 = vpop.f32.mrf.mxu1 }
  0xc6   : > { %v911_v22 = vadd.f32 %v910_v19, %v770_v18 }
  0xc7   : > { %817 = vmatmul.f32.gmra.mxu0 %v701_v20 }
  0xc8   : > { %957 = vmatmul.f32.gmra.mxu1 %v702_v21  ;;  %v1073_v23 = vrot.slane %v911_v22, 1  ;;  %v1549_v24 = vrot.slane %v911_v22, 2  ;;  %9326 = vmatmul.msk.f32.gmra.mxu3 %vm1145_vm1, %v911_v22  ;;  %v2034_v32 = vrot.slane %v911_v22, 3  ;;  %v2344_v33 = vrot.slane %v911_v22, 4 }
  0xca   : > { %v1074_v25 = vsel %vm1069_vm2, %v1071_v15, %v1073_v23  ;;  %v10471_v26 = vsel %vm1545_vm3, %v1547_v13, %v1549_v24  ;;  %v710_v13 = vld [vmem:[%s16377_s4 + $0x168] sm:$0xff] }
  0xcb   : > { %9288 = vmatmul.msk.f32.gmra.mxu2 %vm1145_vm1, %v1074_v25 }
  0xcc   : > { %v773_v27 = vpop.f32.mrf.mxu0 }
  0xcd   : > { %v913_v28 = vpop.f32.mrf.mxu1 }
  0xce   : > { %v914_v31 = vadd.f32 %v913_v28, %v773_v27 }
  0xcf   : > { %820 = vmatmul.f32.gmra.mxu0 %v703_v29 }
  0xd0   : > { %960 = vmatmul.f32.gmra.mxu1 %v704_v30  ;;  %v1075_v34 = vrot.slane %v914_v31, 1  ;;  %v2035_v35 = vrot.slane %v914_v31, 3  ;;  %v2345_v36 = vrot.slane %v914_v31, 4  ;;  %v1551_v37 = vrot.slane %v914_v31, 2  ;;  %9327 = vmatmul.msk.f32.gmra.mxu3 %vm1145_vm1, %v914_v31  ;;  %v711_v31 = vld [vmem:[%s16377_s4 + $0x170] sm:$0xff] }
  0xd2   : > { %v1076_v38 = vsel %vm1069_vm2, %v1073_v23, %v1075_v34  ;;  %v10483_v39 = vsel %vm2033_vm4, %v2034_v32, %v2035_v35  ;;  %v10486_v40 = vsel %vm2343_vm5, %v2344_v33, %v2345_v36  ;;  %v10489_v41 = vsel %vm1545_vm3, %v1549_v24, %v1551_v37  ;;  %v712_v32 = vld [vmem:[%s16377_s4 + $0x178] sm:$0xff] }
  0xd3   : > { %9289 = vmatmul.msk.f32.gmra.mxu2 %vm1145_vm1, %v1076_v38 }
  0xd4   : > { %v776_v42 = vpop.f32.mrf.mxu0 }
  0xd5   : > { %v916_v43 = vpop.f32.mrf.mxu1 }
  0xd6   : > { %v917_v46 = vadd.f32 %v916_v43, %v776_v42 }
  0xd7   : > { %823 = vmatmul.f32.gmra.mxu0 %v705_v44 }
  0xd8   : > { %963 = vmatmul.f32.gmra.mxu1 %v706_v45  ;;  %v1077_v47 = vrot.slane %v917_v46, 1  ;;  %v2037_v48 = vrot.slane %v917_v46, 3  ;;  %v2347_v49 = vrot.slane %v917_v46, 4  ;;  %v1553_v50 = vrot.slane %v917_v46, 2  ;;  %9328 = vmatmul.msk.f32.gmra.mxu3 %vm1145_vm1, %v917_v46 }
  0xd9   : > { %v3140_v0 = vrot.slane %v917_v46, 6  ;;  %v2831_v2 = vrot.slane %v917_v46, 5 }
  0xda   : > { %v1078_v51 = vsel %vm1069_vm2, %v1075_v34, %v1077_v47  ;;  %v10501_v52 = vsel %vm2033_vm4, %v2035_v35, %v2037_v48  ;;  %v10504_v53 = vsel %vm2343_vm5, %v2345_v36, %v2347_v49  ;;  %v10507_v54 = vsel %vm1545_vm3, %v1551_v37, %v1553_v50 }
  0xdb   : > { %9290 = vmatmul.msk.f32.gmra.mxu2 %vm1145_vm1, %v1078_v51  ;;  %v713_v51 = vld [vmem:[%s16377_s4 + $0x180] sm:$0xff] }
  0xdc   : > { %v779_v55 = vpop.f32.mrf.mxu0 }
  0xdd   : > { %v919_v56 = vpop.f32.mrf.mxu1 }
  0xde   : > { %v920_v59 = vadd.f32 %v919_v56, %v779_v55  ;;  %v714_v55 = vld [vmem:[%s16377_s4 + $0x188] sm:$0xff] }
  0xdf   : > { %826 = vmatmul.f32.gmra.mxu0 %v707_v57 }
  0xe0   : > { %966 = vmatmul.f32.gmra.mxu1 %v708_v58  ;;  %v1079_v60 = vrot.slane %v920_v59, 1  ;;  %v2039_v61 = vrot.slane %v920_v59, 3  ;;  %v2349_v62 = vrot.slane %v920_v59, 4  ;;  %v1555_v63 = vrot.slane %v920_v59, 2  ;;  %9329 = vmatmul.msk.f32.gmra.mxu3 %vm1145_vm1, %v920_v59 }
  0xe1   : > { %v3141_v1 = vrot.slane %v920_v59, 6  ;;  %v2832_v3 = vrot.slane %v920_v59, 5 }
  0xe2   : > { %v1080_v4 = vsel %vm1069_vm2, %v1077_v47, %v1079_v60  ;;  %v10519_v5 = vsel %vm2033_vm4, %v2037_v48, %v2039_v61  ;;  %v10522_v6 = vsel %vm2343_vm5, %v2347_v49, %v2349_v62  ;;  %v10525_v7 = vsel %vm1545_vm3, %v1553_v50, %v1555_v63 }
  0xe3   : > { %16379 = vst [vmem:[#allocation2_spill] sm:$0xff] %v10522_v6  ;;  %9291 = vmatmul.msk.f32.gmra.mxu2 %vm1145_vm1, %v1080_v4  ;;  %v10529_v8 = vsel %vm1620_vm6, %v3140_v0, %v3141_v1  ;;  %v10532_v9 = vsel %vm1218_vm0, %v2831_v2, %v2832_v3 }
  0xe4   : > { %16380 = vst [vmem:[#allocation3_spill] sm:$0xff] %v10529_v8  ;;  %v782_v10 = vpop.f32.mrf.mxu0 }
  0xe5   : > { %16381 = vst [vmem:[#allocation4_spill] sm:$0xff] %v10532_v9  ;;  %v922_v11 = vpop.f32.mrf.mxu1 }
  0xe6   : > { %v923_v14 = vadd.f32 %v922_v11, %v782_v10 }
  0xe7   : > { %829 = vmatmul.f32.gmra.mxu0 %v709_v12  ;;  %v715_v12 = vld [vmem:[%s16377_s4 + $0x190] sm:$0xff] }
  0xe8   : > { %969 = vmatmul.f32.gmra.mxu1 %v710_v13  ;;  %v1081_v15 = vrot.slane %v923_v14, 1  ;;  %v2041_v16 = vrot.slane %v923_v14, 3  ;;  %v2351_v18 = vrot.slane %v923_v14, 4  ;;  %v1557_v19 = vrot.slane %v923_v14, 2  ;;  %9330 = vmatmul.msk.f32.gmra.mxu3 %vm1145_vm1, %v923_v14  ;;  %v716_v13 = vld [vmem:[%s16377_s4 + $0x198] sm:$0xff] }
  0xe9   : > { %v3143_v20 = vrot.slane %v923_v14, 6  ;;  %v2834_v21 = vrot.slane %v923_v14, 5 }
  0xea   : > { %v1082_v22 = vsel %vm1069_vm2, %v1079_v60, %v1081_v15  ;;  %v10543_v23 = vsel %vm2033_vm4, %v2039_v61, %v2041_v16  ;;  %v10546_v24 = vsel %vm2343_vm5, %v2349_v62, %v2351_v18  ;;  %v10549_v25 = vsel %vm1545_vm3, %v1555_v63, %v1557_v19 }
  0xeb   : > { %16382 = vst [vmem:[#allocation5_spill] sm:$0xff] %v10546_v24  ;;  %9292 = vmatmul.msk.f32.gmra.mxu2 %vm1145_vm1, %v1082_v22  ;;  %v10553_v27 = vsel %vm1620_vm6, %v3141_v1, %v3143_v20  ;;  %v10556_v28 = vsel %vm1218_vm0, %v2832_v3, %v2834_v21 }
  0xec   : > { %16383 = vst [vmem:[#allocation6_spill] sm:$0xff] %v10553_v27  ;;  %v785_v29 = vpop.f32.mrf.mxu0 }
  0xed   : > { %16384 = vst [vmem:[#allocation7_spill] sm:$0xff] %v10556_v28  ;;  %v925_v30 = vpop.f32.mrf.mxu1 }
  0xee   : > { %v926_v33 = vadd.f32 %v925_v30, %v785_v29 }
  0xef   : > { %832 = vmatmul.f32.gmra.mxu0 %v711_v31 }
  0xf0   : > { %972 = vmatmul.f32.gmra.mxu1 %v712_v32  ;;  %v1083_v34 = vrot.slane %v926_v33, 1  ;;  %v2043_v35 = vrot.slane %v926_v33, 3  ;;  %v2353_v36 = vrot.slane %v926_v33, 4  ;;  %v1559_v37 = vrot.slane %v926_v33, 2  ;;  %9331 = vmatmul.msk.f32.gmra.mxu3 %vm1145_vm1, %v926_v33 }
  0xf1   : > { %v3145_v38 = vrot.slane %v926_v33, 6  ;;  %v2836_v42 = vrot.slane %v926_v33, 5 }
  0xf2   : > { %v1084_v43 = vsel %vm1069_vm2, %v1081_v15, %v1083_v34  ;;  %v10567_v44 = vsel %vm2033_vm4, %v2041_v16, %v2043_v35  ;;  %v10570_v45 = vsel %vm2343_vm5, %v2351_v18, %v2353_v36  ;;  %v10573_v46 = vsel %vm1545_vm3, %v1557_v19, %v1559_v37 }
  0xf3   : > { %16385 = vst [vmem:[#allocation8_spill] sm:$0xff] %v10570_v45  ;;  %9293 = vmatmul.msk.f32.gmra.mxu2 %vm1145_vm1, %v1084_v43  ;;  %v10577_v47 = vsel %vm1620_vm6, %v3143_v20, %v3145_v38  ;;  %v10580_v48 = vsel %vm1218_vm0, %v2834_v21, %v2836_v42 }
  0xf4   : > { %16386 = vst [vmem:[#allocation9_spill] sm:$0xff] %v10573_v46  ;;  %v788_v49 = vpop.f32.mrf.mxu0 }
  0xf5   : > { %16387 = vst [vmem:[#allocation10_spill] sm:$0xff] %v10577_v47  ;;  %v928_v50 = vpop.f32.mrf.mxu1 }
  0xf6   : > { %16388 = vst [vmem:[#allocation11_spill] sm:$0xff] %v10580_v48  ;;  %v929_v56 = vadd.f32 %v928_v50, %v788_v49 }
  0xf7   : > { %835 = vmatmul.f32.gmra.mxu0 %v713_v51 }
  0xf8   : > { %975 = vmatmul.f32.gmra.mxu1 %v714_v55  ;;  %v1085_v57 = vrot.slane %v929_v56, 1  ;;  %v2045_v58 = vrot.slane %v929_v56, 3  ;;  %v2355_v59 = vrot.slane %v929_v56, 4  ;;  %v1561_v60 = vrot.slane %v929_v56, 2  ;;  %9332 = vmatmul.msk.f32.gmra.mxu3 %vm1145_vm1, %v929_v56 }
  0xf9   : > { %v3147_v61 = vrot.slane %v929_v56, 6  ;;  %v2838_v62 = vrot.slane %v929_v56, 5 }
  0xfa   : > { %v1086_v63 = vsel %vm1069_vm2, %v1083_v34, %v1085_v57  ;;  %v10591_v0 = vsel %vm2033_vm4, %v2043_v35, %v2045_v58  ;;  %v10594_v1 = vsel %vm2343_vm5, %v2353_v36, %v2355_v59  ;;  %v10597_v2 = vsel %vm1545_vm3, %v1559_v37, %v1561_v60  ;;  %v717_v36 = vld [vmem:[%s16377_s4 + $0x1a0] sm:$0xff]  ;;  %v718_v37 = vld [vmem:[%s16377_s4 + $0x1a8] sm:$0xff] }
  0xfb   : > { %16389 = vst [vmem:[#allocation12_spill] sm:$0xff] %v10594_v1  ;;  %9294 = vmatmul.msk.f32.gmra.mxu2 %vm1145_vm1, %v1086_v63  ;;  %v10601_v3 = vsel %vm1620_vm6, %v3145_v38, %v3147_v61  ;;  %v10604_v4 = vsel %vm1218_vm0, %v2836_v42, %v2838_v62 }
  0xfc   : > { %16390 = vst [vmem:[#allocation13_spill] sm:$0xff] %v10597_v2  ;;  %v791_v10 = vpop.f32.mrf.mxu0 }
  0xfd   : > { %16391 = vst [vmem:[#allocation14_spill] sm:$0xff] %v10601_v3  ;;  %v931_v11 = vpop.f32.mrf.mxu1 }
  0xfe   : > { %16392 = vst [vmem:[#allocation15_spill] sm:$0xff] %v10604_v4  ;;  %v932_v14 = vadd.f32 %v931_v11, %v791_v10  ;;  %v719_v10 = vld [vmem:[%s16377_s4 + $0x1b0] sm:$0xff]  ;;  %v720_v11 = vld [vmem:[%s16377_s4 + $0x1b8] sm:$0xff] }
  0xff   : > { %838 = vmatmul.f32.gmra.mxu0 %v715_v12 }
 0x100   : > { %978 = vmatmul.f32.gmra.mxu1 %v716_v13  ;;  %v1087_v15 = vrot.slane %v932_v14, 1  ;;  %v2047_v16 = vrot.slane %v932_v14, 3  ;;  %v2357_v18 = vrot.slane %v932_v14, 4  ;;  %v1563_v19 = vrot.slane %v932_v14, 2  ;;  %9333 = vmatmul.msk.f32.gmra.mxu3 %vm1145_vm1, %v932_v14 }
 0x101   : > { %v3149_v20 = vrot.slane %v932_v14, 6  ;;  %v2840_v21 = vrot.slane %v932_v14, 5 }
 0x102   : > { %v1088_v22 = vsel %vm1069_vm2, %v1085_v57, %v1087_v15  ;;  %v10615_v29 = vsel %vm2033_vm4, %v2045_v58, %v2047_v16  ;;  %v10618_v30 = vsel %vm2343_vm5, %v2355_v59, %v2357_v18  ;;  %v10621_v31 = vsel %vm1545_vm3, %v1561_v60, %v1563_v19 }
 0x103   : > { %16393 = vst [vmem:[#allocation16_spill] sm:$0xff] %v10618_v30  ;;  %9295 = vmatmul.msk.f32.gmra.mxu2 %vm1145_vm1, %v1088_v22  ;;  %v10625_v32 = vsel %vm1620_vm6, %v3147_v61, %v3149_v20  ;;  %v10628_v33 = vsel %vm1218_vm0, %v2838_v62, %v2840_v21 }
 0x104   : > { %16394 = vst [vmem:[#allocation17_spill] sm:$0xff] %v10621_v31  ;;  %v794_v34 = vpop.f32.mrf.mxu0 }
 0x105   : > { %16395 = vst [vmem:[#allocation18_spill] sm:$0xff] %v10625_v32  ;;  %v934_v35 = vpop.f32.mrf.mxu1 }
 0x106   : > { %16396 = vst [vmem:[#allocation19_spill] sm:$0xff] %v10628_v33  ;;  %v935_v38 = vadd.f32 %v934_v35, %v794_v34 }
 0x107   : > { %841 = vmatmul.f32.gmra.mxu0 %v717_v36 }
 0x108   : > { %981 = vmatmul.f32.gmra.mxu1 %v718_v37  ;;  %v1089_v42 = vrot.slane %v935_v38, 1  ;;  %v2049_v43 = vrot.slane %v935_v38, 3  ;;  %v2359_v49 = vrot.slane %v935_v38, 4  ;;  %v1565_v50 = vrot.slane %v935_v38, 2  ;;  %9334 = vmatmul.msk.f32.gmra.mxu3 %vm1145_vm1, %v935_v38 }
 0x109   : > { %v3151_v51 = vrot.slane %v935_v38, 6  ;;  %v2842_v55 = vrot.slane %v935_v38, 5 }
 0x10a   : > { %v1090_v56 = vsel %vm1069_vm2, %v1087_v15, %v1089_v42  ;;  %v10639_v57 = vsel %vm2033_vm4, %v2047_v16, %v2049_v43  ;;  %v10642_v58 = vsel %vm2343_vm5, %v2357_v18, %v2359_v49  ;;  %v10645_v59 = vsel %vm1545_vm3, %v1563_v19, %v1565_v50 }
 0x10b   : > { %16397 = vst [vmem:[#allocation20_spill] sm:$0xff] %v10642_v58  ;;  %9296 = vmatmul.msk.f32.gmra.mxu2 %vm1145_vm1, %v1090_v56  ;;  %v10649_v60 = vsel %vm1620_vm6, %v3149_v20, %v3151_v51  ;;  %v10652_v61 = vsel %vm1218_vm0, %v2840_v21, %v2842_v55 }
 0x10c   : > { %16398 = vst [vmem:[#allocation21_spill] sm:$0xff] %v10645_v59  ;;  %v797_v62 = vpop.f32.mrf.mxu0 }
 0x10d   : > { %16399 = vst [vmem:[#allocation22_spill] sm:$0xff] %v10649_v60  ;;  %v937_v63 = vpop.f32.mrf.mxu1 }
 0x10e   : > { %16400 = vst [vmem:[#allocation23_spill] sm:$0xff] %v10652_v61  ;;  %v938_v12 = vadd.f32 %v937_v63, %v797_v62 }
 0x10f   : > { %844 = vmatmul.f32.gmra.mxu0 %v719_v10 }
 0x110   : > { %984 = vmatmul.f32.gmra.mxu1 %v720_v11  ;;  %v1091_v13 = vrot.slane %v938_v12, 1  ;;  %v2051_v14 = vrot.slane %v938_v12, 3  ;;  %v2361_v15 = vrot.slane %v938_v12, 4  ;;  %v1567_v16 = vrot.slane %v938_v12, 2  ;;  %9335 = vmatmul.msk.f32.gmra.mxu3 %vm1145_vm1, %v938_v12 }
 0x111   : > { %v3153_v18 = vrot.slane %v938_v12, 6  ;;  %v2844_v19 = vrot.slane %v938_v12, 5 }
 0x112   : > { %v1092_v20 = vsel %vm1069_vm2, %v1089_v42, %v1091_v13  ;;  %v10663_v21 = vsel %vm2033_vm4, %v2049_v43, %v2051_v14  ;;  %v10666_v22 = vsel %vm2343_vm5, %v2359_v49, %v2361_v15  ;;  %v10669_v34 = vsel %vm1545_vm3, %v1565_v50, %v1567_v16  ;;  %v721_v42 = vld [vmem:[%s16377_s4 + $0x1c0] sm:$0xff]  ;;  %v722_v43 = vld [vmem:[%s16377_s4 + $0x1c8] sm:$0xff] }
 0x113   : > { %16401 = vst [vmem:[#allocation24_spill] sm:$0xff] %v10666_v22  ;;  %9297 = vmatmul.msk.f32.gmra.mxu2 %vm1145_vm1, %v1092_v20  ;;  %v10673_v35 = vsel %vm1620_vm6, %v3151_v51, %v3153_v18  ;;  %v10676_v36 = vsel %vm1218_vm0, %v2842_v55, %v2844_v19 }
 0x114   : > { %16402 = vst [vmem:[#allocation25_spill] sm:$0xff] %v10669_v34  ;;  %v800_v37 = vpop.f32.mrf.mxu0 }
 0x115   : > { %16403 = vst [vmem:[#allocation26_spill] sm:$0xff] %v10673_v35  ;;  %v940_v38 = vpop.f32.mrf.mxu1 }
 0x116   : > { %16404 = vst [vmem:[#allocation27_spill] sm:$0xff] %v10676_v36  ;;  %v941_v49 = vadd.f32 %v940_v38, %v800_v37 }
 0x117   : > { %847 = vmatmul.f32.gmra.mxu0 %v721_v42 }
 0x118   : > { %987 = vmatmul.f32.gmra.mxu1 %v722_v43  ;;  %v1093_v50 = vrot.slane %v941_v49, 1  ;;  %v2053_v56 = vrot.slane %v941_v49, 3  ;;  %v2363_v51 = vrot.slane %v941_v49, 4  ;;  %v1569_v62 = vrot.slane %v941_v49, 2  ;;  %9336 = vmatmul.msk.f32.gmra.mxu3 %vm1145_vm1, %v941_v49 }
 0x119   : > { %v3155_v55 = vrot.slane %v941_v49, 6  ;;  %v2846_v63 = vrot.slane %v941_v49, 5 }
 0x11a   : > { %v1094_v10 = vsel %vm1069_vm2, %v1091_v13, %v1093_v50  ;;  %v10687_v11 = vsel %vm2033_vm4, %v2051_v14, %v2053_v56  ;;  %v10690_v12 = vsel %vm2343_vm5, %v2361_v15, %v2363_v51  ;;  %v10693_v20 = vsel %vm1545_vm3, %v1567_v16, %v1569_v62  ;;  %v723_v13 = vld [vmem:[%s16377_s4 + $0x1d0] sm:$0xff]  ;;  %v724_v14 = vld [vmem:[%s16377_s4 + $0x1d8] sm:$0xff] }
 0x11b   : > { %16405 = vst [vmem:[#allocation28_spill] sm:$0xff] %v10690_v12  ;;  %9298 = vmatmul.msk.f32.gmra.mxu2 %vm1145_vm1, %v1094_v10  ;;  %v10697_v37 = vsel %vm1620_vm6, %v3153_v18, %v3155_v55  ;;  %v10700_v38 = vsel %vm1218_vm0, %v2844_v19, %v2846_v63 }
 0x11c   : > { %16406 = vst [vmem:[#allocation29_spill] sm:$0xff] %v10693_v20  ;;  %v803_v42 = vpop.f32.mrf.mxu0 }
 0x11d   : > { %16407 = vst [vmem:[#allocation30_spill] sm:$0xff] %v10697_v37  ;;  %v943_v43 = vpop.f32.mrf.mxu1 }
 0x11e   : > { %16408 = vst [vmem:[#allocation31_spill] sm:$0xff] %v10700_v38  ;;  %v944_v15 = vadd.f32 %v943_v43, %v803_v42 }
 0x11f   : > { %850 = vmatmul.f32.gmra.mxu0 %v723_v13 }
 0x120   : > { %990 = vmatmul.f32.gmra.mxu1 %v724_v14  ;;  %v1095_v16 = vrot.slane %v944_v15, 1  ;;  %v2055_v49 = vrot.slane %v944_v15, 3  ;;  %v2365_v18 = vrot.slane %v944_v15, 4  ;;  %v1571_v10 = vrot.slane %v944_v15, 2  ;;  %9337 = vmatmul.msk.f32.gmra.mxu3 %vm1145_vm1, %v944_v15 }
 0x121   : > { %v3157_v19 = vrot.slane %v944_v15, 6  ;;  %v2848_v38 = vrot.slane %v944_v15, 5 }
 0x122   : > { %v1096_v36 = vsel %vm1069_vm2, %v1093_v50, %v1095_v16  ;;  %v10711_v61 = vsel %vm2033_vm4, %v2053_v56, %v2055_v49  ;;  %v10714_v33 = vsel %vm2343_vm5, %v2363_v51, %v2365_v18  ;;  %v10717_v42 = vsel %vm1545_vm3, %v1569_v62, %v1571_v10  ;;  %v725_v50 = vld [vmem:[%s16377_s4 + $0x1e0] sm:$0xff]  ;;  %v726_v56 = vld [vmem:[%s16377_s4 + $0x1e8] sm:$0xff] }
 0x123   : > { %16409 = vst [vmem:[#allocation32_spill] sm:$0xff] %v10714_v33  ;;  %9299 = vmatmul.msk.f32.gmra.mxu2 %vm1145_vm1, %v1096_v36  ;;  %v10721_v43 = vsel %vm1620_vm6, %v3155_v55, %v3157_v19  ;;  %v10724_v13 = vsel %vm1218_vm0, %v2846_v63, %v2848_v38 }
 0x124   : > { %16410 = vst [vmem:[#allocation33_spill] sm:$0xff] %v10717_v42  ;;  %v806_v14 = vpop.f32.mrf.mxu0 }
 0x125   : > { %16411 = vst [vmem:[#allocation34_spill] sm:$0xff] %v10721_v43  ;;  %v946_v15 = vpop.f32.mrf.mxu1 }
 0x126   : > { %16412 = vst [vmem:[#allocation35_spill] sm:$0xff] %v10724_v13  ;;  %v947_v51 = vadd.f32 %v946_v15, %v806_v14 }
 0x127   : > { %853 = vmatmul.f32.gmra.mxu0 %v725_v50 }
 0x128   : > { %993 = vmatmul.f32.gmra.mxu1 %v726_v56  ;;  %v1097_v36 = vrot.slane %v947_v51, 1  ;;  %v2057_v62 = vrot.slane %v947_v51, 3  ;;  %v2367_v55 = vrot.slane %v947_v51, 4  ;;  %v1573_v4 = vrot.slane %v947_v51, 2  ;;  %9338 = vmatmul.msk.f32.gmra.mxu3 %vm1145_vm1, %v947_v51 }
 0x129   : > { %v3159_v63 = vrot.slane %v947_v51, 6  ;;  %v2850_v13 = vrot.slane %v947_v51, 5 }
 0x12a   : > { %v1098_v48 = vsel %vm1069_vm2, %v1095_v16, %v1097_v36  ;;  %v10735_v28 = vsel %vm2033_vm4, %v2055_v49, %v2057_v62  ;;  %v10738_v9 = vsel %vm2343_vm5, %v2365_v18, %v2367_v55  ;;  %v10741_v14 = vsel %vm1545_vm3, %v1571_v10, %v1573_v4  ;;  %v727_v16 = vld [vmem:[%s16377_s4 + $0x1f0] sm:$0xff]  ;;  %v728_v49 = vld [vmem:[%s16377_s4 + $0x1f8] sm:$0xff] }
 0x12b   : > { %16413 = vst [vmem:[#allocation36_spill] sm:$0xff] %v10738_v9  ;;  %9300 = vmatmul.msk.f32.gmra.mxu2 %vm1145_vm1, %v1098_v48  ;;  %v10745_v15 = vsel %vm1620_vm6, %v3157_v19, %v3159_v63  ;;  %v10748_v50 = vsel %vm1218_vm0, %v2848_v38, %v2850_v13 }
 0x12c   : > { %16414 = vst [vmem:[#allocation37_spill] sm:$0xff] %v10741_v14  ;;  %v809_v56 = vpop.f32.mrf.mxu0 }
 0x12d   : > { %16415 = vst [vmem:[#allocation38_spill] sm:$0xff] %v10745_v15  ;;  %v949_v51 = vpop.f32.mrf.mxu1 }
 0x12e   : > { %16416 = vst [vmem:[#allocation39_spill] sm:$0xff] %v10748_v50  ;;  %v950_v18 = vadd.f32 %v949_v51, %v809_v56 }
 0x12f   : > { %856 = vmatmul.f32.gmra.mxu0 %v727_v16 }
 0x130   : > { %996 = vmatmul.f32.gmra.mxu1 %v728_v49  ;;  %v1099_v48 = vrot.slane %v950_v18, 1  ;;  %v2059_v10 = vrot.slane %v950_v18, 3  ;;  %v2369_v19 = vrot.slane %v950_v18, 4  ;;  %v1575_v15 = vrot.slane %v950_v18, 2  ;;  %9339 = vmatmul.msk.f32.gmra.mxu3 %vm1145_vm1, %v950_v18 }
 0x131   : > { %v3161_v38 = vrot.slane %v950_v18, 6  ;;  %v2852_v50 = vrot.slane %v950_v18, 5 }
 0x132   : > { %v1100_v43 = vsel %vm1069_vm2, %v1097_v36, %v1099_v48  ;;  %v10759_v37 = vsel %vm2033_vm4, %v2057_v62, %v2059_v10  ;;  %v10762_v35 = vsel %vm2343_vm5, %v2367_v55, %v2369_v19  ;;  %v10765_v56 = vsel %vm1545_vm3, %v1573_v4, %v1575_v15  ;;  %v729_v36 = vld [vmem:[%s16377_s4 + $0x200] sm:$0xff]  ;;  %v730_v62 = vld [vmem:[%s16377_s4 + $0x208] sm:$0xff] }
 0x133   : > { %16417 = vst [vmem:[#allocation40_spill] sm:$0xff] %v10765_v56  ;;  %9301 = vmatmul.msk.f32.gmra.mxu2 %vm1145_vm1, %v1100_v43  ;;  %v10769_v51 = vsel %vm1620_vm6, %v3159_v63, %v3161_v38  ;;  %v10772_v16 = vsel %vm1218_vm0, %v2850_v13, %v2852_v50 }
 0x134   : > { %16418 = vst [vmem:[#allocation41_spill] sm:$0xff] %v10769_v51  ;;  %v812_v49 = vpop.f32.mrf.mxu0 }
 0x135   : > { %16419 = vst [vmem:[#allocation42_spill] sm:$0xff] %v10772_v16  ;;  %v952_v18 = vpop.f32.mrf.mxu1 }
 0x136   : > { %v953_v4 = vadd.f32 %v952_v18, %v812_v49 }
 0x137   : > { %859 = vmatmul.f32.gmra.mxu0 %v729_v36 }
 0x138   : > { %999 = vmatmul.f32.gmra.mxu1 %v730_v62  ;;  %v1101_v43 = vrot.slane %v953_v4, 1  ;;  %v2061_v55 = vrot.slane %v953_v4, 3  ;;  %v2371_v63 = vrot.slane %v953_v4, 4  ;;  %v1577_v51 = vrot.slane %v953_v4, 2  ;;  %9340 = vmatmul.msk.f32.gmra.mxu3 %vm1145_vm1, %v953_v4 }
 0x139   : > { %v3163_v13 = vrot.slane %v953_v4, 6  ;;  %v2854_v16 = vrot.slane %v953_v4, 5 }
 0x13a   : > { %v1102_v60 = vsel %vm1069_vm2, %v1099_v48, %v1101_v43  ;;  %v10783_v32 = vsel %vm2033_vm4, %v2059_v10, %v2061_v55  ;;  %v10786_v3 = vsel %vm2343_vm5, %v2369_v19, %v2371_v63  ;;  %v10789_v49 = vsel %vm1545_vm3, %v1575_v15, %v1577_v51  ;;  %v731_v10 = vld [vmem:[%s16377_s4 + $0x210] sm:$0xff]  ;;  %v732_v15 = vld [vmem:[%s16377_s4 + $0x218] sm:$0xff] }
 0x13b   : > { %16420 = vst [vmem:[#allocation43_spill] sm:$0xff] %v10789_v49  ;;  %9302 = vmatmul.msk.f32.gmra.mxu2 %vm1145_vm1, %v1102_v60  ;;  %v10793_v18 = vsel %vm1620_vm6, %v3161_v38, %v3163_v13  ;;  %v10796_v36 = vsel %vm1218_vm0, %v2852_v50, %v2854_v16  ;;  %v1437_v62 = vpop.f32.mrf.mxu3 }
 0x13c   : > { %16421 = vst [vmem:[#allocation44_spill] sm:$0xff] %v10793_v18  ;;  %v815_v4 = vpop.f32.mrf.mxu0 }
 0x13d   : > { %16422 = vst [vmem:[#allocation45_spill] sm:$0xff] %v10796_v36  ;;  %v955_v48 = vpop.f32.mrf.mxu1 }
 0x13e   : > { %v956_v19 = vadd.f32 %v955_v48, %v815_v4 }
 0x13f   : > { %862 = vmatmul.f32.gmra.mxu0 %v731_v10 }
 0x140   : > { %1002 = vmatmul.f32.gmra.mxu1 %v732_v15  ;;  %v1103_v60 = vrot.slane %v956_v19, 1  ;;  %v2063_v38 = vrot.slane %v956_v19, 3  ;;  %v2373_v18 = vrot.slane %v956_v19, 4  ;;  %v1579_v47 = vrot.slane %v956_v19, 2  ;;  %9341 = vmatmul.msk.f32.gmra.mxu3 %vm1145_vm1, %v956_v19 }
 0x141   : > { %v3165_v50 = vrot.slane %v956_v19, 6  ;;  %v2856_v36 = vrot.slane %v956_v19, 5 }
 0x142   : > { %v1104_v27 = vsel %vm1069_vm2, %v1101_v43, %v1103_v60  ;;  %v10807_v8 = vsel %vm2033_vm4, %v2061_v55, %v2063_v38  ;;  %v10810_v49 = vsel %vm2343_vm5, %v2371_v63, %v2373_v18  ;;  %v10813_v4 = vsel %vm1545_vm3, %v1577_v51, %v1579_v47  ;;  %v733_v55 = vld [vmem:[%s16377_s4 + $0x220] sm:$0xff]  ;;  %v734_v51 = vld [vmem:[%s16377_s4 + $0x228] sm:$0xff] }
 0x143   : > { %16423 = vst [vmem:[#allocation46_spill] sm:$0xff] %v10813_v4  ;;  %9303 = vmatmul.msk.f32.gmra.mxu2 %vm1145_vm1, %v1104_v27  ;;  %v10817_v48 = vsel %vm1620_vm6, %v3163_v13, %v3165_v50  ;;  %v10820_v10 = vsel %vm1218_vm0, %v2854_v16, %v2856_v36  ;;  %v1440_v15 = vpop.f32.mrf.mxu3 }
 0x144   : > { %16424 = vst [vmem:[#allocation47_spill] sm:$0xff] %v10817_v48  ;;  %v818_v19 = vpop.f32.mrf.mxu0 }
 0x145   : > { %16425 = vst [vmem:[#allocation48_spill] sm:$0xff] %v10820_v10  ;;  %v958_v43 = vpop.f32.mrf.mxu1 }
 0x146   : > { %v959_v63 = vadd.f32 %v958_v43, %v818_v19  ;;  %v1238_v4 = vpop.f32.mrf.mxu2 }
 0x147   : > { %v10828_v27 = vadd.f32 %v1437_v62, %v1238_v4  ;;  %865 = vmatmul.f32.gmra.mxu0 %v733_v55 }
 0x148   : > { %1005 = vmatmul.f32.gmra.mxu1 %v734_v51  ;;  %v1105_v13 = vrot.slane %v959_v63, 1  ;;  %v2065_v16 = vrot.slane %v959_v63, 3  ;;  %v2375_v10 = vrot.slane %v959_v63, 4  ;;  %v1581_v48 = vrot.slane %v959_v63, 2  ;;  %9342 = vmatmul.msk.f32.gmra.mxu3 %vm1145_vm1, %v959_v63 }
 0x149   : > { %16426 = vst [vmem:[#allocation49_spill] sm:$0xff] %v10828_v27  ;;  %v3167_v56 = vrot.slane %v959_v63, 6  ;;  %v2858_v14 = vrot.slane %v959_v63, 5 }
 0x14a   : > { %v1106_v42 = vsel %vm1069_vm2, %v1103_v60, %v1105_v13  ;;  %v10833_v20 = vsel %vm2033_vm4, %v2063_v38, %v2065_v16  ;;  %v10836_v19 = vsel %vm2343_vm5, %v2373_v18, %v2375_v10  ;;  %v10839_v62 = vsel %vm1545_vm3, %v1579_v47, %v1581_v48  ;;  %v735_v38 = vld [vmem:[%s16377_s4 + $0x230] sm:$0xff]  ;;  %v736_v47 = vld [vmem:[%s16377_s4 + $0x238] sm:$0xff] }
 0x14b   : > { %16427 = vst [vmem:[#allocation50_spill] sm:$0xff] %v10836_v19  ;;  %9304 = vmatmul.msk.f32.gmra.mxu2 %vm1145_vm1, %v1106_v42  ;;  %v10843_v4 = vsel %vm1620_vm6, %v3165_v50, %v3167_v56  ;;  %v10846_v43 = vsel %vm1218_vm0, %v2856_v36, %v2858_v14  ;;  %v1443_v55 = vpop.f32.mrf.mxu3 }
 0x14c   : > { %16428 = vst [vmem:[#allocation51_spill] sm:$0xff] %v10839_v62  ;;  %v821_v51 = vpop.f32.mrf.mxu0 }
 0x14d   : > { %16429 = vst [vmem:[#allocation52_spill] sm:$0xff] %v10843_v4  ;;  %v961_v60 = vpop.f32.mrf.mxu1 }
 0x14e   : > { %16430 = vst [vmem:[#allocation53_spill] sm:$0xff] %v10846_v43  ;;  %v962_v18 = vadd.f32 %v961_v60, %v821_v51  ;;  %v1241_v63 = vpop.f32.mrf.mxu2 }
 0x14f   : > { %v10854_v42 = vadd.f32 %v1440_v15, %v1241_v63  ;;  %868 = vmatmul.f32.gmra.mxu0 %v735_v38 }
 0x150   : > { %1008 = vmatmul.f32.gmra.mxu1 %v736_v47  ;;  %v1107_v50 = vrot.slane %v962_v18, 1  ;;  %v2067_v36 = vrot.slane %v962_v18, 3  ;;  %v2377_v43 = vrot.slane %v962_v18, 4  ;;  %v1583_v4 = vrot.slane %v962_v18, 2  ;;  %9343 = vmatmul.msk.f32.gmra.mxu3 %vm1145_vm1, %v962_v18 }
 0x151   : > { %16431 = vst [vmem:[#allocation54_spill] sm:$0xff] %v10854_v42  ;;  %v3169_v27 = vrot.slane %v962_v18, 6  ;;  %v2860_v62 = vrot.slane %v962_v18, 5 }
 0x152   : > { %v1108_v34 = vsel %vm1069_vm2, %v1105_v13, %v1107_v50  ;;  %v10859_v59 = vsel %vm2033_vm4, %v2065_v16, %v2067_v36  ;;  %v10862_v51 = vsel %vm2343_vm5, %v2375_v10, %v2377_v43  ;;  %v10865_v15 = vsel %vm1545_vm3, %v1581_v48, %v1583_v4  ;;  %v737_v16 = vld [vmem:[%s16377_s4 + $0x240] sm:$0xff]  ;;  %v738_v48 = vld [vmem:[%s16377_s4 + $0x248] sm:$0xff] }
 0x153   : > { %16432 = vst [vmem:[#allocation55_spill] sm:$0xff] %v10859_v59  ;;  %9305 = vmatmul.msk.f32.gmra.mxu2 %vm1145_vm1, %v1108_v34  ;;  %v10869_v60 = vsel %vm1620_vm6, %v3167_v56, %v3169_v27  ;;  %v10872_v38 = vsel %vm1218_vm0, %v2858_v14, %v2860_v62  ;;  %v1446_v47 = vpop.f32.mrf.mxu3 }
 0x154   : > { %16433 = vst [vmem:[#allocation56_spill] sm:$0xff] %v10862_v51  ;;  %v824_v18 = vpop.f32.mrf.mxu0 }
 0x155   : > { %16434 = vst [vmem:[#allocation57_spill] sm:$0xff] %v10865_v15  ;;  %v964_v13 = vpop.f32.mrf.mxu1 }
 0x156   : > { %16435 = vst [vmem:[#allocation58_spill] sm:$0xff] %v10869_v60  ;;  %v965_v10 = vadd.f32 %v964_v13, %v824_v18  ;;  %v1244_v63 = vpop.f32.mrf.mxu2 }
 0x157   : > { %16436 = vst [vmem:[#allocation59_spill] sm:$0xff] %v10872_v38  ;;  %v10880_v34 = vadd.f32 %v1443_v55, %v1244_v63  ;;  %871 = vmatmul.f32.gmra.mxu0 %v737_v16 }
 0x158   : > { %1011 = vmatmul.f32.gmra.mxu1 %v738_v48  ;;  %v1109_v56 = vrot.slane %v965_v10, 1  ;;  %v2069_v14 = vrot.slane %v965_v10, 3  ;;  %v2379_v38 = vrot.slane %v965_v10, 4  ;;  %v1585_v60 = vrot.slane %v965_v10, 2  ;;  %9344 = vmatmul.msk.f32.gmra.mxu3 %vm1145_vm1, %v965_v10 }
 0x159   : > { %16437 = vst [vmem:[#allocation60_spill] sm:$0xff] %v10880_v34  ;;  %v3171_v42 = vrot.slane %v965_v10, 6  ;;  %v2862_v15 = vrot.slane %v965_v10, 5 }
 0x15a   : > { %v1110_v31 = vsel %vm1069_vm2, %v1107_v50, %v1109_v56  ;;  %v10885_v2 = vsel %vm2033_vm4, %v2067_v36, %v2069_v14  ;;  %v10888_v18 = vsel %vm2343_vm5, %v2377_v43, %v2379_v38  ;;  %v10891_v55 = vsel %vm1545_vm3, %v1583_v4, %v1585_v60  ;;  %v10903_v50 = vld [vmem:[%s16378_s26 + $0x8] sm:$0xff]  ;;  %v10908_v43 = vld [vmem:[%s16378_s26 + $0x10] sm:$0xff] }
 0x15b   : > { %16438 = vst [vmem:[#allocation61_spill] sm:$0xff] %v10885_v2  ;;  %9306 = vmatmul.msk.f32.gmra.mxu2 %vm1145_vm1, %v1110_v31  ;;  %v10895_v13 = vsel %vm1620_vm6, %v3169_v27, %v3171_v42  ;;  %v10898_v16 = vsel %vm1218_vm0, %v2860_v62, %v2862_v15  ;;  %v1449_v48 = vpop.f32.mrf.mxu3  ;;  %v739_v31 = vld [vmem:[%s16377_s4 + $0x250] sm:$0xff]  ;;  %v740_v27 = vld [vmem:[%s16377_s4 + $0x258] sm:$0xff]  ;;  %v2419_v62 = vrot.slane %v10903_v50, 7  ;;  %v2420_v10 = vrot.slane %v10908_v43, 7 }
 0x15c   : > { %16439 = vst [vmem:[#allocation62_spill] sm:$0xff] %v10888_v18  ;;  %v827_v4 = vpop.f32.mrf.mxu0 }
 0x15d   : > { %16440 = vst [vmem:[#allocation63_spill] sm:$0xff] %v10891_v55  ;;  %v967_v36 = vpop.f32.mrf.mxu1  ;;  %v2421_v55 = vsel %vm2418_vm7, %v2419_v62, %v2420_v10 }
 0x15e   : > { %16441 = vst [vmem:[#allocation64_spill] sm:$0xff] %v10895_v13  ;;  %v968_v63 = vadd.f32 %v967_v36, %v827_v4  ;;  %v16293_v13 = vrot.slane %v10903_v50, 4  ;;  %9471 = vmatpush.msk.msrb.mxu1 %vm1218_vm0, %v2421_v55 }
 0x15f   : > { %16442 = vst [vmem:[#allocation65_spill] sm:$0xff] %v10898_v16  ;;  %v1247_v16 = vpop.f32.mrf.mxu2  ;;  %874 = vmatmul.f32.gmra.mxu0 %v739_v31 }
 0x160   : > { %v10919_v34 = vadd.f32 %v1446_v47, %v1247_v16  ;;  %1014 = vmatmul.f32.gmra.mxu1 %v740_v27  ;;  %v1111_v18 = vrot.slane %v968_v63, 1  ;;  %v2071_v2 = vrot.slane %v968_v63, 3  ;;  %v2381_v51 = vrot.slane %v968_v63, 4  ;;  %9345 = vmatmul.msk.f32.gmra.mxu3 %vm1145_vm1, %v968_v63 }
 0x161   : > { %v1587_v59 = vrot.slane %v968_v63, 2  ;;  %9434 = vmatpush.msk.msrb.mxu0 %vm1218_vm0, %v16293_v13  ;;  %v3173_v4 = vrot.slane %v968_v63, 6  ;;  %v2864_v36 = vrot.slane %v968_v63, 5 }
 0x162   : > { %16443 = vst [vmem:[#allocation66_spill] sm:$0xff] %v10919_v34  ;;  %v1112_v46 = vsel %vm1069_vm2, %v1109_v56, %v1111_v18  ;;  %v10929_v47 = vsel %vm2033_vm4, %v2069_v14, %v2071_v2  ;;  %v10932_v16 = vsel %vm2343_vm5, %v2379_v38, %v2381_v51  ;;  %v741_v14 = vld [vmem:[%s16377_s4 + $0x260] sm:$0xff] }
 0x163   : > { %16444 = vst [vmem:[#allocation67_spill] sm:$0xff] %v10932_v16  ;;  %v10935_v31 = vsel %vm1545_vm3, %v1585_v60, %v1587_v59  ;;  %9307 = vmatmul.msk.f32.gmra.mxu2 %vm1145_vm1, %v1112_v46  ;;  %v10939_v27 = vsel %vm1620_vm6, %v3171_v42, %v3173_v4  ;;  %v10942_v62 = vsel %vm1218_vm0, %v2862_v15, %v2864_v36  ;;  %v1452_v56 = vpop.f32.mrf.mxu3  ;;  %v742_v60 = vld [vmem:[%s16377_s4 + $0x268] sm:$0xff] }
 0x164   : > { %16445 = vst [vmem:[#allocation68_spill] sm:$0xff] %v10935_v31  ;;  %v830_v10 = vpop.f32.mrf.mxu0 }
 0x165   : > { %16446 = vst [vmem:[#allocation69_spill] sm:$0xff] %v10939_v27  ;;  %v970_v55 = vpop.f32.mrf.mxu1 }
 0x166   : > { %16447 = vst [vmem:[#allocation70_spill] sm:$0xff] %v10942_v62  ;;  %v971_v38 = vadd.f32 %v970_v55, %v830_v10 }
 0x167   : > { %v1250_v63 = vpop.f32.mrf.mxu2  ;;  %877 = vmatmul.f32.gmra.mxu0 %v741_v14 }
 0x168   : > { %v10950_v46 = vadd.f32 %v1449_v48, %v1250_v63  ;;  %1017 = vmatmul.f32.gmra.mxu1 %v742_v60  ;;  %v1113_v42 = vrot.slane %v971_v38, 1  ;;  %v2073_v15 = vrot.slane %v971_v38, 3  ;;  %v2383_v13 = vrot.slane %v971_v38, 4  ;;  %9346 = vmatmul.msk.f32.gmra.mxu3 %vm1145_vm1, %v971_v38 }
 0x169   : > { %v1589_v62 = vrot.slane %v971_v38, 2  ;;  %v3175_v27 = vrot.slane %v971_v38, 6  ;;  %v2866_v34 = vrot.slane %v971_v38, 5 }
 0x16a   : > { %16448 = vst [vmem:[#allocation71_spill] sm:$0xff] %v10950_v46  ;;  %v1114_v31 = vsel %vm1069_vm2, %v1111_v18, %v1113_v42  ;;  %v10955_v16 = vsel %vm2033_vm4, %v2071_v2, %v2073_v15  ;;  %v10958_v10 = vsel %vm2343_vm5, %v2381_v51, %v2383_v13  ;;  %v743_v2 = vld [vmem:[%s16377_s4 + $0x270] sm:$0xff] }
 0x16b   : > { %16449 = vst [vmem:[#allocation72_spill] sm:$0xff] %v10955_v16  ;;  %v10961_v48 = vsel %vm1545_vm3, %v1587_v59, %v1589_v62  ;;  %9308 = vmatmul.msk.f32.gmra.mxu2 %vm1145_vm1, %v1114_v31  ;;  %v10965_v55 = vsel %vm1620_vm6, %v3173_v4, %v3175_v27  ;;  %v10968_v14 = vsel %vm1218_vm0, %v2864_v36, %v2866_v34  ;;  %v1455_v60 = vpop.f32.mrf.mxu3  ;;  %v744_v59 = vld [vmem:[%s16377_s4 + $0x278] sm:$0xff] }
 0x16c   : > { %16450 = vst [vmem:[#allocation73_spill] sm:$0xff] %v10958_v10  ;;  %v833_v38 = vpop.f32.mrf.mxu0 }
 0x16d   : > { %16451 = vst [vmem:[#allocation74_spill] sm:$0xff] %v10961_v48  ;;  %v973_v18 = vpop.f32.mrf.mxu1 }
 0x16e   : > { %16452 = vst [vmem:[#allocation75_spill] sm:$0xff] %v10965_v55  ;;  %v974_v51 = vadd.f32 %v973_v18, %v833_v38 }
 0x16f   : > { %16453 = vst [vmem:[#allocation76_spill] sm:$0xff] %v10968_v14  ;;  %v1253_v63 = vpop.f32.mrf.mxu2  ;;  %880 = vmatmul.f32.gmra.mxu0 %v743_v2 }
 0x170   : > { %v10976_v31 = vadd.f32 %v1452_v56, %v1253_v63  ;;  %1020 = vmatmul.f32.gmra.mxu1 %v744_v59  ;;  %v1115_v4 = vrot.slane %v974_v51, 1  ;;  %v2075_v36 = vrot.slane %v974_v51, 3  ;;  %v2385_v14 = vrot.slane %v974_v51, 4  ;;  %9347 = vmatmul.msk.f32.gmra.mxu3 %vm1145_vm1, %v974_v51 }
 0x171   : > { %v1591_v55 = vrot.slane %v974_v51, 2  ;;  %v3177_v46 = vrot.slane %v974_v51, 6  ;;  %v2868_v48 = vrot.slane %v974_v51, 5 }
 0x172   : > { %16454 = vst [vmem:[#allocation77_spill] sm:$0xff] %v10976_v31  ;;  %v1116_v10 = vsel %vm1069_vm2, %v1113_v42, %v1115_v4  ;;  %v10981_v16 = vsel %vm2033_vm4, %v2073_v15, %v2075_v36  ;;  %v10984_v38 = vsel %vm2343_vm5, %v2383_v13, %v2385_v14  ;;  %v745_v15 = vld [vmem:[%s16377_s4 + $0x280] sm:$0x3f]  ;;  %v746_v13 = vld [vmem:[%s16377_s4 + $0x288] sm:$0x3f] }
 0x173   : > { %16455 = vst [vmem:[#allocation78_spill] sm:$0xff] %v10981_v16  ;;  %v10987_v56 = vsel %vm1545_vm3, %v1589_v62, %v1591_v55  ;;  %9309 = vmatmul.msk.f32.gmra.mxu2 %vm1145_vm1, %v1116_v10  ;;  %v10991_v18 = vsel %vm1620_vm6, %v3175_v27, %v3177_v46  ;;  %v10994_v2 = vsel %vm1218_vm0, %v2866_v34, %v2868_v48  ;;  %v1458_v59 = vpop.f32.mrf.mxu3 }
 0x174   : > { %16456 = vst [vmem:[#allocation79_spill] sm:$0xff] %v10984_v38  ;;  %v836_v51 = vpop.f32.mrf.mxu0 }
 0x175   : > { %16457 = vst [vmem:[#allocation80_spill] sm:$0xff] %v10987_v56  ;;  %v976_v42 = vpop.f32.mrf.mxu1 }
 0x176   : > { %16458 = vst [vmem:[#allocation81_spill] sm:$0xff] %v10991_v18  ;;  %v977_v62 = vadd.f32 %v976_v42, %v836_v51 }
 0x177   : > { %16459 = vst [vmem:[#allocation82_spill] sm:$0xff] %v10994_v2  ;;  %v1256_v63 = vpop.f32.mrf.mxu2  ;;  %883 = vmatmul.f32.gmra.mxu0 %v745_v15 }
 0x178   : > { %v11002_v10 = vadd.f32 %v1455_v60, %v1256_v63  ;;  %1023 = vmatmul.f32.gmra.mxu1 %v746_v13  ;;  %v1117_v27 = vrot.slane %v977_v62, 1  ;;  %v2077_v34 = vrot.slane %v977_v62, 3  ;;  %v2387_v2 = vrot.slane %v977_v62, 4  ;;  %9348 = vmatmul.msk.f32.gmra.mxu3 %vm1145_vm1, %v977_v62 }
 0x179   : > { %v1593_v18 = vrot.slane %v977_v62, 2  ;;  %v3179_v31 = vrot.slane %v977_v62, 6  ;;  %v2870_v56 = vrot.slane %v977_v62, 5 }
 0x17a   : > { %16460 = vst [vmem:[#allocation83_spill] sm:$0xff] %v11002_v10  ;;  %v1118_v38 = vsel %vm1069_vm2, %v1115_v4, %v1117_v27  ;;  %v11007_v16 = vsel %vm2033_vm4, %v2075_v36, %v2077_v34  ;;  %v11010_v51 = vsel %vm2343_vm5, %v2385_v14, %v2387_v2 }
 0x17b   : > { %16461 = vst [vmem:[#allocation84_spill] sm:$0xff] %v11010_v51  ;;  %v11013_v60 = vsel %vm1545_vm3, %v1591_v55, %v1593_v18  ;;  %9310 = vmatmul.msk.f32.gmra.mxu2 %vm1145_vm1, %v1118_v38  ;;  %v11017_v42 = vsel %vm1620_vm6, %v3177_v46, %v3179_v31  ;;  %v11020_v15 = vsel %vm1218_vm0, %v2868_v48, %v2870_v56  ;;  %v1461_v13 = vpop.f32.mrf.mxu3 }
 0x17c   : > { %16462 = vst [vmem:[#allocation85_spill] sm:$0xff] %v11013_v60  ;;  %v839_v62 = vpop.f32.mrf.mxu0 }
 0x17d   : > { %16463 = vst [vmem:[#allocation86_spill] sm:$0xff] %v11017_v42  ;;  %v979_v4 = vpop.f32.mrf.mxu1 }
 0x17e   : > { %16464 = vst [vmem:[#allocation87_spill] sm:$0xff] %v11020_v15  ;;  %v980_v63 = vadd.f32 %v979_v4, %v839_v62 }
 0x17f   : > { %v1259_v36 = vpop.f32.mrf.mxu2  ;;  %9435 = vmatmul.msk.f32.vlgmr.msrb.gmra.mxu0 %vm1145_vm1, %v10483_v39 }
 0x180   : > { %v11022_v10 = vadd.f32 %v1458_v59, %v1259_v36  ;;  %9472 = vmatmul.msk.f32.vlgmr.msrb.gmra.mxu1 %vm1145_vm1, %v10486_v40  ;;  %v1119_v55 = vrot.slane %v980_v63, 1  ;;  %v2079_v14 = vrot.slane %v980_v63, 3  ;;  %v2389_v46 = vrot.slane %v980_v63, 4  ;;  %9349 = vmatmul.msk.f32.gmra.mxu3 %vm1145_vm1, %v980_v63 }
 0x181   : > { %v1595_v38 = vrot.slane %v980_v63, 2  ;;  %v3181_v48 = vrot.slane %v980_v63, 6  ;;  %v2872_v15 = vrot.slane %v980_v63, 5 }
 0x182   : > { %16465 = vst [vmem:[#allocation88_spill] sm:$0xff] %v11022_v10  ;;  %v1120_v42 = vsel %vm1069_vm2, %v1117_v27, %v1119_v55  ;;  %v11031_v62 = vsel %vm2033_vm4, %v2077_v34, %v2079_v14  ;;  %v11034_v59 = vsel %vm2343_vm5, %v2387_v2, %v2389_v46 }
 0x183   : > { %16466 = vst [vmem:[#allocation89_spill] sm:$0xff] %v11034_v59  ;;  %v11037_v39 = vsel %vm1545_vm3, %v1593_v18, %v1595_v38  ;;  %9311 = vmatmul.msk.f32.gmra.mxu2 %vm1145_vm1, %v1120_v42  ;;  %v11041_v40 = vsel %vm1620_vm6, %v3179_v31, %v3181_v48  ;;  %v11044_v4 = vsel %vm1218_vm0, %v2870_v56, %v2872_v15  ;;  %v1464_v63 = vpop.f32.mrf.mxu3  ;;  %v10177_v56 = vld [vmem:[%s16378_s26] sm:$0xff] }
 0x184   : > { %16467 = vst [vmem:[#allocation90_spill] sm:$0xff] %v11037_v39  ;;  %v842_v36 = vpop.f32.mrf.mxu0 }
 0x185   : > { %16468 = vst [vmem:[#allocation91_spill] sm:$0xff] %v11041_v40  ;;  %v982_v27 = vpop.f32.mrf.mxu1 }
 0x186   : > { %16469 = vst [vmem:[#allocation92_spill] sm:$0xff] %v11044_v4  ;;  %v983_v10 = vadd.f32 %v982_v27, %v842_v36  ;;  %v1621_v4 = vrot.slane %v10177_v56, 6 }
 0x187   : > { %v1262_v34 = vpop.f32.mrf.mxu2  ;;  %9436 = vmatmul.msk.f32.gmra.mxu0 %vm1145_vm1, %v10501_v52 }
 0x188   : > { %v11046_v60 = vadd.f32 %v1461_v13, %v1262_v34  ;;  %9473 = vmatmul.msk.f32.gmra.mxu1 %vm1145_vm1, %v10504_v53  ;;  %v1121_v18 = vrot.slane %v983_v10, 1  ;;  %v2081_v2 = vrot.slane %v983_v10, 3  ;;  %v2391_v31 = vrot.slane %v983_v10, 4  ;;  %9350 = vmatmul.msk.f32.gmra.mxu3 %vm1145_vm1, %v983_v10 }
 0x189   : > { %v1597_v42 = vrot.slane %v983_v10, 2  ;;  %v3183_v36 = vrot.slane %v983_v10, 6  ;;  %v2874_v13 = vrot.slane %v983_v10, 5 }
 0x18a   : > { %16470 = vst [vmem:[#allocation93_spill] sm:$0xff] %v11046_v60  ;;  %v1122_v27 = vsel %vm1069_vm2, %v1119_v55, %v1121_v18  ;;  %v11058_v52 = vsel %vm2033_vm4, %v2079_v14, %v2081_v2  ;;  %v11061_v53 = vsel %vm2343_vm5, %v2389_v46, %v2391_v31  ;;  %v1622_v55 = vrot.slane %v10903_v50, 6 }
 0x18b   : > { %16471 = vst [vmem:[#allocation94_spill] sm:$0xff] %v11058_v52  ;;  %v11064_v34 = vsel %vm1545_vm3, %v1595_v38, %v1597_v42  ;;  %9312 = vmatmul.msk.f32.gmra.mxu2 %vm1145_vm1, %v1122_v27  ;;  %v11068_v40 = vsel %vm1620_vm6, %v3181_v48, %v3183_v36  ;;  %v11071_v56 = vsel %vm1218_vm0, %v2872_v15, %v2874_v13  ;;  %v1467_v10 = vpop.f32.mrf.mxu3 }
 0x18c   : > { %16472 = vst [vmem:[#allocation95_spill] sm:$0xff] %v11061_v53  ;;  %v845_v60 = vpop.f32.mrf.mxu0  ;;  %v1623_v46 = vsel %vm1620_vm6, %v1621_v4, %v1622_v55 }
 0x18d   : > { %16473 = vst [vmem:[#allocation96_spill] sm:$0xff] %v11068_v40  ;;  %v985_v14 = vpop.f32.mrf.mxu1  ;;  %9360 = vmatpush.msk.msrb.mxu2 %vm1218_vm0, %v1623_v46 }
 0x18e   : > { %16474 = vst [vmem:[#allocation97_spill] sm:$0xff] %v11071_v56  ;;  %v986_v39 = vadd.f32 %v985_v14, %v845_v60  ;;  %v16476_v60 = vrot.slane %v10903_v50, 4 }
 0x18f   : > { %v1265_v52 = vpop.f32.mrf.mxu2  ;;  %9437 = vmatmul.msk.f32.gmra.mxu0 %vm1145_vm1, %v10519_v5 }
 0x190   : > { %v11075_v53 = vadd.f32 %v1464_v63, %v1265_v52  ;;  %9474 = vmatmul.msk.f32.gmra.mxu1 %vm1145_vm1, %v10522_v6  ;;  %v1123_v15 = vrot.slane %v986_v39, 1  ;;  %v2083_v38 = vrot.slane %v986_v39, 3  ;;  %v2393_v48 = vrot.slane %v986_v39, 4  ;;  %9351 = vmatmul.msk.f32.gmra.mxu3 %vm1145_vm1, %v986_v39 }
 0x191   : > { %v1599_v27 = vrot.slane %v986_v39, 2  ;;  %10026 = vmatpush.msk.msra.mxu2 %vm1218_vm0, %v16476_v60  ;;  %v3185_v4 = vrot.slane %v986_v39, 6  ;;  %v2876_v63 = vrot.slane %v986_v39, 5 }
 0x192   : > { %16475 = vst [vmem:[#allocation98_spill] sm:$0xff] %v11075_v53  ;;  %v1124_v52 = vsel %vm1069_vm2, %v1121_v18, %v1123_v15  ;;  %v11088_v55 = vsel %vm2033_vm4, %v2081_v2, %v2083_v38  ;;  %v11091_v5 = vsel %vm2343_vm5, %v2391_v31, %v2393_v48 }
 0x193   : > { %16477 = vst [vmem:[#allocation99_spill] sm:$0xff] %v11091_v5  ;;  %v11094_v14 = vsel %vm1545_vm3, %v1597_v42, %v1599_v27  ;;  %9313 = vmatmul.msk.f32.gmra.mxu2 %vm1145_vm1, %v1124_v52  ;;  %v11098_v46 = vsel %vm1620_vm6, %v3183_v36, %v3185_v4  ;;  %v11101_v60 = vsel %vm1218_vm0, %v2874_v13, %v2876_v63  ;;  %v1470_v39 = vpop.f32.mrf.mxu3 }
 0x194   : > { %16478 = vst [vmem:[#allocation100_spill] sm:$0xff] %v11098_v46  ;;  %v848_v56 = vpop.f32.mrf.mxu0 }
 0x195   : > { %16479 = vst [vmem:[#allocation101_spill] sm:$0xff] %v11101_v60  ;;  %v988_v18 = vpop.f32.mrf.mxu1 }
 0x196   : > { %v989_v40 = vadd.f32 %v988_v18, %v848_v56 }
 0x197   : > { %v1268_v2 = vpop.f32.mrf.mxu2  ;;  %9438 = vmatmul.msk.f32.gmra.mxu0 %vm1145_vm1, %v10543_v23 }
 0x198   : > { %v11103_v6 = vadd.f32 %v1467_v10, %v1268_v2  ;;  %9475 = vmatmul.msk.f32.gmra.mxu1 %vm1145_vm1, %v10546_v24  ;;  %v1125_v31 = vrot.slane %v989_v40, 1  ;;  %v2085_v42 = vrot.slane %v989_v40, 3  ;;  %v2395_v36 = vrot.slane %v989_v40, 4  ;;  %9352 = vmatmul.msk.f32.gmra.mxu3 %vm1145_vm1, %v989_v40 }
 0x199   : > { %v1601_v52 = vrot.slane %v989_v40, 2  ;;  %v3187_v13 = vrot.slane %v989_v40, 6  ;;  %v2878_v60 = vrot.slane %v989_v40, 5 }
 0x19a   : > { %16480 = vst [vmem:[#allocation102_spill] sm:$0xff] %v11103_v6  ;;  %v1126_v46 = vsel %vm1069_vm2, %v1123_v15, %v1125_v31  ;;  %v11112_v56 = vsel %vm2033_vm4, %v2083_v38, %v2085_v42  ;;  %v11115_v10 = vsel %vm2343_vm5, %v2393_v48, %v2395_v36 }
 0x19b   : > { %16481 = vst [vmem:[#allocation103_spill] sm:$0xff] %v11115_v10  ;;  %v11118_v23 = vsel %vm1545_vm3, %v1599_v27, %v1601_v52  ;;  %9314 = vmatmul.msk.f32.gmra.mxu2 %vm1145_vm1, %v1126_v46  ;;  %v11122_v18 = vsel %vm1620_vm6, %v3185_v4, %v3187_v13  ;;  %v11125_v2 = vsel %vm1218_vm0, %v2876_v63, %v2878_v60  ;;  %v1473_v40 = vpop.f32.mrf.mxu3 }
 0x19c   : > { %16482 = vst [vmem:[#allocation104_spill] sm:$0xff] %v11118_v23  ;;  %v851_v24 = vpop.f32.mrf.mxu0  ;;  %v2904_v23 = vrot.slane %v10908_v43, 5 }
 0x19d   : > { %16483 = vst [vmem:[#allocation105_spill] sm:$0xff] %v11122_v18  ;;  %v991_v15 = vpop.f32.mrf.mxu1 }
 0x19e   : > { %16484 = vst [vmem:[#allocation106_spill] sm:$0xff] %v11125_v2  ;;  %v992_v6 = vadd.f32 %v991_v15, %v851_v24 }
 0x19f   : > { %v1271_v38 = vpop.f32.mrf.mxu2  ;;  %9439 = vmatmul.msk.f32.gmra.mxu0 %vm1145_vm1, %v10567_v44 }
 0x1a0   : > { %v11127_v53 = vadd.f32 %v1470_v39, %v1271_v38  ;;  %9476 = vmatmul.msk.f32.gmra.mxu1 %vm1145_vm1, %v10570_v45  ;;  %v1127_v48 = vrot.slane %v992_v6, 1  ;;  %v2087_v27 = vrot.slane %v992_v6, 3  ;;  %v2397_v4 = vrot.slane %v992_v6, 4  ;;  %9353 = vmatmul.msk.f32.gmra.mxu3 %vm1145_vm1, %v992_v6 }
 0x1a1   : > { %v1603_v46 = vrot.slane %v992_v6, 2  ;;  %v3189_v63 = vrot.slane %v992_v6, 6  ;;  %v2880_v2 = vrot.slane %v992_v6, 5 }
 0x1a2   : > { %16485 = vst [vmem:[#allocation107_spill] sm:$0xff] %v11127_v53  ;;  %v1128_v18 = vsel %vm1069_vm2, %v1125_v31, %v1127_v48  ;;  %v11136_v24 = vsel %vm2033_vm4, %v2085_v42, %v2087_v27  ;;  %v11139_v39 = vsel %vm2343_vm5, %v2395_v36, %v2397_v4 }
 0x1a3   : > { %16486 = vst [vmem:[#allocation108_spill] sm:$0xff] %v11139_v39  ;;  %v11142_v44 = vsel %vm1545_vm3, %v1601_v52, %v1603_v46  ;;  %9315 = vmatmul.msk.f32.gmra.mxu2 %vm1145_vm1, %v1128_v18  ;;  %v11146_v15 = vsel %vm1620_vm6, %v3187_v13, %v3189_v63  ;;  %v11149_v38 = vsel %vm1218_vm0, %v2878_v60, %v2880_v2  ;;  %v1476_v6 = vpop.f32.mrf.mxu3  ;;  %v1865_v52 = vrot.slane %v10903_v50, 1 }
 0x1a4   : > { %16487 = vst [vmem:[#allocation109_spill] sm:$0xff] %v11146_v15  ;;  %v854_v45 = vpop.f32.mrf.mxu0 }
 0x1a5   : > { %16488 = vst [vmem:[#allocation110_spill] sm:$0xff] %v11149_v38  ;;  %v994_v31 = vpop.f32.mrf.mxu1  ;;  %9397 = vmatpush.msk.msrb.mxu3 %vm1218_vm0, %v1865_v52 }
 0x1a6   : > { %v995_v53 = vadd.f32 %v994_v31, %v854_v45 }
 0x1a7   : > { %v1274_v42 = vpop.f32.mrf.mxu2  ;;  %9440 = vmatmul.msk.f32.gmra.mxu0 %vm1145_vm1, %v10591_v0  ;;  %9545 = vmatpush.msk.msra.mxu3 %vm1218_vm0, %v2904_v23 }
 0x1a8   : > { %v11152_v36 = vadd.f32 %v1473_v40, %v1274_v42  ;;  %9477 = vmatmul.msk.f32.gmra.mxu1 %vm1145_vm1, %v10594_v1  ;;  %v1129_v13 = vrot.slane %v995_v53, 1  ;;  %v2089_v60 = vrot.slane %v995_v53, 3  ;;  %v2399_v18 = vrot.slane %v995_v53, 4  ;;  %9354 = vmatmul.msk.f32.gmra.mxu3 %vm1145_vm1, %v995_v53 }
 0x1a9   : > { %v1605_v38 = vrot.slane %v995_v53, 2  ;;  %v3191_v45 = vrot.slane %v995_v53, 6  ;;  %v2882_v31 = vrot.slane %v995_v53, 5 }
 0x1aa   : > { %16489 = vst [vmem:[#allocation111_spill] sm:$0xff] %v11152_v36  ;;  %v1130_v15 = vsel %vm1069_vm2, %v1127_v48, %v1129_v13  ;;  %v11163_v50 = vsel %vm2033_vm4, %v2087_v27, %v2089_v60  ;;  %v11166_v0 = vsel %vm2343_vm5, %v2397_v4, %v2399_v18 }
 0x1ab   : > { %16490 = vst [vmem:[#allocation112_spill] sm:$0xff] %v11166_v0  ;;  %v11169_v40 = vsel %vm1545_vm3, %v1603_v46, %v1605_v38  ;;  %9316 = vmatmul.msk.f32.gmra.mxu2 %vm1145_vm1, %v1130_v15  ;;  %v11174_v42 = vsel %vm1620_vm6, %v3189_v63, %v3191_v45  ;;  %v11177_v53 = vsel %vm1218_vm0, %v2880_v2, %v2882_v31  ;;  %v1479_v48 = vpop.f32.mrf.mxu3 }
 0x1ac   : > { %16491 = vst [vmem:[#allocation113_spill] sm:$0xff] %v11169_v40  ;;  %v857_v52 = vpop.f32.mrf.mxu0 }
 0x1ad   : > { %16492 = vst [vmem:[#allocation114_spill] sm:$0xff] %v11174_v42  ;;  %v997_v27 = vpop.f32.mrf.mxu1 }
 0x1ae   : > { %16493 = vst [vmem:[#allocation115_spill] sm:$0xff] %v11177_v53  ;;  %v998_v1 = vadd.f32 %v997_v27, %v857_v52 }
 0x1af   : > { %v1277_v36 = vpop.f32.mrf.mxu2  ;;  %9441 = vmatmul.msk.f32.gmra.mxu0 %vm1145_vm1, %v10615_v29 }
 0x1b0   : > { %v11179_v4 = vadd.f32 %v1476_v6, %v1277_v36  ;;  %9478 = vmatmul.msk.f32.gmra.mxu1 %vm1145_vm1, %v10618_v30  ;;  %v1131_v23 = vrot.slane %v998_v1, 1  ;;  %v2091_v46 = vrot.slane %v998_v1, 3  ;;  %v2401_v63 = vrot.slane %v998_v1, 4  ;;  %9355 = vmatmul.msk.f32.gmra.mxu3 %vm1145_vm1, %v998_v1 }
 0x1b1   : > { %v1607_v15 = vrot.slane %v998_v1, 2  ;;  %v3193_v2 = vrot.slane %v998_v1, 6  ;;  %v2884_v53 = vrot.slane %v998_v1, 5 }
 0x1b2   : > { %16494 = vst [vmem:[#allocation116_spill] sm:$0xff] %v11179_v4  ;;  %v1132_v42 = vsel %vm1069_vm2, %v1129_v13, %v1131_v23  ;;  %v11188_v52 = vsel %vm2033_vm4, %v2089_v60, %v2091_v46  ;;  %v11191_v6 = vsel %vm2343_vm5, %v2399_v18, %v2401_v63 }
 0x1b3   : > { %16495 = vst [vmem:[#allocation117_spill] sm:$0xff] %v11191_v6  ;;  %v11194_v29 = vsel %vm1545_vm3, %v1605_v38, %v1607_v15  ;;  %9317 = vmatmul.msk.f32.gmra.mxu2 %vm1145_vm1, %v1132_v42  ;;  %v11198_v36 = vsel %vm1620_vm6, %v3191_v45, %v3193_v2  ;;  %v11201_v27 = vsel %vm1218_vm0, %v2882_v31, %v2884_v53  ;;  %v1482_v1 = vpop.f32.mrf.mxu3 }
 0x1b4   : > { %16496 = vst [vmem:[#allocation118_spill] sm:$0xff] %v11194_v29  ;;  %v860_v30 = vpop.f32.mrf.mxu0 }
 0x1b5   : > { %16497 = vst [vmem:[#allocation119_spill] sm:$0xff] %v11198_v36  ;;  %v1000_v13 = vpop.f32.mrf.mxu1 }
 0x1b6   : > { %16498 = vst [vmem:[#allocation120_spill] sm:$0xff] %v11201_v27  ;;  %v1001_v4 = vadd.f32 %v1000_v13, %v860_v30 }
 0x1b7   : > { %v1280_v60 = vpop.f32.mrf.mxu2  ;;  %9442 = vmatmul.msk.f32.gmra.mxu0 %vm1145_vm1, %v10639_v57 }
 0x1b8   : > { %v11203_v40 = vadd.f32 %v1479_v48, %v1280_v60  ;;  %9479 = vmatmul.msk.f32.gmra.mxu1 %vm1145_vm1, %v10642_v58  ;;  %v1133_v38 = vrot.slane %v1001_v4, 1  ;;  %v2093_v18 = vrot.slane %v1001_v4, 3  ;;  %v2403_v45 = vrot.slane %v1001_v4, 4  ;;  %9356 = vmatmul.msk.f32.gmra.mxu3 %vm1145_vm1, %v1001_v4 }
 0x1b9   : > { %v1609_v42 = vrot.slane %v1001_v4, 2  ;;  %v3195_v31 = vrot.slane %v1001_v4, 6  ;;  %v2886_v27 = vrot.slane %v1001_v4, 5 }
 0x1ba   : > { %16499 = vst [vmem:[#allocation121_spill] sm:$0xff] %v11203_v40  ;;  %v1134_v36 = vsel %vm1069_vm2, %v1131_v23, %v1133_v38  ;;  %v11212_v30 = vsel %vm2033_vm4, %v2091_v46, %v2093_v18  ;;  %v11215_v48 = vsel %vm2343_vm5, %v2401_v63, %v2403_v45 }
 0x1bb   : > { %16500 = vst [vmem:[#allocation122_spill] sm:$0xff] %v11215_v48  ;;  %v11218_v57 = vsel %vm1545_vm3, %v1607_v15, %v1609_v42  ;;  %9318 = vmatmul.msk.f32.gmra.mxu2 %vm1145_vm1, %v1134_v36  ;;  %v11222_v13 = vsel %vm1620_vm6, %v3193_v2, %v3195_v31  ;;  %v11225_v60 = vsel %vm1218_vm0, %v2884_v53, %v2886_v27  ;;  %v1485_v4 = vpop.f32.mrf.mxu3 }
 0x1bc   : > { %16501 = vst [vmem:[#allocation123_spill] sm:$0xff] %v11218_v57  ;;  %v863_v58 = vpop.f32.mrf.mxu0 }
 0x1bd   : > { %16502 = vst [vmem:[#allocation124_spill] sm:$0xff] %v11222_v13  ;;  %v1003_v23 = vpop.f32.mrf.mxu1 }
 0x1be   : > { %16503 = vst [vmem:[#allocation125_spill] sm:$0xff] %v11225_v60  ;;  %v1004_v40 = vadd.f32 %v1003_v23, %v863_v58 }
 0x1bf   : > { %v1283_v46 = vpop.f32.mrf.mxu2  ;;  %9443 = vmatmul.msk.f32.gmra.mxu0 %vm1145_vm1, %v10663_v21 }
 0x1c0   : > { %v11227_v29 = vadd.f32 %v1482_v1, %v1283_v46  ;;  %9480 = vmatmul.msk.f32.gmra.mxu1 %vm1145_vm1, %v10666_v22  ;;  %v1135_v63 = vrot.slane %v1004_v40, 1  ;;  %v2095_v15 = vrot.slane %v1004_v40, 3  ;;  %v2405_v2 = vrot.slane %v1004_v40, 4  ;;  %9357 = vmatmul.msk.f32.gmra.mxu3 %vm1145_vm1, %v1004_v40 }
 0x1c1   : > { %v1611_v36 = vrot.slane %v1004_v40, 2  ;;  %v3197_v53 = vrot.slane %v1004_v40, 6  ;;  %v2888_v60 = vrot.slane %v1004_v40, 5 }
 0x1c2   : > { %16504 = vst [vmem:[#allocation126_spill] sm:$0xff] %v11227_v29  ;;  %v1136_v13 = vsel %vm1069_vm2, %v1133_v38, %v1135_v63  ;;  %v11236_v58 = vsel %vm2033_vm4, %v2093_v18, %v2095_v15  ;;  %v11239_v1 = vsel %vm2343_vm5, %v2403_v45, %v2405_v2 }
 0x1c3   : > { %16505 = vst [vmem:[#allocation127_spill] sm:$0xff] %v11239_v1  ;;  %v11242_v21 = vsel %vm1545_vm3, %v1609_v42, %v1611_v36  ;;  %9319 = vmatmul.msk.f32.gmra.mxu2 %vm1145_vm1, %v1136_v13  ;;  %v11246_v23 = vsel %vm1620_vm6, %v3195_v31, %v3197_v53  ;;  %v11249_v46 = vsel %vm1218_vm0, %v2886_v27, %v2888_v60  ;;  %v1488_v40 = vpop.f32.mrf.mxu3 }
 0x1c4   : > { %16506 = vst [vmem:[#allocation128_spill] sm:$0xff] %v11242_v21  ;;  %v866_v22 = vpop.f32.mrf.mxu0 }
 0x1c5   : > { %16507 = vst [vmem:[#allocation129_spill] sm:$0xff] %v11246_v23  ;;  %v1006_v38 = vpop.f32.mrf.mxu1 }
 0x1c6   : > { %16508 = vst [vmem:[#allocation130_spill] sm:$0xff] %v11249_v46  ;;  %v1007_v29 = vadd.f32 %v1006_v38, %v866_v22 }
 0x1c7   : > { %v1286_v18 = vpop.f32.mrf.mxu2  ;;  %9444 = vmatmul.msk.f32.gmra.mxu0 %vm1145_vm1, %v10687_v11 }
 0x1c8   : > { %v11251_v57 = vadd.f32 %v1485_v4, %v1286_v18  ;;  %9481 = vmatmul.msk.f32.gmra.mxu1 %vm1145_vm1, %v10690_v12  ;;  %v1137_v45 = vrot.slane %v1007_v29, 1  ;;  %v2097_v42 = vrot.slane %v1007_v29, 3  ;;  %v2407_v31 = vrot.slane %v1007_v29, 4  ;;  %9358 = vmatmul.msk.f32.gmra.mxu3 %vm1145_vm1, %v1007_v29 }
 0x1c9   : > { %v1613_v13 = vrot.slane %v1007_v29, 2  ;;  %v3199_v27 = vrot.slane %v1007_v29, 6  ;;  %v2890_v46 = vrot.slane %v1007_v29, 5 }
 0x1ca   : > { %16509 = vst [vmem:[#allocation131_spill] sm:$0xff] %v11251_v57  ;;  %v1138_v23 = vsel %vm1069_vm2, %v1135_v63, %v1137_v45  ;;  %v11260_v22 = vsel %vm2033_vm4, %v2095_v15, %v2097_v42  ;;  %v11263_v4 = vsel %vm2343_vm5, %v2405_v2, %v2407_v31 }
 0x1cb   : > { %v11266_v11 = vsel %vm1545_vm3, %v1611_v36, %v1613_v13  ;;  %9320 = vmatmul.msk.f32.gmra.mxu2 %vm1145_vm1, %v1138_v23  ;;  %v11270_v38 = vsel %vm1620_vm6, %v3197_v53, %v3199_v27  ;;  %v11273_v18 = vsel %vm1218_vm0, %v2888_v60, %v2890_v46  ;;  %v1491_v29 = vpop.f32.mrf.mxu3 }
 0x1cc   : > { %16510 = vst [vmem:[#allocation132_spill] sm:$0xff] %v11266_v11  ;;  %v869_v12 = vpop.f32.mrf.mxu0 }
 0x1cd   : > { %16511 = vst [vmem:[#allocation133_spill] sm:$0xff] %v11270_v38  ;;  %v1009_v63 = vpop.f32.mrf.mxu1 }
 0x1ce   : > { %16512 = vst [vmem:[#allocation134_spill] sm:$0xff] %v11273_v18  ;;  %v1010_v57 = vadd.f32 %v1009_v63, %v869_v12 }
 0x1cf   : > { %v1289_v15 = vpop.f32.mrf.mxu2  ;;  %9445 = vmatmul.msk.f32.gmra.mxu0 %vm1145_vm1, %v10711_v61 }
 0x1d0   : > { %v11275_v21 = vadd.f32 %v1488_v40, %v1289_v15  ;;  %9482 = vmatmul.msk.f32.gmra.mxu1 %vm1145_vm1, %v10714_v33  ;;  %v1139_v2 = vrot.slane %v1010_v57, 1  ;;  %v2099_v36 = vrot.slane %v1010_v57, 3  ;;  %v2409_v53 = vrot.slane %v1010_v57, 4  ;;  %9359 = vmatmul.msk.f32.gmra.mxu3 %vm1145_vm1, %v1010_v57 }
 0x1d1   : > { %v1615_v23 = vrot.slane %v1010_v57, 2  ;;  %v3201_v60 = vrot.slane %v1010_v57, 6  ;;  %v2892_v18 = vrot.slane %v1010_v57, 5 }
 0x1d2   : > { %16513 = vst [vmem:[#allocation135_spill] sm:$0xff] %v11275_v21  ;;  %v1140_v38 = vsel %vm1069_vm2, %v1137_v45, %v1139_v2  ;;  %v11284_v12 = vsel %vm2033_vm4, %v2097_v42, %v2099_v36  ;;  %v11287_v40 = vsel %vm2343_vm5, %v2407_v31, %v2409_v53 }
 0x1d3   : > { %v11290_v61 = vsel %vm1545_vm3, %v1613_v13, %v1615_v23  ;;  %9321 = vmatmul.msk.f32.gmra.mxu2 %vm1145_vm1, %v1140_v38  ;;  %v11294_v63 = vsel %vm1620_vm6, %v3199_v27, %v3201_v60  ;;  %v11297_v15 = vsel %vm1218_vm0, %v2890_v46, %v2892_v18  ;;  %v1494_v57 = vpop.f32.mrf.mxu3 }
 0x1d4   : > { %16514 = vst [vmem:[#allocation136_spill] sm:$0xff] %v11294_v63  ;;  %v872_v33 = vpop.f32.mrf.mxu0 }
 0x1d5   : > { %16515 = vst [vmem:[#allocation137_spill] sm:$0xff] %v11297_v15  ;;  %v1012_v45 = vpop.f32.mrf.mxu1 }
 0x1d6   : > { %v11299_v21 = vadd.f32 %v1012_v45, %v872_v33 }
 0x1d7   : > { %v1292_v42 = vpop.f32.mrf.mxu2  ;;  %9446 = vmatmul.msk.f32.gmra.mxu0 %vm1145_vm1, %v10735_v28 }
 0x1d8   : > { %v11301_v11 = vadd.f32 %v1491_v29, %v1292_v42  ;;  %9483 = vmatmul.msk.f32.gmra.mxu1 %vm1145_vm1, %v10738_v9  ;;  %v1141_v31 = vrot.slane %v11299_v21, 1  ;;  %v16319_v13 = vrot.slane %v11299_v21, 4  ;;  %v1617_v46 = vrot.slane %v11299_v21, 2  ;;  %9398 = vmatmul.msk.f32.vlgmr.msrb.gmra.mxu3 %vm1145_vm1, %v10489_v41 }
 0x1d9   : > { %v2101_v27 = vrot.slane %v11299_v21, 3  ;;  %v3203_v33 = vrot.slane %v11299_v21, 6  ;;  %v2894_v38 = vrot.slane %v11299_v21, 5 }
 0x1da   : > { %16516 = vst [vmem:[#allocation138_spill] sm:$0xff] %v11301_v11  ;;  %v1142_v28 = vsel %vm1069_vm2, %v1139_v2, %v1141_v31  ;;  %v11319_v29 = vsel %vm2343_vm5, %v2409_v53, %v16319_v13  ;;  %v11322_v45 = vsel %vm1545_vm3, %v1615_v23, %v1617_v46  ;;  %v2663_v23 = vrot.slane %v10908_v43, 2 }
 0x1db   : > { %16517 = vst [vmem:[#allocation139_spill] sm:$0xff] %v11319_v29  ;;  %v11325_v42 = vsel %vm2033_vm4, %v2099_v36, %v2101_v27  ;;  %9322 = vmatmul.msk.f32.gmra.mxu2 %vm1145_vm1, %v1142_v28  ;;  %v11329_v15 = vsel %vm1620_vm6, %v3201_v60, %v3203_v33  ;;  %v11332_v63 = vsel %vm1218_vm0, %v2892_v18, %v2894_v38  ;;  %v1497_v2 = vpop.f32.mrf.mxu3 }
 0x1dc   : > { %16518 = vst [vmem:[#allocation140_spill] sm:$0xff] %v11332_v63  ;;  %v875_v31 = vpop.f32.mrf.mxu0 }
 0x1dd   : > { %v1015_v9 = vpop.f32.mrf.mxu1 }
 0x1de   : > { %v11334_v11 = vadd.f32 %v1015_v9, %v875_v31 }
 0x1df   : > { %v1295_v53 = vpop.f32.mrf.mxu2  ;;  %9447 = vmatmul.msk.f32.gmra.mxu0 %vm1145_vm1, %v10759_v37 }
 0x1e0   : > { %v11336_v13 = vadd.f32 %v1494_v57, %v1295_v53  ;;  %9484 = vmatmul.msk.f32.gmra.mxu1 %vm1145_vm1, %v10762_v35  ;;  %v16323_v36 = vrot.slane %v11334_v11, 2  ;;  %v16322_v18 = vrot.slane %v11334_v11, 3  ;;  %v16321_v60 = vrot.slane %v11334_v11, 6  ;;  %9399 = vmatmul.msk.f32.gmra.mxu3 %vm1145_vm1, %v10507_v54 }
 0x1e1   : > { %v16320_v9 = vrot.slane %v11334_v11, 5 }
 0x1e2   : > { %v11352_v43 = vsel %vm1545_vm3, %v1617_v46, %v16323_v36  ;;  %v11357_v37 = vsel %vm2033_vm4, %v2101_v27, %v16322_v18  ;;  %v11362_v57 = vsel %vm1620_vm6, %v3203_v33, %v16321_v60 }
 0x1e3   : > { %16519 = vst [vmem:[#allocation141_spill] sm:$0xff] %v11362_v57  ;;  %9361 = vmatmul.msk.f32.vlgmr.msrb.gmra.mxu2 %vm1145_vm1, %v10459_v17  ;;  %v11369_v28 = vsel %vm1218_vm0, %v2894_v38, %v16320_v9  ;;  %v1500_v46 = vpop.f32.mrf.mxu3 }
 0x1e4   : > { %16520 = vst [vmem:[#allocation142_spill] sm:$0xff] %v11369_v28  ;;  %9508 = vmatpush.msk.msrb.mxu2 %vm1218_vm0, %v2663_v23  ;;  %v11372_v31 = vpop.f32.mrf.mxu0 }
 0x1e5   : > { %v11432_v28 = vpop.f32.mrf.mxu1 }
 0x1e7   : > { %v1298_v27 = vpop.f32.mrf.mxu2  ;;  %9448 = vmatmul.msk.f32.gmra.mxu0 %vm1145_vm1, %v10783_v32 }
 0x1e8   : > { %v11374_v53 = vadd.f32 %v1497_v2, %v1298_v27  ;;  %9485 = vmatmul.msk.f32.gmra.mxu1 %vm1145_vm1, %v10786_v3  ;;  %9400 = vmatmul.msk.f32.gmra.mxu3 %vm1145_vm1, %v10525_v7 }
 0x1eb   : > { %9362 = vmatmul.msk.f32.gmra.mxu2 %vm1145_vm1, %v10471_v26  ;;  %v1503_v17 = vpop.f32.mrf.mxu3 }
 0x1ec   : > { %v11384_v33 = vpop.f32.mrf.mxu0 }
 0x1ef   : > { %v1301_v38 = vpop.f32.mrf.mxu2  ;;  %9449 = vmatmul.msk.f32.gmra.mxu0 %vm1145_vm1, %v10807_v8  ;;  %v16521_v8 = vld [vmem:[#allocation9_spill] sm:$0xff] }
 0x1f0   : > { %v11386_v23 = vadd.f32 %v1500_v46, %v1301_v38  ;;  %9486 = vmatmul.msk.f32.gmra.mxu1 %vm1145_vm1, %v10810_v49  ;;  %9401 = vmatmul.msk.f32.gmra.mxu3 %vm1145_vm1, %v10549_v25 }
 0x1f3   : > { %9363 = vmatmul.msk.f32.gmra.mxu2 %vm1145_vm1, %v10489_v41  ;;  %v1506_v32 = vpop.f32.mrf.mxu3 }
 0x1f4   : > { %v11396_v26 = vpop.f32.mrf.mxu0 }
 0x1f7   : > { %v1304_v2 = vpop.f32.mrf.mxu2  ;;  %9450 = vmatmul.msk.f32.gmra.mxu0 %vm1145_vm1, %v10833_v20  ;;  %v16525_v20 = vld [vmem:[#allocation13_spill] sm:$0xff] }
 0x1f8   : > { %v11398_v27 = vadd.f32 %v1503_v17, %v1304_v2  ;;  %9487 = vmatmul.msk.f32.gmra.mxu1 %vm1145_vm1, %v10836_v19  ;;  %9402 = vmatmul.msk.f32.gmra.mxu3 %vm1145_vm1, %v16521_v8  ;;  %v16523_v17 = vld [vmem:[#allocation55_spill] sm:$0xff]  ;;  %v16524_v2 = vld [vmem:[#allocation56_spill] sm:$0xff] }
 0x1fb   : > { %9364 = vmatmul.msk.f32.gmra.mxu2 %vm1145_vm1, %v10507_v54  ;;  %v1509_v46 = vpop.f32.mrf.mxu3 }
 0x1fc   : > { %v11408_v41 = vpop.f32.mrf.mxu0 }
 0x1fd   : > { %16522 = vst [vmem:[#allocation9_spill] sm:$0xff] %v11408_v41 }
 0x1ff   : > { %v1307_v38 = vpop.f32.mrf.mxu2  ;;  %9451 = vmatmul.msk.f32.gmra.mxu0 %vm1145_vm1, %v16523_v17  ;;  %v16529_v17 = vld [vmem:[#allocation17_spill] sm:$0xff] }
 0x200   : > { %v11410_v9 = vadd.f32 %v1506_v32, %v1307_v38  ;;  %9488 = vmatmul.msk.f32.gmra.mxu1 %vm1145_vm1, %v16524_v2  ;;  %9403 = vmatmul.msk.f32.gmra.mxu3 %vm1145_vm1, %v16525_v20  ;;  %v16527_v32 = vld [vmem:[#allocation61_spill] sm:$0xff]  ;;  %v16528_v38 = vld [vmem:[#allocation62_spill] sm:$0xff] }
 0x203   : > { %9365 = vmatmul.msk.f32.gmra.mxu2 %vm1145_vm1, %v10525_v7  ;;  %v1512_v60 = vpop.f32.mrf.mxu3 }
 0x204   : > { %v11420_v54 = vpop.f32.mrf.mxu0 }
 0x205   : > { %16526 = vst [vmem:[#allocation55_spill] sm:$0xff] %v11420_v54 }
 0x207   : > { %v1310_v18 = vpop.f32.mrf.mxu2  ;;  %9452 = vmatmul.msk.f32.gmra.mxu0 %vm1145_vm1, %v16527_v32  ;;  %v16532_v32 = vld [vmem:[#allocation21_spill] sm:$0xff] }
 0x208   : > { %v11422_v36 = vadd.f32 %v1509_v46, %v1310_v18  ;;  %9489 = vmatmul.msk.f32.gmra.mxu1 %vm1145_vm1, %v16528_v38  ;;  %9404 = vmatmul.msk.f32.gmra.mxu3 %vm1145_vm1, %v16529_v17  ;;  %v16531_v46 = vld [vmem:[#allocation67_spill] sm:$0xff]  ;;  %v11448_v38 = vpop.f32.mrf.mxu1 }
 0x20b   : > { %9366 = vmatmul.msk.f32.gmra.mxu2 %vm1145_vm1, %v10549_v25  ;;  %v1515_v7 = vpop.f32.mrf.mxu3 }
 0x20c   : > { %v11434_v63 = vpop.f32.mrf.mxu0 }
 0x20d   : > { %16530 = vst [vmem:[#allocation13_spill] sm:$0xff] %v11434_v63 }
 0x20f   : > { %v1313_v54 = vpop.f32.mrf.mxu2  ;;  %9453 = vmatmul.msk.f32.gmra.mxu0 %vm1145_vm1, %v10929_v47  ;;  %v16535_v47 = vld [vmem:[#allocation73_spill] sm:$0xff] }
 0x210   : > { %v11436_v18 = vadd.f32 %v1512_v60, %v1313_v54  ;;  %9490 = vmatmul.msk.f32.gmra.mxu1 %vm1145_vm1, %v16531_v46  ;;  %9405 = vmatmul.msk.f32.gmra.mxu3 %vm1145_vm1, %v16532_v32  ;;  %v16534_v54 = vld [vmem:[#allocation72_spill] sm:$0xff]  ;;  %v16536_v46 = vld [vmem:[#allocation25_spill] sm:$0xff] }
 0x213   : > { %9367 = vmatmul.msk.f32.gmra.mxu2 %vm1145_vm1, %v16521_v8  ;;  %v1518_v25 = vpop.f32.mrf.mxu3 }
 0x214   : > { %v11446_v41 = vpop.f32.mrf.mxu0 }
 0x215   : > { %16533 = vst [vmem:[#allocation61_spill] sm:$0xff] %v11446_v41 }
 0x217   : > { %v1316_v63 = vpop.f32.mrf.mxu2  ;;  %9454 = vmatmul.msk.f32.gmra.mxu0 %vm1145_vm1, %v16534_v54  ;;  %v16539_v54 = vld [vmem:[#allocation79_spill] sm:$0xff] }
 0x218   : > { %v11450_v60 = vadd.f32 %v1515_v7, %v1316_v63  ;;  %9491 = vmatmul.msk.f32.gmra.mxu1 %vm1145_vm1, %v16535_v47  ;;  %9406 = vmatmul.msk.f32.gmra.mxu3 %vm1145_vm1, %v16536_v46  ;;  %v11464_v63 = vpop.f32.mrf.mxu1  ;;  %v16538_v7 = vld [vmem:[#allocation78_spill] sm:$0xff]  ;;  %v16540_v47 = vld [vmem:[#allocation29_spill] sm:$0xff] }
 0x21b   : > { %9368 = vmatmul.msk.f32.gmra.mxu2 %vm1145_vm1, %v16525_v20  ;;  %v1521_v8 = vpop.f32.mrf.mxu3 }
 0x21c   : > { %v11460_v2 = vpop.f32.mrf.mxu0 }
 0x21d   : > { %16537 = vst [vmem:[#allocation17_spill] sm:$0xff] %v11460_v2 }
 0x21f   : > { %v1319_v41 = vpop.f32.mrf.mxu2  ;;  %9455 = vmatmul.msk.f32.gmra.mxu0 %vm1145_vm1, %v16538_v7 }
 0x220   : > { %v11462_v57 = vadd.f32 %v1518_v25, %v1319_v41  ;;  %9492 = vmatmul.msk.f32.gmra.mxu1 %vm1145_vm1, %v16539_v54  ;;  %9407 = vmatmul.msk.f32.gmra.mxu3 %vm1145_vm1, %v16540_v47  ;;  %v16542_v25 = vld [vmem:[#allocation33_spill] sm:$0xff]  ;;  %v11484_v7 = vpop.f32.mrf.mxu1 }
 0x221   : > { %16543 = vst [vmem:[#allocation72_spill] sm:$0xff] %v11484_v7 }
 0x223   : > { %9369 = vmatmul.msk.f32.gmra.mxu2 %vm1145_vm1, %v16529_v17  ;;  %v1524_v20 = vpop.f32.mrf.mxu3 }
 0x224   : > { %v11474_v19 = vpop.f32.mrf.mxu0 }
 0x225   : > { %16541 = vst [vmem:[#allocation21_spill] sm:$0xff] %v11474_v19 }
 0x227   : > { %v1322_v2 = vpop.f32.mrf.mxu2  ;;  %9456 = vmatmul.msk.f32.gmra.mxu0 %vm1145_vm1, %v11007_v16  ;;  %v16545_v16 = vld [vmem:[#allocation37_spill] sm:$0xff] }
 0x228   : > { %v11476_v41 = vadd.f32 %v1521_v8, %v1322_v2  ;;  %9493 = vmatmul.msk.f32.gmra.mxu1 %vm1145_vm1, %v11010_v51  ;;  %9408 = vmatmul.msk.f32.gmra.mxu3 %vm1145_vm1, %v16542_v25  ;;  %v11500_v8 = vpop.f32.mrf.mxu1 }
 0x229   : > { %16546 = vst [vmem:[#allocation78_spill] sm:$0xff] %v11500_v8 }
 0x22b   : > { %9370 = vmatmul.msk.f32.gmra.mxu2 %vm1145_vm1, %v16532_v32  ;;  %v1527_v17 = vpop.f32.mrf.mxu3 }
 0x22c   : > { %v11488_v54 = vpop.f32.mrf.mxu0 }
 0x22d   : > { %16544 = vst [vmem:[#allocation25_spill] sm:$0xff] %v11488_v54 }
 0x22f   : > { %v1325_v19 = vpop.f32.mrf.mxu2  ;;  %9457 = vmatmul.msk.f32.gmra.mxu0 %vm1145_vm1, %v11031_v62  ;;  %v16549_v62 = vld [vmem:[#allocation95_spill] sm:$0xff] }
 0x230   : > { %v11490_v2 = vadd.f32 %v1524_v20, %v1325_v19  ;;  %9494 = vmatmul.msk.f32.gmra.mxu1 %vm1145_vm1, %v11034_v59  ;;  %9409 = vmatmul.msk.f32.gmra.mxu3 %vm1145_vm1, %v16545_v16  ;;  %v16548_v20 = vld [vmem:[#allocation94_spill] sm:$0xff]  ;;  %v16550_v59 = vld [vmem:[#allocation40_spill] sm:$0xff]  ;;  %v11516_v7 = vpop.f32.mrf.mxu1 }
 0x233   : > { %9371 = vmatmul.msk.f32.gmra.mxu2 %vm1145_vm1, %v16536_v46  ;;  %v1530_v32 = vpop.f32.mrf.mxu3 }
 0x234   : > { %v11502_v51 = vpop.f32.mrf.mxu0 }
 0x235   : > { %16547 = vst [vmem:[#allocation29_spill] sm:$0xff] %v11502_v51 }
 0x237   : > { %v1328_v54 = vpop.f32.mrf.mxu2  ;;  %9458 = vmatmul.msk.f32.gmra.mxu0 %vm1145_vm1, %v16548_v20 }
 0x238   : > { %v11504_v19 = vadd.f32 %v1527_v17, %v1328_v54  ;;  %9495 = vmatmul.msk.f32.gmra.mxu1 %vm1145_vm1, %v16549_v62  ;;  %9410 = vmatmul.msk.f32.gmra.mxu3 %vm1145_vm1, %v16550_v59  ;;  %v16552_v17 = vld [vmem:[#allocation43_spill] sm:$0xff] }
 0x23b   : > { %9372 = vmatmul.msk.f32.gmra.mxu2 %vm1145_vm1, %v16540_v47  ;;  %v1533_v46 = vpop.f32.mrf.mxu3 }
 0x23c   : > { %v11514_v8 = vpop.f32.mrf.mxu0 }
 0x23d   : > { %16551 = vst [vmem:[#allocation33_spill] sm:$0xff] %v11514_v8 }
 0x23f   : > { %v1331_v51 = vpop.f32.mrf.mxu2  ;;  %9459 = vmatmul.msk.f32.gmra.mxu0 %vm1145_vm1, %v11088_v55  ;;  %v16555_v55 = vld [vmem:[#allocation46_spill] sm:$0xff] }
 0x240   : > { %v11518_v54 = vadd.f32 %v1530_v32, %v1331_v51  ;;  %9496 = vmatmul.msk.f32.gmra.mxu1 %vm1145_vm1, %v11091_v5  ;;  %9411 = vmatmul.msk.f32.gmra.mxu3 %vm1145_vm1, %v16552_v17  ;;  %v11532_v51 = vpop.f32.mrf.mxu1 }
 0x241   : > { %16554 = vst [vmem:[#allocation94_spill] sm:$0xff] %v11532_v51 }
 0x243   : > { %9373 = vmatmul.msk.f32.gmra.mxu2 %vm1145_vm1, %v16542_v25  ;;  %v1536_v47 = vpop.f32.mrf.mxu3 }
 0x244   : > { %v11528_v20 = vpop.f32.mrf.mxu0 }
 0x245   : > { %16553 = vst [vmem:[#allocation37_spill] sm:$0xff] %v11528_v20 }
 0x247   : > { %v1334_v8 = vpop.f32.mrf.mxu2  ;;  %9460 = vmatmul.msk.f32.gmra.mxu0 %vm1145_vm1, %v11112_v56  ;;  %v16557_v56 = vld [vmem:[#allocation51_spill] sm:$0xff] }
 0x248   : > { %v11530_v62 = vadd.f32 %v1533_v46, %v1334_v8  ;;  %9497 = vmatmul.msk.f32.gmra.mxu1 %vm1145_vm1, %v11115_v10  ;;  %9412 = vmatmul.msk.f32.gmra.mxu3 %vm1145_vm1, %v16555_v55  ;;  %v11552_v46 = vpop.f32.mrf.mxu1 }
 0x249   : > { %16558 = vst [vmem:[#allocation43_spill] sm:$0xff] %v11552_v46 }
 0x24b   : > { %9374 = vmatmul.msk.f32.gmra.mxu2 %vm1145_vm1, %v16545_v16  ;;  %v1539_v25 = vpop.f32.mrf.mxu3 }
 0x24c   : > { %v11542_v32 = vpop.f32.mrf.mxu0 }
 0x24d   : > { %16556 = vst [vmem:[#allocation40_spill] sm:$0xff] %v11542_v32 }
 0x24f   : > { %v1337_v20 = vpop.f32.mrf.mxu2  ;;  %9461 = vmatmul.msk.f32.gmra.mxu0 %vm1145_vm1, %v11136_v24  ;;  %v16560_v24 = vld [vmem:[#allocation57_spill] sm:$0xff] }
 0x250   : > { %v11544_v8 = vadd.f32 %v1536_v47, %v1337_v20  ;;  %9498 = vmatmul.msk.f32.gmra.mxu1 %vm1145_vm1, %v11139_v39  ;;  %9413 = vmatmul.msk.f32.gmra.mxu3 %vm1145_vm1, %v16557_v56  ;;  %v11568_v20 = vadd.f32 %v11432_v28, %v11372_v31  ;;  %v11582_v28 = vadd.f32 %v11448_v38, %v11384_v33  ;;  %v16565_v33 = vld [vmem:[#allocation63_spill] sm:$0xff] }
 0x252   : > { %v2898_v5 = vrot.slane %v11568_v20, 5  ;;  %v16566_v38 = vrot.slane %v11568_v20, 6  ;;  %v16332_v51 = vrot.slane %v11568_v20, 4 }
 0x253   : > { %9375 = vmatmul.msk.f32.gmra.mxu2 %vm1145_vm1, %v16550_v59  ;;  %v1542_v16 = vpop.f32.mrf.mxu3  ;;  %v11572_v59 = vpop.f32.mrf.mxu1 }
 0x254   : > { %v11556_v10 = vpop.f32.mrf.mxu0  ;;  %16561 = vst [vmem:[#allocation51_spill] sm:$0xff] %v11572_v59 }
 0x255   : > { %16559 = vst [vmem:[#allocation46_spill] sm:$0xff] %v11556_v10  ;;  %v1863_v10 = vrot.slane %v11568_v20, 2 }
 0x257   : > { %v1340_v32 = vpop.f32.mrf.mxu2  ;;  %9462 = vmatmul.msk.f32.gmra.mxu0 %vm1145_vm1, %v11163_v50  ;;  %v2105_v50 = vrot.slane %v11568_v20, 3 }
 0x258   : > { %v11558_v47 = vadd.f32 %v1539_v25, %v1340_v32  ;;  %9499 = vmatmul.msk.f32.gmra.mxu1 %vm1145_vm1, %v11166_v0  ;;  %9414 = vmatmul.msk.f32.gmra.mxu3 %vm1145_vm1, %v16560_v24 }
 0x25b   : > { %9376 = vmatmul.msk.f32.gmra.mxu2 %vm1145_vm1, %v16552_v17  ;;  %v1889_v25 = vpop.f32.mrf.mxu3  ;;  %v16563_v17 = vrot.slane %v11334_v11, 2  ;;  %v11618_v59 = vpop.f32.mrf.mxu1 }
 0x25c   : > { %v11584_v31 = vpop.f32.mrf.mxu0  ;;  %16570 = vst [vmem:[#allocation143_spill] sm:$0xff] %v11618_v59  ;;  %v16574_v59 = vld [vmem:[#allocation68_spill] sm:$0xff] }
 0x25d   : > { %16562 = vst [vmem:[#allocation57_spill] sm:$0xff] %v11584_v31  ;;  %v11593_v0 = vsel %vm1545_vm3, %v16563_v17, %v1863_v10  ;;  %v2900_v17 = vrot.slane %v11582_v28, 5 }
 0x25f   : > { %v1343_v32 = vpop.f32.mrf.mxu2  ;;  %9463 = vmatmul.msk.f32.gmra.mxu0 %vm1145_vm1, %v11188_v52  ;;  %v16567_v52 = vrot.slane %v11334_v11, 6 }
 0x260   : > { %v11577_v39 = vadd.f32 %v1542_v16, %v1343_v32  ;;  %9500 = vmatmul.msk.f32.gmra.mxu1 %vm1145_vm1, %v11191_v6  ;;  %v16564_v16 = vrot.slane %v11334_v11, 3  ;;  %9415 = vmatmul.msk.f32.gmra.mxu3 %vm1145_vm1, %v16565_v33  ;;  %v16568_v6 = vrot.slane %v11334_v11, 5 }
 0x261   : > { %v11607_v31 = vsel %vm1620_vm6, %v16567_v52, %v16566_v38  ;;  %v16571_v38 = vld [vmem:[#allocation49_spill] sm:$0xff] }
 0x262   : > { %v11598_v32 = vsel %vm2033_vm4, %v16564_v16, %v2105_v50  ;;  %v11612_v10 = vsel %vm1218_vm0, %v16568_v6, %v2898_v5  ;;  %v2659_v50 = vrot.slane %v11582_v28, 4  ;;  %v1030_v6 = vld [vmem:[%s16378_s26 + $0x18] sm:$0x7] }
 0x263   : > { %16569 = vst [vmem:[#allocation63_spill] sm:$0xff] %v11612_v10  ;;  %9377 = vmatmul.msk.f32.gmra.mxu2 %vm1145_vm1, %v16555_v55  ;;  %v1892_v16 = vpop.f32.mrf.mxu3  ;;  %v11627_v10 = vadd.f32 %v11464_v63, %v11396_v26  ;;  %v11634_v55 = vsel %vm1218_vm0, %v2898_v5, %v2900_v17  ;;  %9582 = vmatpush.msk.msra.mxu0 %vm1218_vm0, %v1030_v6 }
 0x264   : > { %16572 = vst [vmem:[#allocation49_spill] sm:$0xff] %v11634_v55  ;;  %v11646_v26 = vpop.f32.mrf.mxu0 }
 0x265   : > { %16575 = vst [vmem:[#allocation68_spill] sm:$0xff] %v11646_v26  ;;  %v2661_v5 = vrot.slane %v11627_v10, 4  ;;  %v16579_v26 = vld [vmem:[#allocation74_spill] sm:$0xff] }
 0x267   : > { %v1715_v46 = vpop.f32.mrf.mxu2  ;;  %9464 = vmatmul.msk.f32.gmra.mxu0 %vm1145_vm1, %v11212_v30  ;;  %v2902_v30 = vrot.slane %v11627_v10, 5 }
 0x268   : > { %v1823_v52 = vadd.f32 %v1715_v46, %v16571_v38  ;;  %9501 = vmatmul.msk.f32.gmra.mxu1 %vm1145_vm1, %v11215_v48  ;;  %v11639_v46 = vsel %vm2343_vm5, %v16332_v51, %v2659_v50  ;;  %9416 = vmatmul.msk.f32.gmra.mxu3 %vm1145_vm1, %v16574_v59  ;;  %v16576_v51 = vld [vmem:[#allocation54_spill] sm:$0xff]  ;;  %v16580_v48 = vld [vmem:[#allocation60_spill] sm:$0xff] }
 0x269   : > { %16573 = vst [vmem:[#allocation144_spill] sm:$0xff] %v11639_v46 }
 0x26a   : > { %v11641_v38 = vadd.f32 %v1889_v25, %v1823_v52  ;;  %v11653_v25 = vpop.f32.mrf.mxu1  ;;  %v11660_v52 = vsel %vm1218_vm0, %v2900_v17, %v2902_v30  ;;  %v16581_v17 = vld [vmem:[#allocation80_spill] sm:$0xff] }
 0x26b   : > { %9378 = vmatmul.msk.f32.gmra.mxu2 %vm1145_vm1, %v16557_v56  ;;  %v1895_v63 = vpop.f32.mrf.mxu3  ;;  %16577 = vst [vmem:[#allocation54_spill] sm:$0xff] %v11660_v52  ;;  %v11663_v56 = vsel %vm2343_vm5, %v2659_v50, %v2661_v5  ;;  %v16583_v5 = vld [vmem:[#allocation66_spill] sm:$0xff] }
 0x26c   : > { %16578 = vst [vmem:[#allocation145_spill] sm:$0xff] %v11663_v56  ;;  %v16586_v56 = vld [vmem:[#allocation71_spill] sm:$0xff] }
 0x26f   : > { %v1718_v55 = vpop.f32.mrf.mxu2  ;;  %9465 = vmatmul.msk.f32.gmra.mxu0 %vm1145_vm1, %v11236_v58 }
 0x270   : > { %v1824_v46 = vadd.f32 %v1718_v55, %v16576_v51  ;;  %9502 = vmatmul.msk.f32.gmra.mxu1 %vm1145_vm1, %v11239_v1  ;;  %9417 = vmatmul.msk.f32.gmra.mxu3 %vm1145_vm1, %v16579_v26  ;;  %v11671_v51 = vpop.f32.mrf.mxu0 }
 0x272   : > { %v11665_v6 = vadd.f32 %v1892_v16, %v1824_v46  ;;  %v11682_v16 = vpop.f32.mrf.mxu1 }
 0x273   : > { %9379 = vmatmul.msk.f32.gmra.mxu2 %vm1145_vm1, %v16560_v24  ;;  %v1898_v58 = vpop.f32.mrf.mxu3 }
 0x277   : > { %v1721_v55 = vpop.f32.mrf.mxu2  ;;  %9466 = vmatmul.msk.f32.gmra.mxu0 %vm1145_vm1, %v11260_v22  ;;  %v16584_v22 = vld [vmem:[#allocation85_spill] sm:$0xff] }
 0x278   : > { %v1825_v1 = vadd.f32 %v1721_v55, %v16580_v48  ;;  %9503 = vmatmul.msk.f32.gmra.mxu1 %vm1145_vm1, %v11263_v4  ;;  %9418 = vmatmul.msk.f32.gmra.mxu3 %vm1145_vm1, %v16581_v17  ;;  %v11686_v46 = vpop.f32.mrf.mxu0 }
 0x279   : > { %16582 = vst [vmem:[#allocation74_spill] sm:$0xff] %v11686_v46 }
 0x27a   : > { %v11678_v50 = vadd.f32 %v1895_v63, %v1825_v1 }
 0x27b   : > { %9380 = vmatmul.msk.f32.gmra.mxu2 %vm1145_vm1, %v16565_v33  ;;  %v1901_v24 = vpop.f32.mrf.mxu3  ;;  %v11699_v33 = vpop.f32.mrf.mxu1 }
 0x27c   : > { %16585 = vst [vmem:[#allocation60_spill] sm:$0xff] %v11699_v33 }
 0x27f   : > { %v1724_v48 = vpop.f32.mrf.mxu2  ;;  %9467 = vmatmul.msk.f32.gmra.mxu0 %vm1145_vm1, %v11284_v12  ;;  %v16588_v12 = vld [vmem:[#allocation3_spill] sm:$0xff] }
 0x280   : > { %v1826_v30 = vadd.f32 %v1724_v48, %v16583_v5  ;;  %9504 = vmatmul.msk.f32.gmra.mxu1 %vm1145_vm1, %v11287_v40  ;;  %9419 = vmatmul.msk.f32.gmra.mxu3 %vm1145_vm1, %v16584_v22  ;;  %v11702_v5 = vpop.f32.mrf.mxu0 }
 0x281   : > { %16587 = vst [vmem:[#allocation80_spill] sm:$0xff] %v11702_v5  ;;  %v16591_v5 = vld [vmem:[#allocation77_spill] sm:$0xff] }
 0x282   : > { %v11693_v1 = vadd.f32 %v1898_v58, %v1826_v30  ;;  %v16589_v30 = vld [vmem:[#allocation90_spill] sm:$0xff] }
 0x283   : > { %9381 = vmatmul.msk.f32.gmra.mxu2 %vm1145_vm1, %v16574_v59  ;;  %v1904_v63 = vpop.f32.mrf.mxu3  ;;  %v2413_v59 = vrot.slane %v11334_v11, 4 }
 0x287   : > { %v1727_v55 = vpop.f32.mrf.mxu2  ;;  %9583 = vmatmul.msk.f32.vlgmr.msra.gmra.mxu0 %vm1145_vm1, %v16588_v12 }
 0x288   : > { %v1827_v48 = vadd.f32 %v1727_v55, %v16586_v56  ;;  %9505 = vmatmul.msk.f32.gmra.mxu1 %vm1145_vm1, %v11319_v29  ;;  %9420 = vmatmul.msk.f32.gmra.mxu3 %vm1145_vm1, %v16589_v30  ;;  %v11715_v56 = vpop.f32.mrf.mxu1  ;;  %v16592_v29 = vrot.slane %v11299_v21, 4  ;;  %v11731_v11 = vpop.f32.mrf.mxu0 }
 0x289   : > { %16590 = vst [vmem:[#allocation66_spill] sm:$0xff] %v11715_v56 }
 0x28a   : > { %v11708_v58 = vadd.f32 %v1901_v24, %v1827_v48  ;;  %v11721_v12 = vsel %vm2343_vm5, %v16592_v29, %v2413_v59  ;;  %v16594_v24 = vld [vmem:[#allocation6_spill] sm:$0xff]  ;;  %16595 = vst [vmem:[#allocation71_spill] sm:$0xff] %v11731_v11  ;;  %v16596_v29 = vld [vmem:[#allocation83_spill] sm:$0xff] }
 0x28b   : > { %9382 = vmatmul.msk.f32.gmra.mxu2 %vm1145_vm1, %v16579_v26  ;;  %v1907_v33 = vpop.f32.mrf.mxu3  ;;  %16593 = vst [vmem:[#allocation85_spill] sm:$0xff] %v11721_v12  ;;  %v16603_v11 = vld [vmem:[#allocation14_spill] sm:$0xff] }
 0x28f   : > { %v1730_v55 = vpop.f32.mrf.mxu2  ;;  %9584 = vmatmul.msk.f32.gmra.mxu0 %vm1145_vm1, %v16594_v24 }
 0x290   : > { %v1828_v46 = vadd.f32 %v1730_v55, %v16591_v5  ;;  %9506 = vmatmul.msk.f32.gmra.mxu1 %vm1145_vm1, %v11721_v12  ;;  %9421 = vmatmul.msk.f32.gmra.mxu3 %vm1145_vm1, %v11064_v34  ;;  %v16597_v55 = vrot.slane %v11568_v20, 4  ;;  %v11741_v24 = vpop.f32.mrf.mxu1 }
 0x291   : > { %16599 = vst [vmem:[#allocation90_spill] sm:$0xff] %v11741_v24  ;;  %v16607_v24 = vld [vmem:[#allocation18_spill] sm:$0xff] }
 0x292   : > { %v11727_v26 = vadd.f32 %v1904_v63, %v1828_v46  ;;  %v11739_v12 = vsel %vm2343_vm5, %v2413_v59, %v16597_v55  ;;  %v16600_v46 = vld [vmem:[#allocation10_spill] sm:$0xff] }
 0x293   : > { %9383 = vmatmul.msk.f32.gmra.mxu2 %vm1145_vm1, %v16581_v17  ;;  %v1910_v21 = vpop.f32.mrf.mxu3  ;;  %16598 = vst [vmem:[#allocation3_spill] sm:$0xff] %v11739_v12  ;;  %v11753_v17 = vpop.f32.mrf.mxu0 }
 0x294   : > { %16601 = vst [vmem:[#allocation77_spill] sm:$0xff] %v11753_v17  ;;  %v16606_v17 = vld [vmem:[#allocation93_spill] sm:$0xff] }
 0x297   : > { %v1733_v48 = vpop.f32.mrf.mxu2  ;;  %9585 = vmatmul.msk.f32.gmra.mxu0 %vm1145_vm1, %v16600_v46  ;;  %v16604_v46 = vld [vmem:[#allocation104_spill] sm:$0xff] }
 0x298   : > { %v1829_v5 = vadd.f32 %v1733_v48, %v16596_v29  ;;  %9507 = vmatmul.msk.f32.gmra.mxu1 %vm1145_vm1, %v11739_v12  ;;  %9422 = vmatmul.msk.f32.gmra.mxu3 %vm1145_vm1, %v11094_v14  ;;  %v16602_v29 = vld [vmem:[#allocation88_spill] sm:$0xff] }
 0x29a   : > { %v11747_v63 = vadd.f32 %v1907_v33, %v1829_v5 }
 0x29b   : > { %9384 = vmatmul.msk.f32.gmra.mxu2 %vm1145_vm1, %v16584_v22  ;;  %v1913_v59 = vpop.f32.mrf.mxu3  ;;  %v11764_v5 = vpop.f32.mrf.mxu0 }
 0x29c   : > { %16605 = vst [vmem:[#allocation6_spill] sm:$0xff] %v11764_v5  ;;  %v16610_v5 = vld [vmem:[#allocation22_spill] sm:$0xff] }
 0x29f   : > { %v1736_v48 = vpop.f32.mrf.mxu2  ;;  %9586 = vmatmul.msk.f32.gmra.mxu0 %vm1145_vm1, %v16603_v11 }
 0x2a0   : > { %v1830_v55 = vadd.f32 %v1736_v48, %v16602_v29  ;;  %9423 = vmatmul.msk.f32.gmra.mxu3 %vm1145_vm1, %v16604_v46 }
 0x2a2   : > { %v11758_v12 = vadd.f32 %v1910_v21, %v1830_v55 }
 0x2a3   : > { %9385 = vmatmul.msk.f32.gmra.mxu2 %vm1145_vm1, %v16589_v30  ;;  %v1916_v33 = vpop.f32.mrf.mxu3  ;;  %v16608_v30 = vld [vmem:[#allocation98_spill] sm:$0xff]  ;;  %v11776_v55 = vpop.f32.mrf.mxu0 }
 0x2a4   : > { %16609 = vst [vmem:[#allocation83_spill] sm:$0xff] %v11776_v55 }
 0x2a7   : > { %v1739_v22 = vpop.f32.mrf.mxu2  ;;  %9587 = vmatmul.msk.f32.gmra.mxu0 %vm1145_vm1, %v16607_v24  ;;  %v16612_v24 = vld [vmem:[#allocation113_spill] sm:$0xff] }
 0x2a8   : > { %v1831_v56 = vadd.f32 %v1739_v22, %v16606_v17  ;;  %9424 = vmatmul.msk.f32.gmra.mxu3 %vm1145_vm1, %v11142_v44  ;;  %v16614_v22 = vld [vmem:[#allocation102_spill] sm:$0xff] }
 0x2aa   : > { %v11769_v48 = vadd.f32 %v1913_v59, %v1831_v56  ;;  %v11786_v56 = vpop.f32.mrf.mxu1 }
 0x2ab   : > { %9386 = vmatmul.msk.f32.gmra.mxu2 %vm1145_vm1, %v11064_v34  ;;  %v1919_v11 = vpop.f32.mrf.mxu3  ;;  %16613 = vst [vmem:[#allocation88_spill] sm:$0xff] %v11786_v56 }
 0x2af   : > { %v1742_v21 = vpop.f32.mrf.mxu2  ;;  %9588 = vmatmul.msk.f32.gmra.mxu0 %vm1145_vm1, %v16610_v5  ;;  %v16617_v5 = vld [vmem:[#allocation118_spill] sm:$0xff] }
 0x2b0   : > { %v1832_v29 = vadd.f32 %v1742_v21, %v16608_v30  ;;  %9425 = vmatmul.msk.f32.gmra.mxu3 %vm1145_vm1, %v16612_v24  ;;  %v16615_v21 = vld [vmem:[#allocation26_spill] sm:$0xff] }
 0x2b2   : > { %v11780_v17 = vadd.f32 %v1916_v33, %v1832_v29  ;;  %v11795_v33 = vpop.f32.mrf.mxu0  ;;  %v11799_v29 = vpop.f32.mrf.mxu1 }
 0x2b3   : > { %9387 = vmatmul.msk.f32.gmra.mxu2 %vm1145_vm1, %v11094_v14  ;;  %v1922_v34 = vpop.f32.mrf.mxu3  ;;  %16618 = vst [vmem:[#allocation104_spill] sm:$0xff] %v11795_v33  ;;  %v16625_v33 = vld [vmem:[#allocation111_spill] sm:$0xff] }
 0x2b4   : > { %16611 = vst [vmem:[#allocation10_spill] sm:$0xff] %v11780_v17  ;;  %v16620_v17 = vld [vmem:[#allocation107_spill] sm:$0xff] }
 0x2b5   : > { %16619 = vst [vmem:[#allocation93_spill] sm:$0xff] %v11799_v29 }
 0x2b7   : > { %v1745_v59 = vpop.f32.mrf.mxu2  ;;  %9589 = vmatmul.msk.f32.gmra.mxu0 %vm1145_vm1, %v16615_v21 }
 0x2b8   : > { %v1833_v52 = vadd.f32 %v1745_v59, %v16614_v22  ;;  %9426 = vmatmul.msk.f32.gmra.mxu3 %vm1145_vm1, %v16617_v5  ;;  %v16621_v59 = vld [vmem:[#allocation30_spill] sm:$0xff] }
 0x2ba   : > { %v11791_v30 = vadd.f32 %v1919_v11, %v1833_v52  ;;  %v16623_v52 = vld [vmem:[#allocation123_spill] sm:$0xff]  ;;  %v11810_v11 = vpop.f32.mrf.mxu0  ;;  %v11813_v29 = vpop.f32.mrf.mxu1 }
 0x2bb   : > { %9388 = vmatmul.msk.f32.gmra.mxu2 %vm1145_vm1, %v16604_v46  ;;  %v1925_v14 = vpop.f32.mrf.mxu3  ;;  %16624 = vst [vmem:[#allocation98_spill] sm:$0xff] %v11810_v11  ;;  %v16631_v11 = vld [vmem:[#allocation116_spill] sm:$0xff] }
 0x2bc   : > { %16616 = vst [vmem:[#allocation14_spill] sm:$0xff] %v11791_v30 }
 0x2bd   : > { %16626 = vst [vmem:[#allocation22_spill] sm:$0xff] %v11813_v29  ;;  %v16636_v29 = vld [vmem:[#allocation121_spill] sm:$0xff] }
 0x2bf   : > { %v1748_v55 = vpop.f32.mrf.mxu2  ;;  %9590 = vmatmul.msk.f32.gmra.mxu0 %vm1145_vm1, %v16621_v59 }
 0x2c0   : > { %v1834_v56 = vadd.f32 %v1748_v55, %v16620_v17  ;;  %9427 = vmatmul.msk.f32.gmra.mxu3 %vm1145_vm1, %v16623_v52  ;;  %v16627_v55 = vld [vmem:[#allocation34_spill] sm:$0xff] }
 0x2c2   : > { %v11804_v22 = vadd.f32 %v1922_v34, %v1834_v56  ;;  %v16629_v56 = vld [vmem:[#allocation128_spill] sm:$0xff]  ;;  %v11823_v34 = vpop.f32.mrf.mxu0 }
 0x2c3   : > { %9389 = vmatmul.msk.f32.gmra.mxu2 %vm1145_vm1, %v11142_v44  ;;  %v1928_v46 = vpop.f32.mrf.mxu3  ;;  %16630 = vst [vmem:[#allocation102_spill] sm:$0xff] %v11823_v34 }
 0x2c4   : > { %16622 = vst [vmem:[#allocation18_spill] sm:$0xff] %v11804_v22 }
 0x2c7   : > { %v1751_v21 = vpop.f32.mrf.mxu2  ;;  %9591 = vmatmul.msk.f32.gmra.mxu0 %vm1145_vm1, %v16627_v55  ;;  %v16634_v55 = vld [vmem:[#allocation132_spill] sm:$0xff] }
 0x2c8   : > { %v1835_v30 = vadd.f32 %v1751_v21, %v16625_v33  ;;  %9428 = vmatmul.msk.f32.gmra.mxu3 %vm1145_vm1, %v16629_v56  ;;  %v16632_v33 = vld [vmem:[#allocation38_spill] sm:$0xff] }
 0x2ca   : > { %v11817_v17 = vadd.f32 %v1925_v14, %v1835_v30  ;;  %v11832_v30 = vpop.f32.mrf.mxu1 }
 0x2cb   : > { %9390 = vmatmul.msk.f32.gmra.mxu2 %vm1145_vm1, %v16612_v24  ;;  %v1931_v44 = vpop.f32.mrf.mxu3  ;;  %16635 = vst [vmem:[#allocation118_spill] sm:$0xff] %v11832_v30 }
 0x2cc   : > { %16628 = vst [vmem:[#allocation113_spill] sm:$0xff] %v11817_v17  ;;  %v11837_v17 = vpop.f32.mrf.mxu0 }
 0x2cf   : > { %v1754_v59 = vpop.f32.mrf.mxu2  ;;  %9592 = vmatmul.msk.f32.gmra.mxu0 %vm1145_vm1, %v16632_v33  ;;  %v16639_v33 = vld [vmem:[#allocation126_spill] sm:$0xff] }
 0x2d0   : > { %v1836_v22 = vadd.f32 %v1754_v59, %v16631_v11  ;;  %9429 = vmatmul.msk.f32.gmra.mxu3 %vm1145_vm1, %v16634_v55  ;;  %v16637_v11 = vld [vmem:[#allocation41_spill] sm:$0xff] }
 0x2d2   : > { %v11828_v21 = vadd.f32 %v1928_v46, %v1836_v22  ;;  %v11847_v22 = vpop.f32.mrf.mxu1 }
 0x2d3   : > { %9391 = vmatmul.msk.f32.gmra.mxu2 %vm1145_vm1, %v16617_v5  ;;  %v1934_v24 = vpop.f32.mrf.mxu3  ;;  %16638 = vst [vmem:[#allocation107_spill] sm:$0xff] %v11847_v22  ;;  %v16643_v22 = vld [vmem:[#allocation131_spill] sm:$0xff] }
 0x2d4   : > { %16633 = vst [vmem:[#allocation26_spill] sm:$0xff] %v11828_v21 }
 0x2d7   : > { %v1757_v14 = vpop.f32.mrf.mxu2  ;;  %9593 = vmatmul.msk.f32.gmra.mxu0 %vm1145_vm1, %v16637_v11 }
 0x2d8   : > { %v1837_v34 = vadd.f32 %v1757_v14, %v16636_v29  ;;  %9430 = vmatmul.msk.f32.gmra.mxu3 %vm1145_vm1, %v11290_v61  ;;  %v16640_v29 = vld [vmem:[#allocation44_spill] sm:$0xff] }
 0x2da   : > { %v11841_v59 = vadd.f32 %v1931_v44, %v1837_v34  ;;  %v11856_v44 = vpop.f32.mrf.mxu0  ;;  %v11860_v34 = vpop.f32.mrf.mxu1 }
 0x2db   : > { %9392 = vmatmul.msk.f32.gmra.mxu2 %vm1145_vm1, %v16623_v52  ;;  %v1937_v5 = vpop.f32.mrf.mxu3  ;;  %16641 = vst [vmem:[#allocation30_spill] sm:$0xff] %v11856_v44 }
 0x2dc   : > { %16642 = vst [vmem:[#allocation123_spill] sm:$0xff] %v11860_v34 }
 0x2df   : > { %v1760_v46 = vpop.f32.mrf.mxu2  ;;  %9594 = vmatmul.msk.f32.gmra.mxu0 %vm1145_vm1, %v16640_v29  ;;  %v16647_v29 = vld [vmem:[#allocation135_spill] sm:$0xff] }
 0x2e0   : > { %v1838_v30 = vadd.f32 %v1760_v46, %v16639_v33  ;;  %9431 = vmatmul.msk.f32.gmra.mxu3 %vm1145_vm1, %v11322_v45  ;;  %v16644_v46 = vld [vmem:[#allocation47_spill] sm:$0xff] }
 0x2e2   : > { %v11852_v14 = vadd.f32 %v1934_v24, %v1838_v30  ;;  %v11871_v30 = vpop.f32.mrf.mxu0  ;;  %v11874_v44 = vpop.f32.mrf.mxu1 }
 0x2e3   : > { %9393 = vmatmul.msk.f32.gmra.mxu2 %vm1145_vm1, %v16629_v56  ;;  %v1940_v52 = vpop.f32.mrf.mxu3  ;;  %16646 = vst [vmem:[#allocation34_spill] sm:$0xff] %v11871_v30 }
 0x2e4   : > { %16648 = vst [vmem:[#allocation128_spill] sm:$0xff] %v11874_v44 }
 0x2e7   : > { %v1763_v11 = vpop.f32.mrf.mxu2  ;;  %9595 = vmatmul.msk.f32.gmra.mxu0 %vm1145_vm1, %v16644_v46 }
 0x2e8   : > { %v1839_v21 = vadd.f32 %v1763_v11, %v16643_v22  ;;  %9432 = vmatmul.msk.f32.gmra.mxu3 %vm1145_vm1, %v11352_v43  ;;  %v16649_v22 = vld [vmem:[#allocation52_spill] sm:$0xff] }
 0x2ea   : > { %v11865_v33 = vadd.f32 %v1937_v5, %v1839_v21  ;;  %v11884_v21 = vpop.f32.mrf.mxu0  ;;  %v16652_v5 = vld [vmem:[#allocation138_spill] sm:$0xff] }
 0x2eb   : > { %9394 = vmatmul.msk.f32.gmra.mxu2 %vm1145_vm1, %v16634_v55  ;;  %v1943_v56 = vpop.f32.mrf.mxu3  ;;  %16651 = vst [vmem:[#allocation38_spill] sm:$0xff] %v11884_v21 }
 0x2ec   : > { %16645 = vst [vmem:[#allocation111_spill] sm:$0xff] %v11865_v33 }
 0x2ef   : > { %v1766_v24 = vpop.f32.mrf.mxu2  ;;  %9596 = vmatmul.msk.f32.gmra.mxu0 %vm1145_vm1, %v16649_v22  ;;  %v16655_v22 = vld [vmem:[#allocation4_spill] sm:$0xff] }
 0x2f0   : > { %v1840_v34 = vadd.f32 %v1766_v24, %v16647_v29  ;;  %9433 = vmatmul.msk.f32.gmra.mxu3 %vm1145_vm1, %v11593_v0  ;;  %v16653_v24 = vld [vmem:[#allocation58_spill] sm:$0xff] }
 0x2f2   : > { %v11878_v11 = vadd.f32 %v1940_v52, %v1840_v34  ;;  %v11893_v52 = vpop.f32.mrf.mxu1  ;;  %v11898_v44 = vpop.f32.mrf.mxu0 }
 0x2f3   : > { %9395 = vmatmul.msk.f32.gmra.mxu2 %vm1145_vm1, %v11290_v61  ;;  %v1946_v43 = vpop.f32.mrf.mxu3  ;;  %16656 = vst [vmem:[#allocation121_spill] sm:$0xff] %v11893_v52 }
 0x2f4   : > { %16650 = vst [vmem:[#allocation116_spill] sm:$0xff] %v11878_v11 }
 0x2f5   : > { %16657 = vst [vmem:[#allocation41_spill] sm:$0xff] %v11898_v44 }
 0x2f7   : > { %v1769_v55 = vpop.f32.mrf.mxu2  ;;  %9597 = vmatmul.msk.f32.gmra.mxu0 %vm1145_vm1, %v16653_v24 }
 0x2f8   : > { %v1841_v46 = vadd.f32 %v1769_v55, %v16652_v5  ;;  %9546 = vmatmul.msk.f32.vlgmr.msra.gmra.mxu3 %vm1145_vm1, %v16655_v22  ;;  %v16658_v55 = vld [vmem:[#allocation64_spill] sm:$0xff] }
 0x2fa   : > { %v11889_v29 = vadd.f32 %v1943_v56, %v1841_v46  ;;  %v16660_v56 = vld [vmem:[#allocation7_spill] sm:$0xff]  ;;  %v11908_v46 = vpop.f32.mrf.mxu1 }
 0x2fb   : > { %9396 = vmatmul.msk.f32.gmra.mxu2 %vm1145_vm1, %v11322_v45  ;;  %v1949_v0 = vpop.f32.mrf.mxu3  ;;  %16661 = vst [vmem:[#allocation44_spill] sm:$0xff] %v11908_v46 }
 0x2fc   : > { %16654 = vst [vmem:[#allocation132_spill] sm:$0xff] %v11889_v29 }
 0x2ff   : > { %v1772_v61 = vpop.f32.mrf.mxu2  ;;  %9598 = vmatmul.msk.f32.gmra.mxu0 %vm1145_vm1, %v16658_v55  ;;  %v16664_v55 = vld [vmem:[#allocation11_spill] sm:$0xff] }
 0x300   : > { %v1842_v34 = vadd.f32 %v1772_v61, %v11336_v13  ;;  %9547 = vmatmul.msk.f32.gmra.mxu3 %vm1145_vm1, %v16660_v56  ;;  %v16662_v13 = vld [vmem:[#allocation69_spill] sm:$0xff] }
 0x302   : > { %v11902_v5 = vadd.f32 %v1946_v43, %v1842_v34  ;;  %v11917_v43 = vpop.f32.mrf.mxu0  ;;  %v11921_v34 = vpop.f32.mrf.mxu1 }
 0x303   : > { %9468 = vmatmul.msk.f32.vlgmr.msra.gmra.mxu2 %vm1145_vm1, %v11325_v42  ;;  %v1952_v45 = vpop.f32.mrf.mxu3  ;;  %16665 = vst [vmem:[#allocation47_spill] sm:$0xff] %v11917_v43 }
 0x304   : > { %16659 = vst [vmem:[#allocation126_spill] sm:$0xff] %v11902_v5 }
 0x305   : > { %16666 = vst [vmem:[#allocation135_spill] sm:$0xff] %v11921_v34 }
 0x307   : > { %v1775_v24 = vpop.f32.mrf.mxu2  ;;  %9599 = vmatmul.msk.f32.gmra.mxu0 %vm1145_vm1, %v16662_v13 }
 0x308   : > { %v1843_v22 = vadd.f32 %v1775_v24, %v11374_v53  ;;  %9548 = vmatmul.msk.f32.gmra.mxu3 %vm1145_vm1, %v16664_v55  ;;  %v16667_v53 = vld [vmem:[#allocation75_spill] sm:$0xff] }
 0x30a   : > { %v11913_v61 = vadd.f32 %v1949_v0, %v1843_v22  ;;  %v16669_v0 = vld [vmem:[#allocation15_spill] sm:$0xff]  ;;  %v11932_v22 = vpop.f32.mrf.mxu0  ;;  %v11935_v52 = vpop.f32.mrf.mxu1 }
 0x30b   : > { %9469 = vmatmul.msk.f32.gmra.mxu2 %vm1145_vm1, %v11357_v37  ;;  %v1955_v42 = vpop.f32.mrf.mxu3  ;;  %16670 = vst [vmem:[#allocation138_spill] sm:$0xff] %v11932_v22 }
 0x30c   : > { %16663 = vst [vmem:[#allocation131_spill] sm:$0xff] %v11913_v61  ;;  %v16710_v61 = vld [vmem:[#allocation124_spill] sm:$0xff] }
 0x30d   : > { %16671 = vst [vmem:[#allocation58_spill] sm:$0xff] %v11935_v52  ;;  %v16703_v52 = vld [vmem:[#allocation114_spill] sm:$0xff] }
 0x30f   : > { %v1778_v56 = vpop.f32.mrf.mxu2  ;;  %9600 = vmatmul.msk.f32.gmra.mxu0 %vm1145_vm1, %v16667_v53 }
 0x310   : > { %v1844_v33 = vadd.f32 %v1778_v56, %v11386_v23  ;;  %9549 = vmatmul.msk.f32.gmra.mxu3 %vm1145_vm1, %v16669_v0  ;;  %v16672_v23 = vld [vmem:[#allocation81_spill] sm:$0xff] }
 0x312   : > { %v11926_v24 = vadd.f32 %v1952_v45, %v1844_v33  ;;  %v16674_v33 = vld [vmem:[#allocation19_spill] sm:$0xff]  ;;  %v16675_v45 = vld [vmem:[#allocation2_spill] sm:$0xff]  ;;  %v11945_v53 = vpop.f32.mrf.mxu0 }
 0x313   : > { %9470 = vmatmul.msk.f32.gmra.mxu2 %vm1145_vm1, %v11598_v32  ;;  %v1958_v37 = vpop.f32.mrf.mxu3  ;;  %16676 = vst [vmem:[#allocation64_spill] sm:$0xff] %v11945_v53  ;;  %v16787_v53 = vld [vmem:[#allocation46_spill] sm:$0xff] }
 0x314   : > { %16668 = vst [vmem:[#allocation52_spill] sm:$0xff] %v11926_v24 }
 0x317   : > { %v1781_v13 = vpop.f32.mrf.mxu2  ;;  %9601 = vmatmul.msk.f32.gmra.mxu0 %vm1145_vm1, %v16672_v23  ;;  %v16679_v23 = vld [vmem:[#allocation23_spill] sm:$0xff] }
 0x318   : > { %v1845_v55 = vadd.f32 %v1781_v13, %v11398_v27  ;;  %9550 = vmatmul.msk.f32.gmra.mxu3 %vm1145_vm1, %v16674_v33  ;;  %v16677_v27 = vld [vmem:[#allocation86_spill] sm:$0xff] }
 0x31a   : > { %v11939_v56 = vadd.f32 %v1955_v42, %v1845_v55  ;;  %v11954_v42 = vpop.f32.mrf.mxu1  ;;  %v16681_v55 = vld [vmem:[#allocation5_spill] sm:$0xff]  ;;  %v11959_v29 = vpop.f32.mrf.mxu0 }
 0x31b   : > { %9509 = vmatmul.msk.f32.vlgmr.msrb.gmra.mxu2 %vm1145_vm1, %v16675_v45  ;;  %v1961_v32 = vpop.f32.mrf.mxu3  ;;  %16680 = vst [vmem:[#allocation69_spill] sm:$0xff] %v11954_v42 }
 0x31c   : > { %16673 = vst [vmem:[#allocation4_spill] sm:$0xff] %v11939_v56 }
 0x31d   : > { %16682 = vst [vmem:[#allocation11_spill] sm:$0xff] %v11959_v29  ;;  %v16699_v29 = vld [vmem:[#allocation109_spill] sm:$0xff] }
 0x31f   : > { %v1784_v0 = vpop.f32.mrf.mxu2  ;;  %9602 = vmatmul.msk.f32.gmra.mxu0 %vm1145_vm1, %v16677_v27 }
 0x320   : > { %v1846_v11 = vadd.f32 %v1784_v0, %v11410_v9  ;;  %9551 = vmatmul.msk.f32.gmra.mxu3 %vm1145_vm1, %v16679_v23  ;;  %v16683_v9 = vld [vmem:[#allocation91_spill] sm:$0xff] }
 0x322   : > { %v11950_v13 = vadd.f32 %v1958_v37, %v1846_v11  ;;  %v16684_v11 = vld [vmem:[#allocation27_spill] sm:$0xff]  ;;  %v16685_v37 = vld [vmem:[#allocation8_spill] sm:$0xff]  ;;  %v2585_v23 = vpop.f32.mrf.mxu1 }
 0x323   : > { %9510 = vmatmul.msk.f32.gmra.mxu2 %vm1145_vm1, %v16681_v55  ;;  %v1964_v33 = vpop.f32.mrf.mxu3 }
 0x324   : > { %16678 = vst [vmem:[#allocation7_spill] sm:$0xff] %v11950_v13  ;;  %v16782_v13 = vld [vmem:[#allocation113_spill] sm:$0xff] }
 0x327   : > { %v1787_v45 = vpop.f32.mrf.mxu2  ;;  %9603 = vmatmul.msk.f32.gmra.mxu0 %vm1145_vm1, %v16683_v9 }
 0x328   : > { %v1847_v46 = vadd.f32 %v1787_v45, %v11422_v36  ;;  %9552 = vmatmul.msk.f32.gmra.mxu3 %vm1145_vm1, %v16684_v11  ;;  %v16687_v45 = vld [vmem:[#allocation96_spill] sm:$0xff] }
 0x329   : > { %v16690_v11 = vld [vmem:[#allocation12_spill] sm:$0xff] }
 0x32a   : > { %v2021_v0 = vadd.f32 %v1961_v32, %v1847_v46  ;;  %v16689_v46 = vld [vmem:[#allocation31_spill] sm:$0xff]  ;;  %v11977_v32 = vpop.f32.mrf.mxu0 }
 0x32b   : > { %9511 = vmatmul.msk.f32.gmra.mxu2 %vm1145_vm1, %v16685_v37  ;;  %v1967_v55 = vpop.f32.mrf.mxu3 }
 0x32c   : > { %v2331_v27 = vadd.f32 %v11837_v17, %v2021_v0 }
 0x32e   : > { %v11968_v34 = vadd.f32 %v2585_v23, %v2331_v27  ;;  %v16691_v27 = vld [vmem:[#allocation100_spill] sm:$0xff] }
 0x32f   : > { %v1790_v5 = vpop.f32.mrf.mxu2  ;;  %9604 = vmatmul.msk.f32.gmra.mxu0 %vm1145_vm1, %v16687_v45 }
 0x330   : > { %16686 = vst [vmem:[#allocation75_spill] sm:$0xff] %v11968_v34  ;;  %v1848_v36 = vadd.f32 %v1790_v5, %v11436_v18  ;;  %9553 = vmatmul.msk.f32.gmra.mxu3 %vm1145_vm1, %v16689_v46  ;;  %v16693_v5 = vld [vmem:[#allocation35_spill] sm:$0xff]  ;;  %v16714_v34 = vld [vmem:[#allocation129_spill] sm:$0xff] }
 0x332   : > { %v11973_v9 = vadd.f32 %v1964_v33, %v1848_v36  ;;  %v16694_v33 = vld [vmem:[#allocation16_spill] sm:$0xff]  ;;  %v11990_v23 = vpop.f32.mrf.mxu0 }
 0x333   : > { %9512 = vmatmul.msk.f32.gmra.mxu2 %vm1145_vm1, %v16690_v11  ;;  %v1970_v17 = vpop.f32.mrf.mxu3  ;;  %v16695_v11 = vld [vmem:[#allocation105_spill] sm:$0xff] }
 0x334   : > { %16688 = vst [vmem:[#allocation15_spill] sm:$0xff] %v11973_v9 }
 0x337   : > { %v1793_v0 = vpop.f32.mrf.mxu2  ;;  %9605 = vmatmul.msk.f32.gmra.mxu0 %vm1145_vm1, %v16691_v27 }
 0x338   : > { %v1849_v37 = vadd.f32 %v1793_v0, %v11450_v60  ;;  %9554 = vmatmul.msk.f32.gmra.mxu3 %vm1145_vm1, %v16693_v5  ;;  %v16697_v0 = vld [vmem:[#allocation39_spill] sm:$0xff] }
 0x33a   : > { %v11984_v18 = vadd.f32 %v1967_v55, %v1849_v37  ;;  %v16698_v55 = vld [vmem:[#allocation20_spill] sm:$0xff]  ;;  %v12001_v27 = vpop.f32.mrf.mxu0 }
 0x33b   : > { %9513 = vmatmul.msk.f32.gmra.mxu2 %vm1145_vm1, %v16694_v33  ;;  %v1973_v36 = vpop.f32.mrf.mxu3 }
 0x33c   : > { %16692 = vst [vmem:[#allocation81_spill] sm:$0xff] %v11984_v18 }
 0x33f   : > { %v1796_v45 = vpop.f32.mrf.mxu2  ;;  %9606 = vmatmul.msk.f32.gmra.mxu0 %vm1145_vm1, %v16695_v11 }
 0x340   : > { %v1850_v46 = vadd.f32 %v1796_v45, %v11462_v57  ;;  %9555 = vmatmul.msk.f32.gmra.mxu3 %vm1145_vm1, %v16697_v0  ;;  %v16701_v45 = vld [vmem:[#allocation42_spill] sm:$0xff] }
 0x342   : > { %v11995_v60 = vadd.f32 %v1970_v17, %v1850_v46  ;;  %v16702_v17 = vld [vmem:[#allocation24_spill] sm:$0xff] }
 0x343   : > { %9514 = vmatmul.msk.f32.gmra.mxu2 %vm1145_vm1, %v16698_v55  ;;  %v1976_v37 = vpop.f32.mrf.mxu3  ;;  %v12013_v55 = vpop.f32.mrf.mxu0 }
 0x344   : > { %16696 = vst [vmem:[#allocation19_spill] sm:$0xff] %v11995_v60 }
 0x347   : > { %v1799_v5 = vpop.f32.mrf.mxu2  ;;  %9607 = vmatmul.msk.f32.gmra.mxu0 %vm1145_vm1, %v16699_v29  ;;  %v16705_v29 = vld [vmem:[#allocation45_spill] sm:$0xff] }
 0x348   : > { %v1851_v33 = vadd.f32 %v1799_v5, %v11476_v41  ;;  %9556 = vmatmul.msk.f32.gmra.mxu3 %vm1145_vm1, %v16701_v45 }
 0x34a   : > { %v12006_v57 = vadd.f32 %v1973_v36, %v1851_v33  ;;  %v16706_v36 = vld [vmem:[#allocation28_spill] sm:$0xff] }
 0x34b   : > { %9515 = vmatmul.msk.f32.gmra.mxu2 %vm1145_vm1, %v16702_v17  ;;  %v1979_v46 = vpop.f32.mrf.mxu3  ;;  %v16707_v17 = vld [vmem:[#allocation119_spill] sm:$0xff] }
 0x34c   : > { %16700 = vst [vmem:[#allocation2_spill] sm:$0xff] %v12006_v57 }
 0x34f   : > { %v1802_v11 = vpop.f32.mrf.mxu2  ;;  %9608 = vmatmul.msk.f32.gmra.mxu0 %vm1145_vm1, %v16703_v52  ;;  %v12030_v52 = vpop.f32.mrf.mxu0 }
 0x350   : > { %v1852_v0 = vadd.f32 %v1802_v11, %v11490_v2  ;;  %9557 = vmatmul.msk.f32.gmra.mxu3 %vm1145_vm1, %v16705_v29  ;;  %v16708_v11 = vld [vmem:[#allocation48_spill] sm:$0xff] }
 0x352   : > { %v12017_v41 = vadd.f32 %v1976_v37, %v1852_v0  ;;  %v16709_v37 = vld [vmem:[#allocation32_spill] sm:$0xff] }
 0x353   : > { %9516 = vmatmul.msk.f32.gmra.mxu2 %vm1145_vm1, %v16706_v36  ;;  %v1982_v5 = vpop.f32.mrf.mxu3 }
 0x354   : > { %16704 = vst [vmem:[#allocation86_spill] sm:$0xff] %v12017_v41 }
 0x357   : > { %v1805_v33 = vpop.f32.mrf.mxu2  ;;  %9609 = vmatmul.msk.f32.gmra.mxu0 %vm1145_vm1, %v16707_v17 }
 0x358   : > { %v1853_v45 = vadd.f32 %v1805_v33, %v11504_v19  ;;  %9558 = vmatmul.msk.f32.gmra.mxu3 %vm1145_vm1, %v16708_v11  ;;  %v16712_v33 = vld [vmem:[#allocation53_spill] sm:$0xff] }
 0x35a   : > { %v12026_v2 = vadd.f32 %v1979_v46, %v1853_v45  ;;  %v16713_v46 = vld [vmem:[#allocation36_spill] sm:$0xff]  ;;  %v12043_v45 = vpop.f32.mrf.mxu0 }
 0x35b   : > { %9517 = vmatmul.msk.f32.gmra.mxu2 %vm1145_vm1, %v16709_v37  ;;  %v1985_v0 = vpop.f32.mrf.mxu3 }
 0x35f   : > { %v1808_v29 = vpop.f32.mrf.mxu2  ;;  %9610 = vmatmul.msk.f32.gmra.mxu0 %vm1145_vm1, %v16710_v61  ;;  %v16716_v61 = vld [vmem:[#allocation59_spill] sm:$0xff] }
 0x360   : > { %v1854_v36 = vadd.f32 %v1808_v29, %v11518_v54  ;;  %9559 = vmatmul.msk.f32.gmra.mxu3 %vm1145_vm1, %v16712_v33 }
 0x362   : > { %v12037_v19 = vadd.f32 %v1982_v5, %v1854_v36  ;;  %v12054_v29 = vpop.f32.mrf.mxu0 }
 0x363   : > { %9518 = vmatmul.msk.f32.gmra.mxu2 %vm1145_vm1, %v16713_v46  ;;  %v1988_v17 = vpop.f32.mrf.mxu3  ;;  %v16717_v46 = vld [vmem:[#allocation133_spill] sm:$0xff] }
 0x364   : > { %16711 = vst [vmem:[#allocation23_spill] sm:$0xff] %v12037_v19 }
 0x367   : > { %v1811_v11 = vpop.f32.mrf.mxu2  ;;  %9611 = vmatmul.msk.f32.gmra.mxu0 %vm1145_vm1, %v16714_v34 }
 0x368   : > { %v1855_v37 = vadd.f32 %v1811_v11, %v11530_v62  ;;  %9560 = vmatmul.msk.f32.gmra.mxu3 %vm1145_vm1, %v16716_v61  ;;  %v16718_v62 = vld [vmem:[#allocation65_spill] sm:$0xff]  ;;  %v16719_v61 = vld [vmem:[#allocation136_spill] sm:$0xff] }
 0x36a   : > { %v12048_v54 = vadd.f32 %v1985_v0, %v1855_v37  ;;  %v12064_v37 = vpop.f32.mrf.mxu0 }
 0x36b   : > { %9519 = vmatmul.msk.f32.gmra.mxu2 %vm1145_vm1, %v10762_v35  ;;  %v1991_v5 = vpop.f32.mrf.mxu3 }
 0x36c   : > { %16715 = vst [vmem:[#allocation5_spill] sm:$0xff] %v12048_v54 }
 0x36f   : > { %v1814_v36 = vpop.f32.mrf.mxu2  ;;  %9612 = vmatmul.msk.f32.gmra.mxu0 %vm1145_vm1, %v16717_v46 }
 0x370   : > { %v1856_v33 = vadd.f32 %v1814_v36, %v11544_v8  ;;  %9561 = vmatmul.msk.f32.gmra.mxu3 %vm1145_vm1, %v16718_v62  ;;  %v16720_v8 = vld [vmem:[#allocation70_spill] sm:$0xff] }
 0x372   : > { %v2030_v34 = vadd.f32 %v1988_v17, %v1856_v33  ;;  %v12077_v62 = vpop.f32.mrf.mxu0 }
 0x373   : > { %9520 = vmatmul.msk.f32.gmra.mxu2 %vm1145_vm1, %v10786_v3  ;;  %v1994_v0 = vpop.f32.mrf.mxu3 }
 0x377   : > { %v1817_v11 = vpop.f32.mrf.mxu2  ;;  %9613 = vmatmul.msk.f32.gmra.mxu0 %vm1145_vm1, %v16719_v61 }
 0x378   : > { %v1857_v35 = vadd.f32 %v1817_v11, %v11558_v47  ;;  %9562 = vmatmul.msk.f32.gmra.mxu3 %vm1145_vm1, %v16720_v8  ;;  %v16721_v47 = vld [vmem:[#allocation76_spill] sm:$0xff]  ;;  %v16722_v11 = vld [vmem:[#allocation50_spill] sm:$0xff] }
 0x37a   : > { %v2031_v36 = vadd.f32 %v1991_v5, %v1857_v35  ;;  %v12089_v8 = vpop.f32.mrf.mxu0 }
 0x37b   : > { %9521 = vmatmul.msk.f32.gmra.mxu2 %vm1145_vm1, %v10810_v49  ;;  %v2996_v17 = vpop.f32.mrf.mxu3  ;;  %v16724_v49 = vld [vmem:[#allocation141_spill] sm:$0xff] }
 0x37f   : > { %v1820_v33 = vpop.f32.mrf.mxu2  ;;  %9614 = vmatmul.msk.f32.gmra.mxu0 %vm1145_vm1, %v11329_v15  ;;  %v16726_v15 = vld [vmem:[#allocation56_spill] sm:$0xff] }
 0x380   : > { %v1858_v3 = vadd.f32 %v1820_v33, %v11577_v39  ;;  %9563 = vmatmul.msk.f32.gmra.mxu3 %vm1145_vm1, %v16721_v47  ;;  %v16725_v39 = vld [vmem:[#allocation82_spill] sm:$0xff]  ;;  %v3209_v47 = vrot.slane %v11582_v28, 6  ;;  %v16733_v28 = vld [vmem:[#allocation9_spill] sm:$0xff] }
 0x382   : > { %v2032_v46 = vadd.f32 %v1994_v0, %v1858_v3 }
 0x383   : > { %9522 = vmatmul.msk.f32.gmra.mxu2 %vm1145_vm1, %v16722_v11  ;;  %v2999_v5 = vpop.f32.mrf.mxu3  ;;  %v16729_v11 = vld [vmem:[#allocation62_spill] sm:$0xff] }
 0x387   : > { %v2298_v35 = vpop.f32.mrf.mxu2  ;;  %9615 = vmatmul.msk.f32.gmra.mxu0 %vm1145_vm1, %v16724_v49  ;;  %v12100_v49 = vpop.f32.mrf.mxu0 }
 0x388   : > { %v12081_v61 = vadd.f32 %v2298_v35, %v2030_v34  ;;  %9564 = vmatmul.msk.f32.gmra.mxu3 %vm1145_vm1, %v16725_v39  ;;  %v16728_v34 = vld [vmem:[#allocation87_spill] sm:$0xff] }
 0x38a   : > { %16723 = vst [vmem:[#allocation91_spill] sm:$0xff] %v12081_v61  ;;  %v16734_v61 = vld [vmem:[#allocation67_spill] sm:$0xff] }
 0x38b   : > { %9523 = vmatmul.msk.f32.gmra.mxu2 %vm1145_vm1, %v16726_v15  ;;  %v3002_v0 = vpop.f32.mrf.mxu3 }
 0x38f   : > { %v2301_v33 = vpop.f32.mrf.mxu2  ;;  %9616 = vmatmul.msk.f32.gmra.mxu0 %vm1145_vm1, %v11607_v31  ;;  %v16732_v31 = vld [vmem:[#allocation92_spill] sm:$0xff]  ;;  %v12117_v54 = vpop.f32.mrf.mxu0 }
 0x390   : > { %v12091_v3 = vadd.f32 %v2301_v33, %v2031_v36  ;;  %9565 = vmatmul.msk.f32.gmra.mxu3 %vm1145_vm1, %v16728_v34  ;;  %v16731_v36 = vrot.slane %v11568_v20, 6  ;;  %v2307_v34 = vadd.f32 %v16733_v28, %v11641_v38 }
 0x392   : > { %16727 = vst [vmem:[#allocation27_spill] sm:$0xff] %v12091_v3  ;;  %v3210_v33 = vsel %vm1620_vm6, %v16731_v36, %v3209_v47 }
 0x393   : > { %9524 = vmatmul.msk.f32.gmra.mxu2 %vm1145_vm1, %v16729_v11  ;;  %v3005_v35 = vpop.f32.mrf.mxu3  ;;  %v3211_v11 = vrot.slane %v11627_v10, 6  ;;  %v16737_v10 = vld [vmem:[#allocation55_spill] sm:$0xff] }
 0x394   : > { %v2308_v38 = vadd.f32 %v16737_v10, %v11665_v6 }
 0x395   : > { %v3212_v36 = vsel %vm1620_vm6, %v3209_v47, %v3211_v11 }
 0x397   : > { %v2304_v39 = vpop.f32.mrf.mxu2  ;;  %9617 = vmatmul.msk.f32.gmra.mxu0 %vm1145_vm1, %v3210_v33 }
 0x398   : > { %v12102_v15 = vadd.f32 %v2304_v39, %v2032_v46  ;;  %9566 = vmatmul.msk.f32.gmra.mxu3 %vm1145_vm1, %v16732_v31  ;;  %v16735_v46 = vld [vmem:[#allocation72_spill] sm:$0xff]  ;;  %v16736_v31 = vld [vmem:[#allocation97_spill] sm:$0xff] }
 0x399   : > { %v2621_v39 = vadd.f32 %v16735_v46, %v2307_v34  ;;  %v16739_v34 = vld [vmem:[#allocation78_spill] sm:$0xff] }
 0x39a   : > { %16730 = vst [vmem:[#allocation8_spill] sm:$0xff] %v12102_v15 }
 0x39b   : > { %9525 = vmatmul.msk.f32.gmra.mxu2 %vm1145_vm1, %v16734_v61  ;;  %v3008_v3 = vpop.f32.mrf.mxu3  ;;  %v16738_v61 = vld [vmem:[#allocation73_spill] sm:$0xff] }
 0x39f   : > { %v2687_v15 = vpop.f32.mrf.mxu2  ;;  %9618 = vmatmul.msk.f32.gmra.mxu0 %vm1145_vm1, %v3212_v36  ;;  %v16742_v36 = vld [vmem:[#allocation79_spill] sm:$0xff] }
 0x3a0   : > { %v2795_v20 = vadd.f32 %v2687_v15, %v2621_v39  ;;  %9567 = vmatmul.msk.f32.gmra.mxu3 %vm1145_vm1, %v16736_v31  ;;  %v2622_v15 = vadd.f32 %v16739_v34, %v2308_v38  ;;  %v16740_v39 = vld [vmem:[#allocation101_spill] sm:$0xff]  ;;  %v16743_v38 = vld [vmem:[#allocation106_spill] sm:$0xff] }
 0x3a2   : > { %v12120_v33 = vadd.f32 %v2996_v17, %v2795_v20  ;;  %v16741_v17 = vld [vmem:[#allocation13_spill] sm:$0xff] }
 0x3a3   : > { %9526 = vmatmul.msk.f32.gmra.mxu2 %vm1145_vm1, %v16738_v61  ;;  %v3011_v28 = vpop.f32.mrf.mxu3  ;;  %v2309_v20 = vadd.f32 %v16741_v17, %v11678_v50 }
 0x3a5   : > { %v2623_v31 = vadd.f32 %v11516_v7, %v2309_v20  ;;  %v16747_v7 = vld [vmem:[#allocation110_spill] sm:$0xff] }
 0x3a7   : > { %v2690_v46 = vpop.f32.mrf.mxu2 }
 0x3a8   : > { %v2796_v47 = vadd.f32 %v2690_v46, %v2622_v15  ;;  %9568 = vmatmul.msk.f32.gmra.mxu3 %vm1145_vm1, %v16740_v39  ;;  %v16745_v15 = vld [vmem:[#allocation84_spill] sm:$0xff]  ;;  %v16746_v46 = vld [vmem:[#allocation94_spill] sm:$0xff] }
 0x3aa   : > { %v12129_v11 = vadd.f32 %v2999_v5, %v2796_v47  ;;  %v16744_v5 = vld [vmem:[#allocation61_spill] sm:$0xff] }
 0x3ab   : > { %9527 = vmatmul.msk.f32.gmra.mxu2 %vm1145_vm1, %v16742_v36  ;;  %v3014_v6 = vpop.f32.mrf.mxu3  ;;  %v2310_v34 = vadd.f32 %v16744_v5, %v11693_v1 }
 0x3ad   : > { %v2624_v47 = vadd.f32 %v16746_v46, %v2310_v34  ;;  %v16751_v34 = vld [vmem:[#allocation115_spill] sm:$0xff] }
 0x3af   : > { %v2693_v10 = vpop.f32.mrf.mxu2 }
 0x3b0   : > { %v2797_v61 = vadd.f32 %v2693_v10, %v2623_v31  ;;  %9569 = vmatmul.msk.f32.gmra.mxu3 %vm1145_vm1, %v16743_v38  ;;  %v16749_v31 = vld [vmem:[#allocation89_spill] sm:$0xff]  ;;  %v16750_v10 = vld [vmem:[#allocation43_spill] sm:$0xff] }
 0x3b2   : > { %v12138_v42 = vadd.f32 %v3002_v0, %v2797_v61  ;;  %v16748_v0 = vld [vmem:[#allocation17_spill] sm:$0xff] }
 0x3b3   : > { %9528 = vmatmul.msk.f32.gmra.mxu2 %vm1145_vm1, %v16745_v15  ;;  %v3017_v50 = vpop.f32.mrf.mxu3  ;;  %v2311_v20 = vadd.f32 %v16748_v0, %v11708_v58 }
 0x3b5   : > { %v2625_v61 = vadd.f32 %v16750_v10, %v2311_v20 }
 0x3b7   : > { %v2696_v39 = vpop.f32.mrf.mxu2 }
 0x3b8   : > { %v2798_v17 = vadd.f32 %v2696_v39, %v2624_v47  ;;  %9570 = vmatmul.msk.f32.gmra.mxu3 %vm1145_vm1, %v16747_v7  ;;  %v16753_v47 = vld [vmem:[#allocation95_spill] sm:$0xff] }
 0x3b9   : > { %v16754_v39 = vld [vmem:[#allocation51_spill] sm:$0xff] }
 0x3ba   : > { %v12147_v36 = vadd.f32 %v3005_v35, %v2798_v17  ;;  %v16752_v35 = vld [vmem:[#allocation21_spill] sm:$0xff] }
 0x3bb   : > { %9529 = vmatmul.msk.f32.gmra.mxu2 %vm1145_vm1, %v16749_v31  ;;  %v3020_v1 = vpop.f32.mrf.mxu3  ;;  %v2312_v46 = vadd.f32 %v16752_v35, %v11727_v26  ;;  %v16755_v31 = vld [vmem:[#allocation120_spill] sm:$0xff] }
 0x3bd   : > { %v2626_v17 = vadd.f32 %v16754_v39, %v2312_v46 }
 0x3bf   : > { %v2699_v38 = vpop.f32.mrf.mxu2 }
 0x3c0   : > { %v2799_v5 = vadd.f32 %v2699_v38, %v2625_v61  ;;  %9571 = vmatmul.msk.f32.gmra.mxu3 %vm1145_vm1, %v16751_v34  ;;  %v16757_v61 = vld [vmem:[#allocation99_spill] sm:$0xff] }
 0x3c1   : > { %v16758_v38 = vld [vmem:[#allocation143_spill] sm:$0xff] }
 0x3c2   : > { %v12156_v15 = vadd.f32 %v3008_v3, %v2799_v5  ;;  %v16756_v3 = vld [vmem:[#allocation25_spill] sm:$0xff] }
 0x3c3   : > { %9530 = vmatmul.msk.f32.gmra.mxu2 %vm1145_vm1, %v16753_v47  ;;  %v12164_v58 = vpop.f32.mrf.mxu3  ;;  %v2313_v10 = vadd.f32 %v16756_v3, %v11747_v63  ;;  %v16759_v47 = vld [vmem:[#allocation125_spill] sm:$0xff]  ;;  %v12186_v63 = vpop.f32.mrf.mxu0 }
 0x3c5   : > { %v2627_v5 = vadd.f32 %v16758_v38, %v2313_v10 }
 0x3c7   : > { %v2702_v7 = vpop.f32.mrf.mxu2 }
 0x3c8   : > { %v2800_v0 = vadd.f32 %v2702_v7, %v2626_v17  ;;  %9572 = vmatmul.msk.f32.gmra.mxu3 %vm1145_vm1, %v16755_v31  ;;  %v16761_v17 = vld [vmem:[#allocation103_spill] sm:$0xff] }
 0x3ca   : > { %v12167_v20 = vadd.f32 %v3011_v28, %v2800_v0  ;;  %v16760_v28 = vld [vmem:[#allocation29_spill] sm:$0xff] }
 0x3cb   : > { %9531 = vmatmul.msk.f32.gmra.mxu2 %vm1145_vm1, %v16757_v61  ;;  %v12175_v26 = vpop.f32.mrf.mxu3  ;;  %v2314_v39 = vadd.f32 %v16760_v28, %v11758_v12  ;;  %v16763_v61 = vld [vmem:[#allocation33_spill] sm:$0xff]  ;;  %v16764_v12 = vld [vmem:[#allocation108_spill] sm:$0xff] }
 0x3cc   : > { %v2315_v38 = vadd.f32 %v16763_v61, %v11769_v48  ;;  %v16769_v61 = vld [vmem:[#allocation140_spill] sm:$0xff] }
 0x3cd   : > { %v2628_v0 = vadd.f32 %v11653_v25, %v2314_v39  ;;  %v16766_v39 = vld [vmem:[#allocation112_spill] sm:$0xff] }
 0x3cf   : > { %v2705_v34 = vpop.f32.mrf.mxu2 }
 0x3d0   : > { %v2801_v35 = vadd.f32 %v2705_v34, %v2627_v5  ;;  %9573 = vmatmul.msk.f32.gmra.mxu3 %vm1145_vm1, %v16759_v47  ;;  %v2629_v34 = vadd.f32 %v11682_v16, %v2315_v38  ;;  %v16770_v38 = vld [vmem:[#allocation122_spill] sm:$0xff] }
 0x3d2   : > { %v12178_v46 = vadd.f32 %v3014_v6, %v2801_v35  ;;  %v16762_v6 = vld [vmem:[#allocation130_spill] sm:$0xff]  ;;  %v12200_v35 = vpop.f32.mrf.mxu0 }
 0x3d3   : > { %9532 = vmatmul.msk.f32.gmra.mxu2 %vm1145_vm1, %v16761_v17  ;;  %v12188_v7 = vpop.f32.mrf.mxu3 }
 0x3d7   : > { %v2708_v31 = vpop.f32.mrf.mxu2 }
 0x3d8   : > { %v2802_v3 = vadd.f32 %v2708_v31, %v2628_v0  ;;  %9574 = vmatmul.msk.f32.gmra.mxu3 %vm1145_vm1, %v16762_v6  ;;  %v16767_v31 = vld [vmem:[#allocation137_spill] sm:$0xff] }
 0x3da   : > { %v12191_v10 = vadd.f32 %v3017_v50, %v2802_v3  ;;  %v16765_v50 = vld [vmem:[#allocation134_spill] sm:$0xff]  ;;  %v3347_v0 = vpop.f32.mrf.mxu0  ;;  %v16768_v3 = vld [vmem:[#allocation117_spill] sm:$0xff] }
 0x3db   : > { %9533 = vmatmul.msk.f32.gmra.mxu2 %vm1145_vm1, %v16764_v12  ;;  %v3032_v5 = vpop.f32.mrf.mxu3 }
 0x3df   : > { %v2711_v47 = vpop.f32.mrf.mxu2 }
 0x3e0   : > { %v2803_v25 = vadd.f32 %v2711_v47, %v2629_v34  ;;  %9575 = vmatmul.msk.f32.gmra.mxu3 %vm1145_vm1, %v16765_v50  ;;  %v16771_v47 = vld [vmem:[#allocation142_spill] sm:$0xff] }
 0x3e2   : > { %v12202_v28 = vadd.f32 %v3020_v1, %v2803_v25  ;;  %v3350_v1 = vpop.f32.mrf.mxu0  ;;  %v16772_v25 = vld [vmem:[#allocation127_spill] sm:$0xff] }
 0x3e3   : > { %9534 = vmatmul.msk.f32.gmra.mxu2 %vm1145_vm1, %v16766_v39  ;;  %v3035_v17 = vpop.f32.mrf.mxu3 }
 0x3e7   : > { %v2714_v48 = vpop.f32.mrf.mxu2 }
 0x3e8   : > { %9576 = vmatmul.msk.f32.gmra.mxu3 %vm1145_vm1, %v16767_v31 }
 0x3ea   : > { %v12220_v50 = vpop.f32.mrf.mxu0 }
 0x3eb   : > { %9535 = vmatmul.msk.f32.gmra.mxu2 %vm1145_vm1, %v16768_v3  ;;  %v3038_v16 = vpop.f32.mrf.mxu3  ;;  %16773 = vst [vmem:[#allocation96_spill] sm:$0xff] %v12220_v50  ;;  %v16775_v3 = vld [vmem:[#allocation63_spill] sm:$0xff]  ;;  %v16779_v50 = vld [vmem:[#allocation26_spill] sm:$0xff] }
 0x3ef   : > { %v2717_v6 = vpop.f32.mrf.mxu2 }
 0x3f0   : > { %9577 = vmatmul.msk.f32.gmra.mxu3 %vm1145_vm1, %v16769_v61 }
 0x3f3   : > { %9536 = vmatmul.msk.f32.gmra.mxu2 %vm1145_vm1, %v16770_v38  ;;  %v3041_v12 = vpop.f32.mrf.mxu3  ;;  %v12230_v38 = vpop.f32.mrf.mxu0 }
 0x3f4   : > { %16777 = vst [vmem:[#allocation100_spill] sm:$0xff] %v12230_v38  ;;  %v16784_v38 = vld [vmem:[#allocation22_spill] sm:$0xff] }
 0x3f7   : > { %v2720_v34 = vpop.f32.mrf.mxu2 }
 0x3f8   : > { %9578 = vmatmul.msk.f32.gmra.mxu3 %vm1145_vm1, %v16771_v47  ;;  %v16778_v47 = vld [vmem:[#allocation49_spill] sm:$0xff] }
 0x3fb   : > { %9537 = vmatmul.msk.f32.gmra.mxu2 %vm1145_vm1, %v16772_v25  ;;  %v12222_v39 = vpop.f32.mrf.mxu3  ;;  %v2321_v25 = vadd.f32 %v11671_v51, %v11841_v59  ;;  %v12245_v18 = vpop.f32.mrf.mxu0  ;;  %v16789_v51 = vld [vmem:[#allocation54_spill] sm:$0xff] }
 0x3fc   : > { %16774 = vst [vmem:[#allocation31_spill] sm:$0xff] %v12222_v39  ;;  %v16780_v39 = vld [vmem:[#allocation68_spill] sm:$0xff]  ;;  %v16790_v59 = vld [vmem:[#allocation74_spill] sm:$0xff] }
 0x3fd   : > { %v2635_v30 = vadd.f32 %v16784_v38, %v2321_v25  ;;  %16785 = vst [vmem:[#allocation16_spill] sm:$0xff] %v12245_v18  ;;  %v16794_v25 = vld [vmem:[#allocation139_spill] sm:$0xff]  ;;  %v16795_v18 = vld [vmem:[#allocation10_spill] sm:$0xff] }
 0x3ff   : > { %v2723_v31 = vpop.f32.mrf.mxu2 }
 0x400   : > { %9579 = vmatmul.msk.f32.gmra.mxu3 %vm1145_vm1, %v16775_v3  ;;  %v2320_v3 = vadd.f32 %v16780_v39, %v16779_v50  ;;  %v2322_v50 = vadd.f32 %v16790_v59, %v11852_v14  ;;  %v16791_v39 = vld [vmem:[#allocation14_spill] sm:$0xff] }
 0x401   : > { %v16799_v14 = vld [vmem:[#allocation66_spill] sm:$0xff] }
 0x403   : > { %9538 = vmatmul.msk.f32.gmra.mxu2 %vm1145_vm1, %v11263_v4  ;;  %v12228_v61 = vpop.f32.mrf.mxu3 }
 0x404   : > { %16776 = vst [vmem:[#allocation12_spill] sm:$0xff] %v12228_v61  ;;  %v16783_v61 = vld [vmem:[#allocation57_spill] sm:$0xff] }
 0x405   : > { %v2319_v9 = vadd.f32 %v16783_v61, %v16782_v13  ;;  %v16793_v13 = vld [vmem:[#allocation88_spill] sm:$0xff] }
 0x407   : > { %v2726_v24 = vpop.f32.mrf.mxu2  ;;  %v2633_v61 = vadd.f32 %v16793_v13, %v2319_v9  ;;  %v16800_v9 = vld [vmem:[#allocation60_spill] sm:$0xff] }
 0x408   : > { %9580 = vmatmul.msk.f32.gmra.mxu3 %vm1145_vm1, %v16778_v47  ;;  %v16786_v47 = vld [vmem:[#allocation18_spill] sm:$0xff] }
 0x409   : > { %v2318_v19 = vadd.f32 %v16787_v53, %v16786_v47  ;;  %v16796_v53 = vld [vmem:[#allocation37_spill] sm:$0xff] }
 0x40a   : > { %v2316_v47 = vadd.f32 %v16796_v53, %v16795_v18  ;;  %v12267_v53 = vpop.f32.mrf.mxu0 }
 0x40b   : > { %9539 = vmatmul.msk.f32.gmra.mxu2 %vm1145_vm1, %v11287_v40  ;;  %v12240_v56 = vpop.f32.mrf.mxu3  ;;  %v16788_v40 = vld [vmem:[#allocation93_spill] sm:$0xff]  ;;  %16802 = vst [vmem:[#allocation39_spill] sm:$0xff] %v12267_v53 }
 0x40c   : > { %16781 = vst [vmem:[#allocation35_spill] sm:$0xff] %v12240_v56  ;;  %v2634_v21 = vadd.f32 %v16788_v40, %v2320_v3  ;;  %v16792_v56 = vld [vmem:[#allocation40_spill] sm:$0xff]  ;;  %v16797_v3 = vld [vmem:[#allocation90_spill] sm:$0xff] }
 0x40d   : > { %v2317_v44 = vadd.f32 %v16792_v56, %v16791_v39 }
 0x40e   : > { %v2808_v38 = vadd.f32 %v2726_v24, %v2634_v21  ;;  %v2630_v21 = vadd.f32 %v16800_v9, %v2316_v47  ;;  %v3420_v47 = vadd.f32 %v12064_v37, %v12191_v10  ;;  %v3418_v37 = vadd.f32 %v12043_v45, %v12167_v20 }
 0x40f   : > { %v2729_v4 = vpop.f32.mrf.mxu2  ;;  %v2631_v59 = vadd.f32 %v16799_v14, %v2317_v44 }
 0x410   : > { %v2809_v60 = vadd.f32 %v2729_v4, %v2635_v30  ;;  %9581 = vmatmul.msk.f32.gmra.mxu3 %vm1145_vm1, %v16789_v51  ;;  %v2632_v30 = vadd.f32 %v16797_v3, %v2318_v19  ;;  %v2807_v4 = vadd.f32 %v2723_v31, %v2633_v61  ;;  %v16798_v51 = vld [vmem:[#allocation118_spill] sm:$0xff]  ;;  %v3117_v56 = vadd.f32 %v3035_v17, %v2808_v38  ;;  %v16804_v17 = vld [vmem:[#allocation85_spill] sm:$0xff] }
 0x411   : > { %v2636_v57 = vadd.f32 %v16798_v51, %v2322_v50  ;;  %v2805_v13 = vadd.f32 %v2717_v6, %v2631_v59  ;;  %v2804_v19 = vadd.f32 %v2714_v48, %v2630_v21  ;;  %v3421_v50 = vadd.f32 %v12077_v62, %v12202_v28 }
 0x412   : > { %v3118_v40 = vadd.f32 %v3038_v16, %v2809_v60  ;;  %v2806_v41 = vadd.f32 %v2720_v34, %v2632_v30  ;;  %v12272_v60 = vld [vmem:[%s16803_s29] ss:$0 sm:$0xff]  ;;  %v16808_v34 = vld [vmem:[#allocation3_spill] sm:$0xff]  ;;  %v12304_v31 = vpop.f32.mrf.mxu0  ;;  %v3419_v62 = vadd.f32 %v12054_v29, %v12178_v46  ;;  %v3417_v46 = vadd.f32 %v12030_v52, %v12156_v15 }
 0x413   : > { %9540 = vmatmul.msk.f32.gmra.mxu2 %vm1145_vm1, %v16794_v25  ;;  %v12265_v24 = vpop.f32.mrf.mxu3  ;;  %v3116_v25 = vadd.f32 %v3032_v5, %v2807_v4  ;;  %v3114_v5 = vadd.f32 %v12175_v26, %v2805_v13  ;;  %v3113_v48 = vadd.f32 %v12164_v58, %v2804_v19  ;;  %16810 = vst [vmem:[#allocation114_spill] sm:$0xff] %v12304_v31  ;;  %v16821_v13 = vld [vmem:[#allocation145_spill] sm:$0xff]  ;;  %v16840_v31 = vld [vmem:[#allocation34_spill] sm:$0xff] }
 0x414   : > { %16801 = vst [vmem:[#allocation105_spill] sm:$0xff] %v12265_v24  ;;  %v3427_v22 = vadd.f32 %v3347_v0, %v3118_v40  ;;  %v3115_v44 = vadd.f32 %v12188_v7, %v2806_v41  ;;  %v3460_v28 = vadd.f32 %v12272_v60, %v3421_v50  ;;  %v3459_v10 = vadd.f32 %v12272_v60, %v3420_v47  ;;  %v16815_v40 = vld [vmem:[#allocation144_spill] sm:$0xff]  ;;  %v3533_v50 = vld [vmem:[%s16829_s21 + $0x48] sm:$0xff] }
 0x415   : > { %v3425_v0 = vadd.f32 %v12186_v63, %v3116_v25  ;;  %v3422_v58 = vadd.f32 %v12089_v8, %v3113_v48  ;;  %v3458_v14 = vadd.f32 %v12272_v60, %v3419_v62  ;;  %v3415_v15 = vadd.f32 %v12001_v27, %v12138_v42  ;;  %v3527_v48 = vld [vmem:[%s16829_s21 + $0x18] sm:$0xff]  ;;  %v3536_v62 = vld [vmem:[%s16829_s21 + $0x60] sm:$0xff] }
 0x416   : > { %v3466_v16 = vadd.f32 %v12272_v60, %v3427_v22  ;;  %v3424_v41 = vadd.f32 %v12117_v54, %v3115_v44  ;;  %v12345_v45 = vmax.f32 %v3460_v28, 0.0  ;;  %v12356_v52 = vmax.f32 %v3459_v10, 0.0 }
 0x417   : > { %v2732_v43 = vpop.f32.mrf.mxu2  ;;  %v3464_v26 = vadd.f32 %v12272_v60, %v3425_v0  ;;  %v3461_v3 = vadd.f32 %v12272_v60, %v3422_v58  ;;  %v3456_v9 = vadd.f32 %v12272_v60, %v3417_v46  ;;  %v12363_v21 = vmax.f32 %v3458_v14, 0.0  ;;  %v3539_v46 = vld [vmem:[%s16829_s21 + $0x78] sm:$0xff] }
 0x418   : > { %v2810_v39 = vadd.f32 %v2732_v43, %v2636_v57  ;;  %v3426_v43 = vadd.f32 %v12200_v35, %v3117_v56  ;;  %v12293_v22 = vmax.f32 %v3466_v16, 0.0  ;;  %v3463_v54 = vadd.f32 %v12272_v60, %v3424_v41  ;;  %16817 = vst [vmem:[#allocation124_spill] sm:$0xff] %v12345_v45 }
 0x419   : > { %v12311_v8 = vmax.f32 %v3464_v26, 0.0  ;;  %v12336_v51 = vmax.f32 %v3461_v3, 0.0  ;;  %v3416_v56 = vadd.f32 %v12013_v55, %v12147_v36  ;;  %16819 = vst [vmem:[#allocation36_spill] sm:$0xff] %v12356_v52  ;;  %v3414_v55 = vadd.f32 %v11990_v23, %v12129_v11  ;;  %v3530_v26 = vld [vmem:[%s16829_s21 + $0x30] sm:$0xff] }
 0x41a   : > { %v3119_v18 = vadd.f32 %v3041_v12, %v2810_v39  ;;  %v3465_v7 = vadd.f32 %v12272_v60, %v3426_v43  ;;  %16807 = vst [vmem:[#allocation42_spill] sm:$0xff] %v12293_v22  ;;  %v12320_v30 = vmax.f32 %v3463_v54, 0.0  ;;  %v12347_v20 = vpop.f32.mrf.mxu0  ;;  %v3457_v39 = vadd.f32 %v12272_v60, %v3418_v37  ;;  %v12431_v54 = vpop.f32.mrf.mxu1 }
 0x41b   : > { %9541 = vmatmul.msk.f32.gmra.mxu2 %vm1145_vm1, %v16804_v17  ;;  %v12295_v63 = vpop.f32.mrf.mxu3  ;;  %16811 = vst [vmem:[#allocation45_spill] sm:$0xff] %v12311_v8  ;;  %v3455_v36 = vadd.f32 %v12272_v60, %v3416_v56  ;;  %v3413_v42 = vadd.f32 %v11977_v32, %v12120_v33  ;;  %v3454_v27 = vadd.f32 %v12272_v60, %v3415_v15 }
 0x41c   : > { %v3428_v57 = vadd.f32 %v3350_v1, %v3119_v18  ;;  %v3423_v1 = vadd.f32 %v12100_v49, %v3114_v5  ;;  %v12302_v49 = vmax.f32 %v3465_v7, 0.0  ;;  %16813 = vst [vmem:[#allocation119_spill] sm:$0xff] %v12320_v30  ;;  %v12372_v25 = vmax.f32 %v3457_v39, 0.0  ;;  %v3524_v5 = vld [vmem:[%s16829_s21] sm:$0xff] }
 0x41d   : > { %16816 = vst [vmem:[#allocation32_spill] sm:$0xff] %v12336_v51  ;;  %v12379_v18 = vmax.f32 %v3456_v9, 0.0  ;;  %v3453_v19 = vadd.f32 %v12272_v60, %v3414_v55  ;;  %v12388_v44 = vmax.f32 %v3455_v36, 0.0  ;;  %v3452_v32 = vadd.f32 %v12272_v60, %v3413_v42  ;;  %v3542_v9 = vld [vmem:[%s16829_s21 + $0x90] sm:$0xff]  ;;  %v3545_v42 = vld [vmem:[%s16829_s21 + $0xa8] sm:$0xff] }
 0x41e   : > { %v3467_v6 = vadd.f32 %v12272_v60, %v3428_v57  ;;  %16809 = vst [vmem:[#allocation24_spill] sm:$0xff] %v12302_v49  ;;  %v3462_v61 = vadd.f32 %v12272_v60, %v3423_v1  ;;  %v12395_v33 = vmax.f32 %v3454_v27, 0.0 }
 0x41f   : > { %v12282_v12 = vpop.f32.mrf.mxu2  ;;  %16818 = vst [vmem:[#allocation53_spill] sm:$0xff] %v12347_v20  ;;  %v12399_v57 = vmax.f32 %v3453_v19, 0.0  ;;  %v12403_v17 = vmax.f32 %v3452_v32, 0.0 }
 0x420   : > { %16805 = vst [vmem:[#allocation20_spill] sm:$0xff] %v12282_v12  ;;  %v12287_v35 = vmax.f32 %v3467_v6, 0.0  ;;  %v12327_v4 = vmax.f32 %v3462_v61, 0.0 }
 0x421   : > { %16820 = vst [vmem:[#allocation129_spill] sm:$0xff] %v12363_v21 }
 0x422   : > { %16806 = vst [vmem:[#allocation109_spill] sm:$0xff] %v12287_v35  ;;  %3717 = vmatpush.msra.mxu1 %v12287_v35  ;;  %4059 = vmatpush.msra.mxu2 %v12287_v35  ;;  %v12390_v43 = vpop.f32.mrf.mxu0  ;;  %v2591_v3 = vpop.f32.mrf.mxu1 }
 0x423   : > { %9542 = vmatmul.msk.f32.gmra.mxu2 %vm1145_vm1, %v16808_v34  ;;  %16814 = vst [vmem:[#allocation48_spill] sm:$0xff] %v12327_v4  ;;  %v12338_v29 = vpop.f32.mrf.mxu3 }
 0x424   : > { %3718 = vmatpush.msra.mxu1 %v12293_v22  ;;  %4060 = vmatpush.msra.mxu2 %v12293_v22  ;;  %16822 = vst [vmem:[#allocation59_spill] sm:$0xff] %v12372_v25 }
 0x425   : > { %16823 = vst [vmem:[#allocation133_spill] sm:$0xff] %v12379_v18 }
 0x426   : > { %3719 = vmatpush.msra.mxu1 %v12302_v49  ;;  %4061 = vmatpush.msra.mxu2 %v12302_v49  ;;  %16824 = vst [vmem:[#allocation65_spill] sm:$0xff] %v12388_v44 }
 0x427   : > { %v12314_v38 = vpop.f32.mrf.mxu2  ;;  %16825 = vst [vmem:[#allocation136_spill] sm:$0xff] %v12390_v43  ;;  %v16842_v43 = vld [vmem:[#allocation30_spill] sm:$0xff] }
 0x428   : > { %16812 = vst [vmem:[#allocation28_spill] sm:$0xff] %v12314_v38  ;;  %3720 = vmatpush.msra.mxu1 %v12311_v8  ;;  %4062 = vmatpush.msra.mxu2 %v12311_v8  ;;  %v16835_v8 = vld [vmem:[#allocation19_spill] sm:$0xff] }
 0x429   : > { %16826 = vst [vmem:[#allocation70_spill] sm:$0xff] %v12395_v33  ;;  %v16841_v38 = vld [vmem:[#allocation15_spill] sm:$0xff] }
 0x42a   : > { %3721 = vmatpush.msra.mxu1 %v12320_v30  ;;  %4063 = vmatpush.msra.mxu2 %v12320_v30  ;;  %16827 = vst [vmem:[#allocation76_spill] sm:$0xff] %v12399_v57  ;;  %v12415_v6 = vpop.f32.mrf.mxu0 }
 0x42b   : > { %9543 = vmatmul.msk.f32.gmra.mxu2 %vm1145_vm1, %v16815_v40  ;;  %v12381_v23 = vpop.f32.mrf.mxu3  ;;  %16828 = vst [vmem:[#allocation50_spill] sm:$0xff] %v12403_v17  ;;  %v2594_v40 = vpop.f32.mrf.mxu1 }
 0x42c   : > { %3722 = vmatpush.msra.mxu1 %v12327_v4  ;;  %4064 = vmatpush.msra.mxu2 %v12327_v4 }
 0x42e   : > { %3723 = vmatpush.msra.mxu1 %v12336_v51  ;;  %4065 = vmatpush.msra.mxu2 %v12336_v51 }
 0x42f   : > { %v12350_v59 = vpop.f32.mrf.mxu2 }
 0x430   : > { %3724 = vmatpush.msra.mxu1 %v12345_v45  ;;  %4066 = vmatpush.msra.mxu2 %v12345_v45  ;;  %v16834_v45 = vld [vmem:[#allocation41_spill] sm:$0xff] }
 0x432   : > { %3725 = vmatpush.msra.mxu1 %v12356_v52  ;;  %4067 = vmatpush.msra.mxu2 %v12356_v52  ;;  %v12424_v1 = vpop.f32.mrf.mxu0  ;;  %v16833_v52 = vld [vmem:[#allocation2_spill] sm:$0xff] }
 0x433   : > { %9544 = vmatmul.msk.f32.gmra.mxu2 %vm1145_vm1, %v16821_v13  ;;  %v12412_v16 = vpop.f32.mrf.mxu3  ;;  %v2597_v15 = vpop.f32.mrf.mxu1  ;;  %v2335_v51 = vadd.f32 %v16834_v45, %v16833_v52  ;;  %v2332_v45 = vadd.f32 %v16842_v43, %v16841_v38 }
 0x434   : > { %3726 = vmatpush.msra.mxu1 %v12363_v21  ;;  %4068 = vmatpush.msra.mxu2 %v12363_v21 }
 0x435   : > { %v2649_v20 = vadd.f32 %v2597_v15, %v2335_v51  ;;  %v16843_v51 = vld [vmem:[#allocation7_spill] sm:$0xff]  ;;  %v2646_v38 = vadd.f32 %v12431_v54, %v2332_v45  ;;  %v16848_v54 = vld [vmem:[#allocation104_spill] sm:$0xff] }
 0x436   : > { %3727 = vmatpush.msra.mxu1 %v12372_v25  ;;  %4069 = vmatpush.msra.mxu2 %v12372_v25 }
 0x437   : > { %v12384_v11 = vpop.f32.mrf.mxu2 }
 0x438   : > { %3728 = vmatpush.msra.mxu1 %v12379_v18  ;;  %4070 = vmatpush.msra.mxu2 %v12379_v18  ;;  %v16832_v18 = vld [vmem:[#allocation47_spill] sm:$0xff] }
 0x43a   : > { %3729 = vmatpush.msra.mxu1 %v12388_v44  ;;  %4071 = vmatpush.msra.mxu2 %v12388_v44  ;;  %v12438_v61 = vpop.f32.mrf.mxu0  ;;  %v16831_v44 = vld [vmem:[#allocation86_spill] sm:$0xff] }
 0x43b   : > { %v12422_v7 = vpop.f32.mrf.mxu3  ;;  %v2600_v19 = vpop.f32.mrf.mxu1  ;;  %v2336_v25 = vadd.f32 %v16832_v18, %v16831_v44  ;;  %v16839_v44 = vld [vmem:[#allocation81_spill] sm:$0xff] }
 0x43c   : > { %3730 = vmatpush.msra.mxu1 %v12395_v33  ;;  %4072 = vmatpush.msra.mxu2 %v12395_v33  ;;  %v2333_v12 = vadd.f32 %v16840_v31, %v16839_v44  ;;  %v16852_v44 = vld [vmem:[#allocation83_spill] sm:$0xff] }
 0x43d   : > { %v2650_v22 = vadd.f32 %v2600_v19, %v2336_v25 }
 0x43e   : > { %3731 = vmatpush.msra.mxu1 %v12399_v57  ;;  %4073 = vmatpush.msra.mxu2 %v12399_v57  ;;  %v2647_v25 = vadd.f32 %v2591_v3, %v2333_v12 }
 0x43f   : > { %v12409_v0 = vpop.f32.mrf.mxu2 }
 0x440   : > { %3732 = vmatpush.msra.mxu1 %v12403_v17  ;;  %4074 = vmatpush.msra.mxu2 %v12403_v17 }
 0x441   : > { %3733 = vmatmul.f32.vlgmr.msra.gmra.mxu1 %v3524_v5  ;;  %v3548_v5 = vld [vmem:[%s16829_s21 + $0xc0] sm:$0xff] }
 0x442   : > { %v12449_v10 = vpop.f32.mrf.mxu0 }
 0x443   : > { %v12433_v34 = vpop.f32.mrf.mxu3 }
 0x447   : > { %v12420_v41 = vpop.f32.mrf.mxu2 }
 0x449   : > { %3736 = vmatmul.f32.gmra.mxu1 %v3527_v48 }
 0x44a   : > { %v12458_v39 = vpop.f32.mrf.mxu0 }
 0x44b   : > { %v12445_v28 = vpop.f32.mrf.mxu3 }
 0x44f   : > { %v12429_v58 = vpop.f32.mrf.mxu2 }
 0x451   : > { %3739 = vmatmul.f32.gmra.mxu1 %v3530_v26 }
 0x452   : > { %v12463_v13 = vpop.f32.mrf.mxu0 }
 0x453   : > { %v12456_v56 = vpop.f32.mrf.mxu3 }
 0x457   : > { %v12440_v47 = vpop.f32.mrf.mxu2 }
 0x459   : > { %3742 = vmatmul.f32.gmra.mxu1 %v3533_v50  ;;  %v2603_v50 = vpop.f32.mrf.mxu1 }
 0x45a   : > { %v3392_v48 = vpop.f32.mrf.mxu0 }
 0x45b   : > { %v3080_v36 = vpop.f32.mrf.mxu3 }
 0x45f   : > { %v12447_v37 = vpop.f32.mrf.mxu2 }
 0x461   : > { %3745 = vmatmul.f32.gmra.mxu1 %v3536_v62  ;;  %v3551_v62 = vld [vmem:[%s16829_s21 + $0xd8] sm:$0xff]  ;;  %v2606_v57 = vpop.f32.mrf.mxu1 }
 0x462   : > { %v3395_v17 = vpop.f32.mrf.mxu0 }
 0x463   : > { %v3083_v32 = vpop.f32.mrf.mxu3 }
 0x467   : > { %v12454_v14 = vpop.f32.mrf.mxu2 }
 0x468   : > { %v2820_v12 = vadd.f32 %v12454_v14, %v2646_v38  ;;  %v16857_v38 = vld [vmem:[#allocation132_spill] sm:$0xff] }
 0x469   : > { %3748 = vmatmul.f32.gmra.mxu1 %v3539_v46  ;;  %v12491_v52 = vpop.f32.mrf.mxu1 }
 0x46a   : > { %v3398_v18 = vpop.f32.mrf.mxu0 }
 0x46b   : > { %v3086_v46 = vpop.f32.mrf.mxu3 }
 0x46f   : > { %v2765_v55 = vpop.f32.mrf.mxu2 }
 0x470   : > { %v2821_v43 = vadd.f32 %v2765_v55, %v2647_v25  ;;  %v16849_v55 = vld [vmem:[#allocation69_spill] sm:$0xff]  ;;  %v16854_v25 = vld [vmem:[#allocation126_spill] sm:$0xff] }
 0x471   : > { %3751 = vmatmul.f32.gmra.mxu1 %v3542_v9 }
 0x473   : > { %v3089_v30 = vpop.f32.mrf.mxu3 }
 0x477   : > { %v2768_v27 = vpop.f32.mrf.mxu2 }
 0x479   : > { %3754 = vmatmul.f32.gmra.mxu1 %v3545_v42  ;;  %v16830_v42 = vld [vmem:[#allocation138_spill] sm:$0xff] }
 0x47a   : > { %v2337_v33 = vadd.f32 %v16830_v42, %v12026_v2  ;;  %v16837_v2 = vld [vmem:[#allocation23_spill] sm:$0xff]  ;;  %v16838_v42 = vld [vmem:[#allocation64_spill] sm:$0xff] }
 0x47b   : > { %v2338_v53 = vadd.f32 %v16838_v42, %v16837_v2  ;;  %v3130_v2 = vadd.f32 %v12445_v28, %v2821_v43  ;;  %v12527_v28 = vpop.f32.mrf.mxu1  ;;  %v16858_v43 = vld [vmem:[#allocation77_spill] sm:$0xff] }
 0x47c   : > { %v2651_v4 = vadd.f32 %v2603_v50, %v2337_v33 }
 0x47f   : > { %v2771_v26 = vpop.f32.mrf.mxu2 }
 0x480   : > { %v2823_v50 = vadd.f32 %v2771_v26, %v2649_v20  ;;  %v12501_v26 = vpop.f32.mrf.mxu3 }
 0x481   : > { %3757 = vmatmul.f32.gmra.mxu1 %v3548_v5  ;;  %v3554_v5 = vld [vmem:[%s16829_s21 + $0xf0] sm:$0xff] }
 0x487   : > { %v2774_v9 = vpop.f32.mrf.mxu2 }
 0x488   : > { %v2824_v24 = vadd.f32 %v2774_v9, %v2650_v22  ;;  %v16844_v22 = vld [vmem:[#allocation102_spill] sm:$0xff] }
 0x489   : > { %3760 = vmatmul.f32.gmra.mxu1 %v3551_v62  ;;  %v16836_v62 = vld [vmem:[#allocation38_spill] sm:$0xff]  ;;  %v2330_v15 = vadd.f32 %v16844_v22, %v16843_v51 }
 0x48a   : > { %v2334_v49 = vadd.f32 %v16836_v62, %v16835_v8  ;;  %v2652_v8 = vadd.f32 %v2606_v57, %v2338_v53  ;;  %v3133_v62 = vadd.f32 %v3083_v32, %v2824_v24  ;;  %v16845_v53 = vld [vmem:[#allocation4_spill] sm:$0xff]  ;;  %v16846_v57 = vld [vmem:[#allocation98_spill] sm:$0xff]  ;;  %v12505_v32 = vpop.f32.mrf.mxu0 }
 0x48c   : > { %v2648_v33 = vadd.f32 %v2594_v40, %v2334_v49  ;;  %v3132_v49 = vadd.f32 %v3080_v36, %v2823_v50  ;;  %v2329_v40 = vadd.f32 %v16846_v57, %v16845_v53  ;;  %v3442_v3 = vadd.f32 %v3392_v48, %v3133_v62  ;;  %v12519_v48 = vld [vmem:[%s16829_s21 + $0x120] sm:$0xff] }
 0x48d   : > { %v2644_v36 = vadd.f32 %v16849_v55, %v2330_v15  ;;  %v3439_v15 = vadd.f32 %v12449_v10, %v3130_v2 }
 0x48e   : > { %v2822_v19 = vadd.f32 %v2768_v27, %v2648_v33  ;;  %v3441_v42 = vadd.f32 %v12463_v13, %v3132_v49  ;;  %v16853_v33 = vld [vmem:[#allocation58_spill] sm:$0xff]  ;;  %v3129_v13 = vadd.f32 %v12433_v34, %v2820_v12  ;;  %v2325_v49 = vadd.f32 %v16858_v43, %v16857_v38  ;;  %v16861_v12 = vld [vmem:[#allocation71_spill] sm:$0xff] }
 0x48f   : > { %v2777_v21 = vpop.f32.mrf.mxu2  ;;  %v2643_v50 = vadd.f32 %v16853_v33, %v2329_v40  ;;  %v16860_v40 = vld [vmem:[#allocation116_spill] sm:$0xff]  ;;  %v16874_v43 = vld [vmem:[#allocation114_spill] sm:$0xff] }
 0x490   : > { %v2825_v35 = vadd.f32 %v2777_v21, %v2651_v4  ;;  %v3557_v4 = vld [vmem:[%s16829_s21 + $0x108] sm:$0xff]  ;;  %v3131_v24 = vadd.f32 %v12456_v56, %v2822_v19  ;;  %v16855_v19 = vld [vmem:[#allocation6_spill] sm:$0xff]  ;;  %v3480_v34 = vadd.f32 %v12272_v60, %v3441_v42  ;;  %v3438_v10 = vadd.f32 %v12438_v61, %v3129_v13 }
 0x491   : > { %3763 = vmatmul.f32.gmra.mxu1 %v3554_v5  ;;  %v2326_v62 = vadd.f32 %v16855_v19, %v16854_v25  ;;  %v2817_v22 = vadd.f32 %v12429_v58, %v2643_v50  ;;  %v16869_v25 = vld [vmem:[#allocation28_spill] sm:$0xff] }
 0x492   : > { %v3134_v5 = vadd.f32 %v3086_v46, %v2825_v35  ;;  %v16847_v46 = vld [vmem:[#allocation52_spill] sm:$0xff]  ;;  %v12572_v55 = vpop.f32.mrf.mxu0 }
 0x493   : > { %v2328_v9 = vadd.f32 %v16848_v54, %v16847_v46  ;;  %v12562_v46 = vpop.f32.mrf.mxu3  ;;  %v3478_v54 = vadd.f32 %v12272_v60, %v3439_v15 }
 0x494   : > { %v3443_v20 = vadd.f32 %v3395_v17, %v3134_v5  ;;  %v16850_v17 = vld [vmem:[#allocation75_spill] sm:$0xff] }
 0x495   : > { %v12594_v13 = vmax.f32 %v3478_v54, 0.0 }
 0x496   : > { %v3482_v14 = vadd.f32 %v12272_v60, %v3443_v20  ;;  %v16859_v20 = vld [vmem:[#allocation44_spill] sm:$0xff] }
 0x497   : > { %v2780_v21 = vpop.f32.mrf.mxu2 }
 0x498   : > { %v2826_v31 = vadd.f32 %v2780_v21, %v2652_v8  ;;  %v3440_v8 = vadd.f32 %v12458_v39, %v3131_v24  ;;  %v12544_v39 = vmax.f32 %v3482_v14, 0.0  ;;  %v2324_v24 = vadd.f32 %v16861_v12, %v16860_v40  ;;  %v16877_v40 = vld [vmem:[#allocation27_spill] sm:$0xff] }
 0x499   : > { %3766 = vmatmul.f32.gmra.mxu1 %v3557_v4  ;;  %v3481_v4 = vadd.f32 %v12272_v60, %v3442_v3  ;;  %v16862_v3 = vld [vmem:[#allocation121_spill] sm:$0xff] }
 0x49a   : > { %v3135_v35 = vadd.f32 %v3089_v30, %v2826_v31  ;;  %v2819_v30 = vadd.f32 %v12447_v37, %v16850_v17  ;;  %v2818_v37 = vadd.f32 %v12440_v47, %v2644_v36  ;;  %v16856_v31 = vld [vmem:[#allocation135_spill] sm:$0xff]  ;;  %v3479_v53 = vadd.f32 %v12272_v60, %v3440_v8 }
 0x49b   : > { %v2642_v51 = vadd.f32 %v16856_v31, %v2328_v9  ;;  %v12556_v57 = vmax.f32 %v3481_v4, 0.0  ;;  %v12570_v9 = vmax.f32 %v3480_v34, 0.0  ;;  %v16863_v36 = vld [vmem:[#allocation111_spill] sm:$0xff]  ;;  %v16871_v31 = vld [vmem:[#allocation53_spill] sm:$0xff] }
 0x49c   : > { %v3444_v27 = vadd.f32 %v3398_v18, %v3135_v35  ;;  %v16851_v18 = vld [vmem:[#allocation131_spill] sm:$0xff]  ;;  %v3128_v47 = vadd.f32 %v12422_v7, %v2819_v30  ;;  %v3127_v7 = vadd.f32 %v12412_v16, %v2818_v37  ;;  %v3126_v16 = vadd.f32 %v12381_v23, %v2817_v22  ;;  %v16865_v30 = vld [vmem:[#allocation128_spill] sm:$0xff] }
 0x49d   : > { %v2327_v45 = vadd.f32 %v16852_v44, %v16851_v18  ;;  %v2816_v58 = vadd.f32 %v12420_v41, %v2642_v51  ;;  %v2639_v2 = vadd.f32 %v16865_v30, %v2325_v49  ;;  %v12584_v18 = vmax.f32 %v3479_v53, 0.0  ;;  %v16866_v44 = vld [vmem:[#allocation123_spill] sm:$0xff] }
 0x49e   : > { %v3483_v56 = vadd.f32 %v12272_v60, %v3444_v27  ;;  %v2640_v27 = vadd.f32 %v16862_v3, %v2326_v62  ;;  %v3437_v61 = vadd.f32 %v12424_v1, %v3128_v47  ;;  %v3436_v14 = vadd.f32 %v12415_v6, %v3127_v7  ;;  %v16868_v8 = vld [vmem:[#allocation107_spill] sm:$0xff]  ;;  %v16872_v47 = vld [vmem:[#allocation20_spill] sm:$0xff]  ;;  %v16875_v7 = vld [vmem:[#allocation5_spill] sm:$0xff] }
 0x49f   : > { %v12525_v5 = vpop.f32.mrf.mxu2  ;;  %v2641_v35 = vadd.f32 %v16859_v20, %v2327_v45  ;;  %v3125_v1 = vadd.f32 %v12338_v29, %v2816_v58  ;;  %v2638_v45 = vadd.f32 %v16866_v44, %v2324_v24  ;;  %v2813_v33 = vadd.f32 %v12350_v59, %v2639_v2  ;;  %v16867_v29 = vld [vmem:[#allocation136_spill] sm:$0xff]  ;;  %v16870_v59 = vld [vmem:[#allocation105_spill] sm:$0xff]  ;;  %v16873_v34 = vld [vmem:[#allocation35_spill] sm:$0xff]  ;;  %v3098_v58 = vpop.f32.mrf.mxu3 }
 0x4a0   : > { %v12532_v21 = vmax.f32 %v3483_v56, 0.0  ;;  %v2814_v42 = vadd.f32 %v12384_v11, %v2640_v27  ;;  %v3477_v56 = vadd.f32 %v12272_v60, %v3438_v10  ;;  %v2615_v11 = vpop.f32.mrf.mxu1  ;;  %v3435_v37 = vadd.f32 %v16867_v29, %v3126_v16  ;;  %v16876_v10 = vld [vmem:[#allocation11_spill] sm:$0xff]  ;;  %v16878_v3 = vld [vmem:[#allocation12_spill] sm:$0xff] }
 0x4a1   : > { %3769 = vmatmul.f32.gmra.mxu1 %v12519_v48  ;;  %v2815_v41 = vadd.f32 %v12409_v0, %v2641_v35  ;;  %v16864_v0 = vld [vmem:[#allocation80_spill] sm:$0xff]  ;;  %v3476_v6 = vadd.f32 %v12272_v60, %v3437_v61  ;;  %v2812_v19 = vadd.f32 %v16869_v25, %v2638_v45  ;;  %v3475_v51 = vadd.f32 %v12272_v60, %v3436_v14  ;;  %v16881_v30 = vld [vmem:[#allocation91_spill] sm:$0xff] }
 0x4a2   : > { %3773 = vmatpush.msrb.mxu1 %v12532_v21  ;;  %4115 = vmatpush.msrb.mxu3 %v12532_v21  ;;  %v2323_v17 = vadd.f32 %v16864_v0, %v16863_v36  ;;  %v3123_v62 = vadd.f32 %v16870_v59, %v2814_v42  ;;  %v12604_v22 = vmax.f32 %v3477_v56, 0.0  ;;  %v3122_v38 = vadd.f32 %v16873_v34, %v2813_v33  ;;  %v3407_v36 = vpop.f32.mrf.mxu0  ;;  %v16880_v0 = vld [vmem:[#allocation31_spill] sm:$0xff]  ;;  %v16882_v42 = vld [vmem:[#allocation16_spill] sm:$0xff] }
 0x4a3   : > { %4468 = vmatpush.msrb.mxu2 %v12532_v21  ;;  %v3124_v50 = vadd.f32 %v12295_v63, %v2815_v41  ;;  %v3434_v63 = vadd.f32 %v16871_v31, %v3125_v1  ;;  %v3474_v20 = vadd.f32 %v12272_v60, %v3435_v37  ;;  %v12613_v35 = vmax.f32 %v3476_v6, 0.0  ;;  %v16879_v41 = vld [vmem:[#allocation39_spill] sm:$0xff]  ;;  %v16884_v6 = vld [vmem:[#allocation96_spill] sm:$0xff] }
 0x4a4   : > { %3774 = vmatpush.msrb.mxu1 %v12544_v39  ;;  %4116 = vmatpush.msrb.mxu3 %v12544_v39  ;;  %v2637_v4 = vadd.f32 %v16868_v8, %v2323_v17  ;;  %v2339_v53 = vadd.f32 %v16876_v10, %v16875_v7  ;;  %v2655_v12 = vadd.f32 %v2615_v11, %v16877_v40  ;;  %v12624_v54 = vmax.f32 %v3475_v51, 0.0  ;;  %v16883_v11 = vld [vmem:[#allocation100_spill] sm:$0xff] }
 0x4a5   : > { %4469 = vmatpush.msrb.mxu2 %v12544_v39  ;;  %v3433_v49 = vadd.f32 %v16874_v43, %v3124_v50  ;;  %v3121_v27 = vadd.f32 %v16878_v3, %v2812_v19  ;;  %v3432_v16 = vadd.f32 %v16879_v41, %v3123_v62  ;;  %v3473_v61 = vadd.f32 %v12272_v60, %v3434_v63 }
 0x4a6   : > { %3775 = vmatpush.msrb.mxu1 %v12556_v57  ;;  %4117 = vmatpush.msrb.mxu3 %v12556_v57  ;;  %v2811_v15 = vadd.f32 %v16872_v47, %v2637_v4  ;;  %v2654_v2 = vadd.f32 %v12527_v28, %v16881_v30  ;;  %v3431_v1 = vadd.f32 %v16882_v42, %v3122_v38  ;;  %v12634_v44 = vmax.f32 %v3474_v20, 0.0  ;;  %v16885_v4 = vld [vmem:[#allocation8_spill] sm:$0xff]  ;;  %v12663_v47 = vld [vmem:[%s16829_s21 + $0x138] sm:$0xff] }
 0x4a7   : > { %4470 = vmatpush.msrb.mxu2 %v12556_v57  ;;  %v2786_v23 = vpop.f32.mrf.mxu2  ;;  %v3472_v14 = vadd.f32 %v12272_v60, %v3433_v49  ;;  %v2653_v45 = vadd.f32 %v12491_v52, %v2339_v53  ;;  %v3430_v28 = vadd.f32 %v16883_v11, %v3121_v27  ;;  %v3471_v50 = vadd.f32 %v12272_v60, %v3432_v16  ;;  %v3101_v34 = vpop.f32.mrf.mxu3  ;;  %v16886_v30 = vld [vmem:[#allocation109_spill] sm:$0xff]  ;;  %v16888_v42 = vld [vmem:[#allocation24_spill] sm:$0xff] }
 0x4a8   : > { %3776 = vmatpush.msrb.mxu1 %v12570_v9  ;;  %4118 = vmatpush.msrb.mxu3 %v12570_v9  ;;  %v3120_v17 = vadd.f32 %v16880_v0, %v2811_v15  ;;  %v2618_v33 = vpop.f32.mrf.mxu1  ;;  %v2828_v29 = vadd.f32 %v2786_v23, %v2654_v2  ;;  %v12642_v37 = vmax.f32 %v3473_v61, 0.0  ;;  %v3470_v25 = vadd.f32 %v12272_v60, %v3431_v1  ;;  %v16887_v2 = vld [vmem:[#allocation42_spill] sm:$0xff]  ;;  %v3531_v1 = vld [vmem:[%s16829_s21 + $0x38] sm:$0xff]  ;;  %v16892_v11 = vld [vmem:[#allocation32_spill] sm:$0xff] }
 0x4a9   : > { %4471 = vmatpush.msrb.mxu2 %v12570_v9  ;;  %v2656_v52 = vadd.f32 %v2618_v33, %v16885_v4  ;;  %v2827_v19 = vadd.f32 %v12525_v5, %v2653_v45  ;;  %v12651_v23 = vmax.f32 %v3472_v14, 0.0  ;;  %v3469_v31 = vadd.f32 %v12272_v60, %v3430_v28  ;;  %v16890_v45 = vld [vmem:[#allocation119_spill] sm:$0xff]  ;;  %v16891_v33 = vld [vmem:[#allocation48_spill] sm:$0xff] }
 0x4aa   : > { %3777 = vmatpush.msrb.mxu1 %v12584_v18  ;;  %4119 = vmatpush.msrb.mxu3 %v12584_v18  ;;  %v3429_v8 = vadd.f32 %v16884_v6, %v3120_v17  ;;  %v3137_v63 = vadd.f32 %v12562_v46, %v2828_v29  ;;  %v12658_v5 = vmax.f32 %v3471_v50, 0.0  ;;  %v12670_v49 = vmax.f32 %v3470_v25, 0.0  ;;  %v3410_v20 = vpop.f32.mrf.mxu0  ;;  %v3534_v28 = vld [vmem:[%s16829_s21 + $0x50] sm:$0xff]  ;;  %v16896_v4 = vld [vmem:[#allocation59_spill] sm:$0xff]  ;;  %v16897_v25 = vld [vmem:[#allocation133_spill] sm:$0xff] }
 0x4ab   : > { %4472 = vmatpush.msrb.mxu2 %v12584_v18  ;;  %v3136_v38 = vadd.f32 %v12501_v26, %v2827_v19  ;;  %v3927_v7 = vrot.slane %v12663_v47, 6  ;;  %v12678_v26 = vmax.f32 %v3469_v31, 0.0  ;;  %v16893_v50 = vld [vmem:[#allocation124_spill] sm:$0xff]  ;;  %v16898_v19 = vld [vmem:[#allocation65_spill] sm:$0xff]  ;;  %v3569_v47 = vld [vmem:[%s16829_s21 + $0x168] sm:$0xff] }
 0x4ac   : > { %3778 = vmatpush.msrb.mxu1 %v12594_v13  ;;  %4120 = vmatpush.msrb.mxu3 %v12594_v13  ;;  %v3468_v15 = vadd.f32 %v12272_v60, %v3429_v8  ;;  %v3446_v10 = vadd.f32 %v12572_v55, %v3137_v63  ;;  %v16894_v6 = vld [vmem:[#allocation36_spill] sm:$0xff]  ;;  %v16895_v8 = vld [vmem:[#allocation129_spill] sm:$0xff]  ;;  %v3540_v63 = vld [vmem:[%s16829_s21 + $0x80] sm:$0xff] }
 0x4ad   : > { %4473 = vmatpush.msrb.mxu2 %v12594_v13  ;;  %v3445_v40 = vadd.f32 %v12505_v32, %v3136_v38  ;;  %v16900_v31 = vld [vmem:[#allocation76_spill] sm:$0xff] }
 0x4ae   : > { %3779 = vmatpush.msrb.mxu1 %v12604_v22  ;;  %4121 = vmatpush.msrb.mxu3 %v12604_v22  ;;  %v12686_v55 = vmax.f32 %v3468_v15, 0.0  ;;  %v3485_v27 = vadd.f32 %v12272_v60, %v3446_v10  ;;  %v3546_v38 = vld [vmem:[%s16829_s21 + $0xb0] sm:$0xff] }
 0x4af   : > { %4474 = vmatpush.msrb.mxu2 %v12604_v22  ;;  %v2789_v24 = vpop.f32.mrf.mxu2  ;;  %v3484_v16 = vadd.f32 %v12272_v60, %v3445_v40 }
 0x4b0   : > { %3780 = vmatpush.msrb.mxu1 %v12613_v35  ;;  %4122 = vmatpush.msrb.mxu3 %v12613_v35  ;;  %v2829_v56 = vadd.f32 %v2789_v24, %v2655_v12  ;;  %v3525_v24 = vld [vmem:[%s16829_s21 + $0x8] sm:$0xff] }
 0x4b1   : > { %4475 = vmatpush.msrb.mxu2 %v12613_v35  ;;  %v3520_v0 = vmax.f32 %v3484_v16, 0.0 }
 0x4b2   : > { %3781 = vmatpush.msrb.mxu1 %v12624_v54  ;;  %4123 = vmatpush.msrb.mxu3 %v12624_v54  ;;  %v3138_v59 = vadd.f32 %v3098_v58, %v2829_v56  ;;  %v3926_v58 = vrot.slane %v12519_v48, 6  ;;  %v16889_v56 = vld [vmem:[#allocation45_spill] sm:$0xff] }
 0x4b3   : > { %4476 = vmatpush.msrb.mxu2 %v12624_v54 }
 0x4b4   : > { %3782 = vmatpush.msrb.mxu1 %v12634_v44  ;;  %4124 = vmatpush.msrb.mxu3 %v12634_v44  ;;  %v3447_v46 = vadd.f32 %v3407_v36, %v3138_v59  ;;  %v3928_v32 = vsel %vm1620_vm6, %v3926_v58, %v3927_v7  ;;  %v3521_v36 = vmax.f32 %v3485_v27, 0.0  ;;  %v3564_v58 = vld [vmem:[%s16829_s21 + $0x140] sm:$0xff]  ;;  %v12791_v27 = vld [vmem:[%s16829_s21 + $0x130] sm:$0xff] }
 0x4b5   : > { %4477 = vmatpush.msrb.mxu2 %v12634_v44 }
 0x4b6   : > { %3783 = vmatpush.msrb.mxu1 %v12642_v37  ;;  %4125 = vmatpush.msrb.mxu3 %v12642_v37  ;;  %v3486_v12 = vadd.f32 %v12272_v60, %v3447_v46 }
 0x4b7   : > { %4478 = vmatpush.msrb.mxu2 %v12642_v37  ;;  %v2792_v62 = vpop.f32.mrf.mxu2 }
 0x4b8   : > { %v2830_v51 = vadd.f32 %v2792_v62, %v2656_v52  ;;  %3784 = vmatpush.msrb.mxu1 %v12651_v23  ;;  %4126 = vmatpush.msrb.mxu3 %v12651_v23  ;;  %v3522_v61 = vmax.f32 %v3486_v12, 0.0  ;;  %v3537_v52 = vld [vmem:[%s16829_s21 + $0x68] sm:$0xff]  ;;  %v16899_v62 = vld [vmem:[#allocation70_spill] sm:$0xff] }
 0x4b9   : > { %4479 = vmatpush.msrb.mxu2 %v12651_v23 }
 0x4ba   : > { %v3139_v43 = vadd.f32 %v3101_v34, %v2830_v51  ;;  %3785 = vmatpush.msrb.mxu1 %v12658_v5  ;;  %4127 = vmatpush.msrb.mxu3 %v12658_v5  ;;  %v16901_v51 = vld [vmem:[#allocation50_spill] sm:$0xff]  ;;  %v3543_v34 = vld [vmem:[%s16829_s21 + $0x98] sm:$0xff] }
 0x4bb   : > { %4480 = vmatpush.msrb.mxu2 %v12658_v5 }
 0x4bc   : > { %v3448_v53 = vadd.f32 %v3410_v20, %v3139_v43  ;;  %3786 = vmatpush.msrb.mxu1 %v12670_v49  ;;  %4128 = vmatpush.msrb.mxu3 %v12670_v49  ;;  %v3561_v43 = vld [vmem:[%s16829_s21 + $0x128] sm:$0xff] }
 0x4bd   : > { %4481 = vmatpush.msrb.mxu2 %v12670_v49  ;;  %v3549_v20 = vld [vmem:[%s16829_s21 + $0xc8] sm:$0xff]  ;;  %v3929_v10 = vrot.slane %v3561_v43, 6 }
 0x4be   : > { %v3487_v48 = vadd.f32 %v12272_v60, %v3448_v53  ;;  %3787 = vmatpush.msrb.mxu1 %v12678_v26  ;;  %4129 = vmatpush.msrb.mxu3 %v12678_v26  ;;  %v12691_v3 = vpop.f32.mrf.mxu1  ;;  %v3528_v60 = vld [vmem:[%s16829_s21 + $0x20] sm:$0xff]  ;;  %v3930_v53 = vrot.slane %v3564_v58, 6 }
 0x4bf   : > { %4482 = vmatpush.msrb.mxu2 %v12678_v26  ;;  %v3576_v58 = vld [vmem:[%s16829_s21 + $0x1a0] sm:$0xff] }
 0x4c0   : > { %3788 = vmatpush.msrb.mxu1 %v12686_v55  ;;  %4130 = vmatpush.msrb.mxu3 %v12686_v55  ;;  %v3523_v41 = vmax.f32 %v3487_v48, 0.0  ;;  %v3931_v12 = vsel %vm1620_vm6, %v3929_v10, %v3930_v53  ;;  %v3552_v48 = vld [vmem:[%s16829_s21 + $0xe0] sm:$0xff]  ;;  %v3574_v10 = vld [vmem:[%s16829_s21 + $0x190] sm:$0xff] }
 0x4c1   : > { %4483 = vmatpush.msrb.mxu2 %v12686_v55  ;;  %3789 = vmatmul.f32.vlgmr.msrb.gmra.mxu1 %v3525_v24  ;;  %v3566_v24 = vld [vmem:[%s16829_s21 + $0x150] sm:$0xff] }
 0x4c2   : > { %3841 = vmatpush.msra.mxu1 %v3523_v41  ;;  %4075 = vmatmul.f32.vlgmr.msra.gmra.mxu2 %v3928_v32  ;;  %v3567_v32 = vld [vmem:[%s16829_s21 + $0x158] sm:$0xff] }
 0x4c3   : > { %4183 = vmatpush.msrb.mxu0 %v3523_v41  ;;  %4536 = vmatpush.msra.mxu3 %v3523_v41  ;;  %v3937_v16 = vrot.slane %v3567_v32, 6 }
 0x4c4   : > { %4880 = vmatpush.msra.mxu2 %v3523_v41  ;;  %3842 = vmatpush.msra.mxu1 %v3522_v61  ;;  %v3935_v41 = vrot.slane %v3566_v24, 6  ;;  %v3951_v24 = vrot.slane %v3574_v10, 6 }
 0x4c5   : > { %4184 = vmatpush.msrb.mxu0 %v3522_v61  ;;  %4537 = vmatpush.msra.mxu3 %v3522_v61 }
 0x4c6   : > { %4881 = vmatpush.msra.mxu2 %v3522_v61  ;;  %3843 = vmatpush.msra.mxu1 %v3521_v36  ;;  %v12702_v17 = vpop.f32.mrf.mxu1  ;;  %v3565_v61 = vld [vmem:[%s16829_s21 + $0x148] sm:$0xff] }
 0x4c7   : > { %4185 = vmatpush.msrb.mxu0 %v3521_v36  ;;  %4538 = vmatpush.msra.mxu3 %v3521_v36 }
 0x4c8   : > { %4882 = vmatpush.msra.mxu2 %v3521_v36  ;;  %3844 = vmatpush.msra.mxu1 %v3520_v0  ;;  %v3932_v36 = vrot.slane %v12791_v27, 6 }
 0x4c9   : > { %4186 = vmatpush.msrb.mxu0 %v3520_v0  ;;  %4539 = vmatpush.msra.mxu3 %v3520_v0 }
 0x4ca   : > { %4883 = vmatpush.msra.mxu2 %v3520_v0  ;;  %3792 = vmatmul.f32.gmra.mxu1 %v3528_v60  ;;  %v3933_v0 = vrot.slane %v3565_v61, 6  ;;  %v3936_v60 = vsel %vm1620_vm6, %v3927_v7, %v3935_v41  ;;  %v3570_v7 = vld [vmem:[%s16829_s21 + $0x170] sm:$0xff] }
 0x4cb   : > { %4412 = vmatpush.msrb.mxu1 %v16886_v30  ;;  %4756 = vmatpush.msra.mxu0 %v16886_v30  ;;  %v3938_v30 = vsel %vm1620_vm6, %v3930_v53, %v3937_v16  ;;  %v3526_v61 = vld [vmem:[%s16829_s21 + $0x10] sm:$0xff] }
 0x4cc   : > { %4131 = vmatmul.f32.vlgmr.msrb.gmra.mxu3 %v3931_v12  ;;  %4078 = vmatmul.f32.gmra.mxu2 %v3936_v60 }
 0x4cd   : > { %4413 = vmatpush.msrb.mxu1 %v16887_v2  ;;  %4757 = vmatpush.msra.mxu0 %v16887_v2  ;;  %v3934_v2 = vsel %vm1620_vm6, %v3932_v36, %v3933_v0  ;;  %v3578_v36 = vld [vmem:[%s16829_s21 + $0x1b0] sm:$0xff] }
 0x4ce   : > { %v12716_v14 = vpop.f32.mrf.mxu1  ;;  %9632 = vmatmul.msk.f32.vlgmr.msrb.gmra.mxu0 %vm3677_vm8, %v3934_v2  ;;  %v3959_v60 = vrot.slane %v3578_v36, 6 }
 0x4cf   : > { %4414 = vmatpush.msrb.mxu1 %v16888_v42  ;;  %4758 = vmatpush.msra.mxu0 %v16888_v42 }
 0x4d1   : > { %4415 = vmatpush.msrb.mxu1 %v16889_v56  ;;  %4759 = vmatpush.msra.mxu0 %v16889_v56  ;;  %v3568_v56 = vld [vmem:[%s16829_s21 + $0x160] sm:$0xff] }
 0x4d2   : > { %3795 = vmatmul.f32.gmra.mxu1 %v3531_v1  ;;  %v3555_v1 = vld [vmem:[%s16829_s21 + $0xf8] sm:$0xff] }
 0x4d3   : > { %4416 = vmatpush.msrb.mxu1 %v16890_v45  ;;  %4760 = vmatpush.msra.mxu0 %v16890_v45  ;;  %v3941_v45 = vrot.slane %v3569_v47, 6 }
 0x4d4   : > { %4134 = vmatmul.f32.gmra.mxu3 %v3938_v30 }
 0x4d5   : > { %4417 = vmatpush.msrb.mxu1 %v16891_v33  ;;  %4761 = vmatpush.msra.mxu0 %v16891_v33  ;;  %v3943_v33 = vrot.slane %v3570_v7, 6 }
 0x4d6   : > { %v12731_v29 = vpop.f32.mrf.mxu1 }
 0x4d7   : > { %4418 = vmatpush.msrb.mxu1 %v16892_v11  ;;  %4762 = vmatpush.msra.mxu0 %v16892_v11  ;;  %v3939_v11 = vrot.slane %v3568_v56, 6 }
 0x4d9   : > { %4419 = vmatpush.msrb.mxu1 %v16893_v50  ;;  %4763 = vmatpush.msra.mxu0 %v16893_v50  ;;  %v3944_v50 = vsel %vm1620_vm6, %v3937_v16, %v3943_v33 }
 0x4da   : > { %3798 = vmatmul.f32.gmra.mxu1 %v3534_v28  ;;  %v3942_v28 = vsel %vm1620_vm6, %v3935_v41, %v3941_v45 }
 0x4db   : > { %4420 = vmatpush.msrb.mxu1 %v16894_v6  ;;  %4764 = vmatpush.msra.mxu0 %v16894_v6  ;;  %v3940_v6 = vsel %vm1620_vm6, %v3933_v0, %v3939_v11  ;;  %v3577_v0 = vld [vmem:[%s16829_s21 + $0x1a8] sm:$0xff] }
 0x4dc   : > { %4081 = vmatmul.f32.gmra.mxu2 %v3942_v28  ;;  %4137 = vmatmul.f32.gmra.mxu3 %v3944_v50  ;;  %v3957_v2 = vrot.slane %v3577_v0, 6  ;;  %v3541_v0 = vld [vmem:[%s16829_s21 + $0x88] sm:$0xff] }
 0x4dd   : > { %4421 = vmatpush.msrb.mxu1 %v16895_v8  ;;  %4765 = vmatpush.msra.mxu0 %v16895_v8  ;;  %v3558_v8 = vld [vmem:[%s16829_s21 + $0x110] sm:$0xff] }
 0x4de   : > { %v12746_v59 = vpop.f32.mrf.mxu1  ;;  %9633 = vmatmul.msk.f32.gmra.mxu0 %vm3677_vm8, %v3940_v6  ;;  %v3958_v56 = vsel %vm1620_vm6, %v3951_v24, %v3957_v2 }
 0x4df   : > { %4422 = vmatpush.msrb.mxu1 %v16896_v4  ;;  %4766 = vmatpush.msra.mxu0 %v16896_v4 }
 0x4e1   : > { %4423 = vmatpush.msrb.mxu1 %v16897_v25  ;;  %4767 = vmatpush.msra.mxu0 %v16897_v25  ;;  %v3573_v25 = vld [vmem:[%s16829_s21 + $0x188] sm:$0xff] }
 0x4e2   : > { %3801 = vmatmul.f32.gmra.mxu1 %v3537_v52  ;;  %v3572_v52 = vld [vmem:[%s16829_s21 + $0x180] sm:$0xff] }
 0x4e3   : > { %4424 = vmatpush.msrb.mxu1 %v16898_v19  ;;  %4768 = vmatpush.msra.mxu0 %v16898_v19  ;;  %v3571_v19 = vld [vmem:[%s16829_s21 + $0x178] sm:$0xff] }
 0x4e5   : > { %4425 = vmatpush.msrb.mxu1 %v16899_v62  ;;  %4769 = vmatpush.msra.mxu0 %v16899_v62  ;;  %v3947_v62 = vrot.slane %v3572_v52, 6 }
 0x4e6   : > { %v12757_v15 = vpop.f32.mrf.mxu1 }
 0x4e7   : > { %4426 = vmatpush.msrb.mxu1 %v16900_v31  ;;  %4770 = vmatpush.msra.mxu0 %v16900_v31  ;;  %v3949_v31 = vrot.slane %v3573_v25, 6  ;;  %v3584_v25 = vld [vmem:[%s16829_s21 + $0x1e0] sm:$0xff] }
 0x4e9   : > { %4427 = vmatpush.msrb.mxu1 %v16901_v51  ;;  %4771 = vmatpush.msra.mxu0 %v16901_v51  ;;  %v3948_v51 = vsel %vm1620_vm6, %v3941_v45, %v3947_v62  ;;  %v3529_v45 = vld [vmem:[%s16829_s21 + $0x28] sm:$0xff] }
 0x4ea   : > { %3804 = vmatmul.f32.gmra.mxu1 %v3540_v63  ;;  %v3945_v63 = vrot.slane %v3571_v19, 6  ;;  %4084 = vmatmul.f32.gmra.mxu2 %v3948_v51  ;;  %v3583_v19 = vld [vmem:[%s16829_s21 + $0x1d8] sm:$0xff] }
 0x4ec   : > { %v3952_v16 = vsel %vm1620_vm6, %v3945_v63, %v3951_v24 }
 0x4ee   : > { %v12765_v46 = vpop.f32.mrf.mxu1 }
 0x4f2   : > { %3807 = vmatmul.f32.gmra.mxu1 %v3543_v34  ;;  %v3950_v34 = vsel %vm1620_vm6, %v3943_v33, %v3949_v31  ;;  %v3581_v33 = vld [vmem:[%s16829_s21 + $0x1c8] sm:$0xff] }
 0x4f3   : > { %4140 = vmatmul.f32.gmra.mxu3 %v3950_v34  ;;  %v3965_v28 = vrot.slane %v3581_v33, 6 }
 0x4f6   : > { %v12776_v40 = vpop.f32.mrf.mxu1 }
 0x4f7   : > { %16902 = vst [vmem:[#allocation141_spill] sm:$0xff] %v12776_v40 }
 0x4fa   : > { %3810 = vmatmul.f32.gmra.mxu1 %v3546_v38  ;;  %v3946_v38 = vsel %vm1620_vm6, %v3939_v11, %v3945_v63  ;;  %v3580_v11 = vld [vmem:[%s16829_s21 + $0x1c0] sm:$0xff] }
 0x4fb   : > { %9634 = vmatmul.msk.f32.gmra.mxu0 %vm3677_vm8, %v3946_v38  ;;  %v3963_v50 = vrot.slane %v3580_v11, 6  ;;  %v3587_v38 = vld [vmem:[%s16829_s21 + $0x1f8] sm:$0xff]  ;;  %v3544_v11 = vld [vmem:[%s16829_s21 + $0xa0] sm:$0xff] }
 0x4fe   : > { %v12802_v42 = vpop.f32.mrf.mxu1 }
 0x4ff   : > { %16903 = vst [vmem:[#allocation82_spill] sm:$0xff] %v12802_v42 }
 0x502   : > { %3813 = vmatmul.f32.gmra.mxu1 %v3549_v20  ;;  %v3575_v20 = vld [vmem:[%s16829_s21 + $0x198] sm:$0xff] }
 0x503   : > { %v3953_v12 = vrot.slane %v3575_v20, 6  ;;  %9635 = vmatmul.msk.f32.gmra.mxu0 %vm3677_vm8, %v3952_v16  ;;  %v3977_v20 = vrot.slane %v3587_v38, 6 }
 0x505   : > { %v3954_v32 = vsel %vm1620_vm6, %v3947_v62, %v3953_v12  ;;  %v3960_v47 = vsel %vm1620_vm6, %v3953_v12, %v3959_v60  ;;  %v3971_v62 = vrot.slane %v3584_v25, 6 }
 0x506   : > { %v12824_v4 = vpop.f32.mrf.mxu1  ;;  %4087 = vmatmul.f32.gmra.mxu2 %v3954_v32  ;;  %v3590_v32 = vld [vmem:[%s16829_s21 + $0x210] sm:$0xff] }
 0x507   : > { %16904 = vst [vmem:[#allocation56_spill] sm:$0xff] %v12824_v4 }
 0x50a   : > { %3816 = vmatmul.f32.gmra.mxu1 %v3552_v48  ;;  %v3955_v48 = vrot.slane %v3576_v58, 6 }
 0x50b   : > { %9636 = vmatmul.msk.f32.gmra.mxu0 %vm3677_vm8, %v3958_v56 }
 0x50c   : > { %v3956_v41 = vsel %vm1620_vm6, %v3949_v31, %v3955_v48  ;;  %v3969_v31 = vrot.slane %v3583_v19, 6 }
 0x50d   : > { %4143 = vmatmul.f32.gmra.mxu3 %v3956_v41  ;;  %v3983_v41 = vrot.slane %v3590_v32, 6 }
 0x50e   : > { %v12848_v53 = vpop.f32.mrf.mxu1  ;;  %4090 = vmatmul.f32.gmra.mxu2 %v3960_v47  ;;  %v3970_v51 = vsel %vm1620_vm6, %v3963_v50, %v3969_v31 }
 0x50f   : > { %16905 = vst [vmem:[#allocation87_spill] sm:$0xff] %v12848_v53 }
 0x512   : > { %3819 = vmatmul.f32.gmra.mxu1 %v3555_v1 }
 0x516   : > { %v12867_v1 = vpop.f32.mrf.mxu1 }
 0x517   : > { %16906 = vst [vmem:[#allocation62_spill] sm:$0xff] %v12867_v1 }
 0x51a   : > { %3822 = vmatmul.f32.gmra.mxu1 %v3558_v8  ;;  %v3964_v8 = vsel %vm1620_vm6, %v3957_v2, %v3963_v50  ;;  %v3592_v2 = vld [vmem:[%s16829_s21 + $0x220] sm:$0xff]  ;;  %v3597_v50 = vld [vmem:[%s16829_s21 + $0x248] sm:$0xff] }
 0x51b   : > { %9637 = vmatmul.msk.f32.gmra.mxu0 %vm3677_vm8, %v3964_v8  ;;  %v3987_v56 = vrot.slane %v3592_v2, 6  ;;  %v3997_v8 = vrot.slane %v3597_v50, 6 }
 0x51e   : > { %v12894_v52 = vpop.f32.mrf.mxu1 }
 0x51f   : > { %16907 = vst [vmem:[#allocation92_spill] sm:$0xff] %v12894_v52 }
 0x522   : > { %3825 = vmatmul.f32.gmra.mxu1 %v3561_v43  ;;  %v3579_v43 = vld [vmem:[%s16829_s21 + $0x1b8] sm:$0xff] }
 0x523   : > { %v3961_v30 = vrot.slane %v3579_v43, 6  ;;  %9638 = vmatmul.msk.f32.gmra.mxu0 %vm3677_vm8, %v3970_v51 }
 0x525   : > { %v3962_v7 = vsel %vm1620_vm6, %v3955_v48, %v3961_v30 }
 0x526   : > { %4146 = vmatmul.f32.gmra.mxu3 %v3962_v7 }
 0x52a   : > { %9619 = vmatmul.msk.f32.vlgmr.msra.gmra.mxu1 %vm3677_vm8, %v3526_v61 }
 0x52b   : > { %4812 = vmatpush.msra.mxu1 %v12532_v21  ;;  %v3582_v21 = vld [vmem:[%s16829_s21 + $0x1d0] sm:$0xff] }
 0x52d   : > { %4813 = vmatpush.msra.mxu1 %v12544_v39  ;;  %v3967_v39 = vrot.slane %v3582_v21, 6 }
 0x52f   : > { %4814 = vmatpush.msra.mxu1 %v12556_v57  ;;  %v3966_v57 = vsel %vm1620_vm6, %v3959_v60, %v3965_v28  ;;  %v3968_v6 = vsel %vm1620_vm6, %v3961_v30, %v3967_v39  ;;  %v3594_v30 = vld [vmem:[%s16829_s21 + $0x230] sm:$0xff] }
 0x530   : > { %4093 = vmatmul.f32.gmra.mxu2 %v3966_v57  ;;  %4149 = vmatmul.f32.gmra.mxu3 %v3968_v6  ;;  %v3991_v7 = vrot.slane %v3594_v30, 6  ;;  %v3595_v57 = vld [vmem:[%s16829_s21 + $0x238] sm:$0xff] }
 0x531   : > { %4815 = vmatpush.msra.mxu1 %v12570_v9  ;;  %v3532_v9 = vld [vmem:[%s16829_s21 + $0x40] sm:$0xff]  ;;  %v3607_v30 = vld [vmem:[%s16829_s21 + $0x298] sm:$0xff] }
 0x532   : > { %9620 = vmatmul.msk.f32.gmra.mxu1 %vm3677_vm8, %v3529_v45  ;;  %v4292_v2 = vrot.slane %v3607_v30, 4 }
 0x533   : > { %4816 = vmatpush.msra.mxu1 %v12584_v18  ;;  %v3585_v18 = vld [vmem:[%s16829_s21 + $0x1e8] sm:$0xff] }
 0x535   : > { %4817 = vmatpush.msra.mxu1 %v12594_v13  ;;  %v3973_v13 = vrot.slane %v3585_v18, 6  ;;  %v3998_v18 = vsel %vm1620_vm6, %v3991_v7, %v3997_v8 }
 0x537   : > { %4818 = vmatpush.msra.mxu1 %v12604_v22  ;;  %v3972_v22 = vsel %vm1620_vm6, %v3965_v28, %v3971_v62  ;;  %v3974_v63 = vsel %vm1620_vm6, %v3967_v39, %v3973_v13  ;;  %v3596_v39 = vld [vmem:[%s16829_s21 + $0x240] sm:$0xff] }
 0x538   : > { %4096 = vmatmul.f32.gmra.mxu2 %v3972_v22  ;;  %4152 = vmatmul.f32.gmra.mxu3 %v3974_v63  ;;  %v3995_v6 = vrot.slane %v3596_v39, 6  ;;  %v3600_v22 = vld [vmem:[%s16829_s21 + $0x260] sm:$0xff]  ;;  %v3598_v63 = vld [vmem:[%s16829_s21 + $0x250] sm:$0xff] }
 0x539   : > { %4819 = vmatpush.msra.mxu1 %v12613_v35  ;;  %v3535_v35 = vld [vmem:[%s16829_s21 + $0x58] sm:$0xff]  ;;  %v3999_v38 = vrot.slane %v3598_v63, 6 }
 0x53a   : > { %9621 = vmatmul.msk.f32.gmra.mxu1 %vm3677_vm8, %v3532_v9  ;;  %v3993_v9 = vrot.slane %v3595_v57, 6 }
 0x53b   : > { %4820 = vmatpush.msra.mxu1 %v12624_v54  ;;  %v3588_v54 = vld [vmem:[%s16829_s21 + $0x200] sm:$0xff] }
 0x53c   : > { %v3979_v58 = vrot.slane %v3588_v54, 6  ;;  %v3994_v19 = vsel %vm1620_vm6, %v3987_v56, %v3993_v9 }
 0x53d   : > { %4821 = vmatpush.msra.mxu1 %v12634_v44  ;;  %v3586_v44 = vld [vmem:[%s16829_s21 + $0x1f0] sm:$0xff] }
 0x53e   : > { %v12919_v34 = vpop.f32.mrf.mxu1  ;;  %v3975_v10 = vrot.slane %v3586_v44, 6  ;;  %v3980_v12 = vsel %vm1620_vm6, %v3973_v13, %v3979_v58 }
 0x53f   : > { %4822 = vmatpush.msra.mxu1 %v12642_v37  ;;  %v3978_v37 = vsel %vm1620_vm6, %v3971_v62, %v3977_v20  ;;  %v3547_v62 = vld [vmem:[%s16829_s21 + $0xb8] sm:$0xff] }
 0x540   : > { %v3976_v48 = vsel %vm1620_vm6, %v3969_v31, %v3975_v10  ;;  %4099 = vmatmul.f32.gmra.mxu2 %v3978_v37  ;;  %4155 = vmatmul.f32.gmra.mxu3 %v3980_v12  ;;  %v13009_v31 = vld [vmem:[%s16829_s21 + $0x258] sm:$0xff]  ;;  %v3601_v37 = vld [vmem:[%s16829_s21 + $0x268] sm:$0xff]  ;;  %v4282_v12 = vrot.slane %v3600_v22, 4 }
 0x541   : > { %4823 = vmatpush.msra.mxu1 %v12651_v23  ;;  %9639 = vmatmul.msk.f32.gmra.mxu0 %vm3677_vm8, %v3976_v48  ;;  %v3538_v23 = vld [vmem:[%s16829_s21 + $0x70] sm:$0xff]  ;;  %v4001_v51 = vrot.slane %v13009_v31, 6  ;;  %v4005_v48 = vrot.slane %v3601_v37, 6 }
 0x542   : > { %9622 = vmatmul.msk.f32.gmra.mxu1 %vm3677_vm8, %v3535_v35  ;;  %v4003_v35 = vrot.slane %v3600_v22, 6 }
 0x543   : > { %4824 = vmatpush.msra.mxu1 %v12658_v5  ;;  %v3591_v5 = vld [vmem:[%s16829_s21 + $0x218] sm:$0xff]  ;;  %v4002_v54 = vsel %vm1620_vm6, %v3995_v6, %v4001_v51  ;;  %v4006_v32 = vsel %vm1620_vm6, %v3999_v38, %v4005_v48 }
 0x544   : > { %v3985_v16 = vrot.slane %v3591_v5, 6  ;;  %v4004_v44 = vsel %vm1620_vm6, %v3997_v8, %v4003_v35  ;;  %v4285_v5 = vrot.slane %v3601_v37, 4  ;;  %v3559_v8 = vld [vmem:[%s16829_s21 + $0x118] sm:$0xff]  ;;  %v4279_v37 = vrot.slane %v13009_v31, 4  ;;  %v3605_v31 = vld [vmem:[%s16829_s21 + $0x288] sm:$0xff] }
 0x545   : > { %4825 = vmatpush.msra.mxu1 %v12670_v49  ;;  %v3589_v49 = vld [vmem:[%s16829_s21 + $0x208] sm:$0xff]  ;;  %v4076_v22 = vpop.f32.mrf.mxu2 }
 0x546   : > { %v3981_v61 = vrot.slane %v3589_v49, 6  ;;  %v3986_v36 = vsel %vm1620_vm6, %v3979_v58, %v3985_v16  ;;  %v3992_v33 = vsel %vm1620_vm6, %v3985_v16, %v3991_v7 }
 0x547   : > { %4826 = vmatpush.msra.mxu1 %v12678_v26  ;;  %v12946_v24 = vpop.f32.mrf.mxu1  ;;  %v3984_v26 = vsel %vm1620_vm6, %v3977_v20, %v3983_v41  ;;  %v4000_v20 = vsel %vm1620_vm6, %v3993_v9, %v3999_v38  ;;  %v3612_v9 = vld [vmem:[%s16829_s21 + $0x2c0] sm:$0xff] }
 0x548   : > { %v3982_v43 = vsel %vm1620_vm6, %v3975_v10, %v3981_v61  ;;  %4102 = vmatmul.f32.gmra.mxu2 %v3984_v26  ;;  %4158 = vmatmul.f32.gmra.mxu3 %v3986_v36  ;;  %v3988_v21 = vsel %vm1620_vm6, %v3981_v61, %v3987_v56  ;;  %v3550_v10 = vld [vmem:[%s16829_s21 + $0xd0] sm:$0xff] }
 0x549   : > { %4827 = vmatpush.msra.mxu1 %v12686_v55  ;;  %9640 = vmatmul.msk.f32.gmra.mxu0 %vm3677_vm8, %v3982_v43  ;;  %v3593_v55 = vld [vmem:[%s16829_s21 + $0x228] sm:$0xff] }
 0x54a   : > { %9623 = vmatmul.msk.f32.gmra.mxu1 %vm3677_vm8, %v3538_v23  ;;  %v3989_v47 = vrot.slane %v3593_v55, 6  ;;  %v3603_v23 = vld [vmem:[%s16829_s21 + $0x278] sm:$0xff]  ;;  %v3553_v43 = vld [vmem:[%s16829_s21 + $0xe8] sm:$0xff] }
 0x54b   : > { %v4283_v49 = vrot.slane %v3603_v23, 4 }
 0x54c   : > { %v3990_v45 = vsel %vm1620_vm6, %v3983_v41, %v3989_v47  ;;  %v3996_v25 = vsel %vm1620_vm6, %v3989_v47, %v3995_v6  ;;  %v3604_v41 = vld [vmem:[%s16829_s21 + $0x280] sm:$0xff] }
 0x54d   : > { %v4286_v16 = vrot.slane %v3604_v41, 4  ;;  %v4284_v61 = vsel %vm2343_vm5, %v4282_v12, %v4283_v49 }
 0x54f   : > { %v12966_v60 = vpop.f32.mrf.mxu1  ;;  %v4287_v26 = vsel %vm2343_vm5, %v4285_v5, %v4286_v16  ;;  %v4293_v7 = vsel %vm2343_vm5, %v4286_v16, %v4292_v2  ;;  %v4132_v51 = vpop.f32.mrf.mxu3 }
 0x550   : > { %4105 = vmatmul.f32.gmra.mxu2 %v3990_v45  ;;  %4161 = vmatmul.f32.gmra.mxu3 %v3992_v33  ;;  %v3556_v45 = vld [vmem:[%s16829_s21 + $0x100] sm:$0xff]  ;;  %v3609_v33 = vld [vmem:[%s16829_s21 + $0x2a8] sm:$0xff]  ;;  %v13090_v38 = vadd.f32 %v4132_v51, %v4076_v22  ;;  %v4079_v5 = vpop.f32.mrf.mxu2  ;;  %v3797_v40 = vadd.f32 %v12966_v60, %v12716_v14 }
 0x551   : > { %9641 = vmatmul.msk.f32.gmra.mxu0 %vm3677_vm8, %v3988_v21  ;;  %v4296_v21 = vrot.slane %v3609_v33, 4  ;;  %v3608_v33 = vld [vmem:[%s16829_s21 + $0x2a0] sm:$0xff] }
 0x552   : > { %9624 = vmatmul.msk.f32.gmra.mxu1 %vm3677_vm8, %v3541_v0  ;;  %v3606_v0 = vld [vmem:[%s16829_s21 + $0x290] sm:$0xff] }
 0x553   : > { %v4290_v55 = vrot.slane %v3606_v0, 4  ;;  %v4288_v0 = vrot.slane %v3605_v31, 4 }
 0x555   : > { %v4291_v47 = vsel %vm2343_vm5, %v4283_v49, %v4290_v55  ;;  %v4297_v50 = vsel %vm2343_vm5, %v4290_v55, %v4296_v21 }
 0x557   : > { %v12985_v28 = vpop.f32.mrf.mxu1  ;;  %v4135_v49 = vpop.f32.mrf.mxu3 }
 0x558   : > { %4108 = vmatmul.f32.gmra.mxu2 %v3996_v25  ;;  %4164 = vmatmul.f32.gmra.mxu3 %v3998_v18  ;;  %v4302_v25 = vrot.slane %v3612_v9, 4  ;;  %v3613_v18 = vld [vmem:[%s16829_s21 + $0x2c8] sm:$0xff]  ;;  %v13110_v16 = vadd.f32 %v4135_v49, %v4079_v5  ;;  %v3627_v5 = vld [vmem:[%s16829_s21 + $0x338] sm:$0xff] }
 0x559   : > { %9642 = vmatmul.msk.f32.gmra.mxu0 %vm3677_vm8, %v3994_v19  ;;  %v4304_v19 = vrot.slane %v3613_v18, 4  ;;  %v4332_v49 = vrot.slane %v3627_v5, 4 }
 0x55a   : > { %9625 = vmatmul.msk.f32.gmra.mxu1 %vm3677_vm8, %v3544_v11  ;;  %v3610_v11 = vld [vmem:[%s16829_s21 + $0x2b0] sm:$0xff] }
 0x55b   : > { %v4298_v39 = vrot.slane %v3610_v11, 4 }
 0x55d   : > { %v4299_v57 = vsel %vm2343_vm5, %v4292_v2, %v4298_v39  ;;  %v4305_v63 = vsel %vm2343_vm5, %v4298_v39, %v4304_v19  ;;  %v3622_v39 = vld [vmem:[%s16829_s21 + $0x310] sm:$0xff] }
 0x55f   : > { %v13004_v13 = vpop.f32.mrf.mxu1  ;;  %v13149_v22 = vpop.f32.mrf.mxu3 }
 0x560   : > { %4111 = vmatmul.f32.gmra.mxu2 %v4002_v54  ;;  %4167 = vmatmul.f32.gmra.mxu3 %v4004_v44  ;;  %v3602_v54 = vld [vmem:[%s16829_s21 + $0x270] sm:$0xff]  ;;  %v3615_v44 = vld [vmem:[%s16829_s21 + $0x2d8] sm:$0xff] }
 0x561   : > { %9643 = vmatmul.msk.f32.gmra.mxu0 %vm3677_vm8, %v4000_v20  ;;  %v4308_v20 = vrot.slane %v3615_v44, 4  ;;  %v4280_v12 = vrot.slane %v3602_v54, 4  ;;  %v3625_v54 = vld [vmem:[%s16829_s21 + $0x328] sm:$0xff] }
 0x562   : > { %9626 = vmatmul.msk.f32.gmra.mxu1 %vm3677_vm8, %v3547_v62  ;;  %v4303_v62 = vsel %vm2343_vm5, %v4296_v21, %v4302_v25  ;;  %v3621_v21 = vld [vmem:[%s16829_s21 + $0x308] sm:$0xff] }
 0x563   : > { %v4309_v23 = vsel %vm2343_vm5, %v4302_v25, %v4308_v20  ;;  %v4320_v11 = vrot.slane %v3621_v21, 4 }
 0x567   : > { %v13023_v58 = vpop.f32.mrf.mxu1 }
 0x568   : > { %4484 = vmatmul.f32.vlgmr.msrb.gmra.mxu2 %v4284_v61  ;;  %9645 = vmatmul.msk.f32.vlgmr.msra.gmra.mxu3 %vm3677_vm8, %v4287_v26  ;;  %v3618_v61 = vld [vmem:[%s16829_s21 + $0x2f0] sm:$0xff] }
 0x569   : > { %9644 = vmatmul.msk.f32.gmra.mxu0 %vm3677_vm8, %v4006_v32  ;;  %v4314_v26 = vrot.slane %v3618_v61, 4 }
 0x56a   : > { %9627 = vmatmul.msk.f32.gmra.mxu1 %vm3677_vm8, %v3550_v10  ;;  %v3616_v10 = vld [vmem:[%s16829_s21 + $0x2e0] sm:$0xff] }
 0x56b   : > { %v4310_v48 = vrot.slane %v3616_v10, 4  ;;  %v4315_v30 = vsel %vm2343_vm5, %v4308_v20, %v4314_v26  ;;  %v4328_v20 = vrot.slane %v3625_v54, 4  ;;  %v3633_v54 = vld [vmem:[%s16829_s21 + $0x368] sm:$0xff] }
 0x56d   : > { %v4311_v32 = vsel %vm2343_vm5, %v4304_v19, %v4310_v48 }
 0x56f   : > { %v13043_v36 = vpop.f32.mrf.mxu1 }
 0x570   : > { %4487 = vmatmul.f32.gmra.mxu2 %v4291_v47  ;;  %9646 = vmatmul.msk.f32.gmra.mxu3 %vm3677_vm8, %v4293_v7  ;;  %v13123_v47 = vpop.f32.mrf.mxu2 }
 0x572   : > { %9628 = vmatmul.msk.f32.gmra.mxu1 %vm3677_vm8, %v3553_v43  ;;  %v3619_v43 = vld [vmem:[%s16829_s21 + $0x2f8] sm:$0xff] }
 0x573   : > { %v4316_v55 = vrot.slane %v3619_v43, 4 }
 0x575   : > { %v4317_v2 = vsel %vm2343_vm5, %v4310_v48, %v4316_v55 }
 0x576   : > { %v13174_v61 = vpop.f32.mrf.mxu3 }
 0x577   : > { %v13058_v56 = vpop.f32.mrf.mxu1 }
 0x578   : > { %16908 = vst [vmem:[#allocation9_spill] sm:$0xff] %v13058_v56  ;;  %4490 = vmatmul.f32.gmra.mxu2 %v4297_v50  ;;  %9647 = vmatmul.msk.f32.gmra.mxu3 %vm3677_vm8, %v4299_v57  ;;  %v4294_v50 = vrot.slane %v3608_v33, 4  ;;  %v4322_v57 = vrot.slane %v3622_v39, 4  ;;  %v13140_v25 = vpop.f32.mrf.mxu2  ;;  %v3630_v33 = vld [vmem:[%s16829_s21 + $0x350] sm:$0xff] }
 0x579   : > { %v4338_v21 = vrot.slane %v3630_v33, 4  ;;  %v4142_v60 = vadd.f32 %v13174_v61, %v13140_v25 }
 0x57a   : > { %9629 = vmatmul.msk.f32.gmra.mxu1 %vm3677_vm8, %v3556_v45  ;;  %v4289_v45 = vsel %vm2343_vm5, %v4280_v12, %v4288_v0  ;;  %v4323_v9 = vsel %vm2343_vm5, %v4316_v55, %v4322_v57  ;;  %v4295_v19 = vsel %vm2343_vm5, %v4288_v0, %v4294_v50 }
 0x57f   : > { %v13073_v6 = vpop.f32.mrf.mxu1 }
 0x580   : > { %16909 = vst [vmem:[#allocation67_spill] sm:$0xff] %v13073_v6  ;;  %4493 = vmatmul.f32.gmra.mxu2 %v4303_v62  ;;  %9648 = vmatmul.msk.f32.gmra.mxu3 %vm3677_vm8, %v4305_v63  ;;  %v3611_v62 = vld [vmem:[%s16829_s21 + $0x2b8] sm:$0xff]  ;;  %v3624_v63 = vld [vmem:[%s16829_s21 + $0x320] sm:$0xff] }
 0x581   : > { %v4326_v51 = vrot.slane %v3624_v63, 4  ;;  %v4300_v44 = vrot.slane %v3611_v62, 4 }
 0x582   : > { %9630 = vmatmul.msk.f32.gmra.mxu1 %vm3677_vm8, %v3559_v8  ;;  %v4321_v8 = vsel %vm2343_vm5, %v4314_v26, %v4320_v11 }
 0x583   : > { %v4327_v10 = vsel %vm2343_vm5, %v4320_v11, %v4326_v51  ;;  %v4333_v43 = vsel %vm2343_vm5, %v4326_v51, %v4332_v49  ;;  %v3631_v11 = vld [vmem:[%s16829_s21 + $0x358] sm:$0xff]  ;;  %v3620_v51 = vld [vmem:[%s16829_s21 + $0x300] sm:$0xff] }
 0x587   : > { %v13088_v35 = vpop.f32.mrf.mxu1 }
 0x588   : > { %16910 = vst [vmem:[#allocation72_spill] sm:$0xff] %v13088_v35  ;;  %4496 = vmatmul.f32.gmra.mxu2 %v4309_v23  ;;  %9649 = vmatmul.msk.f32.gmra.mxu3 %vm3677_vm8, %v4311_v32  ;;  %v4301_v23 = vsel %vm2343_vm5, %v4294_v50, %v4300_v44  ;;  %v3614_v32 = vld [vmem:[%s16829_s21 + $0x2d0] sm:$0xff]  ;;  %v4340_v50 = vrot.slane %v3631_v11, 4 }
 0x589   : > { %v4306_v31 = vrot.slane %v3614_v32, 4 }
 0x58a   : > { %9631 = vmatmul.msk.f32.gmra.mxu1 %vm3677_vm8, %v12791_v27  ;;  %v4281_v27 = vsel %vm2343_vm5, %v4279_v37, %v4280_v12  ;;  %v4329_v37 = vsel %vm2343_vm5, %v4322_v57, %v4328_v20  ;;  %v13159_v12 = vpop.f32.mrf.mxu2  ;;  %v4339_v57 = vsel %vm2343_vm5, %v4332_v49, %v4338_v21 }
 0x58f   : > { %v13107_v41 = vpop.f32.mrf.mxu1 }
 0x590   : > { %16911 = vst [vmem:[#allocation97_spill] sm:$0xff] %v13107_v41  ;;  %4499 = vmatmul.f32.gmra.mxu2 %v4315_v30  ;;  %9650 = vmatmul.msk.f32.gmra.mxu3 %vm3677_vm8, %v4317_v2  ;;  %v4307_v2 = vsel %vm2343_vm5, %v4300_v44, %v4306_v31  ;;  %v4344_v44 = vrot.slane %v3633_v54, 4 }
 0x592   : > { %4428 = vmatmul.f32.vlgmr.msrb.gmra.mxu1 %v4281_v27  ;;  %v3628_v27 = vld [vmem:[%s16829_s21 + $0x340] sm:$0xff]  ;;  %v13178_v55 = vpop.f32.mrf.mxu2 }
 0x593   : > { %v4334_v26 = vrot.slane %v3628_v27, 4 }
 0x595   : > { %v4335_v0 = vsel %vm2343_vm5, %v4328_v20, %v4334_v26  ;;  %v3634_v20 = vld [vmem:[%s16829_s21 + $0x370] sm:$0xff] }
 0x597   : > { %v13126_v7 = vpop.f32.mrf.mxu1 }
 0x598   : > { %16912 = vst [vmem:[#allocation55_spill] sm:$0xff] %v13126_v7  ;;  %4502 = vmatmul.f32.gmra.mxu2 %v4321_v8  ;;  %9651 = vmatmul.msk.f32.gmra.mxu3 %vm3677_vm8, %v4323_v9  ;;  %v13194_v8 = vpop.f32.mrf.mxu3  ;;  %v4341_v9 = vsel %vm2343_vm5, %v4334_v26, %v4340_v50  ;;  %v3623_v26 = vld [vmem:[%s16829_s21 + $0x318] sm:$0xff] }
 0x59a   : > { %4431 = vmatmul.f32.gmra.mxu1 %v4289_v45  ;;  %v3617_v45 = vld [vmem:[%s16829_s21 + $0x2e8] sm:$0xff] }
 0x59b   : > { %v4312_v39 = vrot.slane %v3617_v45, 4  ;;  %v4324_v45 = vrot.slane %v3623_v26, 4 }
 0x59d   : > { %v4313_v63 = vsel %vm2343_vm5, %v4306_v31, %v4312_v39 }
 0x59f   : > { %v13143_v18 = vpop.f32.mrf.mxu1 }
 0x5a0   : > { %16913 = vst [vmem:[#allocation73_spill] sm:$0xff] %v13143_v18  ;;  %4505 = vmatmul.f32.gmra.mxu2 %v4327_v10  ;;  %9652 = vmatmul.msk.f32.gmra.mxu3 %vm3677_vm8, %v4329_v37  ;;  %v4318_v10 = vrot.slane %v3620_v51, 4  ;;  %v4346_v37 = vrot.slane %v3634_v20, 4  ;;  %v13247_v51 = vld [vmem:[%s16829_s21 + $0x398] sm:$0xff] }
 0x5a1   : > { %v4356_v54 = vrot.slane %v13247_v51, 4 }
 0x5a2   : > { %4434 = vmatmul.f32.gmra.mxu1 %v4295_v19  ;;  %v4347_v32 = vsel %vm2343_vm5, %v4340_v50, %v4346_v37  ;;  %v4319_v27 = vsel %vm2343_vm5, %v4312_v39, %v4318_v10 }
 0x5a7   : > { %v13162_v48 = vpop.f32.mrf.mxu1 }
 0x5a8   : > { %4508 = vmatmul.f32.gmra.mxu2 %v4333_v43  ;;  %9653 = vmatmul.msk.f32.gmra.mxu3 %vm3677_vm8, %v4335_v0  ;;  %v3636_v43 = vld [vmem:[%s16829_s21 + $0x380] sm:$0xff] }
 0x5a9   : > { %v13220_v31 = vpop.f32.mrf.mxu3  ;;  %v4350_v0 = vrot.slane %v3636_v43, 4  ;;  %v3629_v43 = vld [vmem:[%s16829_s21 + $0x348] sm:$0xff] }
 0x5aa   : > { %4437 = vmatmul.f32.gmra.mxu1 %v4301_v23  ;;  %v4345_v23 = vsel %vm2343_vm5, %v4338_v21, %v4344_v44 }
 0x5ab   : > { %v4351_v21 = vsel %vm2343_vm5, %v4344_v44, %v4350_v0  ;;  %v3640_v44 = vld [vmem:[%s16829_s21 + $0x3a0] sm:$0xff] }
 0x5af   : > { %v13181_v30 = vpop.f32.mrf.mxu1 }
 0x5b0   : > { %4511 = vmatmul.f32.gmra.mxu2 %v4339_v57  ;;  %9654 = vmatmul.msk.f32.gmra.mxu3 %vm3677_vm8, %v4341_v9  ;;  %v4325_v57 = vsel %vm2343_vm5, %v4318_v10, %v4324_v45  ;;  %v3626_v9 = vld [vmem:[%s16829_s21 + $0x330] sm:$0xff]  ;;  %v4358_v10 = vrot.slane %v3640_v44, 4 }
 0x5b1   : > { %v4330_v20 = vrot.slane %v3626_v9, 4 }
 0x5b2   : > { %4440 = vmatmul.f32.gmra.mxu1 %v4307_v2  ;;  %v3637_v2 = vld [vmem:[%s16829_s21 + $0x388] sm:$0xff] }
 0x5b3   : > { %v13197_v19 = vpop.f32.mrf.mxu2  ;;  %v4352_v33 = vrot.slane %v3637_v2, 4  ;;  %v4331_v26 = vsel %vm2343_vm5, %v4324_v45, %v4330_v20  ;;  %v4635_v2 = vrot.slane %v3640_v44, 2 }
 0x5b5   : > { %v4353_v11 = vsel %vm2343_vm5, %v4346_v37, %v4352_v33  ;;  %v4357_v37 = vsel %vm2343_vm5, %v4350_v0, %v4356_v54  ;;  %v3643_v0 = vld [vmem:[%s16829_s21 + $0x3b8] sm:$0xff] }
 0x5b7   : > { %v13200_v62 = vpop.f32.mrf.mxu1 }
 0x5b8   : > { %4514 = vmatmul.f32.gmra.mxu2 %v4345_v23  ;;  %9655 = vmatmul.msk.f32.gmra.mxu3 %vm3677_vm8, %v4347_v32  ;;  %v4359_v23 = vsel %vm2343_vm5, %v4352_v33, %v4358_v10 }
 0x5ba   : > { %4443 = vmatmul.f32.gmra.mxu1 %v4313_v63  ;;  %v13242_v63 = vpop.f32.mrf.mxu3 }
 0x5bb   : > { %v13214_v5 = vpop.f32.mrf.mxu2 }
 0x5bf   : > { %v13217_v49 = vpop.f32.mrf.mxu1 }
 0x5c0   : > { %4517 = vmatmul.f32.gmra.mxu2 %v4351_v21  ;;  %9656 = vmatmul.msk.f32.gmra.mxu3 %vm3677_vm8, %v4353_v11  ;;  %v4336_v21 = vrot.slane %v3629_v43, 4  ;;  %v4636_v11 = vrot.slane %v3643_v0, 2 }
 0x5c2   : > { %4446 = vmatmul.f32.gmra.mxu1 %v4319_v27  ;;  %v13267_v33 = vpop.f32.mrf.mxu3  ;;  %v4637_v45 = vsel %vm1545_vm3, %v4635_v2, %v4636_v11  ;;  %v4337_v10 = vsel %vm2343_vm5, %v4330_v20, %v4336_v21  ;;  %v3646_v2 = vld [vmem:[%s16829_s21 + $0x3d0] sm:$0xff]  ;;  %v13289_v20 = vpop.f32.mrf.mxu0 }
 0x5c3   : > { %v13233_v39 = vpop.f32.mrf.mxu2  ;;  %16916 = vst [vmem:[#allocation13_spill] sm:$0xff] %v13267_v33  ;;  %v4189_v42 = vadd.f32 %v13289_v20, %v13090_v38 }
 0x5c4   : > { %16914 = vst [vmem:[#allocation78_spill] sm:$0xff] %v13233_v39 }
 0x5c7   : > { %v13236_v50 = vpop.f32.mrf.mxu1 }
 0x5c8   : > { %4520 = vmatmul.f32.gmra.mxu2 %v4357_v37  ;;  %9657 = vmatmul.msk.f32.gmra.mxu3 %vm3677_vm8, %v4359_v23  ;;  %v3641_v37 = vld [vmem:[%s16829_s21 + $0x3a8] sm:$0xff]  ;;  %v3632_v23 = vld [vmem:[%s16829_s21 + $0x360] sm:$0xff] }
 0x5c9   : > { %v4342_v0 = vrot.slane %v3632_v23, 4  ;;  %v3635_v23 = vld [vmem:[%s16829_s21 + $0x378] sm:$0xff] }
 0x5ca   : > { %4449 = vmatmul.f32.gmra.mxu1 %v4325_v57  ;;  %v3638_v57 = vld [vmem:[%s16829_s21 + $0x390] sm:$0xff]  ;;  %v13291_v18 = vpop.f32.mrf.mxu3 }
 0x5cb   : > { %v13255_v32 = vpop.f32.mrf.mxu2  ;;  %v4629_v9 = vrot.slane %v3638_v57, 2  ;;  %16918 = vst [vmem:[#allocation106_spill] sm:$0xff] %v13291_v18 }
 0x5cc   : > { %16915 = vst [vmem:[#allocation101_spill] sm:$0xff] %v13255_v32 }
 0x5cf   : > { %v13258_v27 = vpop.f32.mrf.mxu1 }
 0x5d0   : > { %9658 = vmatmul.msk.f32.vlgmr.msra.gmra.mxu2 %vm3677_vm8, %v4637_v45  ;;  %v4642_v45 = vrot.slane %v3646_v2, 2  ;;  %v4348_v2 = vrot.slane %v3635_v23, 4 }
 0x5d2   : > { %4452 = vmatmul.f32.gmra.mxu1 %v4331_v26  ;;  %v4630_v26 = vrot.slane %v3641_v37, 2  ;;  %v4643_v52 = vsel %vm1545_vm3, %v4636_v11, %v4642_v45  ;;  %v3644_v37 = vld [vmem:[%s16829_s21 + $0x3c0] sm:$0xff] }
 0x5d3   : > { %v13273_v54 = vpop.f32.mrf.mxu2 }
 0x5d4   : > { %16917 = vst [vmem:[#allocation79_spill] sm:$0xff] %v13273_v54  ;;  %v4631_v43 = vsel %vm1545_vm3, %v4629_v9, %v4630_v26  ;;  %v4343_v9 = vsel %vm2343_vm5, %v4336_v21, %v4342_v0 }
 0x5d5   : > { %4772 = vmatmul.f32.vlgmr.msra.gmra.mxu0 %v4631_v43  ;;  %v4638_v43 = vrot.slane %v3644_v37, 2  ;;  %v4349_v37 = vsel %vm2343_vm5, %v4342_v0, %v4348_v2 }
 0x5d7   : > { %v13276_v44 = vpop.f32.mrf.mxu1  ;;  %v4639_v11 = vsel %vm1545_vm3, %v4630_v26, %v4638_v43  ;;  %v3647_v26 = vld [vmem:[%s16829_s21 + $0x3d8] sm:$0xff] }
 0x5d8   : > { %9659 = vmatmul.msk.f32.gmra.mxu2 %vm3677_vm8, %v4643_v52  ;;  %v3649_v52 = vld [vmem:[%s16829_s21 + $0x3e8] sm:$0xff]  ;;  %v4644_v23 = vrot.slane %v3647_v26, 2 }
 0x5d9   : > { %v4648_v1 = vrot.slane %v3649_v52, 2  ;;  %v4354_v52 = vrot.slane %v3638_v57, 4 }
 0x5da   : > { %4455 = vmatmul.f32.gmra.mxu1 %v4337_v10 }
 0x5db   : > { %v13294_v7 = vpop.f32.mrf.mxu2  ;;  %v4649_v21 = vsel %vm1545_vm3, %v4642_v45, %v4648_v1  ;;  %v4645_v45 = vsel %vm1545_vm3, %v4638_v43, %v4644_v23  ;;  %v4355_v35 = vsel %vm2343_vm5, %v4348_v2, %v4354_v52  ;;  %v3642_v43 = vld [vmem:[%s16829_s21 + $0x3b0] sm:$0xff]  ;;  %v4632_v2 = vrot.slane %v13247_v51, 2  ;;  %v3645_v51 = vld [vmem:[%s16829_s21 + $0x3c8] sm:$0xff] }
 0x5dc   : > { %16919 = vst [vmem:[#allocation61_spill] sm:$0xff] %v13294_v7  ;;  %v13311_v7 = vpop.f32.mrf.mxu0  ;;  %v4633_v52 = vrot.slane %v3642_v43, 2 }
 0x5dd   : > { %4775 = vmatmul.f32.gmra.mxu0 %v4639_v11  ;;  %v3652_v11 = vld [vmem:[%s16829_s21 + $0x400] sm:$0xff] }
 0x5df   : > { %v13297_v10 = vpop.f32.mrf.mxu1 }
 0x5e0   : > { %16920 = vst [vmem:[#allocation84_spill] sm:$0xff] %v13297_v10  ;;  %9660 = vmatmul.msk.f32.gmra.mxu2 %vm3677_vm8, %v4649_v21  ;;  %v4654_v21 = vrot.slane %v3652_v11, 2 }
 0x5e2   : > { %4458 = vmatmul.f32.gmra.mxu1 %v4343_v9  ;;  %v13317_v9 = vpop.f32.mrf.mxu3  ;;  %v4655_v0 = vsel %vm1545_vm3, %v4648_v1, %v4654_v21 }
 0x5e3   : > { %16922 = vst [vmem:[#allocation110_spill] sm:$0xff] %v13317_v9  ;;  %v13322_v53 = vpop.f32.mrf.mxu2 }
 0x5e4   : > { %16923 = vst [vmem:[#allocation17_spill] sm:$0xff] %v13322_v53 }
 0x5e5   : > { %4778 = vmatmul.f32.gmra.mxu0 %v4645_v45  ;;  %v13341_v45 = vpop.f32.mrf.mxu0 }
 0x5e7   : > { %v13314_v41 = vpop.f32.mrf.mxu1 }
 0x5e8   : > { %16921 = vst [vmem:[#allocation94_spill] sm:$0xff] %v13314_v41  ;;  %9661 = vmatmul.msk.f32.gmra.mxu2 %vm3677_vm8, %v4655_v0  ;;  %v3655_v0 = vld [vmem:[%s16829_s21 + $0x418] sm:$0xff] }
 0x5e9   : > { %v4660_v53 = vrot.slane %v3655_v0, 2 }
 0x5ea   : > { %4461 = vmatmul.f32.gmra.mxu1 %v4349_v37  ;;  %v3650_v37 = vld [vmem:[%s16829_s21 + $0x3f0] sm:$0xff]  ;;  %v13343_v1 = vpop.f32.mrf.mxu3 }
 0x5eb   : > { %v13339_v26 = vpop.f32.mrf.mxu2  ;;  %v4650_v57 = vrot.slane %v3650_v37, 2  ;;  %16925 = vst [vmem:[#allocation43_spill] sm:$0xff] %v13343_v1  ;;  %v4634_v37 = vsel %vm1545_vm3, %v4632_v2, %v4633_v52  ;;  %v4640_v2 = vrot.slane %v3645_v51, 2 }
 0x5ed   : > { %v4651_v11 = vsel %vm1545_vm3, %v4644_v23, %v4650_v57 }
 0x5ee   : > { %4781 = vmatmul.f32.gmra.mxu0 %v4651_v11  ;;  %v13364_v11 = vpop.f32.mrf.mxu0 }
 0x5ef   : > { %v13330_v54 = vpop.f32.mrf.mxu1  ;;  %v4198_v25 = vadd.f32 %v13364_v11, %v4142_v60 }
 0x5f0   : > { %16924 = vst [vmem:[#allocation89_spill] sm:$0xff] %v13330_v54  ;;  %v4661_v54 = vsel %vm1545_vm3, %v4654_v21, %v4660_v53 }
 0x5f1   : > { %9662 = vmatmul.msk.f32.gmra.mxu2 %vm3677_vm8, %v4661_v54  ;;  %v3658_v54 = vld [vmem:[%s16829_s21 + $0x430] sm:$0xff] }
 0x5f2   : > { %4464 = vmatmul.f32.gmra.mxu1 %v4355_v35  ;;  %v3653_v35 = vld [vmem:[%s16829_s21 + $0x408] sm:$0xff]  ;;  %v13366_v0 = vpop.f32.mrf.mxu3 }
 0x5f3   : > { %v13361_v23 = vpop.f32.mrf.mxu2  ;;  %v4656_v43 = vrot.slane %v3653_v35, 2  ;;  %16927 = vst [vmem:[#allocation21_spill] sm:$0xff] %v13366_v0  ;;  %v4641_v35 = vsel %vm1545_vm3, %v4633_v52, %v4640_v2 }
 0x5f5   : > { %v4657_v21 = vsel %vm1545_vm3, %v4650_v57, %v4656_v43  ;;  %v3656_v57 = vld [vmem:[%s16829_s21 + $0x420] sm:$0xff] }
 0x5f6   : > { %4784 = vmatmul.f32.gmra.mxu0 %v4657_v21  ;;  %v4662_v21 = vrot.slane %v3656_v57, 2 }
 0x5f7   : > { %v13351_v4 = vpop.f32.mrf.mxu1 }
 0x5f8   : > { %16926 = vst [vmem:[#allocation115_spill] sm:$0xff] %v13351_v4  ;;  %v4666_v4 = vrot.slane %v3658_v54, 2 }
 0x5fa   : > { %4828 = vmatmul.f32.vlgmr.msra.gmra.mxu1 %v4634_v37  ;;  %v4667_v1 = vsel %vm1545_vm3, %v4660_v53, %v4666_v4  ;;  %v3648_v37 = vld [vmem:[%s16829_s21 + $0x3e0] sm:$0xff]  ;;  %v4663_v53 = vsel %vm1545_vm3, %v4656_v43, %v4662_v21  ;;  %v13390_v0 = vpop.f32.mrf.mxu3  ;;  %v3659_v43 = vld [vmem:[%s16829_s21 + $0x438] sm:$0xff] }
 0x5fb   : > { %9663 = vmatmul.msk.f32.gmra.mxu2 %vm3677_vm8, %v4667_v1  ;;  %v13382_v51 = vpop.f32.mrf.mxu2  ;;  %v4646_v54 = vrot.slane %v3648_v37, 2  ;;  %v3661_v1 = vld [vmem:[%s16829_s21 + $0x448] sm:$0xff]  ;;  %16929 = vst [vmem:[#allocation51_spill] sm:$0xff] %v13390_v0 }
 0x5fc   : > { %v4672_v52 = vrot.slane %v3661_v1, 2 }
 0x5fd   : > { %v4647_v57 = vsel %vm1545_vm3, %v4640_v2, %v4646_v54  ;;  %v3791_v2 = vadd.f32 %v12919_v34, %v12691_v3  ;;  %v3662_v3 = vld [vmem:[%s16829_s21 + $0x450] sm:$0xff] }
 0x5fe   : > { %4787 = vmatmul.f32.gmra.mxu0 %v4663_v53  ;;  %v4673_v32 = vsel %vm1545_vm3, %v4666_v4, %v4672_v52  ;;  %v4668_v53 = vrot.slane %v3659_v43, 2  ;;  %v4674_v20 = vrot.slane %v3662_v3, 2 }
 0x5ff   : > { %v13372_v9 = vpop.f32.mrf.mxu1  ;;  %v3847_v6 = vadd.f32 %v13162_v48, %v3791_v2  ;;  %v3654_v48 = vld [vmem:[%s16829_s21 + $0x410] sm:$0xff]  ;;  %v3667_v2 = vld [vmem:[%s16829_s21 + $0x478] sm:$0xff] }
 0x600   : > { %16928 = vst [vmem:[#allocation95_spill] sm:$0xff] %v13372_v9  ;;  %v13388_v9 = vpop.f32.mrf.mxu0  ;;  %v4669_v4 = vsel %vm1545_vm3, %v4662_v21, %v4668_v53 }
 0x602   : > { %4831 = vmatmul.f32.gmra.mxu1 %v4641_v35  ;;  %v3651_v35 = vld [vmem:[%s16829_s21 + $0x3f8] sm:$0xff]  ;;  %v4541_v0 = vpop.f32.mrf.mxu3 }
 0x603   : > { %9664 = vmatmul.msk.f32.gmra.mxu2 %vm3677_vm8, %v4673_v32  ;;  %v13403_v37 = vpop.f32.mrf.mxu2  ;;  %v4652_v1 = vrot.slane %v3651_v35, 2  ;;  %v3664_v32 = vld [vmem:[%s16829_s21 + $0x460] sm:$0xff] }
 0x605   : > { %v4653_v35 = vsel %vm1545_vm3, %v4646_v54, %v4652_v1  ;;  %v4675_v54 = vsel %vm1545_vm3, %v4668_v53, %v4674_v20 }
 0x606   : > { %4790 = vmatmul.f32.gmra.mxu0 %v4669_v4 }
 0x607   : > { %v13393_v41 = vpop.f32.mrf.mxu1 }
 0x608   : > { %16930 = vst [vmem:[#allocation120_spill] sm:$0xff] %v13393_v41  ;;  %v4678_v41 = vrot.slane %v3664_v32, 2  ;;  %v13415_v43 = vpop.f32.mrf.mxu0  ;;  %v4658_v32 = vrot.slane %v3654_v48, 2 }
 0x60a   : > { %4834 = vmatmul.f32.gmra.mxu1 %v4647_v57  ;;  %v4679_v57 = vsel %vm1545_vm3, %v4672_v52, %v4678_v41  ;;  %v4227_v52 = vmax.f32 %v3847_v6, %v4189_v42  ;;  %v4192_v42 = vadd.f32 %v13311_v7, %v13110_v16  ;;  %v4544_v53 = vpop.f32.mrf.mxu3 }
 0x60b   : > { %9665 = vmatmul.msk.f32.gmra.mxu2 %vm3677_vm8, %v4679_v57  ;;  %v13426_v38 = vpop.f32.mrf.mxu2 }
 0x60e   : > { %4793 = vmatmul.f32.gmra.mxu0 %v4675_v54 }
 0x60f   : > { %v4429_v21 = vpop.f32.mrf.mxu1 }
 0x610   : > { %v4486_v34 = vadd.f32 %v13339_v26, %v4429_v21  ;;  %v3794_v26 = vadd.f32 %v12946_v24, %v12702_v17  ;;  %v4684_v21 = vrot.slane %v3667_v2, 2  ;;  %v3665_v17 = vld [vmem:[%s16829_s21 + $0x468] sm:$0xff] }
 0x611   : > { %v4680_v16 = vrot.slane %v3665_v17, 2 }
 0x612   : > { %v4542_v4 = vadd.f32 %v4541_v0, %v4486_v34  ;;  %4837 = vmatmul.f32.gmra.mxu1 %v4653_v35  ;;  %v3850_v18 = vadd.f32 %v13181_v30, %v3794_v26  ;;  %v4685_v6 = vsel %vm1545_vm3, %v4678_v41, %v4684_v21  ;;  %v4659_v35 = vsel %vm1545_vm3, %v4652_v1, %v4658_v32  ;;  %v3657_v30 = vld [vmem:[%s16829_s21 + $0x428] sm:$0xff]  ;;  %v13451_v41 = vpop.f32.mrf.mxu0 }
 0x613   : > { %9666 = vmatmul.msk.f32.gmra.mxu2 %vm3677_vm8, %v4685_v6  ;;  %v13449_v3 = vpop.f32.mrf.mxu2  ;;  %v4681_v1 = vsel %vm1545_vm3, %v4674_v20, %v4680_v16  ;;  %v4664_v48 = vrot.slane %v3657_v30, 2  ;;  %v3660_v20 = vld [vmem:[%s16829_s21 + $0x440] sm:$0xff] }
 0x614   : > { %v13434_v57 = vmax.f32 %v4227_v52, %v4542_v4  ;;  %v4228_v7 = vmax.f32 %v3850_v18, %v4192_v42  ;;  %v3668_v18 = vld [vmem:[%s16829_s21 + $0x480] sm:$0xff] }
 0x615   : > { %v4665_v26 = vsel %vm1545_vm3, %v4658_v32, %v4664_v48  ;;  %v4686_v6 = vrot.slane %v3668_v18, 2  ;;  %v3673_v32 = vld [vmem:[%s16829_s21 + $0x4a8] sm:$0xff] }
 0x616   : > { %4796 = vmatmul.f32.gmra.mxu0 %v4681_v1 }
 0x617   : > { %v4432_v0 = vpop.f32.mrf.mxu1 }
 0x618   : > { %v4489_v24 = vadd.f32 %v13361_v23, %v4432_v0  ;;  %v3670_v23 = vld [vmem:[%s16829_s21 + $0x490] sm:$0xff] }
 0x619   : > { %v4690_v4 = vrot.slane %v3670_v23, 2 }
 0x61a   : > { %v4545_v34 = vadd.f32 %v4544_v53, %v4489_v24  ;;  %4840 = vmatmul.f32.gmra.mxu1 %v4659_v35  ;;  %v13473_v0 = vpop.f32.mrf.mxu0  ;;  %v4670_v53 = vrot.slane %v3660_v20, 2  ;;  %v4696_v35 = vrot.slane %v3673_v32, 2  ;;  %v3666_v32 = vld [vmem:[%s16829_s21 + $0x470] sm:$0xff] }
 0x61b   : > { %v4691_v54 = vsel %vm1545_vm3, %v4684_v21, %v4690_v4  ;;  %v13470_v42 = vpop.f32.mrf.mxu2  ;;  %v4687_v21 = vsel %vm1545_vm3, %v4680_v16, %v4686_v6  ;;  %16931 = vst [vmem:[#allocation25_spill] sm:$0xff] %v13473_v0  ;;  %v3671_v16 = vld [vmem:[%s16829_s21 + $0x498] sm:$0xff] }
 0x61c   : > { %v13457_v52 = vmax.f32 %v4228_v7, %v4545_v34  ;;  %9667 = vmatmul.msk.f32.gmra.mxu2 %vm3677_vm8, %v4691_v54  ;;  %v4697_v17 = vsel %vm1545_vm3, %v4690_v4, %v4696_v35  ;;  %v4671_v30 = vsel %vm1545_vm3, %v4664_v48, %v4670_v53  ;;  %v3663_v7 = vld [vmem:[%s16829_s21 + $0x458] sm:$0xff]  ;;  %v4692_v1 = vrot.slane %v3671_v16, 2  ;;  %v3676_v48 = vld [vmem:[%s16829_s21 + $0x4c0] sm:$0xff] }
 0x61d   : > { %v4676_v4 = vrot.slane %v3663_v7, 2  ;;  %v4702_v54 = vrot.slane %v3676_v48, 2  ;;  %v4682_v16 = vrot.slane %v3666_v32, 2  ;;  %v3669_v48 = vld [vmem:[%s16829_s21 + $0x488] sm:$0xff]  ;;  %v3672_v32 = vld [vmem:[%s16829_s21 + $0x4a0] sm:$0xff] }
 0x61e   : > { %4799 = vmatmul.f32.gmra.mxu0 %v4687_v21  ;;  %v4693_v23 = vsel %vm1545_vm3, %v4686_v6, %v4692_v1  ;;  %v3674_v6 = vld [vmem:[%s16829_s21 + $0x4b0] sm:$0xff] }
 0x61f   : > { %v13460_v2 = vpop.f32.mrf.mxu1  ;;  %v4703_v18 = vsel %vm1545_vm3, %v4696_v35, %v4702_v54  ;;  %v4677_v21 = vsel %vm1545_vm3, %v4670_v53, %v4676_v4 }
 0x622   : > { %4843 = vmatmul.f32.gmra.mxu1 %v4665_v26  ;;  %v13495_v26 = vpop.f32.mrf.mxu0 }
 0x623   : > { %v13489_v34 = vpop.f32.mrf.mxu2  ;;  %16933 = vst [vmem:[#allocation143_spill] sm:$0xff] %v13495_v26 }
 0x624   : > { %9668 = vmatmul.msk.f32.gmra.mxu2 %vm3677_vm8, %v4697_v17  ;;  %16932 = vst [vmem:[#allocation99_spill] sm:$0xff] %v13489_v34 }
 0x626   : > { %4802 = vmatmul.f32.gmra.mxu0 %v4693_v23  ;;  %v4683_v23 = vsel %vm1545_vm3, %v4676_v4, %v4682_v16 }
 0x627   : > { %v13479_v24 = vpop.f32.mrf.mxu1 }
 0x62a   : > { %4846 = vmatmul.f32.gmra.mxu1 %v4671_v30  ;;  %v4698_v30 = vrot.slane %v3674_v6, 2  ;;  %v13511_v7 = vpop.f32.mrf.mxu0 }
 0x62b   : > { %v13508_v17 = vpop.f32.mrf.mxu2  ;;  %16935 = vst [vmem:[#allocation29_spill] sm:$0xff] %v13511_v7 }
 0x62c   : > { %9669 = vmatmul.msk.f32.gmra.mxu2 %vm3677_vm8, %v4703_v18  ;;  %16934 = vst [vmem:[#allocation125_spill] sm:$0xff] %v13508_v17  ;;  %v4699_v35 = vsel %vm1545_vm3, %v4692_v1, %v4698_v30 }
 0x62e   : > { %4805 = vmatmul.f32.gmra.mxu0 %v4699_v35 }
 0x62f   : > { %v13498_v20 = vpop.f32.mrf.mxu1 }
 0x632   : > { %4849 = vmatmul.f32.gmra.mxu1 %v4677_v21  ;;  %v4688_v21 = vrot.slane %v3669_v48, 2  ;;  %v13528_v4 = vpop.f32.mrf.mxu0 }
 0x633   : > { %v13520_v18 = vpop.f32.mrf.mxu2  ;;  %16937 = vst [vmem:[#allocation130_spill] sm:$0xff] %v13528_v4 }
 0x634   : > { %9670 = vmatmul.msk.f32.gmra.mxu2 %vm3677_vm8, %v4702_v54  ;;  %16936 = vst [vmem:[#allocation103_spill] sm:$0xff] %v13520_v18  ;;  %v4689_v6 = vsel %vm1545_vm3, %v4682_v16, %v4688_v21  ;;  %v4694_v54 = vrot.slane %v3672_v32, 2 }
 0x636   : > { %4808 = vmatmul.f32.gmra.mxu0 %v4698_v30  ;;  %v3675_v30 = vld [vmem:[%s16829_s21 + $0x4b8] sm:$0xff] }
 0x637   : > { %v13513_v53 = vpop.f32.mrf.mxu1  ;;  %v4700_v48 = vrot.slane %v3675_v30, 2  ;;  %v4944_v30 = vld [vmem:[%s16258_s5 + $0x38] sm:$0xff] }
 0x638   : > { %5038 = vmatpush.msrb.mxu3 %v4944_v30  ;;  %v4952_v30 = vld [vmem:[%s16258_s5 + $0x78] sm:$0xff] }
 0x639   : > { %5255 = vmatpush.msrb.mxu1 %v4952_v30  ;;  %v4950_v30 = vld [vmem:[%s16258_s5 + $0x68] sm:$0xff] }
 0x63a   : > { %4852 = vmatmul.f32.gmra.mxu1 %v4683_v23  ;;  %v4695_v23 = vsel %vm1545_vm3, %v4688_v21, %v4694_v54  ;;  %v13538_v16 = vpop.f32.mrf.mxu0 }
 0x63b   : > { %v13530_v35 = vpop.f32.mrf.mxu2  ;;  %16940 = vst [vmem:[#allocation134_spill] sm:$0xff] %v13538_v16 }
 0x63c   : > { %16938 = vst [vmem:[#allocation33_spill] sm:$0xff] %v13530_v35 }
 0x63f   : > { %v13522_v1 = vpop.f32.mrf.mxu1 }
 0x642   : > { %4855 = vmatmul.f32.gmra.mxu1 %v4689_v6  ;;  %v4701_v6 = vsel %vm1545_vm3, %v4694_v54, %v4700_v48  ;;  %v13545_v32 = vpop.f32.mrf.mxu0  ;;  %v4943_v54 = vld [vmem:[%s16258_s5 + $0x30] sm:$0xff] }
 0x643   : > { %v13540_v18 = vpop.f32.mrf.mxu2  ;;  %16943 = vst [vmem:[#allocation117_spill] sm:$0xff] %v13545_v32  ;;  %5039 = vmatpush.msrb.mxu3 %v4943_v54  ;;  %v4960_v54 = vld [vmem:[%s16258_s5 + $0xb8] sm:$0xff] }
 0x644   : > { %16941 = vst [vmem:[#allocation112_spill] sm:$0xff] %v13540_v18  ;;  %v4956_v18 = vld [vmem:[%s16258_s5 + $0x98] sm:$0xff]  ;;  %5451 = vmatpush.msrb.mxu0 %v4960_v54  ;;  %v4958_v54 = vld [vmem:[%s16258_s5 + $0xa8] sm:$0xff] }
 0x645   : > { %5353 = vmatpush.msrb.mxu2 %v4956_v18  ;;  %v4954_v18 = vld [vmem:[%s16258_s5 + $0x88] sm:$0xff] }
 0x647   : > { %v13532_v7 = vpop.f32.mrf.mxu1 }
 0x648   : > { %16939 = vst [vmem:[#allocation108_spill] sm:$0xff] %v13532_v7  ;;  %v4139_v7 = vadd.f32 %v13149_v22, %v13123_v47 }
 0x64a   : > { %4858 = vmatmul.f32.gmra.mxu1 %v4695_v23 }
 0x64b   : > { %v13549_v21 = vpop.f32.mrf.mxu2 }
 0x64c   : > { %16945 = vst [vmem:[#allocation122_spill] sm:$0xff] %v13549_v21  ;;  %v4941_v21 = vld [vmem:[%s16258_s5 + $0x20] sm:$0xff] }
 0x64f   : > { %v13542_v26 = vpop.f32.mrf.mxu1 }
 0x650   : > { %16942 = vst [vmem:[#allocation137_spill] sm:$0xff] %v13542_v26  ;;  %v4957_v26 = vld [vmem:[%s16258_s5 + $0xa0] sm:$0xff] }
 0x652   : > { %4861 = vmatmul.f32.gmra.mxu1 %v4701_v6  ;;  %v4773_v35 = vpop.f32.mrf.mxu0  ;;  %v4942_v6 = vld [vmem:[%s16258_s5 + $0x28] sm:$0xff] }
 0x653   : > { %v4885_v23 = vpop.f32.mrf.mxu2  ;;  %5040 = vmatpush.msrb.mxu3 %v4942_v6  ;;  %v4951_v6 = vld [vmem:[%s16258_s5 + $0x70] sm:$0xff] }
 0x654   : > { %5256 = vmatpush.msrb.mxu1 %v4951_v6  ;;  %v4949_v6 = vld [vmem:[%s16258_s5 + $0x60] sm:$0xff] }
 0x655   : > { %5041 = vmatpush.msrb.mxu3 %v4941_v21  ;;  %v4955_v21 = vld [vmem:[%s16258_s5 + $0x90] sm:$0xff] }
 0x656   : > { %5354 = vmatpush.msrb.mxu2 %v4955_v21  ;;  %5257 = vmatpush.msrb.mxu1 %v4950_v30  ;;  %v4953_v21 = vld [vmem:[%s16258_s5 + $0x80] sm:$0xff] }
 0x657   : > { %v13547_v4 = vpop.f32.mrf.mxu1 }
 0x658   : > { %16944 = vst [vmem:[#allocation140_spill] sm:$0xff] %v13547_v4  ;;  %5355 = vmatpush.msrb.mxu2 %v4954_v18  ;;  %5258 = vmatpush.msrb.mxu1 %v4949_v6  ;;  %v4492_v6 = vadd.f32 %v13382_v51, %v13460_v2 }
 0x65a   : > { %4864 = vmatmul.f32.gmra.mxu1 %v4700_v48  ;;  %v4776_v48 = vpop.f32.mrf.mxu0  ;;  %5356 = vmatpush.msrb.mxu2 %v4953_v21 }
 0x65b   : > { %v4888_v16 = vpop.f32.mrf.mxu2 }
 0x65f   : > { %v13551_v17 = vpop.f32.mrf.mxu1 }
 0x660   : > { %16946 = vst [vmem:[#allocation142_spill] sm:$0xff] %v13551_v17  ;;  %v4547_v17 = vpop.f32.mrf.mxu3 }
 0x661   : > { %v4548_v22 = vadd.f32 %v4547_v17, %v4492_v6 }
 0x662   : > { %v4779_v39 = vpop.f32.mrf.mxu0 }
 0x667   : > { %v13562_v32 = vpop.f32.mrf.mxu1 }
 0x668   : > { %16947 = vst [vmem:[#allocation127_spill] sm:$0xff] %v13562_v32  ;;  %v4959_v32 = vld [vmem:[%s16258_s5 + $0xb0] sm:$0xff]  ;;  %v4550_v18 = vpop.f32.mrf.mxu3 }
 0x669   : > { %5452 = vmatpush.msrb.mxu0 %v4959_v32  ;;  %v4891_v32 = vpop.f32.mrf.mxu2 }
 0x66b   : > { %5453 = vmatpush.msrb.mxu0 %v4958_v54 }
 0x66d   : > { %5454 = vmatpush.msrb.mxu0 %v4957_v26 }
 0x66f   : > { %v13594_v4 = vpop.f32.mrf.mxu1 }
 0x670   : > { %16948 = vst [vmem:[#allocation63_spill] sm:$0xff] %v13594_v4  ;;  %v4782_v4 = vpop.f32.mrf.mxu0  ;;  %v4553_v21 = vpop.f32.mrf.mxu3 }
 0x671   : > { %v4894_v0 = vpop.f32.mrf.mxu2 }
 0x677   : > { %v4829_v30 = vpop.f32.mrf.mxu1 }
 0x678   : > { %v4830_v54 = vadd.f32 %v4829_v30, %v4773_v35  ;;  %v3853_v35 = vadd.f32 %v13200_v62, %v3797_v40  ;;  %v4785_v47 = vpop.f32.mrf.mxu0  ;;  %v3800_v62 = vadd.f32 %v12985_v28, %v12731_v29  ;;  %v4556_v61 = vpop.f32.mrf.mxu3 }
 0x67a   : > { %v4886_v10 = vadd.f32 %v4885_v23, %v4830_v54  ;;  %v4195_v23 = vadd.f32 %v13341_v45, %v4139_v7  ;;  %v3856_v2 = vadd.f32 %v13217_v49, %v3800_v62  ;;  %v4145_v49 = vadd.f32 %v13194_v8, %v13159_v12 }
 0x67b   : > { %v4498_v12 = vadd.f32 %v13426_v38, %v13498_v20  ;;  %v4148_v62 = vadd.f32 %v13220_v31, %v13178_v55 }
 0x67c   : > { %v13612_v26 = vmax.f32 %v13434_v57, %v4886_v10  ;;  %v4897_v10 = vpop.f32.mrf.mxu2  ;;  %v4229_v57 = vmax.f32 %v3853_v35, %v4195_v23 }
 0x67d   : > { %v4554_v38 = vadd.f32 %v4553_v21, %v4498_v12 }
 0x67e   : > { %v4582_v45 = vmax.f32 %v4229_v57, %v4548_v22  ;;  %v3803_v22 = vadd.f32 %v13004_v13, %v12746_v59  ;;  %v4201_v59 = vadd.f32 %v13388_v9, %v4145_v49 }
 0x67f   : > { %v4832_v34 = vpop.f32.mrf.mxu1 }
 0x680   : > { %v4833_v56 = vadd.f32 %v4832_v34, %v4776_v48  ;;  %v4985_v34 = vrot.slane %v13612_v26, 1  ;;  %v4230_v48 = vmax.f32 %v3856_v2, %v4198_v25  ;;  %v3859_v60 = vadd.f32 %v13236_v50, %v3803_v22  ;;  %v4559_v20 = vpop.f32.mrf.mxu3 }
 0x681   : > { %v4501_v2 = vadd.f32 %v13449_v3, %v13513_v53 }
 0x682   : > { %v4889_v33 = vadd.f32 %v4888_v16, %v4833_v56 }
 0x684   : > { %v13617_v30 = vmax.f32 %v13457_v52, %v4889_v33  ;;  %v4495_v33 = vadd.f32 %v13403_v37, %v13479_v24 }
 0x686   : > { %v4986_v14 = vrot.slane %v13617_v30, 1  ;;  %v5141_v7 = vrot.slane %v13617_v30, 2  ;;  %v5300_v16 = vrot.slane %v13617_v30, 3 }
 0x687   : > { %v4835_v51 = vpop.f32.mrf.mxu1 }
 0x688   : > { %v4836_v56 = vadd.f32 %v4835_v51, %v4779_v39  ;;  %v4987_v40 = vsel %vm1069_vm2, %v4985_v34, %v4986_v14  ;;  %v4551_v39 = vadd.f32 %v4550_v18, %v4495_v33  ;;  %v4788_v18 = vpop.f32.mrf.mxu0 }
 0x689   : > { %9671 = vmatmul.msk.f32.vlgmr.msrb.gmra.mxu3 %vm3677_vm8, %v4987_v40  ;;  %v4231_v40 = vmax.f32 %v3859_v60, %v4201_v59 }
 0x68a   : > { %v4892_v52 = vadd.f32 %v4891_v32, %v4836_v56  ;;  %v5398_v32 = vrot.slane %v13617_v30, 4  ;;  %v4583_v34 = vmax.f32 %v4230_v48, %v4551_v39  ;;  %v4557_v39 = vadd.f32 %v4556_v61, %v4501_v2  ;;  %v16955_v2 = vld [vmem:[#allocation25_spill] sm:$0xff] }
 0x68c   : > { %v13631_v17 = vmax.f32 %v4582_v45, %v4892_v52  ;;  %v3806_v52 = vadd.f32 %v13023_v58, %v12757_v15  ;;  %v4204_v58 = vadd.f32 %v13415_v43, %v4148_v62 }
 0x68e   : > { %v4988_v29 = vrot.slane %v13631_v17, 1  ;;  %v5143_v28 = vrot.slane %v13631_v17, 2  ;;  %v5301_v37 = vrot.slane %v13631_v17, 3  ;;  %v5399_v24 = vrot.slane %v13631_v17, 4 }
 0x68f   : > { %v4838_v11 = vpop.f32.mrf.mxu1  ;;  %v3862_v15 = vadd.f32 %v13258_v27, %v3806_v52  ;;  %v4562_v27 = vpop.f32.mrf.mxu3 }
 0x690   : > { %v4839_v54 = vadd.f32 %v4838_v11, %v4782_v4  ;;  %v4989_v6 = vsel %vm1069_vm2, %v4986_v14, %v4988_v29  ;;  %v13646_v35 = vsel %vm1545_vm3, %v5141_v7, %v5143_v28  ;;  %v5302_v23 = vsel %vm2033_vm4, %v5300_v16, %v5301_v37  ;;  %v4900_v4 = vpop.f32.mrf.mxu2  ;;  %v4791_v31 = vpop.f32.mrf.mxu0 }
 0x691   : > { %9672 = vmatmul.msk.f32.gmra.mxu3 %vm3677_vm8, %v4989_v6  ;;  %9701 = vmatmul.msk.f32.vlgmr.msrb.gmra.mxu1 %vm3677_vm8, %v13646_v35  ;;  %v5400_v8 = vsel %vm2343_vm5, %v5398_v32, %v5399_v24  ;;  %v3809_v32 = vadd.f32 %v13043_v36, %v12765_v46 }
 0x692   : > { %v4895_v14 = vadd.f32 %v4894_v0, %v4839_v54  ;;  %9711 = vmatmul.msk.f32.vlgmr.msrb.gmra.mxu2 %vm3677_vm8, %v5302_v23  ;;  %9721 = vmatmul.msk.f32.vlgmr.msrb.gmra.mxu0 %vm3677_vm8, %v5400_v8  ;;  %v4504_v54 = vadd.f32 %v13470_v42, %v13522_v1 }
 0x693   : > { %v3865_v46 = vadd.f32 %v13276_v44, %v3809_v32  ;;  %v16958_v32 = vld [vmem:[#allocation82_spill] sm:$0xff] }
 0x694   : > { %v13661_v13 = vmax.f32 %v4583_v34, %v4895_v14  ;;  %v4560_v6 = vadd.f32 %v4559_v20, %v4504_v54  ;;  %v16949_v14 = vld [vmem:[#allocation13_spill] sm:$0xff]  ;;  %v16959_v54 = vld [vmem:[#allocation67_spill] sm:$0xff] }
 0x695   : > { %v4154_v60 = vadd.f32 %v16949_v14, %v13214_v5  ;;  %v16963_v14 = vld [vmem:[#allocation143_spill] sm:$0xff] }
 0x696   : > { %v4990_v51 = vrot.slane %v13661_v13, 1  ;;  %v5145_v57 = vrot.slane %v13661_v13, 2  ;;  %v5303_v56 = vrot.slane %v13661_v13, 3  ;;  %v5401_v0 = vrot.slane %v13661_v13, 4 }
 0x697   : > { %v4841_v33 = vpop.f32.mrf.mxu1 }
 0x698   : > { %v4842_v50 = vadd.f32 %v4841_v33, %v4785_v47  ;;  %v4991_v9 = vsel %vm1069_vm2, %v4988_v29, %v4990_v51  ;;  %v13671_v45 = vsel %vm1545_vm3, %v5143_v28, %v5145_v57  ;;  %v5304_v21 = vsel %vm2033_vm4, %v5301_v37, %v5303_v56  ;;  %v4903_v3 = vpop.f32.mrf.mxu2  ;;  %v4794_v42 = vpop.f32.mrf.mxu0 }
 0x699   : > { %9673 = vmatmul.msk.f32.gmra.mxu3 %vm3677_vm8, %v4991_v9  ;;  %9702 = vmatmul.msk.f32.gmra.mxu1 %vm3677_vm8, %v13671_v45  ;;  %v13682_v55 = vsel %vm2343_vm5, %v5399_v24, %v5401_v0  ;;  %v4584_v47 = vmax.f32 %v4231_v40, %v4554_v38  ;;  %v4232_v37 = vmax.f32 %v3862_v15, %v4204_v58  ;;  %v16953_v40 = vld [vmem:[#allocation99_spill] sm:$0xff] }
 0x69a   : > { %v4898_v25 = vadd.f32 %v4897_v10, %v4842_v50  ;;  %9712 = vmatmul.msk.f32.gmra.mxu2 %vm3677_vm8, %v5304_v21  ;;  %9722 = vmatmul.msk.f32.gmra.mxu0 %vm3677_vm8, %v13682_v55  ;;  %v4151_v24 = vadd.f32 %v13242_v63, %v13197_v19  ;;  %v4565_v50 = vpop.f32.mrf.mxu3  ;;  %v16954_v21 = vld [vmem:[#allocation84_spill] sm:$0xff] }
 0x69b   : > { %v4585_v63 = vmax.f32 %v4232_v37, %v4557_v39 }
 0x69c   : > { %v13689_v53 = vmax.f32 %v4584_v47, %v4898_v25  ;;  %v4207_v36 = vadd.f32 %v13451_v41, %v4151_v24 }
 0x69e   : > { %v4992_v16 = vrot.slane %v13689_v53, 1  ;;  %v5147_v29 = vrot.slane %v13689_v53, 2  ;;  %v5305_v28 = vrot.slane %v13689_v53, 3  ;;  %v5403_v10 = vrot.slane %v13689_v53, 4 }
 0x69f   : > { %v4844_v48 = vpop.f32.mrf.mxu1  ;;  %v4233_v34 = vmax.f32 %v3865_v46, %v4207_v36  ;;  %v16961_v46 = vld [vmem:[#allocation125_spill] sm:$0xff] }
 0x6a0   : > { %v4845_v49 = vadd.f32 %v4844_v48, %v4788_v18  ;;  %v4993_v43 = vsel %vm1069_vm2, %v4990_v51, %v4992_v16  ;;  %v13699_v11 = vsel %vm1545_vm3, %v5145_v57, %v5147_v29  ;;  %v5306_v61 = vsel %vm2033_vm4, %v5303_v56, %v5305_v28  ;;  %v4906_v23 = vpop.f32.mrf.mxu2  ;;  %v16950_v51 = vld [vmem:[#allocation141_spill] sm:$0xff]  ;;  %v4797_v15 = vpop.f32.mrf.mxu0 }
 0x6a1   : > { %9674 = vmatmul.msk.f32.gmra.mxu3 %vm3677_vm8, %v4993_v43  ;;  %9703 = vmatmul.msk.f32.gmra.mxu1 %vm3677_vm8, %v13699_v11  ;;  %v13710_v19 = vsel %vm2343_vm5, %v5401_v0, %v5403_v10  ;;  %v16951_v57 = vld [vmem:[#allocation9_spill] sm:$0xff]  ;;  %v16952_v0 = vld [vmem:[#allocation108_spill] sm:$0xff]  ;;  %v4586_v33 = vmax.f32 %v4233_v34, %v4560_v6 }
 0x6a2   : > { %v4901_v18 = vadd.f32 %v4900_v4, %v4845_v49  ;;  %9713 = vmatmul.msk.f32.gmra.mxu2 %vm3677_vm8, %v5306_v61  ;;  %9723 = vmatmul.msk.f32.gmra.mxu0 %vm3677_vm8, %v13710_v19  ;;  %v3812_v56 = vadd.f32 %v16951_v57, %v16950_v51  ;;  %v4507_v62 = vadd.f32 %v16953_v40, %v16952_v0  ;;  %v16964_v40 = vld [vmem:[#allocation101_spill] sm:$0xff] }
 0x6a4   : > { %v13717_v1 = vmax.f32 %v4585_v63, %v4901_v18  ;;  %v3868_v52 = vadd.f32 %v16954_v21, %v3812_v56  ;;  %v4563_v25 = vadd.f32 %v4562_v27, %v4507_v62  ;;  %v3815_v63 = vadd.f32 %v16959_v54, %v16958_v32  ;;  %v16960_v18 = vld [vmem:[#allocation137_spill] sm:$0xff]  ;;  %v16965_v62 = vld [vmem:[#allocation110_spill] sm:$0xff] }
 0x6a5   : > { %v4510_v36 = vadd.f32 %v16961_v46, %v16960_v18  ;;  %v16970_v32 = vld [vmem:[#allocation89_spill] sm:$0xff]  ;;  %v4967_v18 = vld [vmem:[%s16258_s5 + $0xf0] sm:$0xff] }
 0x6a6   : > { %v4994_v22 = vrot.slane %v13717_v1, 1  ;;  %v5149_v12 = vrot.slane %v13717_v1, 2  ;;  %v5307_v8 = vrot.slane %v13717_v1, 3  ;;  %v5405_v4 = vrot.slane %v13717_v1, 4  ;;  %v4971_v46 = vld [vmem:[%s16258_s5 + $0x110] sm:$0xff] }
 0x6a7   : > { %v4847_v44 = vpop.f32.mrf.mxu1 }
 0x6a8   : > { %v4848_v59 = vadd.f32 %v4847_v44, %v4791_v31  ;;  %v4995_v41 = vsel %vm1069_vm2, %v4992_v16, %v4994_v22  ;;  %v13727_v38 = vsel %vm1545_vm3, %v5147_v29, %v5149_v12  ;;  %v5308_v20 = vsel %vm2033_vm4, %v5305_v28, %v5307_v8  ;;  %v16956_v28 = vld [vmem:[#allocation78_spill] sm:$0xff]  ;;  %v4909_v48 = vpop.f32.mrf.mxu2  ;;  %v4568_v44 = vpop.f32.mrf.mxu3 }
 0x6a9   : > { %9675 = vmatmul.msk.f32.gmra.mxu3 %vm3677_vm8, %v4995_v41  ;;  %9704 = vmatmul.msk.f32.gmra.mxu1 %vm3677_vm8, %v13727_v38  ;;  %v13738_v5 = vsel %vm2343_vm5, %v5403_v10, %v5405_v4  ;;  %v4210_v31 = vadd.f32 %v16955_v2, %v4154_v60  ;;  %v16957_v10 = vld [vmem:[#allocation106_spill] sm:$0xff]  ;;  %v4566_v41 = vadd.f32 %v4565_v50, %v4510_v36  ;;  %v4800_v21 = vpop.f32.mrf.mxu0  ;;  %v4966_v36 = vld [vmem:[%s16258_s5 + $0xe8] sm:$0xff] }
 0x6aa   : > { %v4904_v9 = vadd.f32 %v4903_v3, %v4848_v59  ;;  %9714 = vmatmul.msk.f32.gmra.mxu2 %vm3677_vm8, %v5308_v20  ;;  %9724 = vmatmul.msk.f32.gmra.mxu0 %vm3677_vm8, %v13738_v5  ;;  %v4157_v37 = vadd.f32 %v16957_v10, %v16956_v28  ;;  %v16967_v28 = vld [vmem:[#allocation72_spill] sm:$0xff] }
 0x6ab   : > { %v4234_v29 = vmax.f32 %v3868_v52, %v4210_v31 }
 0x6ac   : > { %v13745_v47 = vmax.f32 %v4586_v33, %v4904_v9  ;;  %v4213_v60 = vadd.f32 %v16963_v14, %v4157_v37  ;;  %v4160_v33 = vadd.f32 %v16965_v62, %v16964_v40  ;;  %v16968_v37 = vld [vmem:[#allocation140_spill] sm:$0xff] }
 0x6ad   : > { %v4587_v6 = vmax.f32 %v4234_v29, %v4563_v25  ;;  %v4937_v25 = vld [vmem:[%s16258_s5] sm:$0xff]  ;;  %v16966_v29 = vld [vmem:[#allocation56_spill] sm:$0xff] }
 0x6ae   : > { %v4996_v58 = vrot.slane %v13745_v47, 1  ;;  %v5151_v39 = vrot.slane %v13745_v47, 2  ;;  %v5309_v16 = vrot.slane %v13745_v47, 3  ;;  %v5407_v3 = vrot.slane %v13745_v47, 4 }
 0x6af   : > { %v4850_v24 = vpop.f32.mrf.mxu1  ;;  %v3818_v10 = vadd.f32 %v16967_v28, %v16966_v29  ;;  %v16977_v28 = vld [vmem:[#allocation33_spill] sm:$0xff] }
 0x6b0   : > { %v4851_v49 = vadd.f32 %v4850_v24, %v4794_v42  ;;  %v4997_v43 = vsel %vm1069_vm2, %v4994_v22, %v4996_v58  ;;  %v13755_v27 = vsel %vm1545_vm3, %v5149_v12, %v5151_v39  ;;  %v5310_v61 = vsel %vm2033_vm4, %v5307_v8, %v5309_v16  ;;  %v4940_v12 = vld [vmem:[%s16258_s5 + $0x18] sm:$0xff]  ;;  %v16962_v8 = vld [vmem:[#allocation94_spill] sm:$0xff]  ;;  %v16969_v24 = vld [vmem:[#allocation103_spill] sm:$0xff] }
 0x6b1   : > { %9676 = vmatmul.msk.f32.gmra.mxu3 %vm3677_vm8, %v4997_v43  ;;  %9705 = vmatmul.msk.f32.gmra.mxu1 %vm3677_vm8, %v13755_v27  ;;  %v13766_v42 = vsel %vm2343_vm5, %v5405_v4, %v5407_v3  ;;  %v3871_v34 = vadd.f32 %v16962_v8, %v3815_v63  ;;  %v4938_v4 = vld [vmem:[%s16258_s5 + $0x8] sm:$0xff]  ;;  %v4968_v43 = vld [vmem:[%s16258_s5 + $0xf8] sm:$0xff]  ;;  %v3874_v54 = vadd.f32 %v16970_v32, %v3818_v10 }
 0x6b2   : > { %v4907_v22 = vadd.f32 %v4906_v23, %v4851_v49  ;;  %9715 = vmatmul.msk.f32.gmra.mxu2 %vm3677_vm8, %v5310_v61  ;;  %9725 = vmatmul.msk.f32.gmra.mxu0 %vm3677_vm8, %v13766_v42  ;;  %v4939_v23 = vld [vmem:[%s16258_s5 + $0x10] sm:$0xff]  ;;  %v4513_v49 = vadd.f32 %v16969_v24, %v16968_v37  ;;  %v4972_v61 = vld [vmem:[%s16258_s5 + $0x118] sm:$0xff]  ;;  %v16978_v24 = vld [vmem:[#allocation115_spill] sm:$0xff] }
 0x6b3   : > { %5105 = vmatpush.msra.mxu3 %v4940_v12  ;;  %v4235_v0 = vmax.f32 %v3871_v34, %v4213_v60  ;;  %5611 = vmatpush.msra.mxu1 %v4968_v43  ;;  %v4571_v12 = vpop.f32.mrf.mxu3 }
 0x6b4   : > { %v13776_v59 = vmax.f32 %v4587_v6, %v4907_v22  ;;  %5709 = vmatpush.msra.mxu2 %v4972_v61  ;;  %v4569_v6 = vadd.f32 %v4568_v44, %v4513_v49  ;;  %v4970_v22 = vld [vmem:[%s16258_s5 + $0x108] sm:$0xff] }
 0x6b5   : > { %5106 = vmatpush.msra.mxu3 %v4939_v23  ;;  %5612 = vmatpush.msra.mxu1 %v4967_v18  ;;  %v16980_v18 = vld [vmem:[#allocation61_spill] sm:$0xff] }
 0x6b6   : > { %v4998_v20 = vrot.slane %v13776_v59, 1  ;;  %v5153_v51 = vrot.slane %v13776_v59, 2  ;;  %v5311_v57 = vrot.slane %v13776_v59, 3  ;;  %v5409_v56 = vrot.slane %v13776_v59, 4  ;;  %5710 = vmatpush.msra.mxu2 %v4971_v46  ;;  %v16981_v46 = vld [vmem:[#allocation21_spill] sm:$0xff] }
 0x6b7   : > { %v4853_v9 = vpop.f32.mrf.mxu1  ;;  %5107 = vmatpush.msra.mxu3 %v4938_v4  ;;  %v16972_v4 = vld [vmem:[#allocation79_spill] sm:$0xff]  ;;  %5613 = vmatpush.msra.mxu1 %v4966_v36  ;;  %v4166_v36 = vadd.f32 %v16981_v46, %v16980_v18 }
 0x6b8   : > { %v4854_v52 = vadd.f32 %v4853_v9, %v4797_v15  ;;  %v4999_v2 = vsel %vm1069_vm2, %v4996_v58, %v4998_v20  ;;  %v13792_v50 = vsel %vm1545_vm3, %v5151_v39, %v5153_v51  ;;  %v5312_v31 = vsel %vm2033_vm4, %v5309_v16, %v5311_v57  ;;  %v4912_v58 = vpop.f32.mrf.mxu2  ;;  %5711 = vmatpush.msra.mxu2 %v4970_v22 }
 0x6b9   : > { %9677 = vmatmul.msk.f32.gmra.mxu3 %vm3677_vm8, %v4999_v2  ;;  %9706 = vmatmul.msk.f32.gmra.mxu1 %vm3677_vm8, %v13792_v50  ;;  %v13806_v15 = vsel %vm2343_vm5, %v5407_v3, %v5409_v56  ;;  %v4588_v39 = vmax.f32 %v4235_v0, %v4566_v41  ;;  %v16971_v3 = vld [vmem:[#allocation29_spill] sm:$0xff]  ;;  %v16973_v41 = vld [vmem:[#allocation43_spill] sm:$0xff]  ;;  %v4969_v2 = vld [vmem:[%s16258_s5 + $0x100] sm:$0xff] }
 0x6ba   : > { %v4910_v16 = vadd.f32 %v4909_v48, %v4854_v52  ;;  %9716 = vmatmul.msk.f32.gmra.mxu2 %vm3677_vm8, %v5312_v31  ;;  %9726 = vmatmul.msk.f32.gmra.mxu0 %vm3677_vm8, %v13806_v15  ;;  %v4216_v63 = vadd.f32 %v16971_v3, %v4160_v33  ;;  %v4163_v0 = vadd.f32 %v16973_v41, %v16972_v4  ;;  %v4965_v52 = vld [vmem:[%s16258_s5 + $0xe0] sm:$0xff]  ;;  %v16974_v31 = vld [vmem:[#allocation87_spill] sm:$0xff] }
 0x6bb   : > { %5108 = vmatpush.msra.mxu3 %v4937_v25  ;;  %v16975_v25 = vld [vmem:[#allocation97_spill] sm:$0xff]  ;;  %5614 = vmatpush.msra.mxu1 %v4965_v52  ;;  %v4574_v22 = vpop.f32.mrf.mxu3 }
 0x6bc   : > { %v13819_v48 = vmax.f32 %v4588_v39, %v4910_v16  ;;  %v4236_v23 = vmax.f32 %v3874_v54, %v4216_v63  ;;  %v3821_v29 = vadd.f32 %v16975_v25, %v16974_v31  ;;  %v16979_v39 = vld [vmem:[#allocation130_spill] sm:$0xff]  ;;  %5712 = vmatpush.msra.mxu2 %v4969_v2 }
 0x6bd   : > { %v4219_v16 = vadd.f32 %v16979_v39, %v4163_v0  ;;  %v16982_v0 = vld [vmem:[#allocation62_spill] sm:$0xff]  ;;  %v16988_v39 = vld [vmem:[#allocation17_spill] sm:$0xff] }
 0x6be   : > { %v5000_v8 = vrot.slane %v13819_v48, 1  ;;  %v5155_v34 = vrot.slane %v13819_v48, 2  ;;  %v5313_v14 = vrot.slane %v13819_v48, 3  ;;  %v5411_v60 = vrot.slane %v13819_v48, 4  ;;  %v16987_v25 = vld [vmem:[#allocation134_spill] sm:$0xff] }
 0x6bf   : > { %v4856_v44 = vpop.f32.mrf.mxu1  ;;  %v4589_v10 = vmax.f32 %v4236_v23, %v4569_v6  ;;  %v3877_v49 = vadd.f32 %v16978_v24, %v3821_v29  ;;  %v4222_v29 = vadd.f32 %v16987_v25, %v4166_v36 }
 0x6c0   : > { %v4857_v40 = vadd.f32 %v4856_v44, %v4800_v21  ;;  %v5001_v62 = vsel %vm1069_vm2, %v4998_v20, %v5000_v8  ;;  %v13841_v33 = vsel %vm1545_vm3, %v5153_v51, %v5155_v34  ;;  %v5314_v9 = vsel %vm2033_vm4, %v5311_v57, %v5313_v14  ;;  %v16976_v21 = vld [vmem:[#allocation142_spill] sm:$0xff]  ;;  %v4803_v57 = vpop.f32.mrf.mxu0  ;;  %v4915_v43 = vpop.f32.mrf.mxu2  ;;  %v16983_v44 = vld [vmem:[#allocation55_spill] sm:$0xff] }
 0x6c1   : > { %v4516_v20 = vadd.f32 %v16977_v28, %v16976_v21  ;;  %9678 = vmatmul.msk.f32.gmra.mxu3 %vm3677_vm8, %v5001_v62  ;;  %9707 = vmatmul.msk.f32.gmra.mxu1 %vm3677_vm8, %v13841_v33  ;;  %v13858_v51 = vsel %vm2343_vm5, %v5409_v56, %v5411_v60  ;;  %v4237_v63 = vmax.f32 %v3877_v49, %v4219_v16  ;;  %v16984_v62 = vld [vmem:[#allocation127_spill] sm:$0xff] }
 0x6c2   : > { %v4913_v37 = vadd.f32 %v4912_v58, %v4857_v40  ;;  %9717 = vmatmul.msk.f32.gmra.mxu2 %vm3677_vm8, %v5314_v9  ;;  %9727 = vmatmul.msk.f32.gmra.mxu0 %vm3677_vm8, %v13858_v51  ;;  %v3824_v40 = vadd.f32 %v16983_v44, %v16982_v0  ;;  %v16985_v9 = vld [vmem:[#allocation112_spill] sm:$0xff]  ;;  %v16989_v16 = vld [vmem:[#allocation51_spill] sm:$0xff] }
 0x6c3   : > { %v4572_v32 = vadd.f32 %v4571_v12, %v4516_v20  ;;  %v4519_v52 = vadd.f32 %v16985_v9, %v16984_v62  ;;  %v16995_v9 = vld [vmem:[#allocation117_spill] sm:$0xff] }
 0x6c4   : > { %v13865_v61 = vmax.f32 %v4589_v10, %v4913_v37 }
 0x6c5   : > { %v4575_v20 = vadd.f32 %v4574_v22, %v4519_v52  ;;  %v16991_v22 = vld [vmem:[#allocation73_spill] sm:$0xff] }
 0x6c6   : > { %v5002_v56 = vrot.slane %v13865_v61, 1  ;;  %v5157_v54 = vrot.slane %v13865_v61, 2  ;;  %v5315_v58 = vrot.slane %v13865_v61, 3  ;;  %v5413_v3 = vrot.slane %v13865_v61, 4 }
 0x6c7   : > { %v4859_v6 = vpop.f32.mrf.mxu1 }
 0x6c8   : > { %v4860_v23 = vadd.f32 %v4859_v6, %v4803_v57  ;;  %v5003_v4 = vsel %vm1069_vm2, %v5000_v8, %v5002_v56  ;;  %v13875_v41 = vsel %vm1545_vm3, %v5155_v34, %v5157_v54  ;;  %v5316_v12 = vsel %vm2033_vm4, %v5313_v14, %v5315_v58  ;;  %v16986_v34 = vld [vmem:[#allocation95_spill] sm:$0xff]  ;;  %v4806_v21 = vpop.f32.mrf.mxu0  ;;  %v4918_v57 = vpop.f32.mrf.mxu2  ;;  %v16990_v6 = vld [vmem:[#allocation92_spill] sm:$0xff] }
 0x6c9   : > { %9679 = vmatmul.msk.f32.gmra.mxu3 %vm3677_vm8, %v5003_v4  ;;  %9708 = vmatmul.msk.f32.gmra.mxu1 %vm3677_vm8, %v13875_v41  ;;  %v13886_v2 = vsel %vm2343_vm5, %v5411_v60, %v5413_v3  ;;  %v4590_v8 = vmax.f32 %v4237_v63, %v4572_v32  ;;  %v3880_v14 = vadd.f32 %v16986_v34, %v3824_v40  ;;  %v16992_v4 = vld [vmem:[#allocation63_spill] sm:$0xff]  ;;  %v4577_v40 = vpop.f32.mrf.mxu3 }
 0x6ca   : > { %v4916_v31 = vadd.f32 %v4915_v43, %v4860_v23  ;;  %9718 = vmatmul.msk.f32.gmra.mxu2 %vm3677_vm8, %v5316_v12  ;;  %9728 = vmatmul.msk.f32.gmra.mxu0 %vm3677_vm8, %v13886_v2  ;;  %v4169_v43 = vadd.f32 %v16989_v16, %v16988_v39  ;;  %v3827_v23 = vadd.f32 %v16991_v22, %v16990_v6  ;;  %v16993_v12 = vld [vmem:[#allocation122_spill] sm:$0xff]  ;;  %v5559_v6 = vrot.slane %v13661_v13, 5 }
 0x6cb   : > { %v4238_v49 = vmax.f32 %v3880_v14, %v4222_v29  ;;  %v4522_v0 = vadd.f32 %v16993_v12, %v16992_v4  ;;  %v5657_v22 = vrot.slane %v13661_v13, 6 }
 0x6cc   : > { %v13893_v28 = vmax.f32 %v4590_v8, %v4916_v31  ;;  %v4225_v52 = vadd.f32 %v16995_v9, %v4169_v43 }
 0x6cd   : > { %v4578_v31 = vadd.f32 %v4577_v40, %v4522_v0 }
 0x6ce   : > { %v5004_v10 = vrot.slane %v13893_v28, 1  ;;  %v5159_v60 = vrot.slane %v13893_v28, 2  ;;  %v5317_v37 = vrot.slane %v13893_v28, 3  ;;  %v5415_v24 = vrot.slane %v13893_v28, 4 }
 0x6cf   : > { %v4862_v32 = vpop.f32.mrf.mxu1 }
 0x6d0   : > { %v4863_v63 = vadd.f32 %v4862_v32, %v4806_v21  ;;  %v5005_v18 = vsel %vm1069_vm2, %v5002_v56, %v5004_v10  ;;  %v13903_v46 = vsel %vm1545_vm3, %v5157_v54, %v5159_v60  ;;  %v5318_v36 = vsel %vm2033_vm4, %v5315_v58, %v5317_v37  ;;  %v16994_v58 = vld [vmem:[#allocation120_spill] sm:$0xff]  ;;  %v4809_v34 = vpop.f32.mrf.mxu0  ;;  %v4921_v10 = vpop.f32.mrf.mxu2 }
 0x6d1   : > { %9680 = vmatmul.msk.f32.gmra.mxu3 %vm3677_vm8, %v5005_v18  ;;  %9709 = vmatmul.msk.f32.gmra.mxu1 %vm3677_vm8, %v13903_v46  ;;  %v13914_v44 = vsel %vm2343_vm5, %v5413_v3, %v5415_v24  ;;  %v4591_v56 = vmax.f32 %v4238_v49, %v4575_v20  ;;  %v3883_v62 = vadd.f32 %v16994_v58, %v3827_v23  ;;  %v5671_v49 = vrot.slane %v13893_v28, 6 }
 0x6d2   : > { %v4919_v54 = vadd.f32 %v4918_v57, %v4863_v63  ;;  %9719 = vmatmul.msk.f32.gmra.mxu2 %vm3677_vm8, %v5318_v36  ;;  %9729 = vmatmul.msk.f32.gmra.mxu0 %vm3677_vm8, %v13914_v44  ;;  %v5573_v57 = vrot.slane %v13893_v28, 5  ;;  %v5558_v23 = vrot.slane %v13631_v17, 5 }
 0x6d3   : > { %v4239_v21 = vmax.f32 %v3883_v62, %v4225_v52  ;;  %v5561_v52 = vrot.slane %v13689_v53, 5 }
 0x6d4   : > { %v4935_v8 = vmax.f32 %v4591_v56, %v4919_v54  ;;  %v5656_v56 = vrot.slane %v13631_v17, 6  ;;  %v5560_v40 = vsel %vm1218_vm0, %v5558_v23, %v5559_v6 }
 0x6d6   : > { %v5239_v14 = vrot.slane %v4935_v8, 2  ;;  %v5319_v25 = vrot.slane %v4935_v8, 3  ;;  %v5417_v29 = vrot.slane %v4935_v8, 4  ;;  %v5575_v3 = vrot.slane %v4935_v8, 5 }
 0x6d7   : > { %v4865_v20 = vpop.f32.mrf.mxu1  ;;  %v5673_v39 = vrot.slane %v4935_v8, 6  ;;  %v5658_v9 = vsel %vm1620_vm6, %v5656_v56, %v5657_v22  ;;  %v5659_v8 = vrot.slane %v13689_v53, 6 }
 0x6d8   : > { %v4866_v16 = vadd.f32 %v4865_v20, %v4809_v34  ;;  %v5240_v32 = vsel %vm1545_vm3, %v5159_v60, %v5239_v14  ;;  %v5320_v43 = vsel %vm2033_vm4, %v5317_v37, %v5319_v25  ;;  %v13926_v63 = vsel %vm2343_vm5, %v5415_v24, %v5417_v29 }
 0x6d9   : > { %9681 = vmatmul.msk.f32.vlgmr.msra.gmra.mxu3 %vm3677_vm8, %v13612_v26  ;;  %9710 = vmatmul.msk.f32.gmra.mxu1 %vm3677_vm8, %v5240_v32  ;;  %v13934_v18 = vsel %vm1218_vm0, %v5573_v57, %v5575_v3  ;;  %v13939_v36 = vsel %vm1620_vm6, %v5671_v49, %v5673_v39  ;;  %v4592_v60 = vmax.f32 %v4239_v21, %v4578_v31  ;;  %v5563_v14 = vrot.slane %v13717_v1, 5 }
 0x6da   : > { %v4922_v37 = vadd.f32 %v4921_v10, %v4866_v16  ;;  %9720 = vmatmul.msk.f32.gmra.mxu2 %vm3677_vm8, %v5320_v43  ;;  %9730 = vmatmul.msk.f32.gmra.mxu0 %vm3677_vm8, %v13926_v63  ;;  %v5562_v31 = vsel %vm1218_vm0, %v5559_v6, %v5561_v52  ;;  %v5660_v34 = vsel %vm1620_vm6, %v5657_v22, %v5659_v8  ;;  %v5661_v25 = vrot.slane %v13717_v1, 6 }
 0x6db   : > { %v5663_v21 = vrot.slane %v13745_v47, 6  ;;  %v5569_v43 = vrot.slane %v13819_v48, 5 }
 0x6dc   : > { %v4936_v24 = vmax.f32 %v4592_v60, %v4922_v37  ;;  %v4947_v60 = vld [vmem:[%s16258_s5 + $0x50] sm:$0xff]  ;;  %v5667_v37 = vrot.slane %v13819_v48, 6 }
 0x6dd   : > { %v5664_v10 = vsel %vm1620_vm6, %v5661_v25, %v5663_v21 }
 0x6de   : > { %v5577_v4 = vrot.slane %v4936_v24, 5  ;;  %v5675_v12 = vrot.slane %v4936_v24, 6  ;;  %v5497_v0 = vrot.slane %v4936_v24, 4  ;;  %v4945_v24 = vld [vmem:[%s16258_s5 + $0x40] sm:$0xff] }
 0x6e0   : > { %v13950_v54 = vsel %vm1218_vm0, %v5575_v3, %v5577_v4  ;;  %v13953_v58 = vsel %vm1620_vm6, %v5673_v39, %v5675_v12  ;;  %v13956_v62 = vsel %vm2343_vm5, %v5417_v29, %v5497_v0  ;;  %v5564_v29 = vsel %vm1218_vm0, %v5561_v52, %v5563_v14 }
 0x6e1   : > { %9682 = vmatmul.msk.f32.gmra.mxu3 %vm3677_vm8, %v13617_v30  ;;  %9741 = vmatmul.msk.f32.vlgmr.msra.gmra.mxu1 %vm3677_vm8, %v5560_v40  ;;  %v5662_v3 = vsel %vm1620_vm6, %v5659_v8, %v5661_v25  ;;  %v5665_v39 = vrot.slane %v13776_v59, 6  ;;  %v5571_v4 = vrot.slane %v13865_v61, 5  ;;  %v5669_v12 = vrot.slane %v13865_v61, 6 }
 0x6e2   : > { %9751 = vmatmul.msk.f32.vlgmr.msra.gmra.mxu2 %vm3677_vm8, %v5658_v9 }
 0x6e3   : > { %v5666_v32 = vsel %vm1620_vm6, %v5663_v21, %v5665_v39  ;;  %v5668_v22 = vsel %vm1620_vm6, %v5665_v39, %v5667_v37  ;;  %v5572_v0 = vsel %vm1218_vm0, %v5569_v43, %v5571_v4  ;;  %v5574_v40 = vsel %vm1218_vm0, %v5571_v4, %v5573_v57 }
 0x6e4   : > { %v5140_v57 = vrot.slane %v13612_v26, 2 }
 0x6e6   : > { %v5142_v28 = vsel %vm1545_vm3, %v5140_v57, %v5141_v7 }
 0x6e9   : > { %9683 = vmatmul.msk.f32.gmra.mxu3 %vm3677_vm8, %v13631_v17  ;;  %9742 = vmatmul.msk.f32.gmra.mxu1 %vm3677_vm8, %v5562_v31  ;;  %v5565_v17 = vrot.slane %v13745_v47, 5 }
 0x6ea   : > { %9752 = vmatmul.msk.f32.gmra.mxu2 %vm3677_vm8, %v5660_v34 }
 0x6eb   : > { %v5566_v20 = vsel %vm1218_vm0, %v5563_v14, %v5565_v17 }
 0x6f1   : > { %9684 = vmatmul.msk.f32.gmra.mxu3 %vm3677_vm8, %v13661_v13  ;;  %9743 = vmatmul.msk.f32.gmra.mxu1 %vm3677_vm8, %v5564_v29  ;;  %v5567_v13 = vrot.slane %v13776_v59, 5 }
 0x6f2   : > { %9753 = vmatmul.msk.f32.gmra.mxu2 %vm3677_vm8, %v5662_v3 }
 0x6f3   : > { %v5568_v16 = vsel %vm1218_vm0, %v5565_v17, %v5567_v13  ;;  %v5570_v6 = vsel %vm1218_vm0, %v5567_v13, %v5569_v43 }
 0x6f9   : > { %9685 = vmatmul.msk.f32.gmra.mxu3 %vm3677_vm8, %v13689_v53  ;;  %9744 = vmatmul.msk.f32.gmra.mxu1 %vm3677_vm8, %v5566_v20  ;;  %v4948_v53 = vld [vmem:[%s16258_s5 + $0x58] sm:$0xff] }
 0x6fa   : > { %9754 = vmatmul.msk.f32.gmra.mxu2 %vm3677_vm8, %v5664_v10  ;;  %5193 = vmatpush.msrb.mxu3 %v4948_v53 }
 0x6fc   : > { %5194 = vmatpush.msrb.mxu3 %v4947_v60 }
 0x701   : > { %9686 = vmatmul.msk.f32.gmra.mxu3 %vm3677_vm8, %v13717_v1  ;;  %9745 = vmatmul.msk.f32.gmra.mxu1 %vm3677_vm8, %v5568_v16  ;;  %v4946_v1 = vld [vmem:[%s16258_s5 + $0x48] sm:$0xff] }
 0x702   : > { %9755 = vmatmul.msk.f32.gmra.mxu2 %vm3677_vm8, %v5666_v32  ;;  %5195 = vmatpush.msrb.mxu3 %v4946_v1 }
 0x704   : > { %5196 = vmatpush.msrb.mxu3 %v4945_v24 }
 0x709   : > { %9687 = vmatmul.msk.f32.gmra.mxu3 %vm3677_vm8, %v13745_v47  ;;  %9746 = vmatmul.msk.f32.gmra.mxu1 %vm3677_vm8, %v5570_v6  ;;  %v5670_v47 = vsel %vm1620_vm6, %v5667_v37, %v5669_v12 }
 0x70a   : > { %9756 = vmatmul.msk.f32.gmra.mxu2 %vm3677_vm8, %v5668_v22 }
 0x70c   : > { %v14015_v23 = vpop.f32.mrf.mxu3 }
 0x70e   : > { %v14114_v52 = vpop.f32.mrf.mxu1 }
 0x70f   : > { %v14176_v24 = vpop.f32.mrf.mxu0 }
 0x710   : > { %16998 = vst [vmem:[#allocation68_spill] sm:$0xff] %v14176_v24 }
 0x711   : > { %9688 = vmatmul.msk.f32.gmra.mxu3 %vm3677_vm8, %v13776_v59  ;;  %9747 = vmatmul.msk.f32.gmra.mxu1 %vm3677_vm8, %v5572_v0  ;;  %v5672_v59 = vsel %vm1620_vm6, %v5669_v12, %v5671_v49 }
 0x712   : > { %9757 = vmatmul.msk.f32.gmra.mxu2 %vm3677_vm8, %v5670_v47 }
 0x714   : > { %v14025_v56 = vpop.f32.mrf.mxu3 }
 0x717   : > { %v14182_v4 = vpop.f32.mrf.mxu0 }
 0x718   : > { %17001 = vst [vmem:[#allocation22_spill] sm:$0xff] %v14182_v4 }
 0x719   : > { %9689 = vmatmul.msk.f32.gmra.mxu3 %vm3677_vm8, %v13819_v48  ;;  %9748 = vmatmul.msk.f32.gmra.mxu1 %vm3677_vm8, %v5574_v40 }
 0x71a   : > { %9758 = vmatmul.msk.f32.gmra.mxu2 %vm3677_vm8, %v5672_v59 }
 0x71c   : > { %v14037_v9 = vpop.f32.mrf.mxu3 }
 0x71f   : > { %v14188_v40 = vpop.f32.mrf.mxu0 }
 0x720   : > { %17004 = vst [vmem:[#allocation93_spill] sm:$0xff] %v14188_v40 }
 0x721   : > { %9690 = vmatmul.msk.f32.gmra.mxu3 %vm3677_vm8, %v13865_v61  ;;  %9749 = vmatmul.msk.f32.gmra.mxu1 %vm3677_vm8, %v13934_v18 }
 0x722   : > { %9759 = vmatmul.msk.f32.gmra.mxu2 %vm3677_vm8, %v13939_v36 }
 0x724   : > { %v14045_v48 = vpop.f32.mrf.mxu3 }
 0x729   : > { %9691 = vmatmul.msk.f32.vlgmr.msrb.gmra.mxu3 %vm3677_vm8, %v5142_v28  ;;  %9750 = vmatmul.msk.f32.gmra.mxu1 %vm3677_vm8, %v13950_v54 }
 0x72a   : > { %9760 = vmatmul.msk.f32.gmra.mxu2 %vm3677_vm8, %v13953_v58 }
 0x72c   : > { %v14056_v61 = vpop.f32.mrf.mxu3 }
 0x731   : > { %9692 = vmatmul.msk.f32.gmra.mxu3 %vm3677_vm8, %v13646_v35  ;;  %v4964_v35 = vld [vmem:[%s16258_s5 + $0xd8] sm:$0xff] }
 0x732   : > { %5513 = vmatpush.msra.mxu3 %v4964_v35 }
 0x734   : > { %v14060_v49 = vpop.f32.mrf.mxu3 }
 0x739   : > { %9693 = vmatmul.msk.f32.gmra.mxu3 %vm3677_vm8, %v13671_v45 }
 0x73c   : > { %v14064_v26 = vpop.f32.mrf.mxu3 }
 0x741   : > { %9694 = vmatmul.msk.f32.gmra.mxu3 %vm3677_vm8, %v13699_v11  ;;  %v4963_v11 = vld [vmem:[%s16258_s5 + $0xd0] sm:$0xff] }
 0x742   : > { %5514 = vmatpush.msra.mxu3 %v4963_v11  ;;  %v14198_v11 = vpop.f32.mrf.mxu0 }
 0x743   : > { %17009 = vst [vmem:[#allocation88_spill] sm:$0xff] %v14198_v11 }
 0x744   : > { %v14068_v30 = vpop.f32.mrf.mxu3 }
 0x749   : > { %9695 = vmatmul.msk.f32.gmra.mxu3 %vm3677_vm8, %v13727_v38  ;;  %v4962_v38 = vld [vmem:[%s16258_s5 + $0xc8] sm:$0xff] }
 0x74a   : > { %5515 = vmatpush.msra.mxu3 %v4962_v38 }
 0x74c   : > { %v14072_v7 = vpop.f32.mrf.mxu3 }
 0x751   : > { %9696 = vmatmul.msk.f32.gmra.mxu3 %vm3677_vm8, %v13755_v27  ;;  %v4961_v27 = vld [vmem:[%s16258_s5 + $0xc0] sm:$0xff] }
 0x752   : > { %5516 = vmatpush.msra.mxu3 %v4961_v27 }
 0x754   : > { %v14079_v45 = vpop.f32.mrf.mxu3 }
 0x759   : > { %9697 = vmatmul.msk.f32.gmra.mxu3 %vm3677_vm8, %v13792_v50 }
 0x75c   : > { %v14092_v18 = vpop.f32.mrf.mxu3 }
 0x761   : > { %9698 = vmatmul.msk.f32.gmra.mxu3 %vm3677_vm8, %v13841_v33 }
 0x764   : > { %v14096_v36 = vpop.f32.mrf.mxu3 }
 0x769   : > { %9699 = vmatmul.msk.f32.gmra.mxu3 %vm3677_vm8, %v13875_v41  ;;  %v14118_v41 = vpop.f32.mrf.mxu2 }
 0x76a   : > { %16996 = vst [vmem:[#allocation49_spill] sm:$0xff] %v14118_v41 }
 0x76c   : > { %v14100_v54 = vpop.f32.mrf.mxu3 }
 0x771   : > { %9700 = vmatmul.msk.f32.gmra.mxu3 %vm3677_vm8, %v13903_v46  ;;  %v14126_v8 = vpop.f32.mrf.mxu2 }
 0x772   : > { %16997 = vst [vmem:[#allocation26_spill] sm:$0xff] %v14126_v8 }
 0x774   : > { %v14104_v58 = vpop.f32.mrf.mxu3 }
 0x779   : > { %9731 = vmatmul.msk.f32.vlgmr.msra.gmra.mxu3 %vm3677_vm8, %v13682_v55  ;;  %v14124_v55 = vpop.f32.mrf.mxu1 }
 0x77c   : > { %v14108_v50 = vpop.f32.mrf.mxu3 }
 0x781   : > { %9732 = vmatmul.msk.f32.gmra.mxu3 %vm3677_vm8, %v13710_v19  ;;  %v14132_v19 = vpop.f32.mrf.mxu1 }
 0x784   : > { %v14112_v33 = vpop.f32.mrf.mxu3 }
 0x789   : > { %9733 = vmatmul.msk.f32.gmra.mxu3 %vm3677_vm8, %v13738_v5  ;;  %v14134_v5 = vpop.f32.mrf.mxu2 }
 0x78c   : > { %v14120_v46 = vpop.f32.mrf.mxu3 }
 0x791   : > { %9734 = vmatmul.msk.f32.gmra.mxu3 %vm3677_vm8, %v13766_v42  ;;  %v14140_v42 = vpop.f32.mrf.mxu1  ;;  %v14142_v25 = vpop.f32.mrf.mxu2 }
 0x794   : > { %v14128_v31 = vpop.f32.mrf.mxu3 }
 0x799   : > { %9735 = vmatmul.msk.f32.gmra.mxu3 %vm3677_vm8, %v13806_v15  ;;  %v14148_v15 = vpop.f32.mrf.mxu1  ;;  %v14152_v3 = vpop.f32.mrf.mxu2 }
 0x79c   : > { %v5134_v34 = vpop.f32.mrf.mxu3 }
 0x7a1   : > { %9736 = vmatmul.msk.f32.gmra.mxu3 %vm3677_vm8, %v13858_v51  ;;  %v14158_v51 = vpop.f32.mrf.mxu1  ;;  %v14160_v21 = vpop.f32.mrf.mxu2 }
 0x7a4   : > { %v14138_v14 = vpop.f32.mrf.mxu3 }
 0x7a9   : > { %9737 = vmatmul.msk.f32.gmra.mxu3 %vm3677_vm8, %v13886_v2  ;;  %v14166_v2 = vpop.f32.mrf.mxu1 }
 0x7ac   : > { %v14146_v29 = vpop.f32.mrf.mxu3 }
 0x7b1   : > { %9738 = vmatmul.msk.f32.gmra.mxu3 %vm3677_vm8, %v13914_v44  ;;  %v14170_v44 = vpop.f32.mrf.mxu2  ;;  %v5281_v39 = vpop.f32.mrf.mxu1 }
 0x7b4   : > { %v14154_v17 = vpop.f32.mrf.mxu3 }
 0x7b9   : > { %9739 = vmatmul.msk.f32.gmra.mxu3 %vm3677_vm8, %v13926_v63  ;;  %v14172_v16 = vpop.f32.mrf.mxu2  ;;  %v5284_v32 = vpop.f32.mrf.mxu1 }
 0x7bc   : > { %v14162_v20 = vpop.f32.mrf.mxu3 }
 0x7c1   : > { %9740 = vmatmul.msk.f32.gmra.mxu3 %vm3677_vm8, %v13956_v62  ;;  %v5382_v53 = vpop.f32.mrf.mxu2  ;;  %v5287_v60 = vpop.f32.mrf.mxu1 }
 0x7c4   : > { %v14168_v10 = vpop.f32.mrf.mxu3 }
 0x7c9   : > { %v14174_v37 = vpop.f32.mrf.mxu2  ;;  %v14178_v62 = vpop.f32.mrf.mxu1 }
 0x7ca   : > { %16999 = vst [vmem:[#allocation113_spill] sm:$0xff] %v14178_v62  ;;  %v14206_v62 = vpop.f32.mrf.mxu0 }
 0x7cb   : > { %17013 = vst [vmem:[#allocation90_spill] sm:$0xff] %v14206_v62 }
 0x7cc   : > { %v5210_v13 = vpop.f32.mrf.mxu3 }
 0x7d1   : > { %v14180_v22 = vpop.f32.mrf.mxu2  ;;  %v14184_v0 = vpop.f32.mrf.mxu1 }
 0x7d2   : > { %17000 = vst [vmem:[#allocation57_spill] sm:$0xff] %v14180_v22 }
 0x7d3   : > { %17002 = vst [vmem:[#allocation18_spill] sm:$0xff] %v14184_v0 }
 0x7d4   : > { %v5213_v63 = vpop.f32.mrf.mxu3 }
 0x7d9   : > { %v14186_v47 = vpop.f32.mrf.mxu2  ;;  %v14192_v57 = vpop.f32.mrf.mxu1 }
 0x7da   : > { %17003 = vst [vmem:[#allocation46_spill] sm:$0xff] %v14186_v47 }
 0x7db   : > { %17006 = vst [vmem:[#allocation74_spill] sm:$0xff] %v14192_v57  ;;  %v5471_v57 = vpop.f32.mrf.mxu0 }
 0x7dc   : > { %v5216_v43 = vpop.f32.mrf.mxu3 }
 0x7e1   : > { %v14194_v28 = vpop.f32.mrf.mxu2  ;;  %v14200_v38 = vpop.f32.mrf.mxu1 }
 0x7e2   : > { %17007 = vst [vmem:[#allocation14_spill] sm:$0xff] %v14194_v28 }
 0x7e3   : > { %17010 = vst [vmem:[#allocation139_spill] sm:$0xff] %v14200_v38  ;;  %v5474_v38 = vpop.f32.mrf.mxu0 }
 0x7e4   : > { %v5219_v1 = vpop.f32.mrf.mxu3 }
 0x7e9   : > { %v14202_v27 = vpop.f32.mrf.mxu2  ;;  %v14208_v47 = vpop.f32.mrf.mxu1 }
 0x7ea   : > { %17011 = vst [vmem:[#allocation10_spill] sm:$0xff] %v14202_v27 }
 0x7eb   : > { %17014 = vst [vmem:[#allocation118_spill] sm:$0xff] %v14208_v47  ;;  %v5477_v41 = vpop.f32.mrf.mxu0  ;;  %v5135_v47 = vadd.f32 %v5134_v34, %v14072_v7 }
 0x7ec   : > { %v5222_v6 = vpop.f32.mrf.mxu3 }
 0x7f4   : > { %v5225_v12 = vpop.f32.mrf.mxu3 }
 0x7fc   : > { %v14190_v59 = vpop.f32.mrf.mxu3 }
 0x7fd   : > { %17005 = vst [vmem:[#allocation54_spill] sm:$0xff] %v14190_v59  ;;  %v14212_v59 = vpop.f32.mrf.mxu2 }
 0x7fe   : > { %17016 = vst [vmem:[#allocation60_spill] sm:$0xff] %v14212_v59  ;;  %v5132_v59 = vadd.f32 %v14128_v31, %v14068_v30  ;;  %v5123_v30 = vadd.f32 %v14108_v50, %v14056_v61  ;;  %v5114_v50 = vadd.f32 %v14096_v36, %v14025_v56 }
 0x804   : > { %v14196_v35 = vpop.f32.mrf.mxu3 }
 0x805   : > { %17008 = vst [vmem:[#allocation40_spill] sm:$0xff] %v14196_v35  ;;  %v14216_v35 = vpop.f32.mrf.mxu1  ;;  %v14218_v24 = vpop.f32.mrf.mxu2 }
 0x806   : > { %17018 = vst [vmem:[#allocation3_spill] sm:$0xff] %v14216_v35  ;;  %v5129_v35 = vadd.f32 %v14120_v46, %v14064_v26  ;;  %v5120_v26 = vadd.f32 %v14104_v58, %v14045_v48  ;;  %v5232_v46 = vadd.f32 %v5210_v13, %v5123_v30 }
 0x807   : > { %17019 = vst [vmem:[#allocation144_spill] sm:$0xff] %v14218_v24 }
 0x808   : > { %v5234_v62 = vadd.f32 %v5216_v43, %v5129_v35 }
 0x80c   : > { %v14204_v22 = vpop.f32.mrf.mxu3 }
 0x80d   : > { %17012 = vst [vmem:[#allocation37_spill] sm:$0xff] %v14204_v22  ;;  %v14220_v27 = vpop.f32.mrf.mxu1  ;;  %v14222_v22 = vpop.f32.mrf.mxu2 }
 0x80e   : > { %17020 = vst [vmem:[#allocation145_spill] sm:$0xff] %v14220_v27  ;;  %v5126_v27 = vadd.f32 %v14112_v33, %v14060_v49  ;;  %v5117_v49 = vadd.f32 %v14100_v54, %v14037_v9  ;;  %v5111_v9 = vadd.f32 %v14092_v18, %v14015_v23 }
 0x80f   : > { %17021 = vst [vmem:[#allocation138_spill] sm:$0xff] %v14222_v22  ;;  %v5138_v22 = vadd.f32 %v14138_v14, %v14079_v45  ;;  %v5231_v45 = vadd.f32 %v14168_v10, %v5120_v26  ;;  %v17030_v26 = vld [vmem:[#allocation3_spill] sm:$0xff] }
 0x810   : > { %v5233_v31 = vadd.f32 %v5213_v63, %v5126_v27  ;;  %v5230_v48 = vadd.f32 %v14162_v20, %v5117_v49  ;;  %v17031_v49 = vld [vmem:[#allocation22_spill] sm:$0xff] }
 0x811   : > { %v5293_v10 = vadd.f32 %v14140_v42, %v5231_v45 }
 0x812   : > { %v5295_v33 = vadd.f32 %v14158_v51, %v5233_v31  ;;  %v5229_v51 = vadd.f32 %v14154_v17, %v5114_v50  ;;  %v17027_v31 = vld [vmem:[#allocation49_spill] sm:$0xff] }
 0x813   : > { %v5391_v17 = vadd.f32 %v14142_v25, %v5293_v10 }
 0x814   : > { %v14210_v0 = vpop.f32.mrf.mxu3  ;;  %v5291_v18 = vadd.f32 %v14124_v55, %v5229_v51  ;;  %v17024_v55 = vld [vmem:[#allocation88_spill] sm:$0xff]  ;;  %v17037_v51 = vld [vmem:[#allocation139_spill] sm:$0xff] }
 0x815   : > { %17015 = vst [vmem:[#allocation66_spill] sm:$0xff] %v14210_v0  ;;  %v5236_v0 = vadd.f32 %v5222_v6, %v5135_v47  ;;  %v5637_v11 = vpop.f32.mrf.mxu1  ;;  %v14229_v24 = vpop.f32.mrf.mxu2  ;;  %v5237_v6 = vadd.f32 %v5225_v12, %v5138_v22  ;;  %v17022_v22 = vld [vmem:[#allocation90_spill] sm:$0xff] }
 0x816   : > { %v5480_v47 = vpop.f32.mrf.mxu0 }
 0x817   : > { %v5298_v7 = vadd.f32 %v5284_v32, %v5236_v0  ;;  %v5299_v14 = vadd.f32 %v5287_v60, %v5237_v6  ;;  %v5228_v32 = vadd.f32 %v14146_v29, %v5111_v9  ;;  %v17036_v9 = vld [vmem:[#allocation40_spill] sm:$0xff] }
 0x819   : > { %v5397_v20 = vadd.f32 %v14174_v37, %v5299_v14 }
 0x81c   : > { %v14214_v28 = vpop.f32.mrf.mxu3 }
 0x81d   : > { %17017 = vst [vmem:[#allocation85_spill] sm:$0xff] %v14214_v28  ;;  %v5235_v28 = vadd.f32 %v5219_v1, %v5132_v59  ;;  %v5296_v1 = vadd.f32 %v14166_v2, %v5234_v62  ;;  %v5396_v59 = vadd.f32 %v5382_v53, %v5298_v7  ;;  %v5294_v2 = vadd.f32 %v14148_v15, %v5232_v46  ;;  %v5738_v54 = vpop.f32.mrf.mxu2 }
 0x81e   : > { %v5292_v15 = vadd.f32 %v14132_v19, %v5230_v48  ;;  %v5483_v23 = vpop.f32.mrf.mxu0  ;;  %v5290_v62 = vadd.f32 %v14114_v52, %v5228_v32 }
 0x81f   : > { %v5297_v34 = vadd.f32 %v5281_v39, %v5235_v28  ;;  %v5640_v39 = vpop.f32.mrf.mxu1  ;;  %v5394_v13 = vadd.f32 %v14170_v44, %v5296_v1  ;;  %v5494_v63 = vadd.f32 %v5480_v47, %v5396_v59  ;;  %v5392_v44 = vadd.f32 %v14152_v3, %v5294_v2  ;;  %v17023_v28 = vld [vmem:[#allocation26_spill] sm:$0xff] }
 0x820   : > { %v5390_v37 = vadd.f32 %v14134_v5, %v5292_v15  ;;  %v5389_v35 = vadd.f32 %v17023_v28, %v5291_v18  ;;  %v5388_v5 = vadd.f32 %v17027_v31, %v5290_v62  ;;  %v17040_v15 = vld [vmem:[#allocation74_spill] sm:$0xff]  ;;  %v5792_v31 = vld [vmem:[%s16260_s7 + $0x78] sm:$0xff] }
 0x821   : > { %v5395_v61 = vadd.f32 %v14172_v16, %v5297_v34  ;;  %v5393_v16 = vadd.f32 %v14160_v21, %v5295_v33  ;;  %v5492_v53 = vadd.f32 %v5474_v38, %v5394_v13  ;;  %v5490_v19 = vadd.f32 %v17022_v22, %v5392_v44  ;;  %v17028_v34 = vld [vmem:[#allocation93_spill] sm:$0xff]  ;;  %v17035_v13 = vld [vmem:[#allocation68_spill] sm:$0xff]  ;;  %v17045_v22 = vld [vmem:[#allocation14_spill] sm:$0xff] }
 0x822   : > { %v5489_v38 = vadd.f32 %v17024_v55, %v5391_v17  ;;  %v5488_v6 = vadd.f32 %v17028_v34, %v5390_v37  ;;  %v5487_v45 = vadd.f32 %v17031_v49, %v5389_v35  ;;  %v17032_v33 = vld [vmem:[#allocation37_spill] sm:$0xff]  ;;  %v17042_v17 = vld [vmem:[#allocation18_spill] sm:$0xff]  ;;  %v5787_v34 = vld [vmem:[%s16260_s7 + $0x50] sm:$0xff] }
 0x823   : > { %v5493_v56 = vadd.f32 %v5477_v41, %v5395_v61  ;;  %v5491_v42 = vadd.f32 %v5471_v57, %v5393_v16  ;;  %v5495_v41 = vadd.f32 %v5483_v23, %v5397_v20  ;;  %v17033_v61 = vld [vmem:[#allocation118_spill] sm:$0xff]  ;;  %v17044_v37 = vld [vmem:[#allocation113_spill] sm:$0xff] }
 0x824   : > { %v5533_v4 = vpop.f32.mrf.mxu3  ;;  %v17025_v25 = vld [vmem:[#allocation85_spill] sm:$0xff]  ;;  %v5550_v14 = vadd.f32 %v17032_v33, %v5488_v6  ;;  %v17039_v20 = vld [vmem:[#allocation54_spill] sm:$0xff] }
 0x825   : > { %v5553_v12 = vadd.f32 %v5533_v4, %v5491_v42  ;;  %v5552_v57 = vadd.f32 %v17025_v25, %v5490_v19  ;;  %v5741_v52 = vpop.f32.mrf.mxu2  ;;  %v14273_v4 = vld [vmem:[%s16259_s6] ss:$0 sm:$0xff]  ;;  %v17047_v55 = vld [vmem:[#allocation57_spill] sm:$0xff] }
 0x826   : > { %v5648_v44 = vadd.f32 %v17040_v15, %v5550_v14 }
 0x827   : > { %v5651_v46 = vadd.f32 %v17030_v26, %v5553_v12  ;;  %v5650_v50 = vadd.f32 %v17033_v61, %v5552_v57  ;;  %v5777_v61 = vld [vmem:[%s16260_s7] sm:$0xff] }
 0x828   : > { %v5746_v19 = vadd.f32 %v17045_v22, %v5648_v44 }
 0x82a   : > { %v5759_v25 = vadd.f32 %v14273_v4, %v5746_v19 }
 0x82c   : > { %v5536_v40 = vpop.f32.mrf.mxu3 }
 0x82d   : > { %v5554_v60 = vadd.f32 %v5536_v40, %v5492_v53  ;;  %v17026_v40 = vld [vmem:[#allocation145_spill] sm:$0xff]  ;;  %v17041_v53 = vld [vmem:[#allocation60_spill] sm:$0xff] }
 0x82f   : > { %v5652_v27 = vadd.f32 %v17026_v40, %v5554_v60  ;;  %v17043_v60 = vld [vmem:[#allocation10_spill] sm:$0xff] }
 0x830   : > { %v14306_v40 = vld [vmem:[%s16260_s7 + $0x20] sm:$0xff] }
 0x834   : > { %v5539_v8 = vpop.f32.mrf.mxu3 }
 0x835   : > { %v5555_v43 = vadd.f32 %v5539_v8, %v5493_v56  ;;  %v5643_v8 = vpop.f32.mrf.mxu1 }
 0x837   : > { %v5653_v3 = vadd.f32 %v5637_v11, %v5555_v43  ;;  %v17029_v11 = vld [vmem:[#allocation66_spill] sm:$0xff]  ;;  %v5748_v43 = vadd.f32 %v17041_v53, %v5650_v50  ;;  %v5783_v50 = vld [vmem:[%s16260_s7 + $0x30] sm:$0xff] }
 0x838   : > { %v5551_v47 = vadd.f32 %v17029_v11, %v5489_v38  ;;  %v5769_v11 = vmax.f32 %v5759_v25, 0.0  ;;  %v5779_v53 = vld [vmem:[%s16260_s7 + $0x10] sm:$0xff]  ;;  %v6061_v25 = vld [vmem:[%s16261_s8 + $0xf8] sm:$0xff] }
 0x839   : > { %v5751_v1 = vadd.f32 %v14229_v24, %v5653_v3  ;;  %v17038_v24 = vld [vmem:[#allocation144_spill] sm:$0xff]  ;;  %v5761_v12 = vadd.f32 %v14273_v4, %v5748_v43  ;;  %v5785_v43 = vld [vmem:[%s16260_s7 + $0x40] sm:$0xff] }
 0x83a   : > { %v5649_v10 = vadd.f32 %v17037_v51, %v5551_v47  ;;  %v5749_v16 = vadd.f32 %v17038_v24, %v5651_v46  ;;  %v5849_v47 = vrot.slane %v14306_v40, 6  ;;  %v5778_v51 = vld [vmem:[%s16260_s7 + $0x8] sm:$0xff] }
 0x83b   : > { %v5764_v56 = vadd.f32 %v14273_v4, %v5751_v1  ;;  %v5771_v57 = vmax.f32 %v5761_v12, 0.0  ;;  %v5975_v1 = vrot.slane %v5792_v31, 2  ;;  %v6031_v31 = vld [vmem:[%s16261_s8 + $0x8] sm:$0xff] }
 0x83c   : > { %v5542_v58 = vpop.f32.mrf.mxu3 }
 0x83d   : > { %v5556_v36 = vadd.f32 %v5542_v58, %v5494_v63  ;;  %v5486_v63 = vadd.f32 %v17035_v13, %v5388_v5  ;;  %v5774_v62 = vmax.f32 %v5764_v56, 0.0  ;;  %v14323_v5 = vld [vmem:[%s16260_s7 + $0x48] sm:$0xff]  ;;  %v5789_v56 = vld [vmem:[%s16260_s7 + $0x60] sm:$0xff] }
 0x83e   : > { %v5912_v49 = vrot.slane %v14323_v5, 4  ;;  %v5858_v22 = vrot.slane %v14323_v5, 6  ;;  %v6059_v5 = vld [vmem:[%s16261_s8 + $0xe8] sm:$0xff] }
 0x83f   : > { %v5654_v21 = vadd.f32 %v5640_v39, %v5556_v36  ;;  %v17034_v39 = vld [vmem:[#allocation138_spill] sm:$0xff]  ;;  %v5548_v32 = vadd.f32 %v17039_v20, %v5486_v63 }
 0x840   : > { %v5750_v48 = vadd.f32 %v17034_v39, %v5652_v27 }
 0x841   : > { %v5752_v7 = vadd.f32 %v5738_v54, %v5654_v21  ;;  %v5549_v54 = vadd.f32 %v17036_v9, %v5487_v45  ;;  %v5747_v21 = vadd.f32 %v17043_v60, %v5649_v10  ;;  %v5913_v45 = vrot.slane %v5787_v34, 4  ;;  %v5784_v10 = vld [vmem:[%s16260_s7 + $0x38] sm:$0xff]  ;;  %v6067_v34 = vld [vmem:[%s16261_s8 + $0x128] sm:$0xff] }
 0x842   : > { %v5763_v23 = vadd.f32 %v14273_v4, %v5750_v48  ;;  %v5793_v48 = vld [vmem:[%s16260_s7 + $0x80] sm:$0xff] }
 0x843   : > { %v5765_v58 = vadd.f32 %v14273_v4, %v5752_v7  ;;  %v5647_v42 = vadd.f32 %v17042_v17, %v5549_v54  ;;  %v5760_v28 = vadd.f32 %v14273_v4, %v5747_v21  ;;  %v5914_v39 = vsel %vm2343_vm5, %v5912_v49, %v5913_v45  ;;  %v5790_v17 = vld [vmem:[%s16260_s7 + $0x68] sm:$0xff]  ;;  %v6040_v49 = vld [vmem:[%s16261_s8 + $0x50] sm:$0xff] }
 0x844   : > { %v5545_v29 = vpop.f32.mrf.mxu3  ;;  %v5773_v3 = vmax.f32 %v5763_v23, 0.0  ;;  %v5977_v13 = vrot.slane %v5793_v48, 2  ;;  %v5919_v21 = vrot.slane %v5790_v17, 4  ;;  %v6054_v48 = vld [vmem:[%s16261_s8 + $0xc0] sm:$0xff] }
 0x845   : > { %v5557_v0 = vadd.f32 %v5545_v29, %v5495_v41  ;;  %v5775_v18 = vmax.f32 %v5765_v58, 0.0  ;;  %v5762_v41 = vadd.f32 %v14273_v4, %v5749_v16  ;;  %v5646_v29 = vadd.f32 %v17044_v37, %v5548_v32  ;;  %v5788_v58 = vld [vmem:[%s16260_s7 + $0x58] sm:$0xff]  ;;  %v5794_v16 = vld [vmem:[%s16260_s7 + $0x88] sm:$0xff]  ;;  %v6098_v17 = vld [vmem:[%s16261_s8 + $0x220] sm:$0xff] }
 0x846   : > { %v5770_v7 = vmax.f32 %v5760_v28, 0.0  ;;  %v5915_v63 = vrot.slane %v5788_v58, 4  ;;  %v5978_v54 = vsel %vm1545_vm3, %v5975_v1, %v5977_v13  ;;  %v5979_v20 = vrot.slane %v5794_v16, 2  ;;  %v5780_v37 = vld [vmem:[%s16260_s7 + $0x18] sm:$0xff]  ;;  %v6035_v28 = vld [vmem:[%s16261_s8 + $0x28] sm:$0xff]  ;;  %v6062_v58 = vld [vmem:[%s16261_s8 + $0x100] sm:$0xff] }
 0x847   : > { %v5655_v30 = vadd.f32 %v5643_v8, %v5557_v0  ;;  %v17046_v0 = vld [vmem:[#allocation46_spill] sm:$0xff]  ;;  %v5772_v35 = vmax.f32 %v5762_v41, 0.0  ;;  %v5744_v38 = vadd.f32 %v17047_v55, %v5646_v29  ;;  %v5917_v32 = vrot.slane %v5789_v56, 4  ;;  %v6033_v55 = vld [vmem:[%s16261_s8 + $0x18] sm:$0xff]  ;;  %v6052_v56 = vld [vmem:[%s16261_s8 + $0xb0] sm:$0xff] }
 0x848   : > { %v5745_v8 = vadd.f32 %v17046_v0, %v5647_v42  ;;  %v5916_v24 = vsel %vm2343_vm5, %v5913_v45, %v5915_v63  ;;  %v5980_v44 = vsel %vm1545_vm3, %v5977_v13, %v5979_v20  ;;  %v5856_v42 = vrot.slane %v5785_v43, 6  ;;  %v6037_v0 = vld [vmem:[%s16261_s8 + $0x38] sm:$0xff]  ;;  %v6056_v45 = vld [vmem:[%s16261_s8 + $0xd0] sm:$0xff]  ;;  %v6075_v13 = vld [vmem:[%s16261_s8 + $0x168] sm:$0xff] }
 0x849   : > { %v5753_v59 = vadd.f32 %v5741_v52, %v5655_v30  ;;  %v5782_v30 = vld [vmem:[%s16260_s7 + $0x28] sm:$0xff]  ;;  %v14315_v52 = vld [vmem:[%s16260_s7 + $0x70] sm:$0xff]  ;;  %v5757_v6 = vadd.f32 %v14273_v4, %v5744_v38  ;;  %v5918_v23 = vsel %vm2343_vm5, %v5915_v63, %v5917_v32  ;;  %v5920_v29 = vsel %vm2343_vm5, %v5917_v32, %v5919_v21  ;;  %v6045_v38 = vld [vmem:[%s16261_s8 + $0x78] sm:$0xff] }
 0x84a   : > { %v5758_v27 = vadd.f32 %v14273_v4, %v5745_v8  ;;  %v5850_v26 = vrot.slane %v5782_v30, 6  ;;  %v5974_v46 = vrot.slane %v14315_v52, 2  ;;  %v5921_v19 = vrot.slane %v14315_v52, 4  ;;  %v6036_v8 = vld [vmem:[%s16261_s8 + $0x30] sm:$0xff]  ;;  %v6043_v52 = vld [vmem:[%s16261_s8 + $0x68] sm:$0xff]  ;;  %v6074_v63 = vld [vmem:[%s16261_s8 + $0x160] sm:$0xff] }
 0x84b   : > { %v5766_v2 = vadd.f32 %v14273_v4, %v5753_v59  ;;  %v5767_v4 = vmax.f32 %v5757_v6, 0.0  ;;  %v5859_v12 = vsel %vm1620_vm6, %v5856_v42, %v5858_v22  ;;  %v6068_v30 = vld [vmem:[%s16261_s8 + $0x130] sm:$0xff]  ;;  %v6030_v6 = vld [vmem:[%s16261_s8] sm:$0xff]  ;;  %v6101_v16 = vld [vmem:[%s16261_s8 + $0x238] sm:$0xff] }
 0x84c   : > { %v5768_v59 = vmax.f32 %v5758_v27, 0.0  ;;  %v5851_v33 = vsel %vm1620_vm6, %v5849_v47, %v5850_v26  ;;  %v5976_v14 = vsel %vm1545_vm3, %v5974_v46, %v5975_v1  ;;  %v6044_v27 = vld [vmem:[%s16261_s8 + $0x70] sm:$0xff]  ;;  %v6058_v47 = vld [vmem:[%s16261_s8 + $0xe0] sm:$0xff]  ;;  %v6041_v46 = vld [vmem:[%s16261_s8 + $0x58] sm:$0xff] }
 0x84d   : > { %v5776_v36 = vmax.f32 %v5766_v2, 0.0  ;;  %v5852_v2 = vrot.slane %v5783_v50, 6  ;;  %v6057_v1 = vld [vmem:[%s16261_s8 + $0xd8] sm:$0xff]  ;;  %v6100_v32 = vld [vmem:[%s16261_s8 + $0x230] sm:$0xff] }
 0x84e   : > { %v6077_v50 = vld [vmem:[%s16261_s8 + $0x178] sm:$0xff] }
 0x84f   : > { %5818 = vmatpush.msra.mxu0 %v5776_v36  ;;  %5876 = vmatpush.msrb.mxu3 %v5776_v36  ;;  %v5853_v9 = vsel %vm1620_vm6, %v5850_v26, %v5852_v2  ;;  %v6066_v26 = vld [vmem:[%s16261_s8 + $0x120] sm:$0xff] }
 0x850   : > { %5939 = vmatpush.msrb.mxu1 %v5776_v36  ;;  %5999 = vmatpush.msrb.mxu2 %v5776_v36  ;;  %v5854_v36 = vrot.slane %v5784_v10, 6 }
 0x851   : > { %5819 = vmatpush.msra.mxu0 %v5775_v18  ;;  %5877 = vmatpush.msrb.mxu3 %v5775_v18 }
 0x852   : > { %5940 = vmatpush.msrb.mxu1 %v5775_v18  ;;  %6000 = vmatpush.msrb.mxu2 %v5775_v18  ;;  %v5855_v15 = vsel %vm1620_vm6, %v5852_v2, %v5854_v36  ;;  %v5795_v18 = vld [vmem:[%s16260_s7 + $0x90] sm:$0xff]  ;;  %v5857_v41 = vsel %vm1620_vm6, %v5854_v36, %v5856_v42  ;;  %v6071_v36 = vld [vmem:[%s16261_s8 + $0x148] sm:$0xff]  ;;  %v6049_v42 = vld [vmem:[%s16261_s8 + $0x98] sm:$0xff] }
 0x853   : > { %5820 = vmatpush.msra.mxu0 %v5774_v62  ;;  %5878 = vmatpush.msrb.mxu3 %v5774_v62  ;;  %v5981_v60 = vrot.slane %v5795_v18, 2  ;;  %v6076_v2 = vld [vmem:[%s16261_s8 + $0x170] sm:$0xff] }
 0x854   : > { %5941 = vmatpush.msrb.mxu1 %v5774_v62  ;;  %6001 = vmatpush.msrb.mxu2 %v5774_v62 }
 0x855   : > { %5821 = vmatpush.msra.mxu0 %v5773_v3  ;;  %5879 = vmatpush.msrb.mxu3 %v5773_v3  ;;  %v5982_v62 = vsel %vm1545_vm3, %v5979_v20, %v5981_v60  ;;  %v6051_v20 = vld [vmem:[%s16261_s8 + $0xa8] sm:$0xff] }
 0x856   : > { %5942 = vmatpush.msrb.mxu1 %v5773_v3  ;;  %6002 = vmatpush.msrb.mxu2 %v5773_v3  ;;  %v5922_v3 = vsel %vm2343_vm5, %v5919_v21, %v5921_v19  ;;  %v6096_v19 = vld [vmem:[%s16261_s8 + $0x210] sm:$0xff] }
 0x857   : > { %5822 = vmatpush.msra.mxu0 %v5772_v35  ;;  %5880 = vmatpush.msrb.mxu3 %v5772_v35 }
 0x858   : > { %5943 = vmatpush.msrb.mxu1 %v5772_v35  ;;  %6003 = vmatpush.msrb.mxu2 %v5772_v35  ;;  %v6034_v35 = vld [vmem:[%s16261_s8 + $0x20] sm:$0xff] }
 0x859   : > { %5823 = vmatpush.msra.mxu0 %v5771_v57  ;;  %5881 = vmatpush.msrb.mxu3 %v5771_v57 }
 0x85a   : > { %5944 = vmatpush.msrb.mxu1 %v5771_v57  ;;  %6004 = vmatpush.msrb.mxu2 %v5771_v57  ;;  %v6069_v57 = vld [vmem:[%s16261_s8 + $0x138] sm:$0xff] }
 0x85b   : > { %5824 = vmatpush.msra.mxu0 %v5770_v7  ;;  %5882 = vmatpush.msrb.mxu3 %v5770_v7 }
 0x85c   : > { %5945 = vmatpush.msrb.mxu1 %v5770_v7  ;;  %6005 = vmatpush.msrb.mxu2 %v5770_v7  ;;  %v6060_v7 = vld [vmem:[%s16261_s8 + $0xf0] sm:$0xff] }
 0x85d   : > { %5825 = vmatpush.msra.mxu0 %v5769_v11  ;;  %5883 = vmatpush.msrb.mxu3 %v5769_v11 }
 0x85e   : > { %5946 = vmatpush.msrb.mxu1 %v5769_v11  ;;  %6006 = vmatpush.msrb.mxu2 %v5769_v11  ;;  %v6042_v11 = vld [vmem:[%s16261_s8 + $0x60] sm:$0xff] }
 0x85f   : > { %5826 = vmatpush.msra.mxu0 %v5768_v59  ;;  %5884 = vmatpush.msrb.mxu3 %v5768_v59 }
 0x860   : > { %5947 = vmatpush.msrb.mxu1 %v5768_v59  ;;  %6007 = vmatpush.msrb.mxu2 %v5768_v59  ;;  %v6065_v59 = vld [vmem:[%s16261_s8 + $0x118] sm:$0xff] }
 0x861   : > { %5827 = vmatpush.msra.mxu0 %v5767_v4  ;;  %5885 = vmatpush.msrb.mxu3 %v5767_v4 }
 0x862   : > { %5948 = vmatpush.msrb.mxu1 %v5767_v4  ;;  %6008 = vmatpush.msrb.mxu2 %v5767_v4  ;;  %v6064_v4 = vld [vmem:[%s16261_s8 + $0x110] sm:$0xff] }
 0x863   : > { %9766 = vmatmul.msk.f32.vlgmr.msrb.gmra.mxu3 %vm5796_vm9, %v5851_v33  ;;  %9776 = vmatmul.msk.f32.vlgmr.msrb.gmra.mxu2 %vm5796_vm9, %v5976_v14  ;;  %v6039_v33 = vld [vmem:[%s16261_s8 + $0x48] sm:$0xff] }
 0x864   : > { %9761 = vmatmul.msk.f32.vlgmr.msra.gmra.mxu0 %vm5796_vm9, %v5777_v61  ;;  %9771 = vmatmul.msk.f32.vlgmr.msrb.gmra.mxu1 %vm5796_vm9, %v5914_v39  ;;  %v6055_v14 = vld [vmem:[%s16261_s8 + $0xc8] sm:$0xff]  ;;  %v6038_v39 = vld [vmem:[%s16261_s8 + $0x40] sm:$0xff] }
 0x865   : > { %6161 = vmatpush.msra.mxu3 %v6037_v0  ;;  %6129 = vmatpush.msrb.mxu0 %v6045_v38  ;;  %v6063_v61 = vld [vmem:[%s16261_s8 + $0x108] sm:$0xff] }
 0x866   : > { %6242 = vmatpush.msra.mxu1 %v6061_v25  ;;  %6284 = vmatpush.msra.mxu2 %v6069_v57 }
 0x867   : > { %6162 = vmatpush.msra.mxu3 %v6036_v8  ;;  %6130 = vmatpush.msrb.mxu0 %v6044_v27 }
 0x868   : > { %6243 = vmatpush.msra.mxu1 %v6060_v7  ;;  %6285 = vmatpush.msra.mxu2 %v6068_v30 }
 0x869   : > { %6163 = vmatpush.msra.mxu3 %v6035_v28  ;;  %6131 = vmatpush.msrb.mxu0 %v6043_v52 }
 0x86a   : > { %6244 = vmatpush.msra.mxu1 %v6059_v5  ;;  %6286 = vmatpush.msra.mxu2 %v6067_v34 }
 0x86b   : > { %9767 = vmatmul.msk.f32.gmra.mxu3 %vm5796_vm9, %v5853_v9  ;;  %9777 = vmatmul.msk.f32.gmra.mxu2 %vm5796_vm9, %v5978_v54  ;;  %v6073_v9 = vld [vmem:[%s16261_s8 + $0x158] sm:$0xff] }
 0x86c   : > { %9762 = vmatmul.msk.f32.gmra.mxu0 %vm5796_vm9, %v5778_v51  ;;  %9772 = vmatmul.msk.f32.gmra.mxu1 %vm5796_vm9, %v5916_v24  ;;  %v6053_v54 = vld [vmem:[%s16261_s8 + $0xb8] sm:$0xff]  ;;  %v6072_v51 = vld [vmem:[%s16261_s8 + $0x150] sm:$0xff] }
 0x86d   : > { %6164 = vmatpush.msra.mxu3 %v6034_v35  ;;  %6132 = vmatpush.msrb.mxu0 %v6042_v11  ;;  %v6094_v35 = vld [vmem:[%s16261_s8 + $0x200] sm:$0xff] }
 0x86e   : > { %6245 = vmatpush.msra.mxu1 %v6058_v47  ;;  %6287 = vmatpush.msra.mxu2 %v6066_v26 }
 0x86f   : > { %6165 = vmatpush.msra.mxu3 %v6033_v55  ;;  %6133 = vmatpush.msrb.mxu0 %v6041_v46  ;;  %v6093_v46 = vld [vmem:[%s16261_s8 + $0x1f8] sm:$0xff] }
 0x870   : > { %6246 = vmatpush.msra.mxu1 %v6057_v1  ;;  %6288 = vmatpush.msra.mxu2 %v6065_v59  ;;  %v6085_v1 = vld [vmem:[%s16261_s8 + $0x1b8] sm:$0xff]  ;;  %v6084_v59 = vld [vmem:[%s16261_s8 + $0x1b0] sm:$0xff] }
 0x871   : > { %6134 = vmatpush.msrb.mxu0 %v6040_v49 }
 0x872   : > { %6247 = vmatpush.msra.mxu1 %v6056_v45  ;;  %6289 = vmatpush.msra.mxu2 %v6064_v4  ;;  %v6092_v45 = vld [vmem:[%s16261_s8 + $0x1f0] sm:$0xff]  ;;  %v6083_v4 = vld [vmem:[%s16261_s8 + $0x1a8] sm:$0xff] }
 0x873   : > { %9768 = vmatmul.msk.f32.gmra.mxu3 %vm5796_vm9, %v5855_v15  ;;  %9778 = vmatmul.msk.f32.gmra.mxu2 %vm5796_vm9, %v5980_v44  ;;  %v6050_v15 = vld [vmem:[%s16261_s8 + $0xa0] sm:$0xff] }
 0x874   : > { %9763 = vmatmul.msk.f32.gmra.mxu0 %vm5796_vm9, %v5779_v53  ;;  %9773 = vmatmul.msk.f32.gmra.mxu1 %vm5796_vm9, %v5918_v23  ;;  %v6070_v44 = vld [vmem:[%s16261_s8 + $0x140] sm:$0xff]  ;;  %v6099_v53 = vld [vmem:[%s16261_s8 + $0x228] sm:$0xff] }
 0x875   : > { %6135 = vmatpush.msrb.mxu0 %v6039_v33  ;;  %6248 = vmatpush.msra.mxu1 %v6055_v14  ;;  %v6091_v14 = vld [vmem:[%s16261_s8 + $0x1e8] sm:$0xff] }
 0x876   : > { %6290 = vmatpush.msra.mxu2 %v6063_v61 }
 0x877   : > { %6136 = vmatpush.msrb.mxu0 %v6038_v39  ;;  %6249 = vmatpush.msra.mxu1 %v6054_v48 }
 0x878   : > { %6291 = vmatpush.msra.mxu2 %v6062_v58 }
 0x879   : > { %6315 = vmatpush.msrb.mxu1 %v6077_v50  ;;  %6200 = vmatpush.msra.mxu0 %v6053_v54 }
 0x87a   : > { %6433 = vmatpush.msrb.mxu2 %v6101_v16  ;;  %v6081_v16 = vld [vmem:[%s16261_s8 + $0x198] sm:$0xff] }
 0x87b   : > { %9769 = vmatmul.msk.f32.gmra.mxu3 %vm5796_vm9, %v5857_v41  ;;  %9779 = vmatmul.msk.f32.gmra.mxu2 %vm5796_vm9, %v5982_v62  ;;  %v6097_v62 = vld [vmem:[%s16261_s8 + $0x218] sm:$0xff] }
 0x87c   : > { %9764 = vmatmul.msk.f32.gmra.mxu0 %vm5796_vm9, %v5780_v37  ;;  %9774 = vmatmul.msk.f32.gmra.mxu1 %vm5796_vm9, %v5920_v29  ;;  %v6047_v29 = vld [vmem:[%s16261_s8 + $0x88] sm:$0xff] }
 0x87d   : > { %6316 = vmatpush.msrb.mxu1 %v6076_v2  ;;  %6201 = vmatpush.msra.mxu0 %v6052_v56  ;;  %v6080_v56 = vld [vmem:[%s16261_s8 + $0x190] sm:$0xff] }
 0x87e   : > { %6434 = vmatpush.msrb.mxu2 %v6100_v32  ;;  %v6079_v32 = vld [vmem:[%s16261_s8 + $0x188] sm:$0xff] }
 0x87f   : > { %6317 = vmatpush.msrb.mxu1 %v6075_v13  ;;  %6202 = vmatpush.msra.mxu0 %v6051_v20  ;;  %v6089_v20 = vld [vmem:[%s16261_s8 + $0x1d8] sm:$0xff] }
 0x880   : > { %6435 = vmatpush.msrb.mxu2 %v6099_v53  ;;  %v6078_v53 = vld [vmem:[%s16261_s8 + $0x180] sm:$0xff] }
 0x881   : > { %6318 = vmatpush.msrb.mxu1 %v6074_v63  ;;  %6203 = vmatpush.msra.mxu0 %v6050_v15 }
 0x882   : > { %6436 = vmatpush.msrb.mxu2 %v6098_v17  ;;  %v6087_v17 = vld [vmem:[%s16261_s8 + $0x1c8] sm:$0xff] }
 0x883   : > { %9770 = vmatmul.msk.f32.gmra.mxu3 %vm5796_vm9, %v5859_v12  ;;  %9780 = vmatmul.msk.f32.gmra.mxu2 %vm5796_vm9, %v5981_v60  ;;  %v6048_v60 = vld [vmem:[%s16261_s8 + $0x90] sm:$0xff]  ;;  %v6046_v12 = vld [vmem:[%s16261_s8 + $0x80] sm:$0xff] }
 0x884   : > { %9765 = vmatmul.msk.f32.gmra.mxu0 %vm5796_vm9, %v14306_v40  ;;  %9775 = vmatmul.msk.f32.gmra.mxu1 %vm5796_vm9, %v5922_v3  ;;  %v6032_v40 = vld [vmem:[%s16261_s8 + $0x10] sm:$0xff]  ;;  %v6095_v3 = vld [vmem:[%s16261_s8 + $0x208] sm:$0xff] }
 0x885   : > { %6166 = vmatpush.msra.mxu3 %v6032_v40  ;;  %6319 = vmatpush.msrb.mxu1 %v6073_v9 }
 0x886   : > { %6204 = vmatpush.msra.mxu0 %v6049_v42  ;;  %6437 = vmatpush.msrb.mxu2 %v6097_v62 }
 0x887   : > { %6167 = vmatpush.msra.mxu3 %v6031_v31  ;;  %6320 = vmatpush.msrb.mxu1 %v6072_v51 }
 0x888   : > { %6205 = vmatpush.msra.mxu0 %v6048_v60  ;;  %6438 = vmatpush.msrb.mxu2 %v6096_v19 }
 0x889   : > { %6168 = vmatpush.msra.mxu3 %v6030_v6  ;;  %6321 = vmatpush.msrb.mxu1 %v6071_v36 }
 0x88a   : > { %6206 = vmatpush.msra.mxu0 %v6047_v29  ;;  %6439 = vmatpush.msrb.mxu2 %v6095_v3 }
 0x88b   : > { %10027 = vmatpush.msrb.mxu3 %v6077_v50  ;;  %6322 = vmatpush.msrb.mxu1 %v6070_v44  ;;  %v6082_v50 = vld [vmem:[%s16261_s8 + $0x1a0] sm:$0xff] }
 0x88c   : > { %6207 = vmatpush.msra.mxu0 %v6046_v12  ;;  %6440 = vmatpush.msrb.mxu2 %v6094_v35 }
 0x88d   : > { %10028 = vmatpush.msrb.mxu3 %v6076_v2 }
 0x88f   : > { %10029 = vmatpush.msrb.mxu3 %v6075_v13 }
 0x891   : > { %10030 = vmatpush.msrb.mxu3 %v6074_v63 }
 0x893   : > { %10031 = vmatpush.msrb.mxu3 %v6073_v9 }
 0x895   : > { %10032 = vmatpush.msrb.mxu3 %v6072_v51 }
 0x897   : > { %10033 = vmatpush.msrb.mxu3 %v6071_v36 }
 0x899   : > { %10034 = vmatpush.msrb.mxu3 %v6070_v44  ;;  %v6088_v44 = vld [vmem:[%s16261_s8 + $0x1d0] sm:$0xff] }
 0x8e1   : > { %v5829_v10 = vpop.f32.mrf.mxu0  ;;  %v5950_v24 = vpop.f32.mrf.mxu1 }
 0x8e6   : > { %v5887_v43 = vpop.f32.mrf.mxu3  ;;  %v6010_v23 = vpop.f32.mrf.mxu2 }
 0x8e7   : > { %v5902_v18 = vmax.f32 %v5829_v10, %v5887_v43  ;;  %v6090_v10 = vld [vmem:[%s16261_s8 + $0x1e0] sm:$0xff] }
 0x8e9   : > { %v5965_v21 = vmax.f32 %v5902_v18, %v5950_v24  ;;  %v5832_v41 = vpop.f32.mrf.mxu0  ;;  %v5953_v37 = vpop.f32.mrf.mxu1 }
 0x8eb   : > { %v14564_v22 = vmax.f32 %v5965_v21, %v6010_v23 }
 0x8ed   : > { %9784 = vmatmul.msk.f32.vlgmr.msra.gmra.mxu3 %vm6114_vm10, %v14564_v22  ;;  %v6107_v40 = vrot.slane %v14564_v22, 1  ;;  %v6221_v27 = vrot.slane %v14564_v22, 6  ;;  %v6263_v52 = vrot.slane %v14564_v22, 7 }
 0x8ee   : > { %v5890_v0 = vpop.f32.mrf.mxu3  ;;  %v6013_v8 = vpop.f32.mrf.mxu2 }
 0x8ef   : > { %v5903_v28 = vmax.f32 %v5832_v41, %v5890_v0  ;;  %v6086_v41 = vld [vmem:[%s16261_s8 + $0x1c0] sm:$0xff] }
 0x8f1   : > { %v5966_v55 = vmax.f32 %v5903_v28, %v5953_v37  ;;  %v5835_v38 = vpop.f32.mrf.mxu0  ;;  %v5956_v57 = vpop.f32.mrf.mxu1  ;;  %v6179_v37 = vrot.slane %v14564_v22, 2 }
 0x8f3   : > { %v14580_v25 = vmax.f32 %v5966_v55, %v6013_v8 }
 0x8f5   : > { %v6108_v7 = vrot.slane %v14580_v25, 1  ;;  %v6222_v30 = vrot.slane %v14580_v25, 6  ;;  %v6264_v31 = vrot.slane %v14580_v25, 7  ;;  %9785 = vmatmul.msk.f32.gmra.mxu3 %vm6114_vm10, %v14580_v25  ;;  %v6180_v62 = vrot.slane %v14580_v25, 2 }
 0x8f6   : > { %v5893_v5 = vpop.f32.mrf.mxu3  ;;  %v6016_v34 = vpop.f32.mrf.mxu2 }
 0x8f7   : > { %v5904_v6 = vmax.f32 %v5835_v38, %v5893_v5  ;;  %v6109_v11 = vsel %vm1069_vm2, %v6107_v40, %v6108_v7  ;;  %v6223_v47 = vsel %vm1620_vm6, %v6221_v27, %v6222_v30  ;;  %v6265_v26 = vsel %vm2418_vm7, %v6263_v52, %v6264_v31 }
 0x8f8   : > { %9781 = vmatmul.msk.f32.vlgmr.msrb.gmra.mxu0 %vm6114_vm10, %v6109_v11  ;;  %9790 = vmatmul.msk.f32.vlgmr.msra.gmra.mxu1 %vm6114_vm10, %v6223_v47  ;;  %v6181_v12 = vsel %vm1545_vm3, %v6179_v37, %v6180_v62  ;;  %v6379_v27 = vrot.slane %v14580_v25, 5 }
 0x8f9   : > { %v5967_v49 = vmax.f32 %v5904_v6, %v5956_v57  ;;  %9793 = vmatmul.msk.f32.vlgmr.msra.gmra.mxu2 %vm6114_vm10, %v6265_v26  ;;  %6358 = vmatpush.msrb.mxu0 %v6085_v1  ;;  %v5838_v61 = vpop.f32.mrf.mxu0  ;;  %v5959_v13 = vpop.f32.mrf.mxu1 }
 0x8fa   : > { %6400 = vmatpush.msra.mxu1 %v6093_v46 }
 0x8fb   : > { %v14611_v33 = vmax.f32 %v5967_v49, %v6016_v34  ;;  %6359 = vmatpush.msrb.mxu0 %v6084_v59  ;;  %v6337_v34 = vrot.slane %v14580_v25, 4 }
 0x8fc   : > { %6401 = vmatpush.msra.mxu1 %v6092_v45 }
 0x8fd   : > { %v6110_v39 = vrot.slane %v14611_v33, 1  ;;  %v6224_v48 = vrot.slane %v14611_v33, 6  ;;  %v6266_v58 = vrot.slane %v14611_v33, 7  ;;  %6360 = vmatpush.msrb.mxu0 %v6083_v4  ;;  %9786 = vmatmul.msk.f32.gmra.mxu3 %vm6114_vm10, %v14611_v33  ;;  %v6182_v8 = vrot.slane %v14611_v33, 2 }
 0x8fe   : > { %v5896_v2 = vpop.f32.mrf.mxu3  ;;  %6402 = vmatpush.msra.mxu1 %v6091_v14  ;;  %v6019_v24 = vpop.f32.mrf.mxu2  ;;  %v6380_v57 = vrot.slane %v14611_v33, 5 }
 0x8ff   : > { %v5905_v63 = vmax.f32 %v5838_v61, %v5896_v2  ;;  %v6111_v9 = vsel %vm1069_vm2, %v6108_v7, %v6110_v39  ;;  %v6225_v54 = vsel %vm1620_vm6, %v6222_v30, %v6224_v48  ;;  %v6267_v51 = vsel %vm2418_vm7, %v6264_v31, %v6266_v58  ;;  %6361 = vmatpush.msrb.mxu0 %v6082_v50 }
 0x900   : > { %9782 = vmatmul.msk.f32.gmra.mxu0 %vm6114_vm10, %v6111_v9  ;;  %9791 = vmatmul.msk.f32.gmra.mxu1 %vm6114_vm10, %v6225_v54  ;;  %v6183_v55 = vsel %vm1545_vm3, %v6180_v62, %v6182_v8  ;;  %v6381_v30 = vsel %vm1218_vm0, %v6379_v27, %v6380_v57  ;;  %v6338_v31 = vrot.slane %v14611_v33, 4 }
 0x901   : > { %v5968_v36 = vmax.f32 %v5905_v63, %v5959_v13  ;;  %9794 = vmatmul.msk.f32.gmra.mxu2 %vm6114_vm10, %v6267_v51  ;;  %6362 = vmatpush.msrb.mxu0 %v6081_v16  ;;  %v5841_v29 = vpop.f32.mrf.mxu0  ;;  %v5962_v0 = vpop.f32.mrf.mxu1 }
 0x902   : > { %6403 = vmatpush.msra.mxu1 %v6090_v10  ;;  %v6339_v6 = vsel %vm2343_vm5, %v6337_v34, %v6338_v31 }
 0x903   : > { %v14645_v15 = vmax.f32 %v5968_v36, %v6019_v24  ;;  %6363 = vmatpush.msrb.mxu0 %v6080_v56 }
 0x904   : > { %6404 = vmatpush.msra.mxu1 %v6089_v20 }
 0x905   : > { %v6112_v43 = vrot.slane %v14645_v15, 1  ;;  %v6226_v23 = vrot.slane %v14645_v15, 6  ;;  %v6268_v18 = vrot.slane %v14645_v15, 7  ;;  %6364 = vmatpush.msrb.mxu0 %v6079_v32  ;;  %9798 = vmatmul.msk.f32.vlgmr.msrb.gmra.mxu3 %vm6114_vm10, %v14645_v15  ;;  %v6184_v38 = vrot.slane %v14645_v15, 2 }
 0x906   : > { %6405 = vmatpush.msra.mxu1 %v6088_v44  ;;  %v5899_v19 = vpop.f32.mrf.mxu3  ;;  %v6022_v35 = vpop.f32.mrf.mxu2  ;;  %v6382_v5 = vrot.slane %v14645_v15, 5  ;;  %v6340_v26 = vrot.slane %v14645_v15, 4 }
 0x907   : > { %v6113_v42 = vsel %vm1069_vm2, %v6110_v39, %v6112_v43  ;;  %v6227_v60 = vsel %vm1620_vm6, %v6224_v48, %v6226_v23  ;;  %v6269_v21 = vsel %vm2418_vm7, %v6266_v58, %v6268_v18  ;;  %6365 = vmatpush.msrb.mxu0 %v6078_v53  ;;  %v5906_v3 = vmax.f32 %v5841_v29, %v5899_v19 }
 0x908   : > { %9783 = vmatmul.msk.f32.gmra.mxu0 %vm6114_vm10, %v6113_v42  ;;  %9792 = vmatmul.msk.f32.gmra.mxu1 %vm6114_vm10, %v6227_v60  ;;  %v6185_v7 = vsel %vm1545_vm3, %v6182_v8, %v6184_v38  ;;  %v6383_v11 = vsel %vm1218_vm0, %v6380_v57, %v6382_v5  ;;  %v6341_v46 = vsel %vm2343_vm5, %v6338_v31, %v6340_v26 }
 0x909   : > { %9795 = vmatmul.msk.f32.gmra.mxu2 %vm6114_vm10, %v6269_v21  ;;  %6406 = vmatpush.msra.mxu1 %v6087_v17  ;;  %v5969_v28 = vmax.f32 %v5906_v3, %v5962_v0 }
 0x90b   : > { %6407 = vmatpush.msra.mxu1 %v6086_v41  ;;  %v6029_v22 = vmax.f32 %v5969_v28, %v6022_v35 }
 0x90d   : > { %v6421_v40 = vrot.slane %v6029_v22, 6  ;;  %v6384_v47 = vrot.slane %v6029_v22, 5 }
 0x90f   : > { %v6422_v52 = vsel %vm1620_vm6, %v6226_v23, %v6421_v40  ;;  %v6385_v1 = vsel %vm1218_vm0, %v6382_v5, %v6384_v47 }
 0x910   : > { %9787 = vmatmul.msk.f32.vlgmr.msra.gmra.mxu0 %vm6114_vm10, %v6181_v12  ;;  %9796 = vmatmul.msk.f32.vlgmr.msrb.gmra.mxu1 %vm6114_vm10, %v14580_v25  ;;  %v6342_v25 = vrot.slane %v6029_v22, 4 }
 0x911   : > { %9805 = vmatmul.msk.f32.vlgmr.msrb.gmra.mxu2 %vm6114_vm10, %v6225_v54 }
 0x912   : > { %v6343_v59 = vsel %vm2343_vm5, %v6340_v26, %v6342_v25  ;;  %v6463_v26 = vld [vmem:[%s16263_s10] sm:$0xff] }
 0x913   : > { %v6489_v25 = vrot.slane %v6463_v26, 4 }
 0x918   : > { %9788 = vmatmul.msk.f32.gmra.mxu0 %vm6114_vm10, %v6183_v55  ;;  %9797 = vmatmul.msk.f32.gmra.mxu1 %vm6114_vm10, %v14611_v33 }
 0x919   : > { %9806 = vmatmul.msk.f32.gmra.mxu2 %vm6114_vm10, %v6227_v60 }
 0x920   : > { %9789 = vmatmul.msk.f32.gmra.mxu0 %vm6114_vm10, %v6185_v7  ;;  %9802 = vmatmul.msk.f32.vlgmr.msra.gmra.mxu1 %vm6114_vm10, %v6381_v30  ;;  %v10045_v7 = vld [vmem:[%s16262_s9] ss:$0 sm:$0xff] }
 0x921   : > { %9807 = vmatmul.msk.f32.gmra.mxu2 %vm6114_vm10, %v6422_v52 }
 0x928   : > { %9799 = vmatmul.msk.f32.vlgmr.msrb.gmra.mxu0 %vm6114_vm10, %v6339_v6  ;;  %9803 = vmatmul.msk.f32.gmra.mxu1 %vm6114_vm10, %v6383_v11  ;;  %v6464_v11 = vld [vmem:[%s16263_s10 + $0x8] sm:$0xff] }
 0x930   : > { %9800 = vmatmul.msk.f32.gmra.mxu0 %vm6114_vm10, %v6341_v46  ;;  %9804 = vmatmul.msk.f32.gmra.mxu1 %vm6114_vm10, %v6385_v1  ;;  %v6537_v46 = vrot.slane %v6464_v11, 4  ;;  %v6592_v1 = vld [vmem:[%s16264_s11 + $0xf8] sm:$0xff] }
 0x938   : > { %9801 = vmatmul.msk.f32.gmra.mxu0 %vm6114_vm10, %v6343_v59  ;;  %v6591_v59 = vld [vmem:[%s16264_s11 + $0xf0] sm:$0xff] }
 0x970   : > { %v6170_v58 = vpop.f32.mrf.mxu3 }
 0x975   : > { %v6138_v49 = vpop.f32.mrf.mxu0  ;;  %v6251_v45 = vpop.f32.mrf.mxu1 }
 0x976   : > { %v6171_v24 = vadd.f32 %v6170_v58, %v6138_v49  ;;  %v6590_v49 = vld [vmem:[%s16264_s11 + $0xe8] sm:$0xff]  ;;  %v6607_v58 = vld [vmem:[%s16264_s11 + $0x170] sm:$0xff] }
 0x978   : > { %v6173_v9 = vpop.f32.mrf.mxu3 }
 0x97c   : > { %v6293_v50 = vpop.f32.mrf.mxu2 }
 0x97d   : > { %v6141_v4 = vpop.f32.mrf.mxu0  ;;  %v6254_v33 = vpop.f32.mrf.mxu1 }
 0x97e   : > { %v6174_v10 = vadd.f32 %v6173_v9, %v6141_v4  ;;  %v6588_v4 = vld [vmem:[%s16264_s11 + $0xd8] sm:$0xff]  ;;  %v6605_v9 = vld [vmem:[%s16264_s11 + $0x160] sm:$0xff] }
 0x980   : > { %v6176_v20 = vpop.f32.mrf.mxu3 }
 0x984   : > { %v6296_v2 = vpop.f32.mrf.mxu2 }
 0x985   : > { %v6144_v14 = vpop.f32.mrf.mxu0  ;;  %v6257_v61 = vpop.f32.mrf.mxu1 }
 0x986   : > { %v6177_v53 = vadd.f32 %v6176_v20, %v6144_v14  ;;  %v6586_v14 = vld [vmem:[%s16264_s11 + $0xc8] sm:$0xff]  ;;  %v6601_v20 = vld [vmem:[%s16264_s11 + $0x140] sm:$0xff] }
 0x988   : > { %v6330_v3 = vpop.f32.mrf.mxu3 }
 0x98c   : > { %v6299_v54 = vpop.f32.mrf.mxu2 }
 0x98d   : > { %v6209_v39 = vpop.f32.mrf.mxu0  ;;  %v6324_v48 = vpop.f32.mrf.mxu1 }
 0x98e   : > { %v6218_v36 = vadd.f32 %v6209_v39, %v6171_v24  ;;  %v6608_v39 = vld [vmem:[%s16264_s11 + $0x178] sm:$0xff]  ;;  %v6603_v24 = vld [vmem:[%s16264_s11 + $0x150] sm:$0xff] }
 0x990   : > { %v6260_v43 = vadd.f32 %v6251_v45, %v6218_v36  ;;  %v6589_v45 = vld [vmem:[%s16264_s11 + $0xe0] sm:$0xff] }
 0x991   : > { %v6569_v36 = vld [vmem:[%s16264_s11 + $0x40] sm:$0xff] }
 0x992   : > { %v6302_v17 = vadd.f32 %v6293_v50, %v6260_v43  ;;  %v6576_v50 = vld [vmem:[%s16264_s11 + $0x78] sm:$0xff]  ;;  %v6582_v43 = vld [vmem:[%s16264_s11 + $0xa8] sm:$0xff] }
 0x993   : > { %6634 = vmatpush.msra.mxu2 %v6576_v50  ;;  %v6615_v50 = vld [vmem:[%s16264_s11 + $0x1b0] sm:$0xff] }
 0x994   : > { %v6442_v15 = vpop.f32.mrf.mxu2  ;;  %v6333_v37 = vadd.f32 %v6324_v48, %v6302_v17  ;;  %v6575_v48 = vld [vmem:[%s16264_s11 + $0x70] sm:$0xff]  ;;  %v6581_v17 = vld [vmem:[%s16264_s11 + $0xa0] sm:$0xff] }
 0x995   : > { %v6212_v13 = vpop.f32.mrf.mxu0  ;;  %v6327_v63 = vpop.f32.mrf.mxu1  ;;  %6635 = vmatpush.msra.mxu2 %v6575_v48  ;;  %v6613_v48 = vld [vmem:[%s16264_s11 + $0x1a0] sm:$0xff] }
 0x996   : > { %v6219_v16 = vadd.f32 %v6212_v13, %v6174_v10  ;;  %v6606_v13 = vld [vmem:[%s16264_s11 + $0x168] sm:$0xff]  ;;  %v6571_v10 = vld [vmem:[%s16264_s11 + $0x50] sm:$0xff] }
 0x998   : > { %v6261_v44 = vadd.f32 %v6254_v33, %v6219_v16  ;;  %v6587_v33 = vld [vmem:[%s16264_s11 + $0xd0] sm:$0xff]  ;;  %v6570_v16 = vld [vmem:[%s16264_s11 + $0x48] sm:$0xff] }
 0x99a   : > { %v6303_v18 = vadd.f32 %v6296_v2, %v6261_v44  ;;  %v6574_v2 = vld [vmem:[%s16264_s11 + $0x68] sm:$0xff]  ;;  %v6568_v44 = vld [vmem:[%s16264_s11 + $0x38] sm:$0xff] }
 0x99b   : > { %6636 = vmatpush.msra.mxu2 %v6574_v2  ;;  %v6631_v2 = vld [vmem:[%s16266_s13 + $0x28] sm:$0xff] }
 0x99c   : > { %v6334_v41 = vadd.f32 %v6327_v63, %v6303_v18  ;;  %v6445_v62 = vpop.f32.mrf.mxu2  ;;  %v6573_v63 = vld [vmem:[%s16264_s11 + $0x60] sm:$0xff]  ;;  %v6599_v18 = vld [vmem:[%s16264_s11 + $0x130] sm:$0xff] }
 0x99d   : > { %v6215_v51 = vpop.f32.mrf.mxu0  ;;  %v6409_v56 = vpop.f32.mrf.mxu1  ;;  %6637 = vmatpush.msra.mxu2 %v6573_v63  ;;  %v6610_v63 = vld [vmem:[%s16264_s11 + $0x188] sm:$0xff] }
 0x99e   : > { %v6220_v23 = vadd.f32 %v6215_v51, %v6177_v53  ;;  %v6604_v51 = vld [vmem:[%s16264_s11 + $0x158] sm:$0xff] }
 0x99f   : > { %v6600_v53 = vld [vmem:[%s16264_s11 + $0x138] sm:$0xff] }
 0x9a0   : > { %v6262_v42 = vadd.f32 %v6257_v61, %v6220_v23  ;;  %v6585_v61 = vld [vmem:[%s16264_s11 + $0xc0] sm:$0xff]  ;;  %v6567_v23 = vld [vmem:[%s16264_s11 + $0x30] sm:$0xff] }
 0x9a2   : > { %v6304_v19 = vadd.f32 %v6299_v54, %v6262_v42  ;;  %v6572_v54 = vld [vmem:[%s16264_s11 + $0x58] sm:$0xff]  ;;  %v6566_v42 = vld [vmem:[%s16264_s11 + $0x28] sm:$0xff] }
 0x9a3   : > { %6638 = vmatpush.msra.mxu2 %v6572_v54  ;;  %v6877_v54 = vld [vmem:[%s16267_s14 + $0xb8] sm:$0xff] }
 0x9a4   : > { %v6335_v8 = vadd.f32 %v6330_v3, %v6304_v19  ;;  %v6448_v40 = vpop.f32.mrf.mxu2  ;;  %v6579_v19 = vld [vmem:[%s16264_s11 + $0x90] sm:$0xff] }
 0x9a5   : > { %v6367_v32 = vpop.f32.mrf.mxu0  ;;  %v6412_v21 = vpop.f32.mrf.mxu1  ;;  %6639 = vmatpush.msra.mxu2 %v6571_v10  ;;  %v6595_v3 = vld [vmem:[%s16264_s11 + $0x110] sm:$0xff] }
 0x9a6   : > { %v6376_v12 = vadd.f32 %v6367_v32, %v6333_v37  ;;  %v6584_v32 = vld [vmem:[%s16264_s11 + $0xb8] sm:$0xff] }
 0x9a7   : > { %6640 = vmatpush.msra.mxu2 %v6570_v16  ;;  %v6564_v37 = vld [vmem:[%s16264_s11 + $0x18] sm:$0xff]  ;;  %v6874_v16 = vld [vmem:[%s16267_s14 + $0xa0] sm:$0xff] }
 0x9a8   : > { %v6418_v35 = vadd.f32 %v6409_v56, %v6376_v12  ;;  %v6602_v56 = vld [vmem:[%s16264_s11 + $0x148] sm:$0xff]  ;;  %v6563_v12 = vld [vmem:[%s16264_s11 + $0x10] sm:$0xff] }
 0x9a9   : > { %6641 = vmatpush.msra.mxu2 %v6569_v36  ;;  %v6632_v36 = vld [vmem:[%s16266_s13 + $0x30] sm:$0xff] }
 0x9aa   : > { %v6451_v27 = vadd.f32 %v6442_v15, %v6418_v35  ;;  %v6583_v15 = vld [vmem:[%s16264_s11 + $0xb0] sm:$0xff]  ;;  %v6594_v35 = vld [vmem:[%s16264_s11 + $0x108] sm:$0xff] }
 0x9ab   : > { %6642 = vmatpush.msra.mxu2 %v6568_v44  ;;  %v6869_v44 = vld [vmem:[%s16267_s14 + $0x78] sm:$0xff] }
 0x9ac   : > { %v6457_v5 = vadd.f32 %v10045_v7, %v6451_v27 }
 0x9ad   : > { %v6370_v60 = vpop.f32.mrf.mxu0  ;;  %v6415_v22 = vpop.f32.mrf.mxu1  ;;  %6643 = vmatpush.msra.mxu2 %v6567_v23  ;;  %v6859_v23 = vld [vmem:[%s16267_s14 + $0x28] sm:$0xff] }
 0x9ae   : > { %v6377_v29 = vadd.f32 %v6370_v60, %v6334_v41  ;;  %v6460_v47 = vmax.f32 %v6457_v5, 0.0  ;;  %v6598_v60 = vld [vmem:[%s16264_s11 + $0x128] sm:$0xff]  ;;  %v6597_v41 = vld [vmem:[%s16264_s11 + $0x120] sm:$0xff] }
 0x9af   : > { %6644 = vmatpush.msra.mxu2 %v6566_v42  ;;  %v6626_v5 = vld [vmem:[%s16266_s13] sm:$0xff] }
 0x9b0   : > { %v6419_v0 = vadd.f32 %v6412_v21, %v6377_v29  ;;  %v6565_v21 = vld [vmem:[%s16264_s11 + $0x20] sm:$0xff]  ;;  %v6596_v29 = vld [vmem:[%s16264_s11 + $0x118] sm:$0xff] }
 0x9b1   : > { %6645 = vmatpush.msra.mxu2 %v6565_v21  ;;  %v6866_v42 = vld [vmem:[%s16267_s14 + $0x60] sm:$0xff]  ;;  %v6857_v21 = vld [vmem:[%s16267_s14 + $0x18] sm:$0xff] }
 0x9b2   : > { %v6452_v38 = vadd.f32 %v6445_v62, %v6419_v0  ;;  %v6580_v62 = vld [vmem:[%s16264_s11 + $0x98] sm:$0xff]  ;;  %v6578_v0 = vld [vmem:[%s16264_s11 + $0x88] sm:$0xff] }
 0x9b3   : > { %6646 = vmatpush.msra.mxu2 %v6564_v37  ;;  %v6856_v37 = vld [vmem:[%s16267_s14 + $0x10] sm:$0xff] }
 0x9b4   : > { %v6458_v52 = vadd.f32 %v10045_v7, %v6452_v38 }
 0x9b5   : > { %v6373_v28 = vpop.f32.mrf.mxu0  ;;  %6647 = vmatpush.msra.mxu2 %v6563_v12  ;;  %v6870_v12 = vld [vmem:[%s16267_s14 + $0x80] sm:$0xff] }
 0x9b6   : > { %v6378_v55 = vadd.f32 %v6373_v28, %v6335_v8  ;;  %v6461_v6 = vmax.f32 %v6458_v52, 0.0  ;;  %v6577_v8 = vld [vmem:[%s16264_s11 + $0x80] sm:$0xff]  ;;  %v6562_v28 = vld [vmem:[%s16264_s11 + $0x8] sm:$0xff] }
 0x9b7   : > { %6648 = vmatpush.msra.mxu2 %v6562_v28  ;;  %v6854_v28 = vld [vmem:[%s16267_s14] sm:$0xff] }
 0x9b8   : > { %v6420_v57 = vadd.f32 %v6415_v22, %v6378_v55  ;;  %v6561_v55 = vld [vmem:[%s16264_s11] sm:$0xff] }
 0x9b9   : > { %v6593_v22 = vld [vmem:[%s16264_s11 + $0x100] sm:$0xff]  ;;  %6649 = vmatpush.msra.mxu2 %v6561_v55  ;;  %v6885_v55 = vld [vmem:[%s16267_s14 + $0xf8] sm:$0xff] }
 0x9ba   : > { %v6453_v30 = vadd.f32 %v6448_v40, %v6420_v57 }
 0x9bc   : > { %v6459_v31 = vadd.f32 %v10045_v7, %v6453_v30 }
 0x9be   : > { %v6462_v34 = vmax.f32 %v6459_v31, 0.0  ;;  %v6624_v31 = vld [vmem:[%s16264_s11 + $0x1f8] sm:$0xff] }
 0x9c0   : > { %6482 = vmatpush.msra.mxu3 %v6462_v34  ;;  %6529 = vmatpush.msra.mxu0 %v6462_v34 }
 0x9c1   : > { %6553 = vmatpush.msrb.mxu1 %v6462_v34 }
 0x9c2   : > { %6483 = vmatpush.msra.mxu3 %v6461_v6  ;;  %6530 = vmatpush.msra.mxu0 %v6461_v6 }
 0x9c3   : > { %6554 = vmatpush.msrb.mxu1 %v6461_v6 }
 0x9c4   : > { %6484 = vmatpush.msra.mxu3 %v6460_v47  ;;  %6531 = vmatpush.msra.mxu0 %v6460_v47 }
 0x9c5   : > { %9808 = vmatmul.msk.f32.vlgmr.msra.gmra.mxu3 %vm6465_vm11, %v6463_v26  ;;  %9810 = vmatmul.msk.f32.vlgmr.msra.gmra.mxu0 %vm6465_vm11, %v6464_v11 }
 0x9c6   : > { %6505 = vmatpush.msrb.mxu3 %v6462_v34  ;;  %6555 = vmatpush.msrb.mxu1 %v6460_v47 }
 0x9c7   : > { %9811 = vmatmul.msk.f32.vlgmr.msrb.gmra.mxu1 %vm6465_vm11, %v6537_v46  ;;  %6739 = vmatpush.msrb.mxu0 %v6608_v39  ;;  %v6622_v46 = vld [vmem:[%s16264_s11 + $0x1e8] sm:$0xff] }
 0x9c8   : > { %6506 = vmatpush.msrb.mxu3 %v6461_v6  ;;  %v6628_v6 = vld [vmem:[%s16266_s13 + $0x10] sm:$0xff]  ;;  %v6614_v39 = vld [vmem:[%s16264_s11 + $0x1a8] sm:$0xff] }
 0x9c9   : > { %6740 = vmatpush.msrb.mxu0 %v6607_v58  ;;  %v6612_v58 = vld [vmem:[%s16264_s11 + $0x198] sm:$0xff] }
 0x9ca   : > { %6507 = vmatpush.msrb.mxu3 %v6460_v47  ;;  %v6623_v47 = vld [vmem:[%s16264_s11 + $0x1f0] sm:$0xff] }
 0x9cb   : > { %6741 = vmatpush.msrb.mxu0 %v6606_v13  ;;  %v6611_v13 = vld [vmem:[%s16264_s11 + $0x190] sm:$0xff] }
 0x9cc   : > { %6654 = vmatpush.msra.mxu3 %v6592_v1  ;;  %v6621_v1 = vld [vmem:[%s16264_s11 + $0x1e0] sm:$0xff] }
 0x9cd   : > { %9809 = vmatmul.msk.f32.vlgmr.msrb.gmra.mxu3 %vm6465_vm11, %v6489_v25  ;;  %6742 = vmatpush.msrb.mxu0 %v6605_v9  ;;  %v6620_v25 = vld [vmem:[%s16264_s11 + $0x1d8] sm:$0xff]  ;;  %v6609_v9 = vld [vmem:[%s16264_s11 + $0x180] sm:$0xff] }
 0x9ce   : > { %6655 = vmatpush.msra.mxu3 %v6591_v59  ;;  %v6627_v59 = vld [vmem:[%s16266_s13 + $0x8] sm:$0xff] }
 0x9cf   : > { %6743 = vmatpush.msrb.mxu0 %v6604_v51  ;;  %v6876_v51 = vld [vmem:[%s16267_s14 + $0xb0] sm:$0xff] }
 0x9d0   : > { %6656 = vmatpush.msra.mxu3 %v6590_v49  ;;  %v6629_v49 = vld [vmem:[%s16266_s13 + $0x18] sm:$0xff] }
 0x9d1   : > { %6744 = vmatpush.msrb.mxu0 %v6603_v24  ;;  %v6875_v24 = vld [vmem:[%s16267_s14 + $0xa8] sm:$0xff] }
 0x9d2   : > { %6657 = vmatpush.msra.mxu3 %v6589_v45  ;;  %v6619_v45 = vld [vmem:[%s16264_s11 + $0x1d0] sm:$0xff] }
 0x9d3   : > { %6745 = vmatpush.msrb.mxu0 %v6602_v56 }
 0x9d4   : > { %6658 = vmatpush.msra.mxu3 %v6588_v4  ;;  %v6618_v4 = vld [vmem:[%s16264_s11 + $0x1c8] sm:$0xff] }
 0x9d5   : > { %6746 = vmatpush.msrb.mxu0 %v6601_v20 }
 0x9d6   : > { %6659 = vmatpush.msra.mxu3 %v6587_v33  ;;  %v6617_v33 = vld [vmem:[%s16264_s11 + $0x1c0] sm:$0xff] }
 0x9d7   : > { %6747 = vmatpush.msrb.mxu0 %v6600_v53  ;;  %v6860_v53 = vld [vmem:[%s16267_s14 + $0x30] sm:$0xff] }
 0x9d8   : > { %6660 = vmatpush.msra.mxu3 %v6586_v14  ;;  %v6616_v14 = vld [vmem:[%s16264_s11 + $0x1b8] sm:$0xff] }
 0x9d9   : > { %6748 = vmatpush.msrb.mxu0 %v6599_v18  ;;  %v6867_v18 = vld [vmem:[%s16267_s14 + $0x68] sm:$0xff] }
 0x9da   : > { %6661 = vmatpush.msra.mxu3 %v6585_v61  ;;  %v6630_v61 = vld [vmem:[%s16266_s13 + $0x20] sm:$0xff] }
 0x9db   : > { %6749 = vmatpush.msrb.mxu0 %v6598_v60  ;;  %v6873_v60 = vld [vmem:[%s16267_s14 + $0x98] sm:$0xff] }
 0x9dc   : > { %6662 = vmatpush.msra.mxu3 %v6584_v32  ;;  %v6633_v32 = vld [vmem:[%s16266_s13 + $0x38] sm:$0xff] }
 0x9dd   : > { %6750 = vmatpush.msrb.mxu0 %v6597_v41  ;;  %v6865_v41 = vld [vmem:[%s16267_s14 + $0x58] sm:$0xff] }
 0x9de   : > { %6663 = vmatpush.msra.mxu3 %v6583_v15  ;;  %v6861_v15 = vld [vmem:[%s16267_s14 + $0x38] sm:$0xff] }
 0x9df   : > { %6751 = vmatpush.msrb.mxu0 %v6596_v29  ;;  %v6864_v29 = vld [vmem:[%s16267_s14 + $0x50] sm:$0xff] }
 0x9e0   : > { %6664 = vmatpush.msra.mxu3 %v6582_v43  ;;  %v6868_v43 = vld [vmem:[%s16267_s14 + $0x70] sm:$0xff] }
 0x9e1   : > { %6752 = vmatpush.msrb.mxu0 %v6595_v3  ;;  %v6855_v3 = vld [vmem:[%s16267_s14 + $0x8] sm:$0xff] }
 0x9e2   : > { %6665 = vmatpush.msra.mxu3 %v6581_v17  ;;  %v6858_v17 = vld [vmem:[%s16267_s14 + $0x20] sm:$0xff] }
 0x9e3   : > { %6753 = vmatpush.msrb.mxu0 %v6594_v35  ;;  %v6862_v35 = vld [vmem:[%s16267_s14 + $0x40] sm:$0xff] }
 0x9e4   : > { %6666 = vmatpush.msra.mxu3 %v6580_v62  ;;  %v6872_v62 = vld [vmem:[%s16267_s14 + $0x90] sm:$0xff] }
 0x9e5   : > { %6754 = vmatpush.msrb.mxu0 %v6593_v22  ;;  %v6884_v22 = vld [vmem:[%s16267_s14 + $0xf0] sm:$0xff] }
 0x9e6   : > { %6667 = vmatpush.msra.mxu3 %v6579_v19  ;;  %v6871_v19 = vld [vmem:[%s16267_s14 + $0x88] sm:$0xff] }
 0x9e8   : > { %6668 = vmatpush.msra.mxu3 %v6578_v0 }
 0x9ea   : > { %6669 = vmatpush.msra.mxu3 %v6577_v8  ;;  %v6863_v8 = vld [vmem:[%s16267_s14 + $0x48] sm:$0xff] }
 0xa42   : > { %v6533_v40 = vpop.f32.mrf.mxu0 }
 0xa44   : > { %v6557_v7 = vpop.f32.mrf.mxu1 }
 0xa48   : > { %v6486_v38 = vpop.f32.mrf.mxu3 }
 0xa50   : > { %v6509_v57 = vpop.f32.mrf.mxu3 }
 0xa51   : > { %v6512_v27 = vmax.f32 %v6486_v38, %v6509_v57  ;;  %v6883_v38 = vld [vmem:[%s16267_s14 + $0xe8] sm:$0xff]  ;;  %v6882_v57 = vld [vmem:[%s16267_s14 + $0xe0] sm:$0xff] }
 0xa53   : > { %v6536_v30 = vmax.f32 %v6512_v27, %v6533_v40  ;;  %v6881_v40 = vld [vmem:[%s16267_s14 + $0xd8] sm:$0xff] }
 0xa55   : > { %v6560_v52 = vmax.f32 %v6536_v30, %v6557_v7  ;;  %v6880_v7 = vld [vmem:[%s16267_s14 + $0xd0] sm:$0xff]  ;;  %v6879_v30 = vld [vmem:[%s16267_s14 + $0xc8] sm:$0xff] }
 0xa57   : > { %6670 = vmatmul.f32.vlgmr.msra.gmra.mxu3 %v6560_v52  ;;  %6650 = vmatmul.f32.vlgmr.msra.gmra.mxu2 %v6560_v52 }
 0xa58   : > { %6755 = vmatmul.f32.vlgmr.msrb.gmra.mxu0 %v6560_v52 }
 0xad5   : > { %v6756_v26 = vpop.f32.mrf.mxu0 }
 0xada   : > { %v6671_v34 = vpop.f32.mrf.mxu3  ;;  %v6651_v11 = vpop.f32.mrf.mxu2 }
 0xadb   : > { %9812 = vmatpush.msk.msrb.mxu2 %vm2343_vm5, %v6671_v34  ;;  %9815 = vmatpush.msk.msra.mxu1 %vm2343_vm5, %v6651_v11 }
 0xadc   : > { %9816 = vmatmul.msk.f32.vlgmr.msra.gmra.mxu1 %vm6674_vm12, %v6626_v5  ;;  %9813 = vmatmul.msk.f32.vlgmr.msrb.gmra.mxu2 %vm6674_vm12, %v6628_v6  ;;  %v10046_v6 = vld [vmem:[%s16265_s12] ss:$0 sm:$0xff] }
 0xadd   : > { %6793 = vmatpush.msra.mxu2 %v6624_v31  ;;  %9818 = vmatpush.msk.msrb.mxu1 %vm2343_vm5, %v6756_v26 }
 0xadf   : > { %6794 = vmatpush.msra.mxu2 %v6623_v47  ;;  %6933 = vmatpush.msra.mxu1 %v6861_v15  ;;  %v6912_v15 = vld [vmem:[%s16269_s16 + $0xc8] sm:$0xff] }
 0xae1   : > { %6795 = vmatpush.msra.mxu2 %v6622_v46  ;;  %6934 = vmatpush.msra.mxu1 %v6860_v53  ;;  %v6898_v53 = vld [vmem:[%s16269_s16 + $0x58] sm:$0xff] }
 0xae3   : > { %6796 = vmatpush.msra.mxu2 %v6621_v1  ;;  %6935 = vmatpush.msra.mxu1 %v6859_v23  ;;  %v6913_v23 = vld [vmem:[%s16269_s16 + $0xd0] sm:$0xff] }
 0xae4   : > { %9817 = vmatmul.msk.f32.gmra.mxu1 %vm6674_vm12, %v6627_v59  ;;  %9814 = vmatmul.msk.f32.gmra.mxu2 %vm6674_vm12, %v6629_v49 }
 0xae5   : > { %6797 = vmatpush.msra.mxu2 %v6620_v25  ;;  %6936 = vmatpush.msra.mxu1 %v6858_v17  ;;  %v6899_v17 = vld [vmem:[%s16269_s16 + $0x60] sm:$0xff] }
 0xae7   : > { %6798 = vmatpush.msra.mxu2 %v6619_v45  ;;  %6937 = vmatpush.msra.mxu1 %v6857_v21  ;;  %v6908_v21 = vld [vmem:[%s16269_s16 + $0xa8] sm:$0xff] }
 0xae9   : > { %6799 = vmatpush.msra.mxu2 %v6618_v4  ;;  %6938 = vmatpush.msra.mxu1 %v6856_v37  ;;  %v6915_v37 = vld [vmem:[%s16269_s16 + $0xe0] sm:$0xff] }
 0xaeb   : > { %6800 = vmatpush.msra.mxu2 %v6617_v33  ;;  %6939 = vmatpush.msra.mxu1 %v6855_v3  ;;  %v6916_v3 = vld [vmem:[%s16269_s16 + $0xe8] sm:$0xff] }
 0xaec   : > { %9819 = vmatmul.msk.f32.vlgmr.msrb.gmra.mxu1 %vm6674_vm12, %v6630_v61 }
 0xaed   : > { %6801 = vmatpush.msra.mxu2 %v6616_v14  ;;  %6940 = vmatpush.msra.mxu1 %v6854_v28  ;;  %v6917_v28 = vld [vmem:[%s16269_s16 + $0xf0] sm:$0xff] }
 0xaef   : > { %6802 = vmatpush.msra.mxu2 %v6615_v50 }
 0xaf1   : > { %6803 = vmatpush.msra.mxu2 %v6614_v39 }
 0xaf3   : > { %6804 = vmatpush.msra.mxu2 %v6613_v48  ;;  %v6887_v48 = vld [vmem:[%s16269_s16] sm:$0xff] }
 0xaf4   : > { %9820 = vmatmul.msk.f32.gmra.mxu1 %vm6674_vm12, %v6631_v2 }
 0xaf5   : > { %6805 = vmatpush.msra.mxu2 %v6612_v58 }
 0xaf7   : > { %6806 = vmatpush.msra.mxu2 %v6611_v13  ;;  %v6903_v13 = vld [vmem:[%s16269_s16 + $0x80] sm:$0xff] }
 0xaf9   : > { %6807 = vmatpush.msra.mxu2 %v6610_v63  ;;  %v6895_v63 = vld [vmem:[%s16269_s16 + $0x40] sm:$0xff] }
 0xafb   : > { %6808 = vmatpush.msra.mxu2 %v6609_v9  ;;  %v6888_v9 = vld [vmem:[%s16269_s16 + $0x8] sm:$0xff] }
 0xafc   : > { %6809 = vmatmul.f32.vlgmr.msra.gmra.mxu2 %v6560_v52  ;;  %v6878_v52 = vld [vmem:[%s16267_s14 + $0xc0] sm:$0xff] }
 0xafd   : > { %7110 = vmatpush.msrb.mxu2 %v6877_v54 }
 0xaff   : > { %7111 = vmatpush.msrb.mxu2 %v6876_v51  ;;  %v6904_v51 = vld [vmem:[%s16269_s16 + $0x88] sm:$0xff] }
 0xb01   : > { %7112 = vmatpush.msrb.mxu2 %v6875_v24  ;;  %v6889_v24 = vld [vmem:[%s16269_s16 + $0x10] sm:$0xff] }
 0xb03   : > { %7113 = vmatpush.msrb.mxu2 %v6874_v16 }
 0xb05   : > { %7114 = vmatpush.msrb.mxu2 %v6873_v60  ;;  %v6914_v60 = vld [vmem:[%s16269_s16 + $0xd8] sm:$0xff] }
 0xb07   : > { %7115 = vmatpush.msrb.mxu2 %v6872_v62  ;;  %v6893_v62 = vld [vmem:[%s16269_s16 + $0x30] sm:$0xff] }
 0xb09   : > { %7116 = vmatpush.msrb.mxu2 %v6871_v19  ;;  %v6901_v19 = vld [vmem:[%s16269_s16 + $0x70] sm:$0xff] }
 0xb0b   : > { %7117 = vmatpush.msrb.mxu2 %v6870_v12  ;;  %v6894_v12 = vld [vmem:[%s16269_s16 + $0x38] sm:$0xff] }
 0xb0d   : > { %7206 = vmatpush.msra.mxu2 %v6885_v55  ;;  %v7316_v55 = vld [vmem:[%s16270_s17 + $0x18] sm:$0xff] }
 0xb0f   : > { %7207 = vmatpush.msra.mxu2 %v6884_v22  ;;  %v7320_v22 = vld [vmem:[%s16270_s17 + $0x38] sm:$0xff] }
 0xb11   : > { %7208 = vmatpush.msra.mxu2 %v6883_v38  ;;  %v7315_v38 = vld [vmem:[%s16270_s17 + $0x10] sm:$0xff] }
 0xb13   : > { %7209 = vmatpush.msra.mxu2 %v6882_v57  ;;  %v7319_v57 = vld [vmem:[%s16270_s17 + $0x30] sm:$0xff] }
 0xb15   : > { %7210 = vmatpush.msra.mxu2 %v6881_v40  ;;  %v7314_v40 = vld [vmem:[%s16270_s17 + $0x8] sm:$0xff] }
 0xb17   : > { %7211 = vmatpush.msra.mxu2 %v6880_v7  ;;  %v7318_v7 = vld [vmem:[%s16270_s17 + $0x28] sm:$0xff] }
 0xb19   : > { %7212 = vmatpush.msra.mxu2 %v6879_v30 }
 0xb1b   : > { %7213 = vmatpush.msra.mxu2 %v6878_v52  ;;  %v7317_v52 = vld [vmem:[%s16270_s17 + $0x20] sm:$0xff] }
 0xb59   : > { %v6733_v0 = vpop.f32.mrf.mxu1 }
 0xb5f   : > { %v14944_v10 = vpop.f32.mrf.mxu2 }
 0xb60   : > { %v6734_v5 = vadd.f32 %v6733_v0, %v14944_v10  ;;  %v6896_v10 = vld [vmem:[%s16269_s16 + $0x48] sm:$0xff]  ;;  %v6910_v0 = vld [vmem:[%s16269_s16 + $0xb8] sm:$0xff] }
 0xb61   : > { %v6736_v27 = vpop.f32.mrf.mxu1 }
 0xb67   : > { %v14952_v56 = vpop.f32.mrf.mxu2 }
 0xb68   : > { %v6737_v26 = vadd.f32 %v6736_v27, %v14952_v56  ;;  %v6911_v56 = vld [vmem:[%s16269_s16 + $0xc0] sm:$0xff] }
 0xb69   : > { %v6785_v31 = vpop.f32.mrf.mxu1  ;;  %v7313_v27 = vld [vmem:[%s16270_s17] sm:$0xff] }
 0xb6a   : > { %v6791_v34 = vadd.f32 %v6785_v31, %v6734_v5 }
 0xb71   : > { %v6788_v1 = vpop.f32.mrf.mxu1 }
 0xb72   : > { %v6792_v59 = vadd.f32 %v6788_v1, %v6737_v26 }
 0xb7f   : > { %v6810_v20 = vpop.f32.mrf.mxu2 }
 0xb80   : > { %9821 = vmatpush.msk.msrb.mxu3 %vm2343_vm5, %v6810_v20  ;;  %v6897_v20 = vld [vmem:[%s16269_s16 + $0x50] sm:$0xff] }
 0xb81   : > { %9822 = vmatmul.msk.f32.vlgmr.msrb.gmra.mxu3 %vm6674_vm12, %v6632_v36  ;;  %v6905_v36 = vld [vmem:[%s16269_s16 + $0x90] sm:$0xff] }
 0xb82   : > { %6956 = vmatpush.msra.mxu3 %v6869_v44  ;;  %v6906_v44 = vld [vmem:[%s16269_s16 + $0x98] sm:$0xff] }
 0xb84   : > { %6957 = vmatpush.msra.mxu3 %v6868_v43  ;;  %v6891_v43 = vld [vmem:[%s16269_s16 + $0x20] sm:$0xff] }
 0xb86   : > { %6958 = vmatpush.msra.mxu3 %v6867_v18  ;;  %v6907_v18 = vld [vmem:[%s16269_s16 + $0xa0] sm:$0xff] }
 0xb88   : > { %6959 = vmatpush.msra.mxu3 %v6866_v42  ;;  %v6892_v42 = vld [vmem:[%s16269_s16 + $0x28] sm:$0xff] }
 0xb89   : > { %9823 = vmatmul.msk.f32.gmra.mxu3 %vm6674_vm12, %v6633_v32  ;;  %v6890_v32 = vld [vmem:[%s16269_s16 + $0x18] sm:$0xff] }
 0xb8a   : > { %6960 = vmatpush.msra.mxu3 %v6865_v41  ;;  %v6900_v41 = vld [vmem:[%s16269_s16 + $0x68] sm:$0xff] }
 0xb8c   : > { %6961 = vmatpush.msra.mxu3 %v6864_v29  ;;  %v6909_v29 = vld [vmem:[%s16269_s16 + $0xb0] sm:$0xff] }
 0xb8e   : > { %6962 = vmatpush.msra.mxu3 %v6863_v8  ;;  %v6902_v8 = vld [vmem:[%s16269_s16 + $0x78] sm:$0xff] }
 0xb90   : > { %6963 = vmatpush.msra.mxu3 %v6862_v35  ;;  %v6918_v35 = vld [vmem:[%s16269_s16 + $0xf8] sm:$0xff] }
 0xc04   : > { %v6839_v11 = vpop.f32.mrf.mxu3 }
 0xc05   : > { %v6845_v47 = vadd.f32 %v6839_v11, %v6791_v34 }
 0xc07   : > { %v6850_v46 = vadd.f32 %v10046_v6, %v6845_v47 }
 0xc09   : > { %v6852_v25 = vmax.f32 %v6850_v46, 0.0 }
 0xc0b   : > { %9844 = vmatmul.msk.f32.vlgmr.msrb.gmra.mxu2 %vm6114_vm10, %v6852_v25  ;;  %9824 = vmatmul.msk.f32.vlgmr.msra.gmra.mxu1 %vm6114_vm10, %v6852_v25 }
 0xc0c   : > { %v6842_v49 = vpop.f32.mrf.mxu3  ;;  %9826 = vmatmul.msk.f32.vlgmr.msra.gmra.mxu3 %vm6114_vm10, %v6852_v25 }
 0xc0d   : > { %v6846_v45 = vadd.f32 %v6842_v49, %v6792_v59 }
 0xc0f   : > { %v6851_v4 = vadd.f32 %v10046_v6, %v6846_v45 }
 0xc11   : > { %v6853_v33 = vmax.f32 %v6851_v4, 0.0 }
 0xc13   : > { %9845 = vmatmul.msk.f32.gmra.mxu2 %vm6114_vm10, %v6853_v33  ;;  %9825 = vmatmul.msk.f32.gmra.mxu1 %vm6114_vm10, %v6853_v33 }
 0xc14   : > { %9827 = vmatmul.msk.f32.gmra.mxu3 %vm6114_vm10, %v6853_v33 }
 0xc1b   : > { %9854 = vmatmul.msk.f32.vlgmr.msra.gmra.mxu2 %vm6114_vm10, %v6852_v25  ;;  %v15215_v25 = vld [vmem:[%s16268_s15] ss:$0 sm:$0xff] }
 0xc23   : > { %9855 = vmatmul.msk.f32.gmra.mxu2 %vm6114_vm10, %v6853_v33 }
 0xc88   : > { %v6942_v14 = vpop.f32.mrf.mxu1 }
 0xc8e   : > { %v7119_v61 = vpop.f32.mrf.mxu2 }
 0xc8f   : > { %v6965_v50 = vpop.f32.mrf.mxu3 }
 0xc90   : > { %v6945_v39 = vpop.f32.mrf.mxu1 }
 0xc91   : > { %7075 = vmatpush.msrb.mxu1 %v6945_v39 }
 0xc93   : > { %7076 = vmatpush.msrb.mxu1 %v6942_v14 }
 0xc94   : > { %9836 = vmatmul.msk.f32.vlgmr.msrb.gmra.mxu1 %vm6971_vm13, %v6887_v48 }
 0xc95   : > { %7535 = vmatpush.msra.mxu1 %v7320_v22 }
 0xc96   : > { %v7122_v58 = vpop.f32.mrf.mxu2 }
 0xc97   : > { %v6968_v2 = vpop.f32.mrf.mxu3  ;;  %7163 = vmatpush.msrb.mxu3 %v7122_v58  ;;  %7536 = vmatpush.msra.mxu1 %v7319_v57 }
 0xc98   : > { %7010 = vmatpush.msra.mxu0 %v6968_v2 }
 0xc99   : > { %7164 = vmatpush.msrb.mxu3 %v7119_v61  ;;  %7537 = vmatpush.msra.mxu1 %v7318_v7 }
 0xc9a   : > { %7011 = vmatpush.msra.mxu0 %v6965_v50  ;;  %9846 = vmatmul.msk.f32.vlgmr.msrb.gmra.mxu3 %vm6971_vm13, %v6903_v13 }
 0xc9b   : > { %9828 = vmatmul.msk.f32.vlgmr.msra.gmra.mxu0 %vm6971_vm13, %v6895_v63  ;;  %7538 = vmatpush.msra.mxu1 %v7317_v52 }
 0xc9c   : > { %9837 = vmatmul.msk.f32.gmra.mxu1 %vm6971_vm13, %v6888_v9  ;;  %7494 = vmatpush.msrb.mxu0 %v7316_v55 }
 0xc9e   : > { %v7215_v54 = vpop.f32.mrf.mxu2  ;;  %7495 = vmatpush.msrb.mxu0 %v7315_v38 }
 0xca0   : > { %7496 = vmatpush.msrb.mxu0 %v7314_v40 }
 0xca2   : > { %9847 = vmatmul.msk.f32.gmra.mxu3 %vm6971_vm13, %v6904_v51  ;;  %7497 = vmatpush.msrb.mxu0 %v7313_v27 }
 0xca3   : > { %9829 = vmatmul.msk.f32.gmra.mxu0 %vm6971_vm13, %v6896_v10 }
 0xca4   : > { %9838 = vmatmul.msk.f32.gmra.mxu1 %vm6971_vm13, %v6889_v24 }
 0xca6   : > { %v7218_v16 = vpop.f32.mrf.mxu2 }
 0xca7   : > { %7259 = vmatpush.msrb.mxu2 %v7218_v16 }
 0xca9   : > { %7260 = vmatpush.msrb.mxu2 %v7215_v54 }
 0xcaa   : > { %9856 = vmatmul.msk.f32.vlgmr.msrb.gmra.mxu2 %vm6971_vm13, %v6911_v56  ;;  %9848 = vmatmul.msk.f32.gmra.mxu3 %vm6971_vm13, %v6905_v36 }
 0xcab   : > { %9830 = vmatmul.msk.f32.gmra.mxu0 %vm6971_vm13, %v6897_v20 }
 0xcac   : > { %9839 = vmatmul.msk.f32.gmra.mxu1 %vm6971_vm13, %v6890_v32 }
 0xcb2   : > { %9857 = vmatmul.msk.f32.gmra.mxu2 %vm6971_vm13, %v6912_v15  ;;  %9849 = vmatmul.msk.f32.gmra.mxu3 %vm6971_vm13, %v6906_v44 }
 0xcb3   : > { %9831 = vmatmul.msk.f32.gmra.mxu0 %vm6971_vm13, %v6898_v53 }
 0xcb4   : > { %9840 = vmatmul.msk.f32.gmra.mxu1 %vm6971_vm13, %v6891_v43 }
 0xcba   : > { %9858 = vmatmul.msk.f32.gmra.mxu2 %vm6971_vm13, %v6913_v23  ;;  %9850 = vmatmul.msk.f32.gmra.mxu3 %vm6971_vm13, %v6907_v18 }
 0xcbb   : > { %9832 = vmatmul.msk.f32.gmra.mxu0 %vm6971_vm13, %v6899_v17 }
 0xcbc   : > { %9841 = vmatmul.msk.f32.gmra.mxu1 %vm6971_vm13, %v6892_v42 }
 0xcc2   : > { %9859 = vmatmul.msk.f32.gmra.mxu2 %vm6971_vm13, %v6914_v60  ;;  %9851 = vmatmul.msk.f32.gmra.mxu3 %vm6971_vm13, %v6908_v21 }
 0xcc3   : > { %9833 = vmatmul.msk.f32.gmra.mxu0 %vm6971_vm13, %v6900_v41  ;;  %v7324_v41 = vld [vmem:[%s16270_s17 + $0x58] sm:$0xff] }
 0xcc4   : > { %9842 = vmatmul.msk.f32.gmra.mxu1 %vm6971_vm13, %v6893_v62  ;;  %v7323_v62 = vld [vmem:[%s16270_s17 + $0x50] sm:$0xff]  ;;  %7994 = vmatpush.msra.mxu0 %v7324_v41  ;;  %v7362_v41 = vld [vmem:[%s16272_s19 + $0x100] sm:$0xff] }
 0xcc6   : > { %7995 = vmatpush.msra.mxu0 %v7323_v62  ;;  %v7330_v62 = vld [vmem:[%s16272_s19] sm:$0xff] }
 0xcca   : > { %9860 = vmatmul.msk.f32.gmra.mxu2 %vm6971_vm13, %v6915_v37  ;;  %9852 = vmatmul.msk.f32.gmra.mxu3 %vm6971_vm13, %v6909_v29 }
 0xccb   : > { %9834 = vmatmul.msk.f32.gmra.mxu0 %vm6971_vm13, %v6901_v19 }
 0xccc   : > { %9843 = vmatmul.msk.f32.gmra.mxu1 %vm6971_vm13, %v6894_v12  ;;  %v7322_v12 = vld [vmem:[%s16270_s17 + $0x48] sm:$0xff] }
 0xccd   : > { %7996 = vmatpush.msra.mxu0 %v7322_v12  ;;  %v7394_v12 = vld [vmem:[%s16272_s19 + $0x200] sm:$0xff] }
 0xcd2   : > { %9861 = vmatmul.msk.f32.gmra.mxu2 %vm6971_vm13, %v6916_v3  ;;  %9853 = vmatmul.msk.f32.gmra.mxu3 %vm6971_vm13, %v6910_v0  ;;  %v7321_v0 = vld [vmem:[%s16270_s17 + $0x40] sm:$0xff] }
 0xcd3   : > { %9835 = vmatmul.msk.f32.gmra.mxu0 %vm6971_vm13, %v6902_v8 }
 0xcd4   : > { %7997 = vmatpush.msra.mxu0 %v7321_v0  ;;  %v7364_v0 = vld [vmem:[%s16272_s19 + $0x110] sm:$0xff] }
 0xcda   : > { %9862 = vmatmul.msk.f32.gmra.mxu2 %vm6971_vm13, %v6917_v28 }
 0xce2   : > { %9863 = vmatmul.msk.f32.gmra.mxu2 %vm6971_vm13, %v6918_v35 }
 0xd11   : > { %v7078_v30 = vpop.f32.mrf.mxu1 }
 0xd18   : > { %v7013_v31 = vpop.f32.mrf.mxu0 }
 0xd19   : > { %v7081_v34 = vpop.f32.mrf.mxu1  ;;  %v7079_v47 = vadd.f32 %v7078_v30, %v7013_v31 }
 0xd1d   : > { %v7166_v5 = vpop.f32.mrf.mxu3 }
 0xd1e   : > { %v7190_v1 = vadd.f32 %v7166_v5, %v7079_v47 }
 0xd20   : > { %v7016_v6 = vpop.f32.mrf.mxu0 }
 0xd21   : > { %v7084_v26 = vpop.f32.mrf.mxu1  ;;  %v7082_v4 = vadd.f32 %v7081_v34, %v7016_v6 }
 0xd25   : > { %v7169_v11 = vpop.f32.mrf.mxu3 }
 0xd26   : > { %v7191_v61 = vadd.f32 %v7169_v11, %v7082_v4  ;;  %v7327_v4 = vld [vmem:[%s16270_s17 + $0x70] sm:$0xff] }
 0xd28   : > { %v7019_v46 = vpop.f32.mrf.mxu0 }
 0xd29   : > { %v7087_v50 = vpop.f32.mrf.mxu1  ;;  %v7085_v2 = vadd.f32 %v7084_v26, %v7019_v46 }
 0xd2d   : > { %v7262_v59 = vpop.f32.mrf.mxu2  ;;  %v7172_v49 = vpop.f32.mrf.mxu3 }
 0xd2e   : > { %v7286_v45 = vadd.f32 %v7262_v59, %v7190_v1  ;;  %v7192_v54 = vadd.f32 %v7172_v49, %v7085_v2 }
 0xd30   : > { %v7297_v33 = vadd.f32 %v15215_v25, %v7286_v45  ;;  %v7022_v39 = vpop.f32.mrf.mxu0 }
 0xd31   : > { %v7090_v51 = vpop.f32.mrf.mxu1  ;;  %v7088_v56 = vadd.f32 %v7087_v50, %v7022_v39 }
 0xd32   : > { %v15218_v14 = vmax.f32 %v7297_v33, 0.0  ;;  %v7326_v33 = vld [vmem:[%s16270_s17 + $0x68] sm:$0xff] }
 0xd34   : > { %9864 = vmatmul.msk.f32.vlgmr.msrb.gmra.mxu0 %vm3677_vm8, %v15218_v14  ;;  %9872 = vmatmul.msk.f32.vlgmr.msra.gmra.mxu1 %vm3677_vm8, %v15218_v14 }
 0xd35   : > { %v7265_v48 = vpop.f32.mrf.mxu2  ;;  %v7175_v13 = vpop.f32.mrf.mxu3 }
 0xd36   : > { %v7287_v58 = vadd.f32 %v7265_v48, %v7191_v61  ;;  %v7193_v15 = vadd.f32 %v7175_v13, %v7088_v56  ;;  %v7325_v61 = vld [vmem:[%s16270_s17 + $0x60] sm:$0xff] }
 0xd38   : > { %v7298_v63 = vadd.f32 %v15215_v25, %v7287_v58  ;;  %v7025_v24 = vpop.f32.mrf.mxu0 }
 0xd39   : > { %v7091_v43 = vadd.f32 %v7090_v51, %v7025_v24  ;;  %v7093_v18 = vpop.f32.mrf.mxu1 }
 0xd3a   : > { %v15225_v9 = vmax.f32 %v7298_v63, 0.0 }
 0xd3c   : > { %9865 = vmatmul.msk.f32.gmra.mxu0 %vm3677_vm8, %v15225_v9  ;;  %9873 = vmatmul.msk.f32.gmra.mxu1 %vm3677_vm8, %v15225_v9 }
 0xd3d   : > { %v7268_v10 = vpop.f32.mrf.mxu2  ;;  %v7178_v20 = vpop.f32.mrf.mxu3 }
 0xd3e   : > { %v7288_v16 = vadd.f32 %v7268_v10, %v7192_v54  ;;  %v7194_v60 = vadd.f32 %v7178_v20, %v7091_v43 }
 0xd40   : > { %v7299_v36 = vadd.f32 %v15215_v25, %v7288_v16  ;;  %v7028_v23 = vpop.f32.mrf.mxu0 }
 0xd41   : > { %v7094_v19 = vadd.f32 %v7093_v18, %v7028_v23  ;;  %v7096_v28 = vpop.f32.mrf.mxu1 }
 0xd42   : > { %v15232_v32 = vmax.f32 %v7299_v36, 0.0 }
 0xd44   : > { %9866 = vmatmul.msk.f32.gmra.mxu0 %vm3677_vm8, %v15232_v32  ;;  %9874 = vmatmul.msk.f32.gmra.mxu1 %vm3677_vm8, %v15232_v32 }
 0xd45   : > { %v7271_v44 = vpop.f32.mrf.mxu2  ;;  %v7181_v21 = vpop.f32.mrf.mxu3 }
 0xd46   : > { %v7289_v53 = vadd.f32 %v7271_v44, %v7193_v15  ;;  %v7195_v55 = vadd.f32 %v7181_v21, %v7094_v19  ;;  %v7331_v19 = vld [vmem:[%s16272_s19 + $0x8] sm:$0xff] }
 0xd48   : > { %v7300_v17 = vadd.f32 %v15215_v25, %v7289_v53  ;;  %v7031_v8 = vpop.f32.mrf.mxu0 }
 0xd49   : > { %v7097_v40 = vadd.f32 %v7096_v28, %v7031_v8  ;;  %v7099_v31 = vpop.f32.mrf.mxu1  ;;  %v7332_v8 = vld [vmem:[%s16272_s19 + $0x10] sm:$0xff]  ;;  %v7395_v28 = vld [vmem:[%s16272_s19 + $0x208] sm:$0xff] }
 0xd4a   : > { %v15239_v42 = vmax.f32 %v7300_v17, 0.0 }
 0xd4c   : > { %9867 = vmatmul.msk.f32.gmra.mxu0 %vm3677_vm8, %v15239_v42  ;;  %9875 = vmatmul.msk.f32.gmra.mxu1 %vm3677_vm8, %v15239_v42 }
 0xd4d   : > { %v7274_v37 = vpop.f32.mrf.mxu2  ;;  %v7184_v38 = vpop.f32.mrf.mxu3 }
 0xd4e   : > { %v7290_v29 = vadd.f32 %v7274_v37, %v7194_v60  ;;  %v7196_v30 = vadd.f32 %v7184_v38, %v7097_v40  ;;  %v7396_v38 = vld [vmem:[%s16272_s19 + $0x210] sm:$0xff]  ;;  %v7366_v40 = vld [vmem:[%s16272_s19 + $0x120] sm:$0xff] }
 0xd50   : > { %v7301_v3 = vadd.f32 %v15215_v25, %v7290_v29  ;;  %v7034_v52 = vpop.f32.mrf.mxu0  ;;  %v7363_v29 = vld [vmem:[%s16272_s19 + $0x108] sm:$0xff] }
 0xd51   : > { %v7100_v6 = vadd.f32 %v7099_v31, %v7034_v52  ;;  %v7367_v52 = vld [vmem:[%s16272_s19 + $0x128] sm:$0xff] }
 0xd52   : > { %v7309_v35 = vmax.f32 %v7301_v3, 0.0  ;;  %v7335_v31 = vld [vmem:[%s16272_s19 + $0x28] sm:$0xff] }
 0xd54   : > { %9868 = vmatmul.msk.f32.gmra.mxu0 %vm3677_vm8, %v7309_v35  ;;  %9876 = vmatmul.msk.f32.gmra.mxu1 %vm3677_vm8, %v7309_v35 }
 0xd55   : > { %v7277_v22 = vpop.f32.mrf.mxu2  ;;  %v7187_v11 = vpop.f32.mrf.mxu3 }
 0xd56   : > { %v7291_v57 = vadd.f32 %v7277_v22, %v7195_v55  ;;  %v7197_v46 = vadd.f32 %v7187_v11, %v7100_v6  ;;  %v7365_v55 = vld [vmem:[%s16272_s19 + $0x118] sm:$0xff]  ;;  %v7368_v6 = vld [vmem:[%s16272_s19 + $0x130] sm:$0xff] }
 0xd57   : > { %v7333_v22 = vld [vmem:[%s16272_s19 + $0x18] sm:$0xff]  ;;  %v7336_v11 = vld [vmem:[%s16272_s19 + $0x30] sm:$0xff] }
 0xd58   : > { %v7302_v27 = vadd.f32 %v15215_v25, %v7291_v57 }
 0xd5a   : > { %v7310_v7 = vmax.f32 %v7302_v27, 0.0  ;;  %v7334_v27 = vld [vmem:[%s16272_s19 + $0x20] sm:$0xff] }
 0xd5c   : > { %9869 = vmatmul.msk.f32.gmra.mxu0 %vm3677_vm8, %v7310_v7  ;;  %9877 = vmatmul.msk.f32.gmra.mxu1 %vm3677_vm8, %v7310_v7 }
 0xd5d   : > { %v7280_v5 = vpop.f32.mrf.mxu2 }
 0xd5e   : > { %v7292_v34 = vadd.f32 %v7280_v5, %v7196_v30  ;;  %v7426_v30 = vld [vmem:[%s16272_s19 + $0x300] sm:$0xff] }
 0xd5f   : > { %v7398_v5 = vld [vmem:[%s16272_s19 + $0x220] sm:$0xff] }
 0xd60   : > { %v7303_v47 = vadd.f32 %v15215_v25, %v7292_v34  ;;  %v7427_v34 = vld [vmem:[%s16272_s19 + $0x308] sm:$0xff] }
 0xd62   : > { %v7311_v26 = vmax.f32 %v7303_v47, 0.0  ;;  %v7399_v47 = vld [vmem:[%s16272_s19 + $0x228] sm:$0xff] }
 0xd64   : > { %9870 = vmatmul.msk.f32.gmra.mxu0 %vm3677_vm8, %v7311_v26  ;;  %9878 = vmatmul.msk.f32.gmra.mxu1 %vm3677_vm8, %v7311_v26 }
 0xd65   : > { %v7283_v1 = vpop.f32.mrf.mxu2 }
 0xd66   : > { %v7293_v59 = vadd.f32 %v7283_v1, %v7197_v46  ;;  %v7369_v46 = vld [vmem:[%s16272_s19 + $0x138] sm:$0xff] }
 0xd67   : > { %v7337_v1 = vld [vmem:[%s16272_s19 + $0x38] sm:$0xff] }
 0xd68   : > { %v7304_v49 = vadd.f32 %v15215_v25, %v7293_v59  ;;  %v7328_v25 = vld [vmem:[%s16270_s17 + $0x78] sm:$0xff]  ;;  %v7400_v59 = vld [vmem:[%s16272_s19 + $0x230] sm:$0xff] }
 0xd69   : > { %8276 = vmatpush.msrb.mxu0 %v7328_v25  ;;  %v7338_v25 = vld [vmem:[%s16272_s19 + $0x40] sm:$0xff] }
 0xd6a   : > { %v7312_v45 = vmax.f32 %v7304_v49, 0.0  ;;  %v7429_v49 = vld [vmem:[%s16272_s19 + $0x318] sm:$0xff] }
 0xd6b   : > { %8277 = vmatpush.msrb.mxu0 %v7327_v4  ;;  %v7401_v4 = vld [vmem:[%s16272_s19 + $0x238] sm:$0xff] }
 0xd6c   : > { %9871 = vmatmul.msk.f32.gmra.mxu0 %vm3677_vm8, %v7312_v45  ;;  %9879 = vmatmul.msk.f32.gmra.mxu1 %vm3677_vm8, %v7312_v45 }
 0xd6d   : > { %8278 = vmatpush.msrb.mxu0 %v7326_v33  ;;  %v7430_v33 = vld [vmem:[%s16272_s19 + $0x320] sm:$0xff] }
 0xd6f   : > { %8279 = vmatpush.msrb.mxu0 %v7325_v61  ;;  %v7371_v61 = vld [vmem:[%s16272_s19 + $0x148] sm:$0xff] }
 0xd74   : > { %9944 = vmatmul.msk.f32.vlgmr.msra.gmra.mxu0 %vm3677_vm8, %v15218_v14 }
 0xd7c   : > { %9945 = vmatmul.msk.f32.gmra.mxu0 %vm3677_vm8, %v15225_v9 }
 0xd84   : > { %9946 = vmatmul.msk.f32.gmra.mxu0 %vm3677_vm8, %v15232_v32 }
 0xd8c   : > { %9947 = vmatmul.msk.f32.gmra.mxu0 %vm3677_vm8, %v15239_v42 }
 0xd94   : > { %9948 = vmatmul.msk.f32.gmra.mxu0 %vm3677_vm8, %v7309_v35 }
 0xd9c   : > { %9949 = vmatmul.msk.f32.gmra.mxu0 %vm3677_vm8, %v7310_v7 }
 0xda4   : > { %9950 = vmatmul.msk.f32.gmra.mxu0 %vm3677_vm8, %v7311_v26 }
 0xdac   : > { %9951 = vmatmul.msk.f32.gmra.mxu0 %vm3677_vm8, %v7312_v45 }
 0xdb1   : > { %v7499_v50 = vpop.f32.mrf.mxu0  ;;  %v7540_v39 = vpop.f32.mrf.mxu1 }
 0xdb4   : > { %9984 = vmatmul.msk.f32.vlgmr.msrb.gmra.mxu0 %vm3677_vm8, %v15218_v14 }
 0xdb9   : > { %v7502_v48 = vpop.f32.mrf.mxu0  ;;  %v7543_v58 = vpop.f32.mrf.mxu1 }
 0xdbc   : > { %9985 = vmatmul.msk.f32.gmra.mxu0 %vm3677_vm8, %v15225_v9 }
 0xdc1   : > { %v7505_v2 = vpop.f32.mrf.mxu0  ;;  %v7546_v13 = vpop.f32.mrf.mxu1 }
 0xdc4   : > { %9986 = vmatmul.msk.f32.gmra.mxu0 %vm3677_vm8, %v15232_v32 }
 0xdc9   : > { %v7508_v63 = vpop.f32.mrf.mxu0  ;;  %v7549_v54 = vpop.f32.mrf.mxu1 }
 0xdcc   : > { %9987 = vmatmul.msk.f32.gmra.mxu0 %vm3677_vm8, %v15239_v42 }
 0xdd1   : > { %v7511_v51 = vpop.f32.mrf.mxu0  ;;  %v7552_v10 = vpop.f32.mrf.mxu1 }
 0xdd4   : > { %9988 = vmatmul.msk.f32.gmra.mxu0 %vm3677_vm8, %v7309_v35 }
 0xdd9   : > { %v7514_v14 = vpop.f32.mrf.mxu0  ;;  %v7555_v24 = vpop.f32.mrf.mxu1 }
 0xddc   : > { %9989 = vmatmul.msk.f32.gmra.mxu0 %vm3677_vm8, %v7310_v7  ;;  %v7397_v7 = vld [vmem:[%s16272_s19 + $0x218] sm:$0xff] }
 0xde1   : > { %v7517_v16 = vpop.f32.mrf.mxu0  ;;  %v7558_v9 = vpop.f32.mrf.mxu1 }
 0xde4   : > { %9990 = vmatmul.msk.f32.gmra.mxu0 %vm3677_vm8, %v7311_v26  ;;  %v7428_v26 = vld [vmem:[%s16272_s19 + $0x310] sm:$0xff] }
 0xde9   : > { %v7520_v56 = vpop.f32.mrf.mxu0  ;;  %v7561_v36 = vpop.f32.mrf.mxu1 }
 0xdea   : > { %7668 = vmatpush.msra.mxu3 %v7561_v36  ;;  %7877 = vmatpush.msra.mxu2 %v7520_v56  ;;  %v7434_v56 = vld [vmem:[%s16272_s19 + $0x340] sm:$0xff]  ;;  %v7375_v36 = vld [vmem:[%s16272_s19 + $0x168] sm:$0xff] }
 0xdec   : > { %9991 = vmatmul.msk.f32.gmra.mxu0 %vm3677_vm8, %v7312_v45  ;;  %7669 = vmatpush.msra.mxu3 %v7558_v9  ;;  %v7370_v45 = vld [vmem:[%s16272_s19 + $0x140] sm:$0xff]  ;;  %v7405_v9 = vld [vmem:[%s16272_s19 + $0x258] sm:$0xff] }
 0xded   : > { %7878 = vmatpush.msra.mxu2 %v7517_v16  ;;  %v7342_v16 = vld [vmem:[%s16272_s19 + $0x60] sm:$0xff] }
 0xdee   : > { %7670 = vmatpush.msra.mxu3 %v7555_v24  ;;  %v7374_v24 = vld [vmem:[%s16272_s19 + $0x160] sm:$0xff] }
 0xdef   : > { %7879 = vmatpush.msra.mxu2 %v7514_v14  ;;  %v7433_v14 = vld [vmem:[%s16272_s19 + $0x338] sm:$0xff] }
 0xdf0   : > { %7671 = vmatpush.msra.mxu3 %v7552_v10  ;;  %v7404_v10 = vld [vmem:[%s16272_s19 + $0x250] sm:$0xff] }
 0xdf1   : > { %v7999_v20 = vpop.f32.mrf.mxu0  ;;  %7880 = vmatpush.msra.mxu2 %v7511_v51  ;;  %v7341_v51 = vld [vmem:[%s16272_s19 + $0x58] sm:$0xff] }
 0xdf2   : > { %7672 = vmatpush.msra.mxu3 %v7549_v54  ;;  %v7373_v54 = vld [vmem:[%s16272_s19 + $0x158] sm:$0xff] }
 0xdf3   : > { %7881 = vmatpush.msra.mxu2 %v7508_v63  ;;  %v7432_v63 = vld [vmem:[%s16272_s19 + $0x330] sm:$0xff] }
 0xdf4   : > { %7673 = vmatpush.msra.mxu3 %v7546_v13  ;;  %v7403_v13 = vld [vmem:[%s16272_s19 + $0x248] sm:$0xff] }
 0xdf5   : > { %7882 = vmatpush.msra.mxu2 %v7505_v2  ;;  %v7340_v2 = vld [vmem:[%s16272_s19 + $0x50] sm:$0xff] }
 0xdf6   : > { %7674 = vmatpush.msra.mxu3 %v7543_v58  ;;  %v7372_v58 = vld [vmem:[%s16272_s19 + $0x150] sm:$0xff] }
 0xdf7   : > { %7883 = vmatpush.msra.mxu2 %v7502_v48  ;;  %v7431_v48 = vld [vmem:[%s16272_s19 + $0x328] sm:$0xff] }
 0xdf8   : > { %7675 = vmatpush.msra.mxu3 %v7540_v39  ;;  %v7402_v39 = vld [vmem:[%s16272_s19 + $0x240] sm:$0xff] }
 0xdf9   : > { %v8002_v32 = vpop.f32.mrf.mxu0  ;;  %7884 = vmatpush.msra.mxu2 %v7499_v50  ;;  %9880 = vmatmul.msk.f32.vlgmr.msra.gmra.mxu3 %vm6114_vm10, %v7362_v41  ;;  %v7339_v50 = vld [vmem:[%s16272_s19 + $0x48] sm:$0xff]  ;;  %v7346_v41 = vld [vmem:[%s16272_s19 + $0x80] sm:$0xff] }
 0xdfa   : > { %9912 = vmatmul.msk.f32.vlgmr.msra.gmra.mxu2 %vm6114_vm10, %v7330_v62  ;;  %v7409_v62 = vld [vmem:[%s16272_s19 + $0x278] sm:$0xff] }
 0xe01   : > { %v8005_v15 = vpop.f32.mrf.mxu0  ;;  %9881 = vmatmul.msk.f32.gmra.mxu3 %vm6114_vm10, %v7363_v29 }
 0xe02   : > { %9913 = vmatmul.msk.f32.gmra.mxu2 %vm6114_vm10, %v7331_v19  ;;  %v7438_v19 = vld [vmem:[%s16272_s19 + $0x360] sm:$0xff] }
 0xe09   : > { %v8008_v44 = vpop.f32.mrf.mxu0  ;;  %9882 = vmatmul.msk.f32.gmra.mxu3 %vm6114_vm10, %v7364_v0  ;;  %v7347_v0 = vld [vmem:[%s16272_s19 + $0x88] sm:$0xff] }
 0xe0a   : > { %9914 = vmatmul.msk.f32.gmra.mxu2 %vm6114_vm10, %v7332_v8  ;;  %v7410_v8 = vld [vmem:[%s16272_s19 + $0x280] sm:$0xff] }
 0xe11   : > { %v8011_v53 = vpop.f32.mrf.mxu0  ;;  %9883 = vmatmul.msk.f32.gmra.mxu3 %vm6114_vm10, %v7365_v55  ;;  %v7439_v55 = vld [vmem:[%s16272_s19 + $0x368] sm:$0xff] }
 0xe12   : > { %9915 = vmatmul.msk.f32.gmra.mxu2 %vm6114_vm10, %v7333_v22 }
 0xe19   : > { %v8014_v43 = vpop.f32.mrf.mxu0  ;;  %9884 = vmatmul.msk.f32.gmra.mxu3 %vm6114_vm10, %v7366_v40  ;;  %v7411_v40 = vld [vmem:[%s16272_s19 + $0x288] sm:$0xff] }
 0xe1a   : > { %9916 = vmatmul.msk.f32.gmra.mxu2 %vm6114_vm10, %v7334_v27 }
 0xe21   : > { %v8017_v23 = vpop.f32.mrf.mxu0  ;;  %9885 = vmatmul.msk.f32.gmra.mxu3 %vm6114_vm10, %v7367_v52 }
 0xe22   : > { %9917 = vmatmul.msk.f32.gmra.mxu2 %vm6114_vm10, %v7335_v31  ;;  %v7381_v31 = vld [vmem:[%s16272_s19 + $0x198] sm:$0xff] }
 0xe29   : > { %v8020_v18 = vpop.f32.mrf.mxu0  ;;  %9886 = vmatmul.msk.f32.gmra.mxu3 %vm6114_vm10, %v7368_v6 }
 0xe2a   : > { %8127 = vmatpush.msrb.mxu1 %v8020_v18  ;;  %9918 = vmatmul.msk.f32.gmra.mxu2 %vm6114_vm10, %v7336_v11  ;;  %v7377_v18 = vld [vmem:[%s16272_s19 + $0x178] sm:$0xff] }
 0xe2c   : > { %8128 = vmatpush.msrb.mxu1 %v8017_v23  ;;  %v7436_v23 = vld [vmem:[%s16272_s19 + $0x350] sm:$0xff] }
 0xe2e   : > { %8129 = vmatpush.msrb.mxu1 %v8014_v43  ;;  %v7407_v43 = vld [vmem:[%s16272_s19 + $0x268] sm:$0xff] }
 0xe30   : > { %8130 = vmatpush.msrb.mxu1 %v8011_v53  ;;  %v7344_v53 = vld [vmem:[%s16272_s19 + $0x70] sm:$0xff] }
 0xe31   : > { %v8281_v17 = vpop.f32.mrf.mxu0  ;;  %9887 = vmatmul.msk.f32.gmra.mxu3 %vm6114_vm10, %v7369_v46 }
 0xe32   : > { %8131 = vmatpush.msrb.mxu1 %v8008_v44  ;;  %9919 = vmatmul.msk.f32.gmra.mxu2 %vm6114_vm10, %v7337_v1  ;;  %v7376_v44 = vld [vmem:[%s16272_s19 + $0x170] sm:$0xff]  ;;  %v7382_v1 = vld [vmem:[%s16272_s19 + $0x1a0] sm:$0xff] }
 0xe34   : > { %8132 = vmatpush.msrb.mxu1 %v8005_v15  ;;  %v7435_v15 = vld [vmem:[%s16272_s19 + $0x348] sm:$0xff] }
 0xe36   : > { %8133 = vmatpush.msrb.mxu1 %v8002_v32  ;;  %v7406_v32 = vld [vmem:[%s16272_s19 + $0x260] sm:$0xff] }
 0xe38   : > { %8134 = vmatpush.msrb.mxu1 %v7999_v20  ;;  %v7343_v20 = vld [vmem:[%s16272_s19 + $0x68] sm:$0xff] }
 0xe39   : > { %v8284_v42 = vpop.f32.mrf.mxu0  ;;  %9952 = vmatmul.msk.f32.vlgmr.msrb.gmra.mxu1 %vm6114_vm10, %v7394_v12  ;;  %9888 = vmatmul.msk.f32.gmra.mxu3 %vm6114_vm10, %v7370_v45 }
 0xe3a   : > { %9920 = vmatmul.msk.f32.gmra.mxu2 %vm6114_vm10, %v7338_v25 }
 0xe41   : > { %v8287_v60 = vpop.f32.mrf.mxu0  ;;  %9953 = vmatmul.msk.f32.gmra.mxu1 %vm6114_vm10, %v7395_v28  ;;  %9889 = vmatmul.msk.f32.gmra.mxu3 %vm6114_vm10, %v7371_v61 }
 0xe42   : > { %9921 = vmatmul.msk.f32.gmra.mxu2 %vm6114_vm10, %v7339_v50  ;;  %v7442_v50 = vld [vmem:[%s16272_s19 + $0x380] sm:$0xff] }
 0xe49   : > { %v8290_v21 = vpop.f32.mrf.mxu0  ;;  %9954 = vmatmul.msk.f32.gmra.mxu1 %vm6114_vm10, %v7396_v38  ;;  %9890 = vmatmul.msk.f32.gmra.mxu3 %vm6114_vm10, %v7372_v58  ;;  %v7380_v38 = vld [vmem:[%s16272_s19 + $0x190] sm:$0xff] }
 0xe4a   : > { %9922 = vmatmul.msk.f32.gmra.mxu2 %vm6114_vm10, %v7340_v2  ;;  %v7383_v2 = vld [vmem:[%s16272_s19 + $0x1a8] sm:$0xff] }
 0xe51   : > { %v8293_v37 = vpop.f32.mrf.mxu0  ;;  %9955 = vmatmul.msk.f32.gmra.mxu1 %vm6114_vm10, %v7397_v7  ;;  %9891 = vmatmul.msk.f32.gmra.mxu3 %vm6114_vm10, %v7373_v54 }
 0xe52   : > { %9923 = vmatmul.msk.f32.gmra.mxu2 %vm6114_vm10, %v7341_v51 }
 0xe59   : > { %v8296_v3 = vpop.f32.mrf.mxu0  ;;  %9956 = vmatmul.msk.f32.gmra.mxu1 %vm6114_vm10, %v7398_v5  ;;  %9892 = vmatmul.msk.f32.gmra.mxu3 %vm6114_vm10, %v7374_v24  ;;  %v7349_v5 = vld [vmem:[%s16272_s19 + $0x98] sm:$0xff] }
 0xe5a   : > { %9924 = vmatmul.msk.f32.gmra.mxu2 %vm6114_vm10, %v7342_v16 }
 0xe61   : > { %v8299_v35 = vpop.f32.mrf.mxu0  ;;  %9957 = vmatmul.msk.f32.gmra.mxu1 %vm6114_vm10, %v7399_v47  ;;  %9893 = vmatmul.msk.f32.gmra.mxu3 %vm6114_vm10, %v7375_v36  ;;  %v7441_v47 = vld [vmem:[%s16272_s19 + $0x378] sm:$0xff] }
 0xe62   : > { %9925 = vmatmul.msk.f32.gmra.mxu2 %vm6114_vm10, %v7343_v20 }
 0xe69   : > { %v8302_v57 = vpop.f32.mrf.mxu0  ;;  %9958 = vmatmul.msk.f32.gmra.mxu1 %vm6114_vm10, %v7400_v59  ;;  %9894 = vmatmul.msk.f32.gmra.mxu3 %vm6114_vm10, %v7376_v44  ;;  %v7350_v59 = vld [vmem:[%s16272_s19 + $0xa0] sm:$0xff]  ;;  %v7352_v44 = vld [vmem:[%s16272_s19 + $0xb0] sm:$0xff] }
 0xe6a   : > { %8409 = vmatpush.msra.mxu0 %v8302_v57  ;;  %9926 = vmatmul.msk.f32.gmra.mxu2 %vm6114_vm10, %v7344_v53  ;;  %v7348_v57 = vld [vmem:[%s16272_s19 + $0x90] sm:$0xff]  ;;  %v7415_v53 = vld [vmem:[%s16272_s19 + $0x2a8] sm:$0xff] }
 0xe6c   : > { %8410 = vmatpush.msra.mxu0 %v8299_v35 }
 0xe6e   : > { %8411 = vmatpush.msra.mxu0 %v8296_v3  ;;  %v7379_v3 = vld [vmem:[%s16272_s19 + $0x188] sm:$0xff] }
 0xe70   : > { %8412 = vmatpush.msra.mxu0 %v8293_v37 }
 0xe71   : > { %9959 = vmatmul.msk.f32.gmra.mxu1 %vm6114_vm10, %v7401_v4  ;;  %9895 = vmatmul.msk.f32.gmra.mxu3 %vm6114_vm10, %v7377_v18 }
 0xe72   : > { %8413 = vmatpush.msra.mxu0 %v8290_v21  ;;  %v7378_v21 = vld [vmem:[%s16272_s19 + $0x180] sm:$0xff] }
 0xe74   : > { %8414 = vmatpush.msra.mxu0 %v8287_v60  ;;  %v7437_v60 = vld [vmem:[%s16272_s19 + $0x358] sm:$0xff] }
 0xe76   : > { %8415 = vmatpush.msra.mxu0 %v8284_v42  ;;  %v7408_v42 = vld [vmem:[%s16272_s19 + $0x270] sm:$0xff] }
 0xe78   : > { %8416 = vmatpush.msra.mxu0 %v8281_v17  ;;  %v7345_v17 = vld [vmem:[%s16272_s19 + $0x78] sm:$0xff] }
 0xe79   : > { %9992 = vmatmul.msk.f32.vlgmr.msra.gmra.mxu0 %vm6114_vm10, %v7426_v30  ;;  %9960 = vmatmul.msk.f32.gmra.mxu1 %vm6114_vm10, %v7402_v39  ;;  %v7440_v30 = vld [vmem:[%s16272_s19 + $0x370] sm:$0xff] }
 0xe7a   : > { %9927 = vmatmul.msk.f32.gmra.mxu2 %vm6114_vm10, %v7345_v17  ;;  %9896 = vmatmul.msk.f32.gmra.mxu3 %vm6114_vm10, %v7378_v21 }
 0xe7c   : > { %v7677_v37 = vpop.f32.mrf.mxu3 }
 0xe7d   : > { %v7886_v29 = vpop.f32.mrf.mxu2 }
 0xe81   : > { %9993 = vmatmul.msk.f32.gmra.mxu0 %vm6114_vm10, %v7427_v34  ;;  %9961 = vmatmul.msk.f32.gmra.mxu1 %vm6114_vm10, %v7403_v13  ;;  %v7412_v34 = vld [vmem:[%s16272_s19 + $0x290] sm:$0xff]  ;;  %v7351_v13 = vld [vmem:[%s16272_s19 + $0xa8] sm:$0xff] }
 0xe82   : > { %9928 = vmatmul.msk.f32.gmra.mxu2 %vm6114_vm10, %v7346_v41  ;;  %9897 = vmatmul.msk.f32.gmra.mxu3 %vm6114_vm10, %v7379_v3 }
 0xe84   : > { %v7680_v28 = vpop.f32.mrf.mxu3 }
 0xe85   : > { %v7889_v35 = vpop.f32.mrf.mxu2 }
 0xe89   : > { %9994 = vmatmul.msk.f32.gmra.mxu0 %vm6114_vm10, %v7428_v26  ;;  %9962 = vmatmul.msk.f32.gmra.mxu1 %vm6114_vm10, %v7404_v10  ;;  %v7887_v26 = vadd.f32 %v7886_v29, %v7677_v37  ;;  %v7444_v37 = vld [vmem:[%s16272_s19 + $0x390] sm:$0xff] }
 0xe8a   : > { %9929 = vmatmul.msk.f32.gmra.mxu2 %vm6114_vm10, %v7347_v0  ;;  %9898 = vmatmul.msk.f32.gmra.mxu3 %vm6114_vm10, %v7380_v38  ;;  %v7385_v0 = vld [vmem:[%s16272_s19 + $0x1b8] sm:$0xff] }
 0xe8c   : > { %v7683_v27 = vpop.f32.mrf.mxu3 }
 0xe8d   : > { %v7892_v7 = vpop.f32.mrf.mxu2 }
 0xe8e   : > { %v7893_v20 = vadd.f32 %v7892_v7, %v7683_v27 }
 0xe91   : > { %9995 = vmatmul.msk.f32.gmra.mxu0 %vm6114_vm10, %v7429_v49  ;;  %9963 = vmatmul.msk.f32.gmra.mxu1 %vm6114_vm10, %v7405_v9  ;;  %v7413_v49 = vld [vmem:[%s16272_s19 + $0x298] sm:$0xff] }
 0xe92   : > { %9930 = vmatmul.msk.f32.gmra.mxu2 %vm6114_vm10, %v7348_v57  ;;  %9899 = vmatmul.msk.f32.gmra.mxu3 %vm6114_vm10, %v7381_v31 }
 0xe94   : > { %v7686_v6 = vpop.f32.mrf.mxu3 }
 0xe95   : > { %v7895_v11 = vpop.f32.mrf.mxu2 }
 0xe99   : > { %9996 = vmatmul.msk.f32.gmra.mxu0 %vm6114_vm10, %v7430_v33  ;;  %9964 = vmatmul.msk.f32.gmra.mxu1 %vm6114_vm10, %v7406_v32  ;;  %v15626_v33 = vld [vmem:[%s16271_s18] ss:$0 sm:$0xff] }
 0xe9a   : > { %9931 = vmatmul.msk.f32.gmra.mxu2 %vm6114_vm10, %v7349_v5  ;;  %9900 = vmatmul.msk.f32.gmra.mxu3 %vm6114_vm10, %v7382_v1  ;;  %v7417_v1 = vld [vmem:[%s16272_s19 + $0x2b8] sm:$0xff] }
 0xe9c   : > { %v15619_v25 = vpop.f32.mrf.mxu3 }
 0xe9d   : > { %v15621_v4 = vpop.f32.mrf.mxu2 }
 0xea1   : > { %9997 = vmatmul.msk.f32.gmra.mxu0 %vm6114_vm10, %v7431_v48  ;;  %9965 = vmatmul.msk.f32.gmra.mxu1 %vm6114_vm10, %v7407_v43  ;;  %v7890_v48 = vadd.f32 %v7889_v35, %v7680_v28  ;;  %v7416_v28 = vld [vmem:[%s16272_s19 + $0x2b0] sm:$0xff] }
 0xea2   : > { %9932 = vmatmul.msk.f32.gmra.mxu2 %vm6114_vm10, %v7350_v59  ;;  %9901 = vmatmul.msk.f32.gmra.mxu3 %vm6114_vm10, %v7383_v2 }
 0xea5   : > { %v15649_v16 = vpop.f32.mrf.mxu2 }
 0xea9   : > { %9998 = vmatmul.msk.f32.gmra.mxu0 %vm6114_vm10, %v7432_v63  ;;  %9966 = vmatmul.msk.f32.gmra.mxu1 %vm6114_vm10, %v7408_v42  ;;  %v7414_v63 = vld [vmem:[%s16272_s19 + $0x2a0] sm:$0xff] }
 0xeaa   : > { %9933 = vmatmul.msk.f32.gmra.mxu2 %vm6114_vm10, %v7351_v13 }
 0xead   : > { %v15672_v21 = vpop.f32.mrf.mxu2 }
 0xeb1   : > { %9999 = vmatmul.msk.f32.gmra.mxu0 %vm6114_vm10, %v7433_v14  ;;  %9967 = vmatmul.msk.f32.gmra.mxu1 %vm6114_vm10, %v7409_v62  ;;  %v15647_v14 = vpop.f32.mrf.mxu3 }
 0xeb2   : > { %9934 = vmatmul.msk.f32.gmra.mxu2 %vm6114_vm10, %v7352_v44  ;;  %v7387_v44 = vld [vmem:[%s16272_s19 + $0x1c8] sm:$0xff] }
 0xeb6   : > { %v8136_v12 = vpop.f32.mrf.mxu1 }
 0xeb7   : > { %v8232_v45 = vadd.f32 %v8136_v12, %v7887_v26  ;;  %v7386_v26 = vld [vmem:[%s16272_s19 + $0x1c0] sm:$0xff] }
 0xeb9   : > { %10000 = vmatmul.msk.f32.gmra.mxu0 %vm6114_vm10, %v7434_v56  ;;  %9968 = vmatmul.msk.f32.gmra.mxu1 %vm6114_vm10, %v7410_v8  ;;  %v7443_v56 = vld [vmem:[%s16272_s19 + $0x388] sm:$0xff]  ;;  %v15670_v17 = vpop.f32.mrf.mxu3  ;;  %v7353_v8 = vld [vmem:[%s16272_s19 + $0xb8] sm:$0xff] }
 0xeba   : > { %9935 = vmatmul.msk.f32.gmra.mxu2 %vm6114_vm10, %v7353_v8 }
 0xebe   : > { %v8139_v22 = vpop.f32.mrf.mxu1 }
 0xebf   : > { %v8233_v10 = vadd.f32 %v8139_v22, %v7890_v48 }
 0xec1   : > { %10001 = vmatmul.msk.f32.gmra.mxu0 %vm6114_vm10, %v7435_v15  ;;  %9969 = vmatmul.msk.f32.gmra.mxu1 %vm6114_vm10, %v7411_v40  ;;  %v7384_v15 = vld [vmem:[%s16272_s19 + $0x1b0] sm:$0xff]  ;;  %v15694_v57 = vpop.f32.mrf.mxu3  ;;  %v15696_v40 = vpop.f32.mrf.mxu2 }
 0xec2   : > { %9902 = vmatmul.msk.f32.gmra.mxu3 %vm6114_vm10, %v7384_v15  ;;  %v7902_v15 = vadd.f32 %v15649_v16, %v15647_v14 }
 0xec6   : > { %v8142_v52 = vpop.f32.mrf.mxu1 }
 0xec7   : > { %v8234_v18 = vadd.f32 %v8142_v52, %v7893_v20  ;;  %v7445_v52 = vld [vmem:[%s16272_s19 + $0x398] sm:$0xff] }
 0xec9   : > { %10002 = vmatmul.msk.f32.gmra.mxu0 %vm6114_vm10, %v7436_v23  ;;  %9970 = vmatmul.msk.f32.gmra.mxu1 %vm6114_vm10, %v7412_v34  ;;  %v15723_v48 = vpop.f32.mrf.mxu3  ;;  %v15725_v2 = vpop.f32.mrf.mxu2 }
 0xeca   : > { %9903 = vmatmul.msk.f32.gmra.mxu3 %vm6114_vm10, %v7385_v0 }
 0xece   : > { %v15604_v46 = vpop.f32.mrf.mxu1 }
 0xed1   : > { %10003 = vmatmul.msk.f32.gmra.mxu0 %vm6114_vm10, %v7437_v60  ;;  %9971 = vmatmul.msk.f32.gmra.mxu1 %vm6114_vm10, %v7413_v49 }
 0xed2   : > { %9904 = vmatmul.msk.f32.gmra.mxu3 %vm6114_vm10, %v7386_v26 }
 0xed6   : > { %v15631_v58 = vpop.f32.mrf.mxu1 }
 0xed9   : > { %10004 = vmatmul.msk.f32.gmra.mxu0 %vm6114_vm10, %v7438_v19  ;;  %9972 = vmatmul.msk.f32.gmra.mxu1 %vm6114_vm10, %v7414_v63  ;;  %v7896_v19 = vadd.f32 %v7895_v11, %v7686_v6 }
 0xeda   : > { %9905 = vmatmul.msk.f32.gmra.mxu3 %vm6114_vm10, %v7387_v44 }
 0xede   : > { %v15654_v32 = vpop.f32.mrf.mxu1 }
 0xee1   : > { %10005 = vmatmul.msk.f32.gmra.mxu0 %vm6114_vm10, %v7439_v55  ;;  %9973 = vmatmul.msk.f32.gmra.mxu1 %vm6114_vm10, %v7415_v53  ;;  %v8235_v55 = vadd.f32 %v15604_v46, %v7896_v19  ;;  %v7354_v46 = vld [vmem:[%s16272_s19 + $0xc0] sm:$0xff]  ;;  %v7355_v53 = vld [vmem:[%s16272_s19 + $0xc8] sm:$0xff] }
 0xee2   : > { %9936 = vmatmul.msk.f32.gmra.mxu2 %vm6114_vm10, %v7354_v46 }
 0xee6   : > { %v15677_v12 = vpop.f32.mrf.mxu1 }
 0xee9   : > { %10006 = vmatmul.msk.f32.gmra.mxu0 %vm6114_vm10, %v7440_v30  ;;  %9974 = vmatmul.msk.f32.gmra.mxu1 %vm6114_vm10, %v7416_v28  ;;  %v7447_v28 = vld [vmem:[%s16272_s19 + $0x3a8] sm:$0xff] }
 0xeea   : > { %9937 = vmatmul.msk.f32.gmra.mxu2 %vm6114_vm10, %v7355_v53 }
 0xeee   : > { %v15703_v34 = vpop.f32.mrf.mxu1 }
 0xef1   : > { %10007 = vmatmul.msk.f32.gmra.mxu0 %vm6114_vm10, %v7441_v47  ;;  %v7899_v47 = vadd.f32 %v15621_v4, %v15619_v25  ;;  %9975 = vmatmul.msk.f32.gmra.mxu1 %vm6114_vm10, %v7417_v1 }
 0xef6   : > { %v8418_v61 = vpop.f32.mrf.mxu0 }
 0xef7   : > { %v8514_v39 = vadd.f32 %v8418_v61, %v8232_v45 }
 0xef9   : > { %v8549_v54 = vadd.f32 %v15626_v33, %v8514_v39  ;;  %10008 = vmatmul.msk.f32.gmra.mxu0 %vm6114_vm10, %v7442_v50  ;;  %v8236_v39 = vadd.f32 %v15631_v58, %v7899_v47  ;;  %v7446_v58 = vld [vmem:[%s16272_s19 + $0x3a0] sm:$0xff] }
 0xefb   : > { %v8581_v51 = vsub.f32 0.0, %v8549_v54 }
 0xefd   : > { %v8613_v24 = vmul.f32 1.442695, %v8581_v51 }
 0xefe   : > { %v8421_v9 = vpop.f32.mrf.mxu0 }
 0xeff   : > { %10049 = vpow2.f32 %v8613_v24  ;;  %v8515_v36 = vadd.f32 %v8421_v9, %v8233_v10  ;;  %v15740_v9 = vpop.f32.mrf.mxu1 }
 0xf01   : > { %v8550_v43 = vadd.f32 %v15626_v33, %v8515_v36  ;;  %10009 = vmatmul.msk.f32.gmra.mxu0 %vm6114_vm10, %v7443_v56 }
 0xf03   : > { %v8582_v23 = vsub.f32 0.0, %v8550_v43  ;;  %v7418_v43 = vld [vmem:[%s16272_s19 + $0x2c0] sm:$0xff] }
 0xf04   : > { %9976 = vmatmul.msk.f32.gmra.mxu1 %vm6114_vm10, %v7418_v43 }
 0xf05   : > { %v10050_v42 = vpop.eup %10049  ;;  %v8615_v60 = vmul.f32 1.442695, %v8582_v23 }
 0xf06   : > { %v8677_v41 = vadd.f32 1.0, %v10050_v42  ;;  %v8424_v62 = vpop.f32.mrf.mxu0 }
 0xf07   : > { %10051 = vpow2.f32 %v8615_v60  ;;  %v8516_v29 = vadd.f32 %v8424_v62, %v8234_v18  ;;  %v8237_v62 = vadd.f32 %v15654_v32, %v7902_v15 }
 0xf08   : > { %10053 = vrcp.f32 %v8677_v41  ;;  %v8720_v59 = vand.u32 2147483648, %v8677_v41  ;;  %v8718_v45 = vand.u32 2147483647, %v8677_v41  ;;  %vm8714_vm15 = vweird.f32 %v8677_v41 }
 0xf09   : > { %v8551_v3 = vadd.f32 %v15626_v33, %v8516_v29  ;;  %10010 = vmatmul.msk.f32.gmra.mxu0 %vm6114_vm10, %v7444_v37  ;;  %v15765_v37 = vpop.f32.mrf.mxu3  ;;  %v15767_v29 = vpop.f32.mrf.mxu2 }
 0xf0a   : > { %v8721_v63 = vor.u32 1.1754944e-38, %v8720_v59  ;;  %vm8719_vm2 = vcmp.eq.f32.partialorder %v8718_v45, 8.507059e+37 }
 0xf0b   : > { %v8583_v35 = vsub.f32 0.0, %v8551_v3 }
 0xf0d   : > { %v10052_v22 = vpop.eup %10051  ;;  %v8617_v38 = vmul.f32 1.442695, %v8583_v35 }
 0xf0e   : > { %v10054_v27 = vpop.eup %10053  ;;  %v15698_v7 = vadd.f32 1.0, %v10052_v22  ;;  %v8427_v30 = vpop.f32.mrf.mxu0 }
 0xf0f   : > { %v8710_v31 = vmul.f32 %v10054_v27, %v8677_v41  ;;  %10055 = vpow2.f32 %v8617_v38  ;;  %v8517_v5 = vadd.f32 %v8427_v30, %v8235_v55  ;;  %vm8715_vm14 = vweird.f32 %v10054_v27  ;;  %v15775_v22 = vpop.f32.mrf.mxu1 }
 0xf10   : > { %10057 = vrcp.f32 %v15698_v7  ;;  %vm8716_vm0 = vmor %vm8714_vm15, %vm8715_vm14  ;;  %v8735_v23 = vand.u32 2147483648, %v15698_v7  ;;  %v8733_v14 = vand.u32 2147483647, %v15698_v7  ;;  %vm8729_vm4 = vweird.f32 %v15698_v7 }
 0xf11   : > { %v8711_v6 = vsub.f32 1.0, %v8710_v31  ;;  %v8552_v11 = vadd.f32 %v15626_v33, %v8517_v5  ;;  %10011 = vmatmul.msk.f32.gmra.mxu0 %vm6114_vm10, %v7445_v52  ;;  %v7388_v52 = vld [vmem:[%s16272_s19 + $0x1d0] sm:$0xff]  ;;  %v7419_v5 = vld [vmem:[%s16272_s19 + $0x2c8] sm:$0xff]  ;;  %v15800_v1 = vpop.f32.mrf.mxu3  ;;  %v15802_v59 = vpop.f32.mrf.mxu2 }
 0xf12   : > { %v8736_v3 = vor.u32 1.1754944e-38, %v8735_v23  ;;  %vm8734_vm6 = vcmp.eq.f32.partialorder %v8733_v14, 8.507059e+37  ;;  %v7356_v31 = vld [vmem:[%s16272_s19 + $0xd0] sm:$0xff]  ;;  %9906 = vmatmul.msk.f32.gmra.mxu3 %vm6114_vm10, %v7388_v52  ;;  %9977 = vmatmul.msk.f32.gmra.mxu1 %vm6114_vm10, %v7419_v5 }
 0xf13   : > { %v8712_v49 = vmul.f32 %v10054_v27, %v8711_v6  ;;  %v8584_v25 = vsub.f32 0.0, %v8552_v11  ;;  %9938 = vmatmul.msk.f32.gmra.mxu2 %vm6114_vm10, %v7356_v31 }
 0xf15   : > { %v10056_v4 = vpop.eup %10055  ;;  %v8713_v61 = vadd.f32 %v10054_v27, %v8712_v49  ;;  %v8619_v50 = vmul.f32 1.442695, %v8584_v25 }
 0xf16   : > { %v10058_v13 = vpop.eup %10057  ;;  %v15734_v54 = vadd.f32 1.0, %v10056_v4  ;;  %v8430_v51 = vpop.f32.mrf.mxu0  ;;  %v7448_v4 = vld [vmem:[%s16272_s19 + $0x3b0] sm:$0xff] }
 0xf17   : > { %v8717_v10 = vsel %vm8716_vm0, %v10054_v27, %v8713_v61  ;;  %v8725_v24 = vmul.f32 %v10058_v13, %v15698_v7  ;;  %10059 = vpow2.f32 %v8619_v50  ;;  %v8518_v20 = vadd.f32 %v8430_v51, %v8236_v39 }
 0xf18   : > { %v8722_v56 = vsel %vm8719_vm2, %v8721_v63, %v8717_v10  ;;  %10061 = vrcp.f32 %v15734_v54  ;;  %vm8730_vm3 = vweird.f32 %v10058_v13  ;;  %v7905_v27 = vadd.f32 %v15672_v21, %v15670_v17  ;;  %v15810_v63 = vpop.f32.mrf.mxu1 }
 0xf19   : > { %9189 = vst.msk [vmem:[%s15732_s2] sm:$0xff] %vm1145_vm1, %v8722_v56  ;;  %v8726_v36 = vsub.f32 1.0, %v8725_v24  ;;  %10012 = vmatmul.msk.f32.gmra.mxu0 %vm6114_vm10, %v7446_v58  ;;  %v8553_v16 = vadd.f32 %v15626_v33, %v8518_v20  ;;  %vm8731_vm5 = vmor %vm8729_vm4, %vm8730_vm3  ;;  %v8750_v17 = vand.u32 2147483648, %v15734_v54  ;;  %v8748_v6 = vand.u32 2147483647, %v15734_v54  ;;  %v7420_v24 = vld [vmem:[%s16272_s19 + $0x2d0] sm:$0xff]  ;;  %v15835_v23 = vpop.f32.mrf.mxu3 }
 0xf1a   : > { %v8238_v47 = vadd.f32 %v15677_v12, %v7905_v27  ;;  %vm8744_vm8 = vweird.f32 %v15734_v54  ;;  %v7908_v12 = vadd.f32 %v15696_v40, %v15694_v57  ;;  %v7389_v57 = vld [vmem:[%s16272_s19 + $0x1d8] sm:$0xff]  ;;  %9978 = vmatmul.msk.f32.gmra.mxu1 %vm6114_vm10, %v7420_v24 }
 0xf1b   : > { %v8727_v18 = vmul.f32 %v10058_v13, %v8726_v36  ;;  %v8585_v41 = vsub.f32 0.0, %v8553_v16  ;;  %v8751_v45 = vor.u32 1.1754944e-38, %v8750_v17  ;;  %vm8749_vm11 = vcmp.eq.f32.partialorder %v8748_v6, 8.507059e+37  ;;  %v7357_v40 = vld [vmem:[%s16272_s19 + $0xd8] sm:$0xff]  ;;  %9907 = vmatmul.msk.f32.gmra.mxu3 %vm6114_vm10, %v7389_v57 }
 0xf1c   : > { %v8239_v36 = vadd.f32 %v15703_v34, %v7908_v12  ;;  %9939 = vmatmul.msk.f32.gmra.mxu2 %vm6114_vm10, %v7357_v40  ;;  %v15837_v34 = vpop.f32.mrf.mxu2  ;;  %v7449_v16 = vld [vmem:[%s16272_s19 + $0x3b8] sm:$0xff] }
 0xf1d   : > { %v10060_v42 = vpop.eup %10059  ;;  %v8728_v60 = vadd.f32 %v10058_v13, %v8727_v18  ;;  %v8621_v32 = vmul.f32 1.442695, %v8585_v41 }
 0xf1e   : > { %v10062_v19 = vpop.eup %10061  ;;  %v15769_v0 = vadd.f32 1.0, %v10060_v42  ;;  %v8433_v8 = vpop.f32.mrf.mxu0  ;;  %v7911_v42 = vadd.f32 %v15725_v2, %v15723_v48  ;;  %v7390_v48 = vld [vmem:[%s16272_s19 + $0x1e0] sm:$0xff] }
 0xf1f   : > { %v8732_v35 = vsel %vm8731_vm5, %v10058_v13, %v8728_v60  ;;  %v8740_v55 = vmul.f32 %v10062_v19, %v15734_v54  ;;  %v8519_v30 = vadd.f32 %v8433_v8, %v8237_v62  ;;  %vm8745_vm7 = vweird.f32 %v10062_v19  ;;  %v7358_v2 = vld [vmem:[%s16272_s19 + $0xe0] sm:$0xff] }
 0xf20   : > { %v8737_v38 = vsel %vm8734_vm6, %v8736_v3, %v8732_v35  ;;  %10063 = vrcp.f32 %v15769_v0  ;;  %vm8746_vm9 = vmor %vm8744_vm8, %vm8745_vm7  ;;  %v8765_v56 = vand.u32 2147483648, %v15769_v0  ;;  %v8763_v15 = vand.u32 2147483647, %v15769_v0  ;;  %v15844_v3 = vpop.f32.mrf.mxu1 }
 0xf21   : > { %9190 = vst.msk [vmem:[%s15732_s2 + $0x8] sm:$0xff] %vm1145_vm1, %v8737_v38  ;;  %v8741_v7 = vsub.f32 1.0, %v8740_v55  ;;  %10065 = vpow2.f32 %v8621_v32  ;;  %10013 = vmatmul.msk.f32.gmra.mxu0 %vm6114_vm10, %v7447_v28  ;;  %v8554_v11 = vadd.f32 %v15626_v33, %v8519_v30  ;;  %vm8759_vm13 = vweird.f32 %v15769_v0  ;;  %v7421_v32 = vld [vmem:[%s16272_s19 + $0x2d8] sm:$0xff]  ;;  %v15869_v17 = vpop.f32.mrf.mxu3 }
 0xf22   : > { %v8766_v18 = vor.u32 1.1754944e-38, %v8765_v56  ;;  %vm8764_vm15 = vcmp.eq.f32.partialorder %v8763_v15, 8.507059e+37  ;;  %9979 = vmatmul.msk.f32.gmra.mxu1 %vm6114_vm10, %v7421_v32 }
 0xf23   : > { %v8742_v21 = vmul.f32 %v10062_v19, %v8741_v7  ;;  %v8586_v46 = vsub.f32 0.0, %v8554_v11  ;;  %9908 = vmatmul.msk.f32.gmra.mxu3 %vm6114_vm10, %v7390_v48  ;;  %v8240_v7 = vadd.f32 %v15740_v9, %v7911_v42  ;;  %v7450_v11 = vld [vmem:[%s16272_s19 + $0x3c0] sm:$0xff]  ;;  %v7914_v9 = vadd.f32 %v15767_v29, %v15765_v37  ;;  %v7391_v29 = vld [vmem:[%s16272_s19 + $0x1e8] sm:$0xff] }
 0xf24   : > { %9940 = vmatmul.msk.f32.gmra.mxu2 %vm6114_vm10, %v7358_v2  ;;  %v7917_v42 = vadd.f32 %v15802_v59, %v15800_v1  ;;  %v7423_v1 = vld [vmem:[%s16272_s19 + $0x2e8] sm:$0xff] }
 0xf25   : > { %v8743_v26 = vadd.f32 %v10062_v19, %v8742_v21  ;;  %v8623_v13 = vmul.f32 1.442695, %v8586_v46  ;;  %v15871_v21 = vpop.f32.mrf.mxu2 }
 0xf26   : > { %v10064_v49 = vpop.eup %10063  ;;  %v8436_v25 = vpop.f32.mrf.mxu0 }
 0xf27   : > { %v10066_v61 = vpop.eup %10065  ;;  %v8747_v50 = vsel %vm8746_vm9, %v10062_v19, %v8743_v26  ;;  %v8755_v39 = vmul.f32 %v10064_v49, %v15769_v0  ;;  %v8520_v58 = vadd.f32 %v8436_v25, %v8238_v47  ;;  %10067 = vpow2.f32 %v8623_v13 }
 0xf28   : > { %v8752_v54 = vsel %vm8749_vm11, %v8751_v45, %v8747_v50  ;;  %v15812_v51 = vadd.f32 1.0, %v10066_v61  ;;  %vm8760_vm12 = vweird.f32 %v10064_v49  ;;  %v7359_v50 = vld [vmem:[%s16272_s19 + $0xe8] sm:$0xff] }
 0xf29   : > { %9191 = vst.msk [vmem:[%s15732_s2 + $0x10] sm:$0xff] %vm1145_vm1, %v8752_v54  ;;  %v8756_v10 = vsub.f32 1.0, %v8755_v39  ;;  %10014 = vmatmul.msk.f32.gmra.mxu0 %vm6114_vm10, %v7448_v4  ;;  %v8555_v44 = vadd.f32 %v15626_v33, %v8520_v58  ;;  %vm8761_vm14 = vmor %vm8759_vm13, %vm8760_vm12  ;;  %v7422_v39 = vld [vmem:[%s16272_s19 + $0x2e0] sm:$0xff]  ;;  %v8241_v58 = vadd.f32 %v15775_v22, %v7914_v9  ;;  %v7451_v22 = vld [vmem:[%s16272_s19 + $0x3c8] sm:$0xff] }
 0xf2a   : > { %10069 = vrcp.f32 %v15812_v51  ;;  %v8780_v30 = vand.u32 2147483648, %v15812_v51  ;;  %v8778_v31 = vand.u32 2147483647, %v15812_v51  ;;  %vm8774_vm2 = vweird.f32 %v15812_v51  ;;  %9980 = vmatmul.msk.f32.gmra.mxu1 %vm6114_vm10, %v7422_v39 }
 0xf2b   : > { %v8757_v20 = vmul.f32 %v10064_v49, %v8756_v10  ;;  %v8587_v43 = vsub.f32 0.0, %v8555_v44  ;;  %9909 = vmatmul.msk.f32.gmra.mxu3 %vm6114_vm10, %v7391_v29 }
 0xf2c   : > { %v8781_v25 = vor.u32 1.1754944e-38, %v8780_v30  ;;  %vm8779_vm4 = vcmp.eq.f32.partialorder %v8778_v31, 8.507059e+37  ;;  %9941 = vmatmul.msk.f32.gmra.mxu2 %vm6114_vm10, %v7359_v50 }
 0xf2d   : > { %v8758_v53 = vadd.f32 %v10064_v49, %v8757_v20  ;;  %v10068_v60 = vpop.eup %10067  ;;  %v8625_v62 = vmul.f32 1.442695, %v8587_v43  ;;  %v15907_v20 = vpop.f32.mrf.mxu2 }
 0xf2e   : > { %v8439_v14 = vpop.f32.mrf.mxu0  ;;  %v15846_v28 = vadd.f32 1.0, %v10068_v60 }
 0xf2f   : > { %v8762_v41 = vsel %vm8761_vm14, %v10064_v49, %v8758_v53  ;;  %v8521_v19 = vadd.f32 %v8439_v14, %v8239_v36  ;;  %10071 = vpow2.f32 %v8625_v62  ;;  %v15879_v49 = vpop.f32.mrf.mxu1  ;;  %v15905_v36 = vpop.f32.mrf.mxu3 }
 0xf30   : > { %v10070_v0 = vpop.eup %10069  ;;  %v8767_v8 = vsel %vm8764_vm15, %v8766_v18, %v8762_v41  ;;  %10073 = vrcp.f32 %v15846_v28  ;;  %v8795_v10 = vand.u32 2147483648, %v15846_v28  ;;  %v8793_v24 = vand.u32 2147483647, %v15846_v28 }
 0xf31   : > { %9192 = vst.msk [vmem:[%s15732_s2 + $0x18] sm:$0xff] %vm1145_vm1, %v8767_v8  ;;  %v8770_v35 = vmul.f32 %v10070_v0, %v15812_v51  ;;  %v8556_v55 = vadd.f32 %v15626_v33, %v8521_v19  ;;  %10015 = vmatmul.msk.f32.gmra.mxu0 %vm6114_vm10, %v7449_v16  ;;  %vm8775_vm0 = vweird.f32 %v10070_v0  ;;  %vm8789_vm6 = vweird.f32 %v15846_v28  ;;  %v7392_v19 = vld [vmem:[%s16272_s19 + $0x1f0] sm:$0xff] }
 0xf32   : > { %vm8776_vm3 = vmor %vm8774_vm2, %vm8775_vm0  ;;  %v8796_v16 = vor.u32 1.1754944e-38, %v8795_v10  ;;  %vm8794_vm8 = vcmp.eq.f32.partialorder %v8793_v24, 8.507059e+37  ;;  %9981 = vmatmul.msk.f32.gmra.mxu1 %vm6114_vm10, %v7423_v1 }
 0xf33   : > { %v8771_v38 = vsub.f32 1.0, %v8770_v35  ;;  %v8588_v27 = vsub.f32 0.0, %v8556_v55  ;;  %9910 = vmatmul.msk.f32.gmra.mxu3 %vm6114_vm10, %v7392_v19  ;;  %v8242_v55 = vadd.f32 %v15810_v63, %v7917_v42  ;;  %v7425_v42 = vld [vmem:[%s16272_s19 + $0x2f8] sm:$0xff] }
 0xf35   : > { %v8772_v52 = vmul.f32 %v10070_v0, %v8771_v38  ;;  %v8627_v5 = vmul.f32 1.442695, %v8588_v27  ;;  %v10072_v47 = vpop.eup %10071 }
 0xf36   : > { %v8442_v6 = vpop.f32.mrf.mxu0  ;;  %v10074_v45 = vpop.eup %10073  ;;  %v15882_v4 = vadd.f32 1.0, %v10072_v47  ;;  %v7920_v47 = vadd.f32 %v15837_v34, %v15835_v23 }
 0xf37   : > { %v8773_v26 = vadd.f32 %v10070_v0, %v8772_v52  ;;  %10075 = vpow2.f32 %v8627_v5  ;;  %v8522_v46 = vadd.f32 %v8442_v6, %v8240_v7  ;;  %v8785_v61 = vmul.f32 %v10074_v45, %v15846_v28  ;;  %v15915_v18 = vpop.f32.mrf.mxu1  ;;  %v15940_v27 = vpop.f32.mrf.mxu3  ;;  %v7452_v5 = vld [vmem:[%s16272_s19 + $0x3d0] sm:$0xff] }
 0xf38   : > { %10077 = vrcp.f32 %v15882_v4  ;;  %vm8790_vm5 = vweird.f32 %v10074_v45  ;;  %v8810_v35 = vand.u32 2147483648, %v15882_v4  ;;  %v8808_v32 = vand.u32 2147483647, %v15882_v4  ;;  %v15942_v7 = vpop.f32.mrf.mxu2 }
 0xf39   : > { %v8777_v12 = vsel %vm8776_vm3, %v10070_v0, %v8773_v26  ;;  %v8557_v37 = vadd.f32 %v15626_v33, %v8522_v46  ;;  %10016 = vmatmul.msk.f32.gmra.mxu0 %vm6114_vm10, %v7450_v11  ;;  %v8786_v54 = vsub.f32 1.0, %v8785_v61  ;;  %vm8791_vm7 = vmor %vm8789_vm6, %vm8790_vm5  ;;  %v7360_v0 = vld [vmem:[%s16272_s19 + $0xf0] sm:$0xff]  ;;  %vm8804_vm11 = vweird.f32 %v15882_v4 }
 0xf3a   : > { %v8782_v13 = vsel %vm8779_vm4, %v8781_v25, %v8777_v12  ;;  %9942 = vmatmul.msk.f32.gmra.mxu2 %vm6114_vm10, %v7360_v0  ;;  %v8811_v9 = vor.u32 1.1754944e-38, %v8810_v35  ;;  %vm8809_vm13 = vcmp.eq.f32.partialorder %v8808_v32, 8.507059e+37  ;;  %v7393_v25 = vld [vmem:[%s16272_s19 + $0x1f8] sm:$0xff]  ;;  %v7424_v12 = vld [vmem:[%s16272_s19 + $0x2f0] sm:$0xff] }
 0xf3b   : > { %9193 = vst.msk [vmem:[%s15732_s2 + $0x20] sm:$0xff] %vm1145_vm1, %v8782_v13  ;;  %v8589_v51 = vsub.f32 0.0, %v8557_v37  ;;  %v8787_v40 = vmul.f32 %v10074_v45, %v8786_v54  ;;  %9911 = vmatmul.msk.f32.gmra.mxu3 %vm6114_vm10, %v7393_v25  ;;  %9982 = vmatmul.msk.f32.gmra.mxu1 %vm6114_vm10, %v7424_v12  ;;  %v8243_v54 = vadd.f32 %v15844_v3, %v7920_v47 }
 0xf3d   : > { %v10076_v57 = vpop.eup %10075  ;;  %v8629_v56 = vmul.f32 1.442695, %v8589_v51  ;;  %v8788_v53 = vadd.f32 %v10074_v45, %v8787_v40 }
 0xf3e   : > { %v15909_v15 = vadd.f32 1.0, %v10076_v57  ;;  %v8445_v44 = vpop.f32.mrf.mxu0  ;;  %v10078_v14 = vpop.eup %10077 }
 0xf3f   : > { %10079 = vpow2.f32 %v8629_v56  ;;  %v8523_v43 = vadd.f32 %v8445_v44, %v8241_v58  ;;  %v8792_v60 = vsel %vm8791_vm7, %v10074_v45, %v8788_v53  ;;  %v8800_v41 = vmul.f32 %v10078_v14, %v15882_v4  ;;  %v15951_v11 = vpop.f32.mrf.mxu1  ;;  %v7361_v4 = vld [vmem:[%s16272_s19 + $0xf8] sm:$0xff]  ;;  %v15976_v51 = vpop.f32.mrf.mxu3 }
 0xf40   : > { %10081 = vrcp.f32 %v15909_v15  ;;  %v8797_v59 = vsel %vm8794_vm8, %v8796_v16, %v8792_v60  ;;  %vm8805_vm9 = vweird.f32 %v10078_v14  ;;  %v8825_v23 = vand.u32 2147483648, %v15909_v15  ;;  %v15978_v58 = vpop.f32.mrf.mxu2  ;;  %v7453_v56 = vld [vmem:[%s16272_s19 + $0x3d8] sm:$0xff] }
 0xf41   : > { %v8558_v62 = vadd.f32 %v15626_v33, %v8523_v43  ;;  %10017 = vmatmul.msk.f32.gmra.mxu0 %vm6114_vm10, %v7451_v22  ;;  %9194 = vst.msk [vmem:[%s15732_s2 + $0x28] sm:$0xff] %vm1145_vm1, %v8797_v59  ;;  %v8801_v8 = vsub.f32 1.0, %v8800_v41  ;;  %vm8806_vm12 = vmor %vm8804_vm11, %vm8805_vm9  ;;  %v8823_v37 = vand.u32 2147483647, %v15909_v15  ;;  %vm8819_vm15 = vweird.f32 %v15909_v15 }
 0xf42   : > { %9943 = vmatmul.msk.f32.gmra.mxu2 %vm6114_vm10, %v7361_v4  ;;  %v8826_v57 = vor.u32 1.1754944e-38, %v8825_v23  ;;  %v7923_v43 = vadd.f32 %v15871_v21, %v15869_v17 }
 0xf43   : > { %v8590_v28 = vsub.f32 0.0, %v8558_v62  ;;  %v8802_v2 = vmul.f32 %v10078_v14, %v8801_v8  ;;  %vm8824_vm2 = vcmp.eq.f32.partialorder %v8823_v37, 8.507059e+37  ;;  %9983 = vmatmul.msk.f32.gmra.mxu1 %vm6114_vm10, %v7425_v42 }
 0xf44   : > { %v8244_v17 = vadd.f32 %v15879_v49, %v7923_v43  ;;  %v7926_v49 = vadd.f32 %v15907_v20, %v15905_v36 }
 0xf45   : > { %v10080_v48 = vpop.eup %10079  ;;  %v8631_v38 = vmul.f32 1.442695, %v8590_v28  ;;  %v8803_v6 = vadd.f32 %v10078_v14, %v8802_v2 }
 0xf46   : > { %v10082_v30 = vpop.eup %10081  ;;  %v15944_v52 = vadd.f32 1.0, %v10080_v48  ;;  %v8448_v31 = vpop.f32.mrf.mxu0  ;;  %v8245_v20 = vadd.f32 %v15915_v18, %v7926_v49  ;;  %v7455_v18 = vld [vmem:[%s16272_s19 + $0x3e8] sm:$0xff] }
 0xf47   : > { %v8815_v63 = vmul.f32 %v10082_v30, %v15909_v15  ;;  %10083 = vpow2.f32 %v8631_v38  ;;  %v8807_v26 = vsel %vm8806_vm12, %v10078_v14, %v8803_v6  ;;  %v8524_v45 = vadd.f32 %v8448_v31, %v8242_v55  ;;  %v15986_v22 = vpop.f32.mrf.mxu1  ;;  %v16003_v1 = vpop.f32.mrf.mxu3  ;;  %v7454_v55 = vld [vmem:[%s16272_s19 + $0x3e0] sm:$0xff] }
 0xf48   : > { %10085 = vrcp.f32 %v15944_v52  ;;  %v8812_v61 = vsel %vm8809_vm13, %v8811_v9, %v8807_v26  ;;  %vm8820_vm14 = vweird.f32 %v10082_v30  ;;  %v8840_v60 = vand.u32 2147483648, %v15944_v52  ;;  %v16005_v59 = vpop.f32.mrf.mxu2 }
 0xf49   : > { %v8816_v46 = vsub.f32 1.0, %v8815_v63  ;;  %10018 = vmatmul.msk.f32.gmra.mxu0 %vm6114_vm10, %v7452_v5  ;;  %9195 = vst.msk [vmem:[%s15732_s2 + $0x30] sm:$0xff] %vm1145_vm1, %v8812_v61  ;;  %v8559_v29 = vadd.f32 %v15626_v33, %v8524_v45  ;;  %vm8821_vm0 = vmor %vm8819_vm15, %vm8820_vm14  ;;  %v8838_v62 = vand.u32 2147483647, %v15944_v52  ;;  %vm8834_vm4 = vweird.f32 %v15944_v52 }
 0xf4a   : > { %v8841_v28 = vor.u32 1.1754944e-38, %v8840_v60  ;;  %v7929_v61 = vadd.f32 %v15942_v7, %v15940_v27 }
 0xf4b   : > { %v8817_v34 = vmul.f32 %v10082_v30, %v8816_v46  ;;  %v8591_v13 = vsub.f32 0.0, %v8559_v29  ;;  %vm8839_vm6 = vcmp.eq.f32.partialorder %v8838_v62, 8.507059e+37 }
 0xf4d   : > { %v10084_v50 = vpop.eup %10083  ;;  %v8818_v39 = vadd.f32 %v10082_v30, %v8817_v34  ;;  %v8633_v3 = vmul.f32 1.442695, %v8591_v13 }
 0xf4e   : > { %v10086_v10 = vpop.eup %10085  ;;  %v15980_v40 = vadd.f32 1.0, %v10084_v50  ;;  %v8451_v24 = vpop.f32.mrf.mxu0 }
 0xf4f   : > { %v8822_v44 = vsel %vm8821_vm0, %v10082_v30, %v8818_v39  ;;  %v8830_v15 = vmul.f32 %v10086_v10, %v15944_v52  ;;  %v8525_v16 = vadd.f32 %v8451_v24, %v8243_v54  ;;  %vm8835_vm3 = vweird.f32 %v10086_v10  ;;  %v16013_v30 = vpop.f32.mrf.mxu1  ;;  %v16026_v45 = vpop.f32.mrf.mxu3 }
 0xf50   : > { %v8827_v53 = vsel %vm8824_vm2, %v8826_v57, %v8822_v44  ;;  %10087 = vrcp.f32 %v15980_v40  ;;  %vm8836_vm5 = vmor %vm8834_vm4, %vm8835_vm3  ;;  %v8855_v36 = vand.u32 2147483648, %v15980_v40  ;;  %v8853_v9 = vand.u32 2147483647, %v15980_v40  ;;  %v16028_v25 = vpop.f32.mrf.mxu2 }
 0xf51   : > { %9196 = vst.msk [vmem:[%s15732_s2 + $0x38] sm:$0xff] %vm1145_vm1, %v8827_v53  ;;  %v8831_v14 = vsub.f32 1.0, %v8830_v15  ;;  %10089 = vpow2.f32 %v8633_v3  ;;  %10019 = vmatmul.msk.f32.gmra.mxu0 %vm6114_vm10, %v7453_v56  ;;  %v8560_v19 = vadd.f32 %v15626_v33, %v8525_v16  ;;  %vm8849_vm8 = vweird.f32 %v15980_v40 }
 0xf52   : > { %v8856_v4 = vor.u32 1.1754944e-38, %v8855_v36  ;;  %vm8854_vm11 = vcmp.eq.f32.partialorder %v8853_v9, 8.507059e+37  ;;  %v7932_v16 = vadd.f32 %v15978_v58, %v15976_v51 }
 0xf53   : > { %v8832_v41 = vmul.f32 %v10086_v10, %v8831_v14  ;;  %v8592_v0 = vsub.f32 0.0, %v8560_v19  ;;  %v7456_v14 = vld [vmem:[%s16272_s19 + $0x3f0] sm:$0xff] }
 0xf55   : > { %v8833_v21 = vadd.f32 %v10086_v10, %v8832_v41  ;;  %v8635_v38 = vmul.f32 1.442695, %v8592_v0 }
 0xf56   : > { %v10088_v8 = vpop.eup %10087  ;;  %v8454_v35 = vpop.f32.mrf.mxu0 }
 0xf57   : > { %v10090_v48 = vpop.eup %10089  ;;  %v8837_v2 = vsel %vm8836_vm5, %v10086_v10, %v8833_v21  ;;  %v8845_v32 = vmul.f32 %v10088_v8, %v15980_v40  ;;  %v8526_v5 = vadd.f32 %v8454_v35, %v8244_v17  ;;  %10091 = vpow2.f32 %v8635_v38  ;;  %v16035_v50 = vpop.f32.mrf.mxu1 }
 0xf58   : > { %v8842_v52 = vsel %vm8839_vm6, %v8841_v28, %v8837_v2  ;;  %v16015_v31 = vadd.f32 1.0, %v10090_v48  ;;  %vm8850_vm7 = vweird.f32 %v10088_v8  ;;  %v8246_v40 = vadd.f32 %v15951_v11, %v7929_v61  ;;  %v16048_v3 = vpop.f32.mrf.mxu3  ;;  %v16050_v53 = vpop.f32.mrf.mxu2 }
 0xf59   : > { %9197 = vst.msk [vmem:[%s15732_s2 + $0x40] sm:$0xff] %vm1145_vm1, %v8842_v52  ;;  %v8846_v6 = vsub.f32 1.0, %v8845_v32  ;;  %10020 = vmatmul.msk.f32.gmra.mxu0 %vm6114_vm10, %v7454_v55  ;;  %v8561_v47 = vadd.f32 %v15626_v33, %v8526_v5  ;;  %vm8851_vm9 = vmor %vm8849_vm8, %vm8850_vm7  ;;  %v8247_v35 = vadd.f32 %v15986_v22, %v7932_v16 }
 0xf5a   : > { %10093 = vrcp.f32 %v16015_v31  ;;  %v8870_v24 = vand.u32 2147483648, %v16015_v31  ;;  %v8868_v44 = vand.u32 2147483647, %v16015_v31  ;;  %vm8864_vm13 = vweird.f32 %v16015_v31 }
 0xf5b   : > { %v8847_v63 = vmul.f32 %v10088_v8, %v8846_v6  ;;  %v8593_v46 = vsub.f32 0.0, %v8561_v47  ;;  %v7457_v6 = vld [vmem:[%s16272_s19 + $0x3f8] sm:$0xff]  ;;  %v7935_v47 = vadd.f32 %v16005_v59, %v16003_v1 }
 0xf5c   : > { %v8871_v19 = vor.u32 1.1754944e-38, %v8870_v24  ;;  %vm8869_vm15 = vcmp.eq.f32.partialorder %v8868_v44, 8.507059e+37 }
 0xf5d   : > { %v8848_v26 = vadd.f32 %v10088_v8, %v8847_v63  ;;  %v10092_v23 = vpop.eup %10091  ;;  %v8637_v37 = vmul.f32 1.442695, %v8593_v46 }
 0xf5e   : > { %v8457_v12 = vpop.f32.mrf.mxu0  ;;  %v16037_v54 = vadd.f32 1.0, %v10092_v23 }
 0xf5f   : > { %v8852_v34 = vsel %vm8851_vm9, %v10088_v8, %v8848_v26  ;;  %v8527_v29 = vadd.f32 %v8457_v12, %v8245_v20  ;;  %10095 = vpow2.f32 %v8637_v37  ;;  %v16058_v41 = vpop.f32.mrf.mxu1 }
 0xf60   : > { %v10094_v39 = vpop.eup %10093  ;;  %v8857_v13 = vsel %vm8854_vm11, %v8856_v4, %v8852_v34  ;;  %10097 = vrcp.f32 %v16037_v54  ;;  %v8885_v55 = vand.u32 2147483648, %v16037_v54  ;;  %v8883_v2 = vand.u32 2147483647, %v16037_v54  ;;  %v16072_v38 = vpop.f32.mrf.mxu3 }
 0xf61   : > { %9198 = vst.msk [vmem:[%s15732_s2 + $0x48] sm:$0xff] %vm1145_vm1, %v8857_v13  ;;  %v8860_v10 = vmul.f32 %v10094_v39, %v16015_v31  ;;  %v8562_v57 = vadd.f32 %v15626_v33, %v8527_v29  ;;  %10021 = vmatmul.msk.f32.gmra.mxu0 %vm6114_vm10, %v7455_v18  ;;  %vm8865_vm12 = vweird.f32 %v10094_v39  ;;  %v16074_v52 = vpop.f32.mrf.mxu2  ;;  %vm8879_vm2 = vweird.f32 %v16037_v54 }
 0xf62   : > { %vm8866_vm14 = vmor %vm8864_vm13, %vm8865_vm12  ;;  %v8886_v9 = vor.u32 1.1754944e-38, %v8885_v55  ;;  %vm8884_vm4 = vcmp.eq.f32.partialorder %v8883_v2, 8.507059e+37  ;;  %v8248_v34 = vadd.f32 %v16013_v30, %v7935_v47  ;;  %v7944_v47 = vadd.f32 %v16074_v52, %v16072_v38 }
 0xf63   : > { %v8861_v27 = vsub.f32 1.0, %v8860_v10  ;;  %v8594_v7 = vsub.f32 0.0, %v8562_v57 }
 0xf65   : > { %v8862_v56 = vmul.f32 %v10094_v39, %v8861_v27  ;;  %v8639_v15 = vmul.f32 1.442695, %v8594_v7  ;;  %v10096_v11 = vpop.eup %10095  ;;  %v7938_v7 = vadd.f32 %v16028_v25, %v16026_v45 }
 0xf66   : > { %v8460_v43 = vpop.f32.mrf.mxu0  ;;  %v10098_v62 = vpop.eup %10097  ;;  %v16061_v17 = vadd.f32 1.0, %v10096_v11  ;;  %v16115_v11 = vld [vmem:[%s16271_s18] ss:$0 sm:$0xff] }
 0xf67   : > { %v8863_v42 = vadd.f32 %v10094_v39, %v8862_v56  ;;  %10099 = vpow2.f32 %v8639_v15  ;;  %v8528_v60 = vadd.f32 %v8460_v43, %v8246_v40  ;;  %v8875_v0 = vmul.f32 %v10098_v62, %v16037_v54  ;;  %v16082_v20 = vpop.f32.mrf.mxu1 }
 0xf68   : > { %10101 = vrcp.f32 %v16061_v17  ;;  %vm8880_vm0 = vweird.f32 %v10098_v62  ;;  %v8900_v23 = vand.u32 2147483648, %v16061_v17  ;;  %v8898_v1 = vand.u32 2147483647, %v16061_v17 }
 0xf69   : > { %v8867_v21 = vsel %vm8866_vm14, %v10094_v39, %v8863_v42  ;;  %v8563_v51 = vadd.f32 %v15626_v33, %v8528_v60  ;;  %10022 = vmatmul.msk.f32.gmra.mxu0 %vm6114_vm10, %v7456_v14  ;;  %v8876_v8 = vsub.f32 1.0, %v8875_v0  ;;  %vm8881_vm3 = vmor %vm8879_vm2, %vm8880_vm0  ;;  %v16095_v39 = vpop.f32.mrf.mxu3  ;;  %v8251_v38 = vadd.f32 %v16082_v20, %v7944_v47 }
 0xf6a   : > { %v8872_v58 = vsel %vm8869_vm15, %v8871_v19, %v8867_v21  ;;  %v8901_v27 = vor.u32 1.1754944e-38, %v8900_v23  ;;  %vm8899_vm7 = vcmp.eq.f32.partialorder %v8898_v1, 8.507059e+37 }
 0xf6b   : > { %9199 = vst.msk [vmem:[%s15732_s2 + $0x50] sm:$0xff] %vm1145_vm1, %v8872_v58  ;;  %v8595_v28 = vsub.f32 0.0, %v8563_v51  ;;  %v8877_v48 = vmul.f32 %v10098_v62, %v8876_v8 }
 0xf6d   : > { %v10100_v49 = vpop.eup %10099  ;;  %v8641_v32 = vmul.f32 1.442695, %v8595_v28  ;;  %v8878_v22 = vadd.f32 %v10098_v62, %v8877_v48 }
 0xf6e   : > { %v16076_v31 = vadd.f32 1.0, %v10100_v49  ;;  %v8463_v5 = vpop.f32.mrf.mxu0  ;;  %v10102_v63 = vpop.eup %10101  ;;  %v7941_v49 = vadd.f32 %v16050_v53, %v16048_v3 }
 0xf6f   : > { %10103 = vpow2.f32 %v8641_v32  ;;  %v8529_v36 = vadd.f32 %v8463_v5, %v8247_v35  ;;  %v8882_v26 = vsel %vm8881_vm3, %v10098_v62, %v8878_v22  ;;  %v8890_v46 = vmul.f32 %v10102_v63, %v16061_v17  ;;  %v16106_v44 = vpop.f32.mrf.mxu1 }
 0xf70   : > { %10105 = vrcp.f32 %v16076_v31  ;;  %v8887_v12 = vsel %vm8884_vm4, %v8886_v9, %v8882_v26  ;;  %vm8895_vm5 = vweird.f32 %v10102_v63  ;;  %v8915_v43 = vand.u32 2147483648, %v16076_v31 }
 0xf71   : > { %v8564_v4 = vadd.f32 %v15626_v33, %v8529_v36  ;;  %10023 = vmatmul.msk.f32.gmra.mxu0 %vm6114_vm10, %v7457_v6  ;;  %9200 = vst.msk [vmem:[%s15732_s2 + $0x58] sm:$0xff] %vm1145_vm1, %v8887_v12  ;;  %v8891_v18 = vsub.f32 1.0, %v8890_v46  ;;  %v16097_v33 = vpop.f32.mrf.mxu2  ;;  %vm8894_vm10 = vweird.f32 %v16061_v17  ;;  %v8913_v16 = vand.u32 2147483647, %v16076_v31  ;;  %v16121_v28 = vpop.f32.mrf.mxu3 }
 0xf72   : > { %vm8896_vm6 = vmor %vm8894_vm10, %vm8895_vm5  ;;  %vm8909_vm9 = vweird.f32 %v16076_v31  ;;  %v8249_v62 = vadd.f32 %v16035_v50, %v7938_v7  ;;  %v8916_v17 = vor.u32 1.1754944e-38, %v8915_v43  ;;  %v8250_v22 = vadd.f32 %v16058_v41, %v7941_v49 }
 0xf73   : > { %v8596_v61 = vsub.f32 0.0, %v8564_v4  ;;  %v8892_v29 = vmul.f32 %v10102_v63, %v8891_v18  ;;  %vm8914_vm12 = vcmp.eq.f32.partialorder %v8913_v16, 8.507059e+37 }
 0xf75   : > { %v10104_v37 = vpop.eup %10103  ;;  %v8643_v59 = vmul.f32 1.442695, %v8596_v61  ;;  %v8893_v57 = vadd.f32 %v10102_v63, %v8892_v29 }
 0xf76   : > { %v10106_v13 = vpop.eup %10105  ;;  %v16099_v54 = vadd.f32 1.0, %v10104_v37  ;;  %v8466_v10 = vpop.f32.mrf.mxu0 }
 0xf77   : > { %v8905_v30 = vmul.f32 %v10106_v13, %v16076_v31  ;;  %10107 = vpow2.f32 %v8643_v59  ;;  %v8897_v40 = vsel %vm8896_vm6, %v10102_v63, %v8893_v57  ;;  %v8530_v56 = vadd.f32 %v8466_v10, %v8248_v34  ;;  %v16132_v6 = vpop.f32.mrf.mxu1 }
 0xf78   : > { %10109 = vrcp.f32 %v16099_v54  ;;  %v8902_v15 = vsel %vm8899_vm7, %v8901_v27, %v8897_v40  ;;  %vm8910_vm8 = vweird.f32 %v10106_v13  ;;  %v8930_v2 = vand.u32 2147483648, %v16099_v54 }
 0xf79   : > { %v8906_v24 = vsub.f32 1.0, %v8905_v30  ;;  %9201 = vst.msk [vmem:[%s15732_s2 + $0x60] sm:$0xff] %vm1145_vm1, %v8902_v15  ;;  %v8565_v45 = vadd.f32 %v16115_v11, %v8530_v56  ;;  %vm8911_vm11 = vmor %vm8909_vm9, %vm8910_vm8  ;;  %v16123_v35 = vpop.f32.mrf.mxu2  ;;  %v8928_v31 = vand.u32 2147483647, %v16099_v54  ;;  %vm8924_vm14 = vweird.f32 %v16099_v54  ;;  %v16140_v34 = vpop.f32.mrf.mxu3 }
 0xf7a   : > { %v8931_v63 = vor.u32 1.1754944e-38, %v8930_v2  ;;  %v7947_v27 = vadd.f32 %v16097_v33, %v16095_v39 }
 0xf7b   : > { %v8907_v14 = vmul.f32 %v10106_v13, %v8906_v24  ;;  %v8597_v60 = vsub.f32 0.0, %v8565_v45  ;;  %vm8929_vm0 = vcmp.eq.f32.partialorder %v8928_v31, 8.507059e+37 }
 0xf7d   : > { %v10108_v25 = vpop.eup %10107  ;;  %v8908_v42 = vadd.f32 %v10106_v13, %v8907_v14  ;;  %v8645_v8 = vmul.f32 1.442695, %v8597_v60 }
 0xf7e   : > { %v10110_v19 = vpop.eup %10109  ;;  %v8692_v21 = vadd.f32 1.0, %v10108_v25  ;;  %v8469_v0 = vpop.f32.mrf.mxu0 }
 0xf7f   : > { %v8912_v51 = vsel %vm8911_vm11, %v10106_v13, %v8908_v42  ;;  %v8920_v58 = vmul.f32 %v10110_v19, %v16099_v54  ;;  %v8531_v48 = vadd.f32 %v8469_v0, %v8249_v62  ;;  %vm8925_vm13 = vweird.f32 %v10110_v19  ;;  %v16146_v10 = vpop.f32.mrf.mxu1 }
 0xf80   : > { %v8917_v55 = vsel %vm8914_vm12, %v8916_v17, %v8912_v51  ;;  %10111 = vrcp.f32 %v8692_v21  ;;  %vm8926_vm15 = vmor %vm8924_vm14, %vm8925_vm13  ;;  %v8945_v29 = vand.u32 2147483648, %v8692_v21  ;;  %v8943_v1 = vand.u32 2147483647, %v8692_v21 }
 0xf81   : > { %9202 = vst.msk [vmem:[%s15732_s2 + $0x68] sm:$0xff] %vm1145_vm1, %v8917_v55  ;;  %v8921_v50 = vsub.f32 1.0, %v8920_v58  ;;  %10113 = vpow2.f32 %v8645_v8  ;;  %v8566_v5 = vadd.f32 %v16115_v11, %v8531_v48  ;;  %v16142_v37 = vpop.f32.mrf.mxu2  ;;  %vm8939_vm3 = vweird.f32 %v8692_v21  ;;  %v16154_v39 = vpop.f32.mrf.mxu3 }
 0xf82   : > { %v8946_v57 = vor.u32 1.1754944e-38, %v8945_v29  ;;  %vm8944_vm5 = vcmp.eq.f32.partialorder %v8943_v1, 8.507059e+37  ;;  %v8252_v42 = vadd.f32 %v16106_v44, %v7947_v27  ;;  %v7950_v0 = vadd.f32 %v16123_v35, %v16121_v28 }
 0xf83   : > { %v8922_v32 = vmul.f32 %v10110_v19, %v8921_v50  ;;  %v8598_v3 = vsub.f32 0.0, %v8566_v5 }
 0xf84   : > { %v8253_v5 = vadd.f32 %v16132_v6, %v7950_v0 }
 0xf85   : > { %v8923_v36 = vadd.f32 %v10110_v19, %v8922_v32  ;;  %v8647_v12 = vmul.f32 1.442695, %v8598_v3 }
 0xf86   : > { %v10112_v53 = vpop.eup %10111  ;;  %v8472_v9 = vpop.f32.mrf.mxu0 }
 0xf87   : > { %v10114_v26 = vpop.eup %10113  ;;  %v8927_v46 = vsel %vm8926_vm15, %v10110_v19, %v8923_v36  ;;  %v8935_v4 = vmul.f32 %v10112_v53, %v8692_v21  ;;  %v8532_v41 = vadd.f32 %v8472_v9, %v8250_v22  ;;  %10115 = vpow2.f32 %v8647_v12  ;;  %v16160_v44 = vpop.f32.mrf.mxu1 }
 0xf88   : > { %v8932_v18 = vsel %vm8929_vm0, %v8931_v63, %v8927_v46  ;;  %v8693_v61 = vadd.f32 1.0, %v10114_v26  ;;  %vm8940_vm2 = vweird.f32 %v10112_v53 }
 0xf89   : > { %9203 = vst.msk [vmem:[%s15732_s2 + $0x70] sm:$0xff] %vm1145_vm1, %v8932_v18  ;;  %v8936_v23 = vsub.f32 1.0, %v8935_v4  ;;  %v8567_v59 = vadd.f32 %v16115_v11, %v8532_v41  ;;  %vm8941_vm4 = vmor %vm8939_vm3, %vm8940_vm2  ;;  %v16156_v33 = vpop.f32.mrf.mxu2  ;;  %v16166_v9 = vpop.f32.mrf.mxu3 }
 0xf8a   : > { %10117 = vrcp.f32 %v8693_v61  ;;  %v8960_v60 = vand.u32 2147483648, %v8693_v61  ;;  %v8958_v19 = vand.u32 2147483647, %v8693_v61  ;;  %vm8954_vm6 = vweird.f32 %v8693_v61 }
 0xf8b   : > { %v8937_v52 = vmul.f32 %v10112_v53, %v8936_v23  ;;  %v8599_v54 = vsub.f32 0.0, %v8567_v59 }
 0xf8c   : > { %v8961_v49 = vor.u32 1.1754944e-38, %v8960_v60  ;;  %vm8959_vm8 = vcmp.eq.f32.partialorder %v8958_v19, 8.507059e+37 }
 0xf8d   : > { %v8938_v13 = vadd.f32 %v10112_v53, %v8937_v52  ;;  %v10116_v7 = vpop.eup %10115  ;;  %v8649_v20 = vmul.f32 1.442695, %v8599_v54 }
 0xf8e   : > { %v8475_v30 = vpop.f32.mrf.mxu0  ;;  %v8694_v43 = vadd.f32 1.0, %v10116_v7 }
 0xf8f   : > { %v8942_v40 = vsel %vm8941_vm4, %v10112_v53, %v8938_v13  ;;  %v8533_v24 = vadd.f32 %v8475_v30, %v8251_v38  ;;  %10119 = vpow2.f32 %v8649_v20  ;;  %v16176_v38 = vpop.f32.mrf.mxu1 }
 0xf90   : > { %v10118_v56 = vpop.eup %10117  ;;  %v8947_v15 = vsel %vm8944_vm5, %v8946_v57, %v8942_v40  ;;  %10121 = vrcp.f32 %v8694_v43  ;;  %v8975_v22 = vand.u32 2147483648, %v8694_v43  ;;  %v8973_v53 = vand.u32 2147483647, %v8694_v43 }
 0xf91   : > { %9204 = vst.msk [vmem:[%s15732_s2 + $0x78] sm:$0xff] %vm1145_vm1, %v8947_v15  ;;  %v8950_v14 = vmul.f32 %v10118_v56, %v8693_v61  ;;  %v8568_v16 = vadd.f32 %v16115_v11, %v8533_v24  ;;  %vm8955_vm10 = vweird.f32 %v10118_v56  ;;  %v16168_v47 = vpop.f32.mrf.mxu2  ;;  %vm8969_vm11 = vweird.f32 %v8694_v43 }
 0xf92   : > { %vm8956_vm7 = vmor %vm8954_vm6, %vm8955_vm10  ;;  %v8976_v6 = vor.u32 1.1754944e-38, %v8975_v22  ;;  %v7953_v61 = vadd.f32 %v16142_v37, %v16140_v34  ;;  %vm8974_vm13 = vcmp.eq.f32.partialorder %v8973_v53, 8.507059e+37 }
 0xf93   : > { %v8951_v45 = vsub.f32 1.0, %v8950_v14  ;;  %v8600_v25 = vsub.f32 0.0, %v8568_v16 }
 0xf94   : > { %v8254_v54 = vadd.f32 %v16146_v10, %v7953_v61  ;;  %v7956_v10 = vadd.f32 %v16156_v33, %v16154_v39 }
 0xf95   : > { %v8952_v62 = vmul.f32 %v10118_v56, %v8951_v45  ;;  %v8651_v17 = vmul.f32 1.442695, %v8600_v25  ;;  %v10120_v51 = vpop.eup %10119 }
 0xf96   : > { %v8478_v21 = vpop.f32.mrf.mxu0  ;;  %v10122_v55 = vpop.eup %10121  ;;  %v8695_v50 = vadd.f32 1.0, %v10120_v51  ;;  %v8255_v33 = vadd.f32 %v16160_v44, %v7956_v10 }
 0xf97   : > { %v8953_v58 = vadd.f32 %v10118_v56, %v8952_v62  ;;  %10123 = vpow2.f32 %v8651_v17  ;;  %v8534_v8 = vadd.f32 %v8478_v21, %v8252_v42  ;;  %v8965_v2 = vmul.f32 %v10122_v55, %v8694_v43  ;;  %v8211_v17 = vpop.f32.mrf.mxu1 }
 0xf98   : > { %10125 = vrcp.f32 %v8695_v50  ;;  %vm8970_vm9 = vweird.f32 %v10122_v55  ;;  %v8990_v13 = vand.u32 2147483648, %v8695_v50  ;;  %v8988_v27 = vand.u32 2147483647, %v8695_v50 }
 0xf99   : > { %v8957_v48 = vsel %vm8956_vm7, %v10118_v56, %v8953_v58  ;;  %v8569_v32 = vadd.f32 %v16115_v11, %v8534_v8  ;;  %v8966_v28 = vsub.f32 1.0, %v8965_v2  ;;  %vm8971_vm12 = vmor %vm8969_vm11, %vm8970_vm9  ;;  %vm8984_vm15 = vweird.f32 %v8695_v50  ;;  %v7752_v56 = vpop.f32.mrf.mxu3  ;;  %v7961_v15 = vpop.f32.mrf.mxu2 }
 0xf9a   : > { %v8962_v31 = vsel %vm8959_vm8, %v8961_v49, %v8957_v48  ;;  %v8991_v43 = vor.u32 1.1754944e-38, %v8990_v13  ;;  %vm8989_vm2 = vcmp.eq.f32.partialorder %v8988_v27, 8.507059e+37 }
 0xf9b   : > { %9205 = vst.msk [vmem:[%s15732_s2 + $0x80] sm:$0xff] %vm1145_vm1, %v8962_v31  ;;  %v8601_v35 = vsub.f32 0.0, %v8569_v32  ;;  %v8967_v3 = vmul.f32 %v10122_v55, %v8966_v28  ;;  %v7959_v32 = vadd.f32 %v16168_v47, %v16166_v9 }
 0xf9d   : > { %v10124_v36 = vpop.eup %10123  ;;  %v8653_v63 = vmul.f32 1.442695, %v8601_v35  ;;  %v8968_v4 = vadd.f32 %v10122_v55, %v8967_v3  ;;  %v8256_v53 = vadd.f32 %v16176_v38, %v7959_v32 }
 0xf9e   : > { %v16170_v26 = vadd.f32 1.0, %v10124_v36  ;;  %v8481_v46 = vpop.f32.mrf.mxu0  ;;  %v10126_v18 = vpop.eup %10125 }
 0xf9f   : > { %10127 = vpow2.f32 %v8653_v63  ;;  %v8535_v12 = vadd.f32 %v8481_v46, %v8253_v5  ;;  %v8972_v41 = vsel %vm8971_vm12, %v10122_v55, %v8968_v4  ;;  %v8980_v23 = vmul.f32 %v10126_v18, %v8695_v50  ;;  %v8214_v47 = vpop.f32.mrf.mxu1 }
 0xfa0   : > { %10129 = vrcp.f32 %v16170_v26  ;;  %v8977_v52 = vsel %vm8974_vm13, %v8976_v6, %v8972_v41  ;;  %vm8985_vm14 = vweird.f32 %v10126_v18  ;;  %v9005_v42 = vand.u32 2147483648, %v16170_v26 }
 0xfa1   : > { %v8570_v29 = vadd.f32 %v16115_v11, %v8535_v12  ;;  %9206 = vst.msk [vmem:[%s15732_s2 + $0x88] sm:$0xff] %vm1145_vm1, %v8977_v52  ;;  %v8981_v1 = vsub.f32 1.0, %v8980_v23  ;;  %vm8986_vm0 = vmor %vm8984_vm15, %vm8985_vm14  ;;  %v9003_v62 = vand.u32 2147483647, %v16170_v26  ;;  %vm8999_vm4 = vweird.f32 %v16170_v26  ;;  %v7755_v28 = vpop.f32.mrf.mxu3  ;;  %v7964_v35 = vpop.f32.mrf.mxu2 }
 0xfa2   : > { %v9006_v58 = vor.u32 1.1754944e-38, %v9005_v42  ;;  %v7962_v12 = vadd.f32 %v7961_v15, %v7752_v56 }
 0xfa3   : > { %v8602_v59 = vsub.f32 0.0, %v8570_v29  ;;  %v8982_v30 = vmul.f32 %v10126_v18, %v8981_v1  ;;  %vm9004_vm10 = vcmp.eq.f32.partialorder %v9003_v62, 8.507059e+37 }
 0xfa5   : > { %v10128_v57 = vpop.eup %10127  ;;  %v8655_v34 = vmul.f32 1.442695, %v8602_v59  ;;  %v8983_v20 = vadd.f32 %v10126_v18, %v8982_v30  ;;  %v8257_v59 = vadd.f32 %v8211_v17, %v7962_v12 }
 0xfa6   : > { %v10130_v37 = vpop.eup %10129  ;;  %v16181_v7 = vadd.f32 1.0, %v10128_v57  ;;  %v8484_v40 = vpop.f32.mrf.mxu0 }
 0xfa7   : > { %v8995_v24 = vmul.f32 %v10130_v37, %v16170_v26  ;;  %10131 = vpow2.f32 %v8655_v34  ;;  %v8987_v14 = vsel %vm8986_vm0, %v10126_v18, %v8983_v20  ;;  %v8536_v45 = vadd.f32 %v8484_v40, %v8254_v54  ;;  %v8217_v10 = vpop.f32.mrf.mxu1 }
 0xfa8   : > { %10133 = vrcp.f32 %v16181_v7  ;;  %v8992_v25 = vsel %vm8989_vm2, %v8991_v43, %v8987_v14  ;;  %vm9000_vm3 = vweird.f32 %v10130_v37  ;;  %v9020_v5 = vand.u32 2147483648, %v16181_v7 }
 0xfa9   : > { %v8996_v16 = vsub.f32 1.0, %v8995_v24  ;;  %9207 = vst.msk [vmem:[%s15732_s2 + $0x90] sm:$0xff] %vm1145_vm1, %v8992_v25  ;;  %v8571_v19 = vadd.f32 %v16115_v11, %v8536_v45  ;;  %vm9001_vm5 = vmor %vm8999_vm4, %vm9000_vm3  ;;  %v9018_v36 = vand.u32 2147483647, %v16181_v7  ;;  %vm9014_vm7 = vweird.f32 %v16181_v7  ;;  %v7758_v30 = vpop.f32.mrf.mxu3  ;;  %v7967_v27 = vpop.f32.mrf.mxu2 }
 0xfaa   : > { %v9021_v46 = vor.u32 1.1754944e-38, %v9020_v5  ;;  %v7965_v20 = vadd.f32 %v7964_v35, %v7755_v28 }
 0xfab   : > { %v8997_v60 = vmul.f32 %v10130_v37, %v8996_v16  ;;  %v8603_v39 = vsub.f32 0.0, %v8571_v19  ;;  %vm9019_vm9 = vcmp.eq.f32.partialorder %v9018_v36, 8.507059e+37 }
 0xfac   : > { %v8258_v19 = vadd.f32 %v8214_v47, %v7965_v20 }
 0xfad   : > { %v10132_v21 = vpop.eup %10131  ;;  %v8998_v0 = vadd.f32 %v10130_v37, %v8997_v60  ;;  %v8657_v48 = vmul.f32 1.442695, %v8603_v39 }
 0xfae   : > { %v10134_v51 = vpop.eup %10133  ;;  %v8698_v8 = vadd.f32 1.0, %v10132_v21  ;;  %v8487_v55 = vpop.f32.mrf.mxu0 }
 0xfaf   : > { %v9002_v49 = vsel %vm9001_vm5, %v10130_v37, %v8998_v0  ;;  %v9010_v50 = vmul.f32 %v10134_v51, %v16181_v7  ;;  %v8537_v44 = vadd.f32 %v8487_v55, %v8255_v33  ;;  %vm9015_vm6 = vweird.f32 %v10134_v51  ;;  %v8220_v35 = vpop.f32.mrf.mxu1 }
 0xfb0   : > { %v9007_v2 = vsel %vm9004_vm10, %v9006_v58, %v9002_v49  ;;  %10135 = vrcp.f32 %v8698_v8  ;;  %vm9016_vm8 = vmor %vm9014_vm7, %vm9015_vm6  ;;  %v9035_v1 = vand.u32 2147483648, %v8698_v8  ;;  %v9033_v54 = vand.u32 2147483647, %v8698_v8 }
 0xfb1   : > { %9208 = vst.msk [vmem:[%s15732_s2 + $0x98] sm:$0xff] %vm1145_vm1, %v9007_v2  ;;  %v9011_v31 = vsub.f32 1.0, %v9010_v50  ;;  %10137 = vpow2.f32 %v8657_v48  ;;  %v8572_v3 = vadd.f32 %v16115_v11, %v8537_v44  ;;  %vm9029_vm12 = vweird.f32 %v8698_v8  ;;  %v7761_v33 = vpop.f32.mrf.mxu3 }
 0xfb2   : > { %v9036_v7 = vor.u32 1.1754944e-38, %v9035_v1  ;;  %vm9034_vm14 = vcmp.eq.f32.partialorder %v9033_v54, 8.507059e+37 }
 0xfb3   : > { %v9012_v22 = vmul.f32 %v10134_v51, %v9011_v31  ;;  %v8604_v9 = vsub.f32 0.0, %v8572_v3 }
 0xfb5   : > { %v9013_v63 = vadd.f32 %v10134_v51, %v9012_v22  ;;  %v8659_v41 = vmul.f32 1.442695, %v8604_v9 }
 0xfb6   : > { %v10136_v26 = vpop.eup %10135  ;;  %v8490_v4 = vpop.f32.mrf.mxu0 }
 0xfb7   : > { %v10138_v18 = vpop.eup %10137  ;;  %v9017_v6 = vsel %vm9016_vm8, %v10134_v51, %v9013_v63  ;;  %v9025_v61 = vmul.f32 %v10136_v26, %v8698_v8  ;;  %v8538_v52 = vadd.f32 %v8490_v4, %v8256_v53  ;;  %10139 = vpow2.f32 %v8659_v41  ;;  %v7970_v51 = vpop.f32.mrf.mxu2 }
 0xfb8   : > { %v9022_v23 = vsel %vm9019_vm9, %v9021_v46, %v9017_v6  ;;  %v8699_v29 = vadd.f32 1.0, %v10138_v18  ;;  %vm9030_vm11 = vweird.f32 %v10136_v26  ;;  %v7968_v8 = vadd.f32 %v7967_v27, %v7758_v30 }
 0xfb9   : > { %9209 = vst.msk [vmem:[%s15732_s2 + $0xa0] sm:$0xff] %vm1145_vm1, %v9022_v23  ;;  %v9026_v38 = vsub.f32 1.0, %v9025_v61  ;;  %v8573_v57 = vadd.f32 %v16115_v11, %v8538_v52  ;;  %vm9031_vm13 = vmor %vm9029_vm12, %vm9030_vm11  ;;  %v7764_v6 = vpop.f32.mrf.mxu3 }
 0xfba   : > { %10141 = vrcp.f32 %v8699_v29  ;;  %v9050_v17 = vand.u32 2147483648, %v8699_v29  ;;  %v9048_v0 = vand.u32 2147483647, %v8699_v29  ;;  %vm9044_vm0 = vweird.f32 %v8699_v29 }
 0xfbb   : > { %v9027_v13 = vmul.f32 %v10136_v26, %v9026_v38  ;;  %v8605_v37 = vsub.f32 0.0, %v8573_v57  ;;  %v8259_v3 = vadd.f32 %v8217_v10, %v7968_v8  ;;  %v8223_v57 = vpop.f32.mrf.mxu1 }
 0xfbc   : > { %v9051_v2 = vor.u32 1.1754944e-38, %v9050_v17  ;;  %vm9049_vm3 = vcmp.eq.f32.partialorder %v9048_v0, 8.507059e+37 }
 0xfbd   : > { %v9028_v34 = vadd.f32 %v10136_v26, %v9027_v13  ;;  %v10140_v24 = vpop.eup %10139  ;;  %v8661_v15 = vmul.f32 1.442695, %v8605_v37 }
 0xfbe   : > { %v8493_v40 = vpop.f32.mrf.mxu0  ;;  %v8700_v45 = vadd.f32 1.0, %v10140_v24 }
 0xfbf   : > { %v9032_v56 = vsel %vm9031_vm13, %v10136_v26, %v9028_v34  ;;  %v8539_v43 = vadd.f32 %v8493_v40, %v8257_v59  ;;  %10143 = vpow2.f32 %v8661_v15  ;;  %v7973_v61 = vpop.f32.mrf.mxu2 }
 0xfc0   : > { %v10142_v14 = vpop.eup %10141  ;;  %v9037_v16 = vsel %vm9034_vm14, %v9036_v7, %v9032_v56  ;;  %10145 = vrcp.f32 %v8700_v45  ;;  %v9065_v53 = vand.u32 2147483648, %v8700_v45  ;;  %v9063_v47 = vand.u32 2147483647, %v8700_v45 }
 0xfc1   : > { %9210 = vst.msk [vmem:[%s15732_s2 + $0xa8] sm:$0xff] %vm1145_vm1, %v9037_v16  ;;  %v9040_v25 = vmul.f32 %v10142_v14, %v8699_v29  ;;  %v8574_v42 = vadd.f32 %v16115_v11, %v8539_v43  ;;  %vm9045_vm15 = vweird.f32 %v10142_v14  ;;  %vm9059_vm5 = vweird.f32 %v8700_v45 }
 0xfc2   : > { %vm9046_vm2 = vmor %vm9044_vm0, %vm9045_vm15  ;;  %v9066_v23 = vor.u32 1.1754944e-38, %v9065_v53  ;;  %v7971_v29 = vadd.f32 %v7970_v51, %v7761_v33  ;;  %vm9064_vm6 = vcmp.eq.f32.partialorder %v9063_v47, 8.507059e+37 }
 0xfc3   : > { %v9041_v60 = vsub.f32 1.0, %v9040_v25  ;;  %v8606_v62 = vsub.f32 0.0, %v8574_v42  ;;  %v7767_v42 = vpop.f32.mrf.mxu3  ;;  %v8226_v8 = vpop.f32.mrf.mxu1 }
 0xfc4   : > { %v8260_v27 = vadd.f32 %v8220_v35, %v7971_v29 }
 0xfc5   : > { %v9042_v21 = vmul.f32 %v10142_v14, %v9041_v60  ;;  %v8663_v39 = vmul.f32 1.442695, %v8606_v62  ;;  %v10144_v55 = vpop.eup %10143 }
 0xfc6   : > { %v8496_v58 = vpop.f32.mrf.mxu0  ;;  %v10146_v48 = vpop.eup %10145  ;;  %v8701_v32 = vadd.f32 1.0, %v10144_v55 }
 0xfc7   : > { %v9043_v49 = vadd.f32 %v10142_v14, %v9042_v21  ;;  %10147 = vpow2.f32 %v8663_v39  ;;  %v8540_v50 = vadd.f32 %v8496_v58, %v8258_v19  ;;  %v9055_v44 = vmul.f32 %v10146_v48, %v8700_v45  ;;  %v7976_v60 = vpop.f32.mrf.mxu2 }
 0xfc8   : > { %10149 = vrcp.f32 %v8701_v32  ;;  %vm9060_vm4 = vweird.f32 %v10146_v48  ;;  %v9080_v30 = vand.u32 2147483648, %v8701_v32  ;;  %v9078_v7 = vand.u32 2147483647, %v8701_v32 }
 0xfc9   : > { %v9047_v31 = vsel %vm9046_vm2, %v10142_v14, %v9043_v49  ;;  %v8575_v28 = vadd.f32 %v16115_v11, %v8540_v50  ;;  %v9056_v22 = vsub.f32 1.0, %v9055_v44  ;;  %vm9061_vm10 = vmor %vm9059_vm5, %vm9060_vm4  ;;  %vm9074_vm8 = vweird.f32 %v8701_v32 }
 0xfca   : > { %v9052_v5 = vsel %vm9049_vm3, %v9051_v2, %v9047_v31  ;;  %v9081_v10 = vor.u32 1.1754944e-38, %v9080_v30  ;;  %v7974_v14 = vadd.f32 %v7973_v61, %v7764_v6  ;;  %vm9079_vm11 = vcmp.eq.f32.partialorder %v9078_v7, 8.507059e+37 }
 0xfcb   : > { %9211 = vst.msk [vmem:[%s15732_s2 + $0xb0] sm:$0xff] %vm1145_vm1, %v9052_v5  ;;  %v8607_v36 = vsub.f32 0.0, %v8575_v28  ;;  %v9057_v9 = vmul.f32 %v10146_v48, %v9056_v22  ;;  %v7977_v28 = vadd.f32 %v7976_v60, %v7767_v42 }
 0xfcc   : > { %v8261_v58 = vadd.f32 %v8223_v57, %v7974_v14 }
 0xfcd   : > { %v10148_v63 = vpop.eup %10147  ;;  %v8665_v26 = vmul.f32 1.442695, %v8607_v36  ;;  %v9058_v12 = vadd.f32 %v10146_v48, %v9057_v9  ;;  %v8262_v47 = vadd.f32 %v8226_v8, %v7977_v28 }
 0xfce   : > { %v16213_v46 = vadd.f32 1.0, %v10148_v63  ;;  %v8499_v4 = vpop.f32.mrf.mxu0  ;;  %v10150_v41 = vpop.eup %10149 }
 0xfcf   : > { %10151 = vpow2.f32 %v8665_v26  ;;  %v8541_v18 = vadd.f32 %v8499_v4, %v8259_v3  ;;  %v9062_v52 = vsel %vm9061_vm10, %v10146_v48, %v9058_v12  ;;  %v9070_v38 = vmul.f32 %v10150_v41, %v8701_v32  ;;  %v7770_v63 = vpop.f32.mrf.mxu3  ;;  %v7979_v9 = vpop.f32.mrf.mxu2 }
 0xfd0   : > { %10153 = vrcp.f32 %v16213_v46  ;;  %v9067_v59 = vsel %vm9064_vm6, %v9066_v23, %v9062_v52  ;;  %vm9075_vm7 = vweird.f32 %v10150_v41  ;;  %v9095_v19 = vand.u32 2147483648, %v16213_v46  ;;  %v8229_v52 = vpop.f32.mrf.mxu1 }
 0xfd1   : > { %v8576_v1 = vadd.f32 %v16115_v11, %v8541_v18  ;;  %9212 = vst.msk [vmem:[%s15732_s2 + $0xb8] sm:$0xff] %vm1145_vm1, %v9067_v59  ;;  %v9071_v13 = vsub.f32 1.0, %v9070_v38  ;;  %vm9076_vm9 = vmor %vm9074_vm8, %vm9075_vm7  ;;  %v9093_v21 = vand.u32 2147483647, %v16213_v46  ;;  %vm9089_vm13 = vweird.f32 %v16213_v46 }
 0xfd2   : > { %v9096_v49 = vor.u32 1.1754944e-38, %v9095_v19  ;;  %v7980_v6 = vadd.f32 %v7979_v9, %v7770_v63 }
 0xfd3   : > { %v8608_v54 = vsub.f32 0.0, %v8576_v1  ;;  %v9072_v37 = vmul.f32 %v10150_v41, %v9071_v13  ;;  %vm9094_vm15 = vcmp.eq.f32.partialorder %v9093_v21, 8.507059e+37 }
 0xfd4   : > { %v8263_v57 = vadd.f32 %v8229_v52, %v7980_v6 }
 0xfd5   : > { %v10152_v34 = vpop.eup %10151  ;;  %v8667_v40 = vmul.f32 1.442695, %v8608_v54  ;;  %v9073_v15 = vadd.f32 %v10150_v41, %v9072_v37 }
 0xfd6   : > { %v10154_v20 = vpop.eup %10153  ;;  %v16219_v24 = vadd.f32 1.0, %v10152_v34  ;;  %v8502_v56 = vpop.f32.mrf.mxu0 }
 0xfd7   : > { %v9085_v43 = vmul.f32 %v10154_v20, %v16213_v46  ;;  %10155 = vpow2.f32 %v8667_v40  ;;  %v9077_v16 = vsel %vm9076_vm9, %v10150_v41, %v9073_v15  ;;  %v8542_v25 = vadd.f32 %v8502_v56, %v8260_v27 }
 0xfd8   : > { %10157 = vrcp.f32 %v16219_v24  ;;  %v9082_v62 = vsel %vm9079_vm11, %v9081_v10, %v9077_v16  ;;  %vm9090_vm12 = vweird.f32 %v10154_v20  ;;  %v9110_v22 = vand.u32 2147483648, %v16219_v24 }
 0xfd9   : > { %v9086_v45 = vsub.f32 1.0, %v9085_v43  ;;  %9213 = vst.msk [vmem:[%s15732_s2 + $0xc0] sm:$0xff] %vm1145_vm1, %v9082_v62  ;;  %v8577_v0 = vadd.f32 %v16115_v11, %v8542_v25  ;;  %vm9091_vm14 = vmor %vm9089_vm13, %vm9090_vm12  ;;  %v9108_v3 = vand.u32 2147483647, %v16219_v24  ;;  %vm9104_vm2 = vweird.f32 %v16219_v24 }
 0xfda   : > { %v9111_v12 = vor.u32 1.1754944e-38, %v9110_v22 }
 0xfdb   : > { %v9087_v17 = vmul.f32 %v10154_v20, %v9086_v45  ;;  %v8609_v51 = vsub.f32 0.0, %v8577_v0  ;;  %vm9109_vm4 = vcmp.eq.f32.partialorder %v9108_v3, 8.507059e+37 }
 0xfdd   : > { %v10156_v39 = vpop.eup %10155  ;;  %v9088_v33 = vadd.f32 %v10154_v20, %v9087_v17  ;;  %v8669_v31 = vmul.f32 1.442695, %v8609_v51 }
 0xfde   : > { %v10158_v55 = vpop.eup %10157  ;;  %v8704_v50 = vadd.f32 1.0, %v10156_v39  ;;  %v8505_v48 = vpop.f32.mrf.mxu0 }
 0xfdf   : > { %v9092_v2 = vsel %vm9091_vm14, %v10154_v20, %v9088_v33  ;;  %v9100_v32 = vmul.f32 %v10158_v55, %v16219_v24  ;;  %v8543_v5 = vadd.f32 %v8505_v48, %v8261_v58  ;;  %vm9105_vm0 = vweird.f32 %v10158_v55 }
 0xfe0   : > { %v9097_v44 = vsel %vm9094_vm15, %v9096_v49, %v9092_v2  ;;  %10159 = vrcp.f32 %v8704_v50  ;;  %vm9106_vm3 = vmor %vm9104_vm2, %vm9105_vm0  ;;  %v9125_v54 = vand.u32 2147483648, %v8704_v50  ;;  %v9123_v27 = vand.u32 2147483647, %v8704_v50 }
 0xfe1   : > { %9214 = vst.msk [vmem:[%s15732_s2 + $0xc8] sm:$0xff] %vm1145_vm1, %v9097_v44  ;;  %v9101_v35 = vsub.f32 1.0, %v9100_v32  ;;  %10161 = vpow2.f32 %v8669_v31  ;;  %v8578_v53 = vadd.f32 %v16115_v11, %v8543_v5  ;;  %vm9119_vm10 = vweird.f32 %v8704_v50 }
 0xfe2   : > { %v9126_v40 = vor.u32 1.1754944e-38, %v9125_v54  ;;  %vm9124_vm7 = vcmp.eq.f32.partialorder %v9123_v27, 8.507059e+37 }
 0xfe3   : > { %v9102_v36 = vmul.f32 %v10158_v55, %v9101_v35  ;;  %v8610_v46 = vsub.f32 0.0, %v8578_v53 }
 0xfe5   : > { %v9103_v26 = vadd.f32 %v10158_v55, %v9102_v36  ;;  %v8671_v29 = vmul.f32 1.442695, %v8610_v46 }
 0xfe6   : > { %v10160_v4 = vpop.eup %10159  ;;  %v8508_v18 = vpop.f32.mrf.mxu0 }
 0xfe7   : > { %v10162_v61 = vpop.eup %10161  ;;  %v9107_v41 = vsel %vm9106_vm3, %v10158_v55, %v9103_v26  ;;  %v9115_v23 = vmul.f32 %v10160_v4, %v8704_v50  ;;  %v8544_v59 = vadd.f32 %v8508_v18, %v8262_v47  ;;  %10163 = vpow2.f32 %v8671_v29 }
 0xfe8   : > { %v9112_v38 = vsel %vm9109_vm4, %v9111_v12, %v9107_v41  ;;  %v8705_v1 = vadd.f32 1.0, %v10162_v61  ;;  %vm9120_vm5 = vweird.f32 %v10160_v4 }
 0xfe9   : > { %9215 = vst.msk [vmem:[%s15732_s2 + $0xd0] sm:$0xff] %vm1145_vm1, %v9112_v38  ;;  %v9116_v13 = vsub.f32 1.0, %v9115_v23  ;;  %v8579_v34 = vadd.f32 %v16115_v11, %v8544_v59  ;;  %vm9121_vm6 = vmor %vm9119_vm10, %vm9120_vm5 }
 0xfea   : > { %10165 = vrcp.f32 %v8705_v1  ;;  %v9140_v62 = vand.u32 2147483648, %v8705_v1  ;;  %v9138_v17 = vand.u32 2147483647, %v8705_v1  ;;  %vm9134_vm9 = vweird.f32 %v8705_v1 }
 0xfeb   : > { %v9117_v30 = vmul.f32 %v10160_v4, %v9116_v13  ;;  %v8611_v7 = vsub.f32 0.0, %v8579_v34 }
 0xfec   : > { %v9141_v51 = vor.u32 1.1754944e-38, %v9140_v62  ;;  %vm9139_vm12 = vcmp.eq.f32.partialorder %v9138_v17, 8.507059e+37 }
 0xfed   : > { %v9118_v37 = vadd.f32 %v10160_v4, %v9117_v30  ;;  %v10164_v24 = vpop.eup %10163  ;;  %v8673_v15 = vmul.f32 1.442695, %v8611_v7 }
 0xfee   : > { %v8511_v20 = vpop.f32.mrf.mxu0  ;;  %v8706_v16 = vadd.f32 1.0, %v10164_v24 }
 0xfef   : > { %v9122_v56 = vsel %vm9121_vm6, %v10160_v4, %v9118_v37  ;;  %v8545_v43 = vadd.f32 %v8511_v20, %v8263_v57  ;;  %10167 = vpow2.f32 %v8673_v15 }
 0xff0   : > { %v10166_v10 = vpop.eup %10165  ;;  %v9127_v14 = vsel %vm9124_vm7, %v9126_v40, %v9122_v56  ;;  %10169 = vrcp.f32 %v8706_v16  ;;  %v9155_v50 = vand.u32 2147483648, %v8706_v16  ;;  %v9153_v32 = vand.u32 2147483647, %v8706_v16 }
 0xff1   : > { %9216 = vst.msk [vmem:[%s15732_s2 + $0xd8] sm:$0xff] %vm1145_vm1, %v9127_v14  ;;  %v9130_v45 = vmul.f32 %v10166_v10, %v8705_v1  ;;  %v8580_v25 = vadd.f32 %v16115_v11, %v8545_v43  ;;  %vm9135_vm8 = vweird.f32 %v10166_v10  ;;  %vm9149_vm14 = vweird.f32 %v8706_v16 }
 0xff2   : > { %vm9136_vm11 = vmor %vm9134_vm9, %vm9135_vm8  ;;  %v9156_v35 = vor.u32 1.1754944e-38, %v9155_v50  ;;  %vm9154_vm0 = vcmp.eq.f32.partialorder %v9153_v32, 8.507059e+37 }
 0xff3   : > { %v9131_v42 = vsub.f32 1.0, %v9130_v45  ;;  %v8612_v60 = vsub.f32 0.0, %v8580_v25 }
 0xff5   : > { %v9132_v19 = vmul.f32 %v10166_v10, %v9131_v42  ;;  %v8675_v21 = vmul.f32 1.442695, %v8612_v60  ;;  %v10168_v0 = vpop.eup %10167 }
 0xff6   : > { %v10170_v33 = vpop.eup %10169  ;;  %v8707_v58 = vadd.f32 1.0, %v10168_v0 }
 0xff7   : > { %v9133_v39 = vadd.f32 %v10166_v10, %v9132_v19  ;;  %10171 = vpow2.f32 %v8675_v21  ;;  %v9145_v11 = vmul.f32 %v10170_v33, %v8706_v16  ;;  %vm9150_vm13 = vweird.f32 %v10170_v33 }
 0xff8   : > { %10173 = vrcp.f32 %v8707_v58  ;;  %vm9151_vm15 = vmor %vm9149_vm14, %vm9150_vm13  ;;  %v9170_v53 = vand.u32 2147483648, %v8707_v58  ;;  %v9168_v9 = vand.u32 2147483647, %v8707_v58  ;;  %vm9164_vm3 = vweird.f32 %v8707_v58 }
 0xff9   : > { %v9137_v8 = vsel %vm9136_vm11, %v10166_v10, %v9133_v39  ;;  %v9146_v49 = vsub.f32 1.0, %v9145_v11 }
 0xffa   : > { %v9142_v55 = vsel %vm9139_vm12, %v9141_v51, %v9137_v8  ;;  %v9171_v4 = vor.u32 1.1754944e-38, %v9170_v53  ;;  %vm9169_vm5 = vcmp.eq.f32.partialorder %v9168_v9, 8.507059e+37 }
 0xffb   : > { %9217 = vst.msk [vmem:[%s15732_s2 + $0xe0] sm:$0xff] %vm1145_vm1, %v9142_v55  ;;  %v9147_v2 = vmul.f32 %v10170_v33, %v9146_v49 }
 0xffd   : > { %v10172_v48 = vpop.eup %10171  ;;  %v9148_v44 = vadd.f32 %v10170_v33, %v9147_v2 }
 0xffe   : > { %v8708_v31 = vadd.f32 1.0, %v10172_v48  ;;  %v10174_v28 = vpop.eup %10173 }
 0xfff   : > { %v9152_v5 = vsel %vm9151_vm15, %v10170_v33, %v9148_v44  ;;  %v9160_v22 = vmul.f32 %v10174_v28, %v8707_v58  ;;  %vm9165_vm2 = vweird.f32 %v10174_v28 }
0x1000   : > { %10175 = vrcp.f32 %v8708_v31  ;;  %v9157_v36 = vsel %vm9154_vm0, %v9156_v35, %v9152_v5  ;;  %vm9166_vm4 = vmor %vm9164_vm3, %vm9165_vm2  ;;  %v9185_v61 = vand.u32 2147483648, %v8708_v31  ;;  %v9183_v23 = vand.u32 2147483647, %v8708_v31 }
0x1001   : > { %9218 = vst.msk [vmem:[%s15732_s2 + $0xe8] sm:$0xff] %vm1145_vm1, %v9157_v36  ;;  %v9161_v3 = vsub.f32 1.0, %v9160_v22  ;;  %vm9179_vm6 = vweird.f32 %v8708_v31 }
0x1002   : > { %v9186_v52 = vor.u32 1.1754944e-38, %v9185_v61  ;;  %vm9184_vm8 = vcmp.eq.f32.partialorder %v9183_v23, 8.507059e+37 }
0x1003   : > { %v9162_v63 = vmul.f32 %v10174_v28, %v9161_v3 }
0x1005   : > { %v9163_v26 = vadd.f32 %v10174_v28, %v9162_v63 }
0x1006   : > { %v10176_v47 = vpop.eup %10175 }
0x1007   : > { %v9175_v46 = vmul.f32 %v10176_v47, %v8708_v31  ;;  %v9167_v12 = vsel %vm9166_vm4, %v10174_v28, %v9163_v26  ;;  %vm9180_vm10 = vweird.f32 %v10176_v47 }
0x1008   : > { %v9172_v6 = vsel %vm9169_vm5, %v9171_v4, %v9167_v12  ;;  %vm9181_vm7 = vmor %vm9179_vm6, %vm9180_vm10 }
0x1009   : > { %v9176_v18 = vsub.f32 1.0, %v9175_v46  ;;  %9219 = vst.msk [vmem:[%s15732_s2 + $0xf0] sm:$0xff] %vm1145_vm1, %v9172_v6 }
0x100b   : > { %v9177_v41 = vmul.f32 %v10176_v47, %v9176_v18 }
0x100d   : > { %v9178_v29 = vadd.f32 %v10176_v47, %v9177_v41 }
0x100f   : > { %v9182_v38 = vsel %vm9181_vm7, %v10176_v47, %v9178_v29 }
0x1010   : > { %v9187_v1 = vsel %vm9184_vm8, %v9186_v52, %v9182_v38 }
0x1011   : > { %9220 = vst.msk [vmem:[%s15732_s2 + $0xf8] sm:$0xff] %vm1145_vm1, %v9187_v1 }
0x1012 PF: > { %s30_s1 = sadd.s32 1, %s10185_s1  }
0x1013   : > { %p27_p4 = scmp.ge.s32.totalorder %s30_s1, 4  }
0x1015   :  { %29 = sbr.rel (!%p27_p4) target bundleno = 6 (0x6), region = 130 }

</bundles_post_ra>
